<compile_context>
chip_gen: v6e
topology: v6e:2x2x1
jax: 0.10.0
libtpu: 0.0.40
codegen_flags: <defaults>
</compile_context>

<pallas_src>
import functools

import jax
import jax.numpy as jnp
from jax.experimental import pallas as pl
from jax.experimental.pallas import tpu as pltpu


_VMEM_LIMIT = 32 * 1024 * 1024  # safe on v5e/v6e (128 MiB phys) and v7x (64 MiB phys)


def _pick_tile(n, candidates):
    """Largest 128-multiple candidate tile that divides n, else the full extent."""
    for t in candidates:
        if n >= t and n % t == 0:
            return t
    return n


# ----------------------------- Pallas kernels ------------------------------ #

def _qkv_kernel(x_ref, wq_ref, wk_ref, wv_ref, bq_ref, bk_ref, bv_ref,
                q_ref, k_ref, v_ref):
    # x_ref: (C, TN) tile of x in native NCHW layout; transpose on-chip (XLU)
    # so no HBM transpose pass is needed.  Weights/biases are grid-invariant
    # (index_map always (0,0)) and stay resident in VMEM.
    xt = x_ref[...].T                                               # (TN, C)
    q_ref[...] = (jnp.dot(xt, wq_ref[...], preferred_element_type=jnp.float32)
                  + bq_ref[...]).astype(q_ref.dtype)
    k_ref[...] = (jnp.dot(xt, wk_ref[...], preferred_element_type=jnp.float32)
                  + bk_ref[...]).astype(k_ref.dtype)
    v_ref[...] = (jnp.dot(xt, wv_ref[...], preferred_element_type=jnp.float32)
                  + bv_ref[...]).astype(v_ref.dtype)


def _attention_kernel(q_ref, kt_ref, v_ref, o_ref, *, heads, scale):
    # q_ref : (TQ, heads*d)   head h occupies columns [h*d, (h+1)*d)
    # kt_ref: (heads, d, M)   == K^T per head (free layout from the pooling view)
    # v_ref : (heads, M, d)
    # o_ref : (TQ, heads*d)   lane-dense store
    tq, dd = q_ref.shape
    d = dd // heads
    outs = []
    for hd in range(heads):  # static, fully unrolled -> back-to-back MXU pushes
        q_h = q_ref[:, hd * d:(hd + 1) * d]                         # (TQ, d)
        s = jnp.dot(q_h, kt_ref[hd],
                    preferred_element_type=jnp.float32) * scale     # (TQ, M)
        s = s - jnp.max(s, axis=-1, keepdims=True)
        p = jnp.exp(s)
        l = jnp.sum(p, axis=-1, keepdims=True)                      # (TQ, 1)
        o_h = jnp.dot(p, v_ref[hd],
                      preferred_element_type=jnp.float32)           # (TQ, d)
        # Deferred normalization: TQ*d multiplies (not TQ*M divides); the
        # reciprocal runs on the EUP slot.
        outs.append(o_h * pl.reciprocal(l, approx=True))
    o_ref[...] = jnp.concatenate(outs, axis=-1).astype(o_ref.dtype)


def _out_proj_kernel(a_ref, w_ref, b_ref, x_ref, sc_ref, sh_ref, o_ref):
    # Output projection + fused residual.  The residual is bn(x) reinterpreted
    # flat as (N, C); since BN is affine we apply it here via per-(row, col)
    # scale/shift maps on raw x so bn(x) is never materialized in HBM.
    res = x_ref[...] * sc_ref[...] + sh_ref[...]
    o_ref[...] = (jnp.dot(a_ref[...], w_ref[...], preferred_element_type=jnp.float32)
                  + b_ref[...] + res).astype(o_ref.dtype)


# ----------------------------- pallas_call wrappers ------------------------ #

def pallas_qkv(x_cn, wq, wk, wv, bq, bk, bv, *, tile_n):
    B, C, N = x_cn.shape
    D = wq.shape[1]
    grid = (B, N // tile_n)
    w_spec = pl.BlockSpec((C, D), lambda bi, ni: (0, 0))
    b_spec = pl.BlockSpec((1, D), lambda bi, ni: (0, 0))
    out_spec = pl.BlockSpec((None, tile_n, D), lambda bi, ni: (bi, ni, 0))
    out_sds = jax.ShapeDtypeStruct((B, N, D), x_cn.dtype)
    return pl.pallas_call(
        _qkv_kernel,
        out_shape=(out_sds, out_sds, out_sds),
        grid=grid,
        in_specs=[
            pl.BlockSpec((None, C, tile_n), lambda bi, ni: (bi, 0, ni)),
            w_spec, w_spec, w_spec, b_spec, b_spec, b_spec,
        ],
        out_specs=(out_spec, out_spec, out_spec),
        compiler_params=pltpu.CompilerParams(
            dimension_semantics=("parallel", "parallel"),
            vmem_limit_bytes=_VMEM_LIMIT),
    )(x_cn, wq, wk, wv, bq, bk, bv)


def pallas_attention(q, k_t, v, scale, heads, *, tile_q):
    B, N, D = q.shape
    _, Hh, d, M = k_t.shape
    grid = (B, N // tile_q)
    kernel = functools.partial(_attention_kernel, heads=heads, scale=scale)
    return pl.pallas_call(
        kernel,
        out_shape=jax.ShapeDtypeStruct((B, N, D), q.dtype),
        grid=grid,
        in_specs=[
            pl.BlockSpec((None, tile_q, D), lambda bi, qi: (bi, qi, 0)),
            pl.BlockSpec((None, Hh, d, M), lambda bi, qi: (bi, 0, 0, 0)),
            pl.BlockSpec((None, Hh, M, d), lambda bi, qi: (bi, 0, 0, 0)),
        ],
        out_specs=pl.BlockSpec((None, tile_q, D), lambda bi, qi: (bi, qi, 0)),
        compiler_params=pltpu.CompilerParams(
            dimension_semantics=("parallel", "parallel"),
            vmem_limit_bytes=_VMEM_LIMIT),
    )(q, k_t, v)


def pallas_out_proj(attn, w, b, x_flat, sc, sh, *, tile_n):
    B, N, D = attn.shape
    C = w.shape[1]
    grid = (B, N // tile_n)
    return pl.pallas_call(
        _out_proj_kernel,
        out_shape=jax.ShapeDtypeStruct((B, N, C), attn.dtype),
        grid=grid,
        in_specs=[
            pl.BlockSpec((None, tile_n, D), lambda bi, ni: (bi, ni, 0)),
            pl.BlockSpec((D, C), lambda bi, ni: (0, 0)),
            pl.BlockSpec((1, C), lambda bi, ni: (0, 0)),
            pl.BlockSpec((None, tile_n, C), lambda bi, ni: (bi, ni, 0)),
            pl.BlockSpec((tile_n, C), lambda bi, ni: (ni, 0)),
            pl.BlockSpec((tile_n, C), lambda bi, ni: (ni, 0)),
        ],
        out_specs=pl.BlockSpec((None, tile_n, C), lambda bi, ni: (bi, ni, 0)),
        compiler_params=pltpu.CompilerParams(
            dimension_semantics=("parallel", "parallel"),
            vmem_limit_bytes=_VMEM_LIMIT),
    )(attn, w, b, x_flat, sc, sh)


# ----------------------------- parameter folding --------------------------- #

def prepare_params(params, eps=1e-5):
    """Fold BatchNorm (inference) into the projection weights, once per model."""
    s = params["bn_gamma"] / jnp.sqrt(params["bn_var"] + eps)        # (C,)
    t = params["bn_beta"] - params["bn_mean"] * s                    # (C,)

    def fold(w, b):
        return s[:, None] * w, (t @ w + b)[None, :]

    wq_f, bq_f = fold(params["wq"], params["bq"])
    wk_f, bk_f = fold(params["wk"], params["bk"])
    wv_f, bv_f = fold(params["wv"], params["bv"])
    return {
        "wq": wq_f, "bq": bq_f,
        "wk": wk_f, "bk": bk_f,
        "wv": wv_f, "bv": bv_f,
        "wo": params["wo"], "bo": params["bo"][None, :],
        "bn_scale": s, "bn_shift": t,
    }


# ----------------------------- E-MHSA forward ------------------------------ #

def e_mhsa_forward(x, fparams, *, heads, inner_dim, stride):
    b, c, h, w = x.shape
    N = h * w
    D = heads * inner_dim
    scale = inner_dim ** (-0.5)
    hp, wp = h // stride, w // stride
    M = hp * wp

    tile_lin = _pick_tile(N, (512, 256, 128))
    tile_q = _pick_tile(N, (256, 128))

    # x stays in NCHW; (b, C, N) is a free flat view.  BN is pre-folded into the
    # projection weights, and the tile transpose happens inside the kernel.
    x_cn = x.reshape(b, c, N)
    q_lin, k_lin, v_lin = pallas_qkv(
        x_cn, fparams["wq"], fparams["wk"], fparams["wv"],
        fparams["bq"], fparams["bk"], fparams["bv"], tile_n=tile_lin)

    # torch: k.view(b, D, h, w) (raw flat reinterpretation) -> AvgPool2d(stride)
    # -> rearrange 'b (head n) h w -> b head (h w) n'.  Keeping the pooled result
    # as (b, head, n, h*w) == K^T is a free reshape, so the QK^T matmul needs no
    # transpose.  The pooled tensors are stride^2 smaller than (b, N, D).
    # TODO(synk): the flat .view reinterpretation scatters sequence/channel
    # indices, which is not expressible as a rectangular BlockSpec, so the
    # pooling stays as a single XLA reduce pass instead of a Pallas kernel.
    def pool(t):
        t4 = t.reshape(b, D, h, w)
        tp = t4.reshape(b, D, hp, stride, wp, stride).mean(axis=(3, 5))
        return tp.reshape(b, heads, inner_dim, M)          # (b, H, d, M)

    k_t = pool(k_lin)                                      # == K^T per head
    v_heads = jnp.transpose(pool(v_lin), (0, 1, 3, 2))     # (b, H, M, d), small

    # All heads per query tile; reads/writes directly in the (b, N, D) layout.
    attn_seq = pallas_attention(q_lin, k_t, v_heads, scale, heads, tile_q=tile_q)

    # Residual: torch adds bn(x) after result.view(b, dim, h, w); in the sequence
    # layout that is bn(x) flat-reinterpreted as (b, N, c).  Apply BN inside the
    # output kernel via batch-independent (N, c) scale/shift maps on raw x.
    res_scale = jnp.repeat(fparams["bn_scale"], h * w).reshape(N, c)
    res_shift = jnp.repeat(fparams["bn_shift"], h * w).reshape(N, c)
    x_flat = x.reshape(b, N, c)                            # free flat view of NCHW

    out_seq = pallas_out_proj(attn_seq, fparams["wo"], fparams["bo"],
                              x_flat, res_scale, res_shift, tile_n=tile_lin)
    return out_seq.reshape(b, c, h, w)


# ----------------------------- pure-JAX reference -------------------------- #

def e_mhsa_reference(x, params, *, heads, inner_dim, stride):
    b, c, h, w = x.shape
    N = h * w
    D = heads * inner_dim
    scale = inner_dim ** (-0.5)
    eps = 1e-5
    inv_std = params["bn_gamma"] / jnp.sqrt(params["bn_var"] + eps)
    x_bn = (
        (x - params["bn_mean"][None, :, None, None]) * inv_std[None, :, None, None]
        + params["bn_beta"][None, :, None, None]
    )
    x_seq = jnp.transpose(x_bn.reshape(b, c, N), (0, 2, 1))
    q_lin = x_seq @ params["wq"] + params["bq"]
    k_lin = x_seq @ params["wk"] + params["bk"]
    v_lin = x_seq @ params["wv"] + params["bv"]
    q = jnp.transpose(q_lin.reshape(b, N, heads, inner_dim), (0, 2, 1, 3))
    hp, wp = h // stride, w // stride

    def pr(t):
        t4 = t.reshape(b, D, h, w)
        tp = t4.reshape(b, D, hp, stride, wp, stride).mean(axis=(3, 5))
        tp = tp.reshape(b, heads, inner_dim, hp, wp)
        return jnp.transpose(tp, (0, 1, 3, 4, 2)).reshape(b, heads, hp * wp, inner_dim)

    k = pr(k_lin)
    v = pr(v_lin)
    attn = jnp.einsum("bhid,bhjd->bhij", q, k) * scale
    attn = jax.nn.softmax(attn, axis=-1)
    result = jnp.einsum("bhij,bhjd->bhid", attn, v)
    result = jnp.transpose(result, (0, 2, 1, 3)).reshape(b, N, D)
    result = result @ params["wo"] + params["bo"]
    return result.reshape(b, c, h, w) + x_bn


# ----------------------------- main ----------------------------------------- #

if __name__ == "__main__":
    # Small but tiling-exercising shapes: N = 32*32 = 1024 rows, 4 heads of 32.
    B, DIM, H, W = 2, 64, 32, 32
    HEADS, INNER_DIM, STRIDE = 4, 32, 2
    D = HEADS * INNER_DIM

    key = jax.random.PRNGKey(0)
    keys = jax.random.split(key, 16)

    def init(k, shape, s=0.1):
        return jax.random.normal(k, shape, dtype=jnp.float32) * s

    params = {
        # BatchNorm2d(dim): gamma, beta, running_mean, running_var (eval mode)
        "bn_gamma": 1.0 + init(keys[0], (DIM,)),
        "bn_beta": init(keys[1], (DIM,)),
        "bn_mean": init(keys[2], (DIM,)),
        "bn_var": 0.5 + jnp.abs(init(keys[3], (DIM,))),
        # Linear weights stored as (in, out); bias (out,)
        "wq": init(keys[4], (DIM, D)),
        "bq": init(keys[5], (D,)),
        "wk": init(keys[6], (DIM, D)),
        "bk": init(keys[7], (D,)),
        "wv": init(keys[8], (DIM, D)),
        "bv": init(keys[9], (D,)),
        "wo": init(keys[10], (D, DIM)),
        "bo": init(keys[11], (DIM,)),
    }

    x = jax.random.normal(keys[12], (B, DIM, H, W), dtype=jnp.float32)

    fparams = prepare_params(params)   # BN fold + weight prep done once, not per call
    fwd = jax.jit(functools.partial(
        e_mhsa_forward, heads=HEADS, inner_dim=INNER_DIM, stride=STRIDE))

    out = jax.block_until_ready(fwd(x, fparams))
    ref = jax.block_until_ready(
        e_mhsa_reference(x, params, heads=HEADS, inner_dim=INNER_DIM, stride=STRIDE))

    assert out.shape == (B, DIM, H, W)
    max_err = jnp.max(jnp.abs(out - ref))
    # 2e-3 tolerance accounts for the EUP approximate-reciprocal softmax
    # normalization and BN weight folding (float reassociation).
    assert jnp.allclose(out, ref, atol=2e-3, rtol=2e-3), f"max abs err {max_err}"
    print("KERNEL_OK")
</pallas_src>

<mosaic_0001>
module attributes {stable_mosaic.version = 11 : i64} {
  func.func @_qkv_kernel(%arg0: i32, %arg1: i32, %arg2: memref<1x64x512xf32, #tpu.memory_space<vmem>>, %arg3: memref<64x128xf32, #tpu.memory_space<vmem>>, %arg4: memref<64x128xf32, #tpu.memory_space<vmem>>, %arg5: memref<64x128xf32, #tpu.memory_space<vmem>>, %arg6: memref<1x128xf32, #tpu.memory_space<vmem>>, %arg7: memref<1x128xf32, #tpu.memory_space<vmem>>, %arg8: memref<1x128xf32, #tpu.memory_space<vmem>>, %arg9: memref<1x512x128xf32, #tpu.memory_space<vmem>>, %arg10: memref<1x512x128xf32, #tpu.memory_space<vmem>>, %arg11: memref<1x512x128xf32, #tpu.memory_space<vmem>>) attributes {dimension_semantics = [#tpu.dimension_semantics<parallel>, #tpu.dimension_semantics<parallel>], iteration_bounds = array<i64: 2, 2>, scalar_prefetch = 0 : i64, scratch_operands = 0 : i64, tpu.core_type = #tpu.core_type<tc>, window_params = [{transform_indices = @transform_0, window_bounds = array<i64: 1, 64, 512>}, {pipeline_mode = #tpu.pipeline_mode<synchronous>, transform_indices = @transform_1, window_bounds = array<i64: 64, 128>}, {pipeline_mode = #tpu.pipeline_mode<synchronous>, transform_indices = @transform_2, window_bounds = array<i64: 64, 128>}, {pipeline_mode = #tpu.pipeline_mode<synchronous>, transform_indices = @transform_3, window_bounds = array<i64: 64, 128>}, {pipeline_mode = #tpu.pipeline_mode<synchronous>, transform_indices = @transform_4, window_bounds = array<i64: 1, 128>}, {pipeline_mode = #tpu.pipeline_mode<synchronous>, transform_indices = @transform_5, window_bounds = array<i64: 1, 128>}, {pipeline_mode = #tpu.pipeline_mode<synchronous>, transform_indices = @transform_6, window_bounds = array<i64: 1, 128>}, {transform_indices = @transform_7, window_bounds = array<i64: 1, 512, 128>}, {transform_indices = @transform_8, window_bounds = array<i64: 1, 512, 128>}, {transform_indices = @transform_9, window_bounds = array<i64: 1, 512, 128>}]} {
    %c0 = arith.constant 0 : index
    %c0_0 = arith.constant 0 : index
    %c0_1 = arith.constant 0 : index
    %0 = vector.load %arg2[%c0, %c0_0, %c0_1] : memref<1x64x512xf32, #tpu.memory_space<vmem>>, vector<1x64x512xf32>
    %1 = vector.shape_cast %0 : vector<1x64x512xf32> to vector<64x512xf32>
    %2 = tpu.transpose %1, [1, 0] : vector<64x512xf32> -> vector<512x64xf32>
    %c0_2 = arith.constant 0 : index
    %c0_3 = arith.constant 0 : index
    %3 = vector.load %arg3[%c0_2, %c0_3] : memref<64x128xf32, #tpu.memory_space<vmem>>, vector<64x128xf32>
    %cst = arith.constant dense<0.000000e+00> : vector<512x128xf32>
    %4 = tpu.matmul %2, %3, %cst {dimension_numbers = #tpu.dot_dimension_numbers<[1], [0], [0], [1], [0, 0, 1, 1], [], []>} : vector<512x64xf32>, vector<64x128xf32>, vector<512x128xf32> -> vector<512x128xf32>
    %c0_4 = arith.constant 0 : index
    %c0_5 = arith.constant 0 : index
    %5 = vector.load %arg6[%c0_4, %c0_5] : memref<1x128xf32, #tpu.memory_space<vmem>>, vector<1x128xf32>
    %6 = vector.broadcast %5 : vector<1x128xf32> to vector<512x128xf32>
    %7 = arith.addf %4, %6 : vector<512x128xf32>
    %c0_6 = arith.constant 0 : index
    %c0_7 = arith.constant 0 : index
    %c0_8 = arith.constant 0 : index
    %8 = vector.load %arg9[%c0_6, %c0_7, %c0_8] : memref<1x512x128xf32, #tpu.memory_space<vmem>>, vector<1x512x128xf32>
    %9 = vector.shape_cast %8 : vector<1x512x128xf32> to vector<512x128xf32>
    %10 = vector.shape_cast %7 : vector<512x128xf32> to vector<1x512x128xf32>
    tpu.vector_store %arg9[%c0_6, %c0_7, %c0_8], %10 {strides = array<i32>} : memref<1x512x128xf32, #tpu.memory_space<vmem>>, vector<1x512x128xf32>,
    %c0_9 = arith.constant 0 : index
    %c0_10 = arith.constant 0 : index
    %11 = vector.load %arg4[%c0_9, %c0_10] : memref<64x128xf32, #tpu.memory_space<vmem>>, vector<64x128xf32>
    %cst_11 = arith.constant dense<0.000000e+00> : vector<512x128xf32>
    %12 = tpu.matmul %2, %11, %cst_11 {dimension_numbers = #tpu.dot_dimension_numbers<[1], [0], [0], [1], [0, 0, 1, 1], [], []>} : vector<512x64xf32>, vector<64x128xf32>, vector<512x128xf32> -> vector<512x128xf32>
    %c0_12 = arith.constant 0 : index
    %c0_13 = arith.constant 0 : index
    %13 = vector.load %arg7[%c0_12, %c0_13] : memref<1x128xf32, #tpu.memory_space<vmem>>, vector<1x128xf32>
    %14 = vector.broadcast %13 : vector<1x128xf32> to vector<512x128xf32>
    %15 = arith.addf %12, %14 : vector<512x128xf32>
    %c0_14 = arith.constant 0 : index
    %c0_15 = arith.constant 0 : index
    %c0_16 = arith.constant 0 : index
    %16 = vector.load %arg10[%c0_14, %c0_15, %c0_16] : memref<1x512x128xf32, #tpu.memory_space<vmem>>, vector<1x512x128xf32>
    %17 = vector.shape_cast %16 : vector<1x512x128xf32> to vector<512x128xf32>
    %18 = vector.shape_cast %15 : vector<512x128xf32> to vector<1x512x128xf32>
    tpu.vector_store %arg10[%c0_14, %c0_15, %c0_16], %18 {strides = array<i32>} : memref<1x512x128xf32, #tpu.memory_space<vmem>>, vector<1x512x128xf32>,
    %c0_17 = arith.constant 0 : index
    %c0_18 = arith.constant 0 : index
    %19 = vector.load %arg5[%c0_17, %c0_18] : memref<64x128xf32, #tpu.memory_space<vmem>>, vector<64x128xf32>
    %cst_19 = arith.constant dense<0.000000e+00> : vector<512x128xf32>
    %20 = tpu.matmul %2, %19, %cst_19 {dimension_numbers = #tpu.dot_dimension_numbers<[1], [0], [0], [1], [0, 0, 1, 1], [], []>} : vector<512x64xf32>, vector<64x128xf32>, vector<512x128xf32> -> vector<512x128xf32>
    %c0_20 = arith.constant 0 : index
    %c0_21 = arith.constant 0 : index
    %21 = vector.load %arg8[%c0_20, %c0_21] : memref<1x128xf32, #tpu.memory_space<vmem>>, vector<1x128xf32>
    %22 = vector.broadcast %21 : vector<1x128xf32> to vector<512x128xf32>
    %23 = arith.addf %20, %22 : vector<512x128xf32>
    %c0_22 = arith.constant 0 : index
    %c0_23 = arith.constant 0 : index
    %c0_24 = arith.constant 0 : index
    %24 = vector.load %arg11[%c0_22, %c0_23, %c0_24] : memref<1x512x128xf32, #tpu.memory_space<vmem>>, vector<1x512x128xf32>
    %25 = vector.shape_cast %24 : vector<1x512x128xf32> to vector<512x128xf32>
    %26 = vector.shape_cast %23 : vector<512x128xf32> to vector<1x512x128xf32>
    tpu.vector_store %arg11[%c0_22, %c0_23, %c0_24], %26 {strides = array<i32>} : memref<1x512x128xf32, #tpu.memory_space<vmem>>, vector<1x512x128xf32>,
    return
  }
  func.func @transform_0(%arg0: i32, %arg1: i32) -> (i32, i32, i32) {
    %c0_i32 = arith.constant 0 : i32
    %c0_i32_0 = arith.constant 0 : i32
    return %arg0, %c0_i32, %arg1 : i32, i32, i32
  }
  func.func @transform_1(%arg0: i32, %arg1: i32) -> (i32, i32) {
    %c0_i32 = arith.constant 0 : i32
    %c0_i32_0 = arith.constant 0 : i32
    %c0_i32_1 = arith.constant 0 : i32
    return %c0_i32, %c0_i32_0 : i32, i32
  }
  func.func @transform_2(%arg0: i32, %arg1: i32) -> (i32, i32) {
    %c0_i32 = arith.constant 0 : i32
    %c0_i32_0 = arith.constant 0 : i32
    %c0_i32_1 = arith.constant 0 : i32
    return %c0_i32, %c0_i32_0 : i32, i32
  }
  func.func @transform_3(%arg0: i32, %arg1: i32) -> (i32, i32) {
    %c0_i32 = arith.constant 0 : i32
    %c0_i32_0 = arith.constant 0 : i32
    %c0_i32_1 = arith.constant 0 : i32
    return %c0_i32, %c0_i32_0 : i32, i32
  }
  func.func @transform_4(%arg0: i32, %arg1: i32) -> (i32, i32) {
    %c0_i32 = arith.constant 0 : i32
    %c0_i32_0 = arith.constant 0 : i32
    %c0_i32_1 = arith.constant 0 : i32
    return %c0_i32, %c0_i32_0 : i32, i32
  }
  func.func @transform_5(%arg0: i32, %arg1: i32) -> (i32, i32) {
    %c0_i32 = arith.constant 0 : i32
    %c0_i32_0 = arith.constant 0 : i32
    %c0_i32_1 = arith.constant 0 : i32
    return %c0_i32, %c0_i32_0 : i32, i32
  }
  func.func @transform_6(%arg0: i32, %arg1: i32) -> (i32, i32) {
    %c0_i32 = arith.constant 0 : i32
    %c0_i32_0 = arith.constant 0 : i32
    %c0_i32_1 = arith.constant 0 : i32
    return %c0_i32, %c0_i32_0 : i32, i32
  }
  func.func @transform_7(%arg0: i32, %arg1: i32) -> (i32, i32, i32) {
    %c0_i32 = arith.constant 0 : i32
    %c0_i32_0 = arith.constant 0 : i32
    return %arg0, %arg1, %c0_i32 : i32, i32, i32
  }
  func.func @transform_8(%arg0: i32, %arg1: i32) -> (i32, i32, i32) {
    %c0_i32 = arith.constant 0 : i32
    %c0_i32_0 = arith.constant 0 : i32
    return %arg0, %arg1, %c0_i32 : i32, i32, i32
  }
  func.func @transform_9(%arg0: i32, %arg1: i32) -> (i32, i32, i32) {
    %c0_i32 = arith.constant 0 : i32
    %c0_i32_0 = arith.constant 0 : i32
    return %arg0, %arg1, %c0_i32 : i32, i32, i32
  }
}

module attributes {stable_mosaic.version = 11 : i64} {
  func.func @_attention_kernel(%arg0: i32, %arg1: i32, %arg2: memref<1x256x128xf32, #tpu.memory_space<vmem>>, %arg3: memref<1x4x32x256xf32, #tpu.memory_space<vmem>>, %arg4: memref<1x4x256x32xf32, #tpu.memory_space<vmem>>, %arg5: memref<1x256x128xf32, #tpu.memory_space<vmem>>) attributes {dimension_semantics = [#tpu.dimension_semantics<parallel>, #tpu.dimension_semantics<parallel>], iteration_bounds = array<i64: 2, 4>, scalar_prefetch = 0 : i64, scratch_operands = 0 : i64, tpu.core_type = #tpu.core_type<tc>, window_params = [{transform_indices = @transform_0, window_bounds = array<i64: 1, 256, 128>}, {transform_indices = @transform_1, window_bounds = array<i64: 1, 4, 32, 256>}, {transform_indices = @transform_2, window_bounds = array<i64: 1, 4, 256, 32>}, {transform_indices = @transform_3, window_bounds = array<i64: 1, 256, 128>}]} {
    %c0 = arith.constant 0 : index
    %c0_0 = arith.constant 0 : index
    %c0_1 = arith.constant 0 : index
    %0 = vector.load %arg2[%c0, %c0_0, %c0_1] : memref<1x256x128xf32, #tpu.memory_space<vmem>>, vector<1x256x32xf32>
    %1 = vector.shape_cast %0 : vector<1x256x32xf32> to vector<256x32xf32>
    %c0_2 = arith.constant 0 : index
    %c0_3 = arith.constant 0 : index
    %c0_4 = arith.constant 0 : index
    %c0_5 = arith.constant 0 : index
    %2 = vector.load %arg3[%c0_2, %c0_3, %c0_4, %c0_5] : memref<1x4x32x256xf32, #tpu.memory_space<vmem>>, vector<1x1x32x256xf32>
    %3 = vector.shape_cast %2 : vector<1x1x32x256xf32> to vector<32x256xf32>
    %cst = arith.constant dense<0.000000e+00> : vector<256x256xf32>
    %4 = tpu.matmul %1, %3, %cst {dimension_numbers = #tpu.dot_dimension_numbers<[1], [0], [0], [1], [0, 0, 1, 1], [], []>} : vector<256x32xf32>, vector<32x256xf32>, vector<256x256xf32> -> vector<256x256xf32>
    %cst_6 = arith.constant 0.176776692 : f32
    %5 = vector.broadcast %cst_6 : f32 to vector<256x256xf32>
    %6 = arith.mulf %4, %5 : vector<256x256xf32>
    %cst_7 = arith.constant dense<0xFF800000> : vector<256xf32>
    %7 = vector.multi_reduction <maximumf>, %6, %cst_7 [1] : vector<256x256xf32> to vector<256xf32>
    %8 = vector.shape_cast %7 : vector<256xf32> to vector<256x1xf32>
    %9 = vector.broadcast %8 : vector<256x1xf32> to vector<256x256xf32>
    %10 = arith.subf %6, %9 : vector<256x256xf32>
    %11 = math.exp %10 : vector<256x256xf32>
    %cst_8 = arith.constant dense<0.000000e+00> : vector<256xf32>
    %12 = vector.multi_reduction <add>, %11, %cst_8 [1] : vector<256x256xf32> to vector<256xf32>
    %13 = vector.shape_cast %12 : vector<256xf32> to vector<256x1xf32>
    %c0_9 = arith.constant 0 : index
    %c0_10 = arith.constant 0 : index
    %c0_11 = arith.constant 0 : index
    %c0_12 = arith.constant 0 : index
    %14 = vector.load %arg4[%c0_9, %c0_10, %c0_11, %c0_12] : memref<1x4x256x32xf32, #tpu.memory_space<vmem>>, vector<1x1x256x32xf32>
    %15 = vector.shape_cast %14 : vector<1x1x256x32xf32> to vector<256x32xf32>
    %cst_13 = arith.constant dense<0.000000e+00> : vector<256x32xf32>
    %16 = tpu.matmul %11, %15, %cst_13 {dimension_numbers = #tpu.dot_dimension_numbers<[1], [0], [0], [1], [0, 0, 1, 1], [], []>} : vector<256x256xf32>, vector<256x32xf32>, vector<256x32xf32> -> vector<256x32xf32>
    %17 = tpu.reciprocal %13 {approx = true} : vector<256x1xf32> -> vector<256x1xf32>
    %18 = vector.broadcast %17 : vector<256x1xf32> to vector<256x32xf32>
    %19 = arith.mulf %16, %18 : vector<256x32xf32>
    %c0_14 = arith.constant 0 : index
    %c0_15 = arith.constant 0 : index
    %c32 = arith.constant 32 : index
    %20 = vector.load %arg2[%c0_14, %c0_15, %c32] : memref<1x256x128xf32, #tpu.memory_space<vmem>>, vector<1x256x32xf32>
    %21 = vector.shape_cast %20 : vector<1x256x32xf32> to vector<256x32xf32>
    %c0_16 = arith.constant 0 : index
    %c1 = arith.constant 1 : index
    %c0_17 = arith.constant 0 : index
    %c0_18 = arith.constant 0 : index
    %22 = vector.load %arg3[%c0_16, %c1, %c0_17, %c0_18] : memref<1x4x32x256xf32, #tpu.memory_space<vmem>>, vector<1x1x32x256xf32>
    %23 = vector.shape_cast %22 : vector<1x1x32x256xf32> to vector<32x256xf32>
    %cst_19 = arith.constant dense<0.000000e+00> : vector<256x256xf32>
    %24 = tpu.matmul %21, %23, %cst_19 {dimension_numbers = #tpu.dot_dimension_numbers<[1], [0], [0], [1], [0, 0, 1, 1], [], []>} : vector<256x32xf32>, vector<32x256xf32>, vector<256x256xf32> -> vector<256x256xf32>
    %cst_20 = arith.constant 0.176776692 : f32
    %25 = vector.broadcast %cst_20 : f32 to vector<256x256xf32>
    %26 = arith.mulf %24, %25 : vector<256x256xf32>
    %cst_21 = arith.constant dense<0xFF800000> : vector<256xf32>
    %27 = vector.multi_reduction <maximumf>, %26, %cst_21 [1] : vector<256x256xf32> to vector<256xf32>
    %28 = vector.shape_cast %27 : vector<256xf32> to vector<256x1xf32>
    %29 = vector.broadcast %28 : vector<256x1xf32> to vector<256x256xf32>
    %30 = arith.subf %26, %29 : vector<256x256xf32>
    %31 = math.exp %30 : vector<256x256xf32>
    %cst_22 = arith.constant dense<0.000000e+00> : vector<256xf32>
    %32 = vector.multi_reduction <add>, %31, %cst_22 [1] : vector<256x256xf32> to vector<256xf32>
    %33 = vector.shape_cast %32 : vector<256xf32> to vector<256x1xf32>
    %c0_23 = arith.constant 0 : index
    %c1_24 = arith.constant 1 : index
    %c0_25 = arith.constant 0 : index
    %c0_26 = arith.constant 0 : index
    %34 = vector.load %arg4[%c0_23, %c1_24, %c0_25, %c0_26] : memref<1x4x256x32xf32, #tpu.memory_space<vmem>>, vector<1x1x256x32xf32>
    %35 = vector.shape_cast %34 : vector<1x1x256x32xf32> to vector<256x32xf32>
    %cst_27 = arith.constant dense<0.000000e+00> : vector<256x32xf32>
    %36 = tpu.matmul %31, %35, %cst_27 {dimension_numbers = #tpu.dot_dimension_numbers<[1], [0], [0], [1], [0, 0, 1, 1], [], []>} : vector<256x256xf32>, vector<256x32xf32>, vector<256x32xf32> -> vector<256x32xf32>
    %37 = tpu.reciprocal %33 {approx = true} : vector<256x1xf32> -> vector<256x1xf32>
    %38 = vector.broadcast %37 : vector<256x1xf32> to vector<256x32xf32>
    %39 = arith.mulf %36, %38 : vector<256x32xf32>
    %c0_28 = arith.constant 0 : index
    %c0_29 = arith.constant 0 : index
    %c64 = arith.constant 64 : index
    %40 = vector.load %arg2[%c0_28, %c0_29, %c64] : memref<1x256x128xf32, #tpu.memory_space<vmem>>, vector<1x256x32xf32>
    %41 = vector.shape_cast %40 : vector<1x256x32xf32> to vector<256x32xf32>
    %c0_30 = arith.constant 0 : index
    %c2 = arith.constant 2 : index
    %c0_31 = arith.constant 0 : index
    %c0_32 = arith.constant 0 : index
    %42 = vector.load %arg3[%c0_30, %c2, %c0_31, %c0_32] : memref<1x4x32x256xf32, #tpu.memory_space<vmem>>, vector<1x1x32x256xf32>
    %43 = vector.shape_cast %42 : vector<1x1x32x256xf32> to vector<32x256xf32>
    %cst_33 = arith.constant dense<0.000000e+00> : vector<256x256xf32>
    %44 = tpu.matmul %41, %43, %cst_33 {dimension_numbers = #tpu.dot_dimension_numbers<[1], [0], [0], [1], [0, 0, 1, 1], [], []>} : vector<256x32xf32>, vector<32x256xf32>, vector<256x256xf32> -> vector<256x256xf32>
    %cst_34 = arith.constant 0.176776692 : f32
    %45 = vector.broadcast %cst_34 : f32 to vector<256x256xf32>
    %46 = arith.mulf %44, %45 : vector<256x256xf32>
    %cst_35 = arith.constant dense<0xFF800000> : vector<256xf32>
    %47 = vector.multi_reduction <maximumf>, %46, %cst_35 [1] : vector<256x256xf32> to vector<256xf32>
    %48 = vector.shape_cast %47 : vector<256xf32> to vector<256x1xf32>
    %49 = vector.broadcast %48 : vector<256x1xf32> to vector<256x256xf32>
    %50 = arith.subf %46, %49 : vector<256x256xf32>
    %51 = math.exp %50 : vector<256x256xf32>
    %cst_36 = arith.constant dense<0.000000e+00> : vector<256xf32>
    %52 = vector.multi_reduction <add>, %51, %cst_36 [1] : vector<256x256xf32> to vector<256xf32>
    %53 = vector.shape_cast %52 : vector<256xf32> to vector<256x1xf32>
    %c0_37 = arith.constant 0 : index
    %c2_38 = arith.constant 2 : index
    %c0_39 = arith.constant 0 : index
    %c0_40 = arith.constant 0 : index
    %54 = vector.load %arg4[%c0_37, %c2_38, %c0_39, %c0_40] : memref<1x4x256x32xf32, #tpu.memory_space<vmem>>, vector<1x1x256x32xf32>
    %55 = vector.shape_cast %54 : vector<1x1x256x32xf32> to vector<256x32xf32>
    %cst_41 = arith.constant dense<0.000000e+00> : vector<256x32xf32>
    %56 = tpu.matmul %51, %55, %cst_41 {dimension_numbers = #tpu.dot_dimension_numbers<[1], [0], [0], [1], [0, 0, 1, 1], [], []>} : vector<256x256xf32>, vector<256x32xf32>, vector<256x32xf32> -> vector<256x32xf32>
    %57 = tpu.reciprocal %53 {approx = true} : vector<256x1xf32> -> vector<256x1xf32>
    %58 = vector.broadcast %57 : vector<256x1xf32> to vector<256x32xf32>
    %59 = arith.mulf %56, %58 : vector<256x32xf32>
    %c0_42 = arith.constant 0 : index
    %c0_43 = arith.constant 0 : index
    %c96 = arith.constant 96 : index
    %60 = vector.load %arg2[%c0_42, %c0_43, %c96] : memref<1x256x128xf32, #tpu.memory_space<vmem>>, vector<1x256x32xf32>
    %61 = vector.shape_cast %60 : vector<1x256x32xf32> to vector<256x32xf32>
    %c0_44 = arith.constant 0 : index
    %c3 = arith.constant 3 : index
    %c0_45 = arith.constant 0 : index
    %c0_46 = arith.constant 0 : index
    %62 = vector.load %arg3[%c0_44, %c3, %c0_45, %c0_46] : memref<1x4x32x256xf32, #tpu.memory_space<vmem>>, vector<1x1x32x256xf32>
    %63 = vector.shape_cast %62 : vector<1x1x32x256xf32> to vector<32x256xf32>
    %cst_47 = arith.constant dense<0.000000e+00> : vector<256x256xf32>
    %64 = tpu.matmul %61, %63, %cst_47 {dimension_numbers = #tpu.dot_dimension_numbers<[1], [0], [0], [1], [0, 0, 1, 1], [], []>} : vector<256x32xf32>, vector<32x256xf32>, vector<256x256xf32> -> vector<256x256xf32>
    %cst_48 = arith.constant 0.176776692 : f32
    %65 = vector.broadcast %cst_48 : f32 to vector<256x256xf32>
    %66 = arith.mulf %64, %65 : vector<256x256xf32>
    %cst_49 = arith.constant dense<0xFF800000> : vector<256xf32>
    %67 = vector.multi_reduction <maximumf>, %66, %cst_49 [1] : vector<256x256xf32> to vector<256xf32>
    %68 = vector.shape_cast %67 : vector<256xf32> to vector<256x1xf32>
    %69 = vector.broadcast %68 : vector<256x1xf32> to vector<256x256xf32>
    %70 = arith.subf %66, %69 : vector<256x256xf32>
    %71 = math.exp %70 : vector<256x256xf32>
    %cst_50 = arith.constant dense<0.000000e+00> : vector<256xf32>
    %72 = vector.multi_reduction <add>, %71, %cst_50 [1] : vector<256x256xf32> to vector<256xf32>
    %73 = vector.shape_cast %72 : vector<256xf32> to vector<256x1xf32>
    %c0_51 = arith.constant 0 : index
    %c3_52 = arith.constant 3 : index
    %c0_53 = arith.constant 0 : index
    %c0_54 = arith.constant 0 : index
    %74 = vector.load %arg4[%c0_51, %c3_52, %c0_53, %c0_54] : memref<1x4x256x32xf32, #tpu.memory_space<vmem>>, vector<1x1x256x32xf32>
    %75 = vector.shape_cast %74 : vector<1x1x256x32xf32> to vector<256x32xf32>
    %cst_55 = arith.constant dense<0.000000e+00> : vector<256x32xf32>
    %76 = tpu.matmul %71, %75, %cst_55 {dimension_numbers = #tpu.dot_dimension_numbers<[1], [0], [0], [1], [0, 0, 1, 1], [], []>} : vector<256x256xf32>, vector<256x32xf32>, vector<256x32xf32> -> vector<256x32xf32>
    %77 = tpu.reciprocal %73 {approx = true} : vector<256x1xf32> -> vector<256x1xf32>
    %78 = vector.broadcast %77 : vector<256x1xf32> to vector<256x32xf32>
    %79 = arith.mulf %76, %78 : vector<256x32xf32>
    %80 = tpu.concatenate %19, %39, %59, %79 in 1 : vector<256x32xf32>, vector<256x32xf32>, vector<256x32xf32>, vector<256x32xf32> -> vector<256x128xf32>
    %c0_56 = arith.constant 0 : index
    %c0_57 = arith.constant 0 : index
    %c0_58 = arith.constant 0 : index
    %81 = vector.load %arg5[%c0_56, %c0_57, %c0_58] : memref<1x256x128xf32, #tpu.memory_space<vmem>>, vector<1x256x128xf32>
    %82 = vector.shape_cast %81 : vector<1x256x128xf32> to vector<256x128xf32>
    %83 = vector.shape_cast %80 : vector<256x128xf32> to vector<1x256x128xf32>
    tpu.vector_store %arg5[%c0_56, %c0_57, %c0_58], %83 {strides = array<i32>} : memref<1x256x128xf32, #tpu.memory_space<vmem>>, vector<1x256x128xf32>,
    return
  }
  func.func @transform_0(%arg0: i32, %arg1: i32) -> (i32, i32, i32) {
    %c0_i32 = arith.constant 0 : i32
    %c0_i32_0 = arith.constant 0 : i32
    return %arg0, %arg1, %c0_i32 : i32, i32, i32
  }
  func.func @transform_1(%arg0: i32, %arg1: i32) -> (i32, i32, i32, i32) {
    %c0_i32 = arith.constant 0 : i32
    %c0_i32_0 = arith.constant 0 : i32
    %c0_i32_1 = arith.constant 0 : i32
    %c0_i32_2 = arith.constant 0 : i32
    return %arg0, %c0_i32, %c0_i32_0, %c0_i32_1 : i32, i32, i32, i32
  }
  func.func @transform_2(%arg0: i32, %arg1: i32) -> (i32, i32, i32, i32) {
    %c0_i32 = arith.constant 0 : i32
    %c0_i32_0 = arith.constant 0 : i32
    %c0_i32_1 = arith.constant 0 : i32
    %c0_i32_2 = arith.constant 0 : i32
    return %arg0, %c0_i32, %c0_i32_0, %c0_i32_1 : i32, i32, i32, i32
  }
  func.func @transform_3(%arg0: i32, %arg1: i32) -> (i32, i32, i32) {
    %c0_i32 = arith.constant 0 : i32
    %c0_i32_0 = arith.constant 0 : i32
    return %arg0, %arg1, %c0_i32 : i32, i32, i32
  }
}

module attributes {stable_mosaic.version = 11 : i64} {
  func.func @_out_proj_kernel(%arg0: i32, %arg1: i32, %arg2: memref<1x512x128xf32, #tpu.memory_space<vmem>>, %arg3: memref<128x64xf32, #tpu.memory_space<vmem>>, %arg4: memref<1x64xf32, #tpu.memory_space<vmem>>, %arg5: memref<1x512x64xf32, #tpu.memory_space<vmem>>, %arg6: memref<512x64xf32, #tpu.memory_space<vmem>>, %arg7: memref<512x64xf32, #tpu.memory_space<vmem>>, %arg8: memref<1x512x64xf32, #tpu.memory_space<vmem>>) attributes {dimension_semantics = [#tpu.dimension_semantics<parallel>, #tpu.dimension_semantics<parallel>], iteration_bounds = array<i64: 2, 2>, scalar_prefetch = 0 : i64, scratch_operands = 0 : i64, tpu.core_type = #tpu.core_type<tc>, window_params = [{transform_indices = @transform_0, window_bounds = array<i64: 1, 512, 128>}, {pipeline_mode = #tpu.pipeline_mode<synchronous>, transform_indices = @transform_1, window_bounds = array<i64: 128, 64>}, {pipeline_mode = #tpu.pipeline_mode<synchronous>, transform_indices = @transform_2, window_bounds = array<i64: 1, 64>}, {transform_indices = @transform_3, window_bounds = array<i64: 1, 512, 64>}, {transform_indices = @transform_4, window_bounds = array<i64: 512, 64>}, {transform_indices = @transform_5, window_bounds = array<i64: 512, 64>}, {transform_indices = @transform_6, window_bounds = array<i64: 1, 512, 64>}]} {
    %c0 = arith.constant 0 : index
    %c0_0 = arith.constant 0 : index
    %c0_1 = arith.constant 0 : index
    %0 = vector.load %arg5[%c0, %c0_0, %c0_1] : memref<1x512x64xf32, #tpu.memory_space<vmem>>, vector<1x512x64xf32>
    %1 = vector.shape_cast %0 : vector<1x512x64xf32> to vector<512x64xf32>
    %c0_2 = arith.constant 0 : index
    %c0_3 = arith.constant 0 : index
    %2 = vector.load %arg6[%c0_2, %c0_3] : memref<512x64xf32, #tpu.memory_space<vmem>>, vector<512x64xf32>
    %3 = arith.mulf %1, %2 : vector<512x64xf32>
    %c0_4 = arith.constant 0 : index
    %c0_5 = arith.constant 0 : index
    %4 = vector.load %arg7[%c0_4, %c0_5] : memref<512x64xf32, #tpu.memory_space<vmem>>, vector<512x64xf32>
    %5 = arith.addf %3, %4 : vector<512x64xf32>
    %c0_6 = arith.constant 0 : index
    %c0_7 = arith.constant 0 : index
    %c0_8 = arith.constant 0 : index
    %6 = vector.load %arg2[%c0_6, %c0_7, %c0_8] : memref<1x512x128xf32, #tpu.memory_space<vmem>>, vector<1x512x128xf32>
    %7 = vector.shape_cast %6 : vector<1x512x128xf32> to vector<512x128xf32>
    %c0_9 = arith.constant 0 : index
    %c0_10 = arith.constant 0 : index
    %8 = vector.load %arg3[%c0_9, %c0_10] : memref<128x64xf32, #tpu.memory_space<vmem>>, vector<128x64xf32>
    %cst = arith.constant dense<0.000000e+00> : vector<512x64xf32>
    %9 = tpu.matmul %7, %8, %cst {dimension_numbers = #tpu.dot_dimension_numbers<[1], [0], [0], [1], [0, 0, 1, 1], [], []>} : vector<512x128xf32>, vector<128x64xf32>, vector<512x64xf32> -> vector<512x64xf32>
    %c0_11 = arith.constant 0 : index
    %c0_12 = arith.constant 0 : index
    %10 = vector.load %arg4[%c0_11, %c0_12] : memref<1x64xf32, #tpu.memory_space<vmem>>, vector<1x64xf32>
    %11 = vector.broadcast %10 : vector<1x64xf32> to vector<512x64xf32>
    %12 = arith.addf %9, %11 : vector<512x64xf32>
    %13 = arith.addf %12, %5 : vector<512x64xf32>
    %c0_13 = arith.constant 0 : index
    %c0_14 = arith.constant 0 : index
    %c0_15 = arith.constant 0 : index
    %14 = vector.load %arg8[%c0_13, %c0_14, %c0_15] : memref<1x512x64xf32, #tpu.memory_space<vmem>>, vector<1x512x64xf32>
    %15 = vector.shape_cast %14 : vector<1x512x64xf32> to vector<512x64xf32>
    %16 = vector.shape_cast %13 : vector<512x64xf32> to vector<1x512x64xf32>
    tpu.vector_store %arg8[%c0_13, %c0_14, %c0_15], %16 {strides = array<i32>} : memref<1x512x64xf32, #tpu.memory_space<vmem>>, vector<1x512x64xf32>,
    return
  }
  func.func @transform_0(%arg0: i32, %arg1: i32) -> (i32, i32, i32) {
    %c0_i32 = arith.constant 0 : i32
    %c0_i32_0 = arith.constant 0 : i32
    return %arg0, %arg1, %c0_i32 : i32, i32, i32
  }
  func.func @transform_1(%arg0: i32, %arg1: i32) -> (i32, i32) {
    %c0_i32 = arith.constant 0 : i32
    %c0_i32_0 = arith.constant 0 : i32
    %c0_i32_1 = arith.constant 0 : i32
    return %c0_i32, %c0_i32_0 : i32, i32
  }
  func.func @transform_2(%arg0: i32, %arg1: i32) -> (i32, i32) {
    %c0_i32 = arith.constant 0 : i32
    %c0_i32_0 = arith.constant 0 : i32
    %c0_i32_1 = arith.constant 0 : i32
    return %c0_i32, %c0_i32_0 : i32, i32
  }
  func.func @transform_3(%arg0: i32, %arg1: i32) -> (i32, i32, i32) {
    %c0_i32 = arith.constant 0 : i32
    %c0_i32_0 = arith.constant 0 : i32
    return %arg0, %arg1, %c0_i32 : i32, i32, i32
  }
  func.func @transform_4(%arg0: i32, %arg1: i32) -> (i32, i32) {
    %c0_i32 = arith.constant 0 : i32
    %c0_i32_0 = arith.constant 0 : i32
    return %arg1, %c0_i32 : i32, i32
  }
  func.func @transform_5(%arg0: i32, %arg1: i32) -> (i32, i32) {
    %c0_i32 = arith.constant 0 : i32
    %c0_i32_0 = arith.constant 0 : i32
    return %arg1, %c0_i32 : i32, i32
  }
  func.func @transform_6(%arg0: i32, %arg1: i32) -> (i32, i32, i32) {
    %c0_i32 = arith.constant 0 : i32
    %c0_i32_0 = arith.constant 0 : i32
    return %arg0, %arg1, %c0_i32 : i32, i32, i32
  }
}

</mosaic_0001>

<bundles_post_ra>
// kernel: e_mhsa_forward.3
= control target key start
LH: loop header
LB: loop body
LE: loop exit
PB: predicated region body
PF: predicated region fallthrough
CT: control target
= control target key end

     0   :  { %s4981_s0 = inlined_call_operand.vmem [shape: f32[2,64,1024], index: 0, kind: input, shape index: {}]   ;;  %s4982_s1 = inlined_call_operand.hbm [shape: f32[64,128], index: 1, kind: input, shape index: {}]   ;;  %s4983_s2 = inlined_call_operand.hbm [shape: f32[64,128], index: 2, kind: input, shape index: {}]   ;;  %s4984_s3 = inlined_call_operand.hbm [shape: f32[64,128], index: 3, kind: input, shape index: {}]   ;;  %s4985_s4 = inlined_call_operand.hbm [shape: f32[1,128], index: 4, kind: input, shape index: {}]   ;;  %s4986_s5 = inlined_call_operand.hbm [shape: f32[1,128], index: 5, kind: input, shape index: {}]   ;;  %s4987_s6 = inlined_call_operand.hbm [shape: f32[1,128], index: 6, kind: input, shape index: {}]   ;;  %s4988_s7 = inlined_call_operand.vmem [shape: f32[2,1024,128], index: 7, kind: output, shape index: {0}]   ;;  %s4989_s8 = inlined_call_operand.vmem [shape: f32[2,1024,128], index: 8, kind: output, shape index: {1}]   ;;  %s4990_s9 = inlined_call_operand.vmem [shape: f32[2,1024,128], index: 9, kind: output, shape index: {2}]  }
   0x1   :  { %5000 = sst [smem:[#allocation20_spill]] %s4982_s1 }
   0x2   :  { %5001 = sst [smem:[#allocation21_spill]] %s4990_s9 }
   0x3   :  { %15 = vsyncpa [#allocation4], 0 }
   0x4   :  { %16 = vsyncpa [#allocation6], 0 }
   0x5   :  { %17 = vsyncpa [#allocation9], 0 }
   0x6   :  { %18 = vsyncpa [#allocation12], 0  ;;  %s3772_s30 = smov 0   ;;  %s3774_s10 = smov 0  }
   0x7   :  { %s3776_s11 = smov 0   ;;  %s3778_s12 = smov 0  }
   0x8   :  { %s3780_s13 = smov 0   ;;  %s3782_s14 = smov 0  }
   0x9   :  { %s3784_s15 = smov 0  }
   0xa LB: > { %s2570_s16 = sadd.s32 4294967295, %s3712_s15   ;;  %s33_s17 = sadd.s32 1, %s3704_s13  ;;  %s3712_s15 = sphi %s3784_s15, %s24_s15   ;;  %s3708_s14 = sphi %s3782_s14, %s5024_s14   ;;  %s3704_s13 = sphi %s3780_s13, %s5023_s13   ;;  %s3700_s12 = sphi %s3778_s12, %s5022_s12   ;;  %s3696_s11 = sphi %s3776_s11, %s5021_s11   ;;  %s3692_s10 = sphi %s3774_s10, %s5020_s10   ;;  %s3688_s30 = sphi %s3772_s30, %s5019_s30  }
   0xb   : > { %p34_p0 = scmp.ge.s32.totalorder %s33_s17, 2  ;;  %s36_s18 = sadd.s32 1, %s3708_s14 }
   0xc   : > { %s45_s19 = sadd.s32 1, %s3692_s10  ;;  %p52_p1 = scmp.ne.s32.totalorder %s3692_s10, %s3688_s30 }
   0xd   : > { %s5026_s17 = smov (%p34_p0, %s33_s17), 0  ;;  %s5028_s18 = smov (!%p34_p0, %s36_s18), %s3708_s14 }
   0xe   : > { %5002 = sst [smem:[#allocation17_spill]] %s5026_s17  ;;  %s41_s20 = ssub.s32 %s3704_s13, %s5026_s17 }
   0xf   : > { %p53_p2 = scmp.eq.s32.totalorder %s3712_s15, 0  ;;  %p38_p3 = scmp.ge.s32.totalorder %s5028_s18, 2 }
  0x10   : > { %p2572_p4 = scmp.ge.s32.totalorder %s3712_s15, 1  ;;  %p279_p6 = scmp.lt.s32.totalorder %s3712_s15, 5 }
  0x11   : > { %p3820_p5 = por %p53_p2, %p52_p1  ;;  %s5030_s18 = smov (%p38_p3, %s5028_s18), 0 }
  0x12   : > { %5004 = sst [smem:[#allocation18_spill]] %s5030_s18  ;;  %p3827_p7 = pnand %p2572_p4, %p279_p6 }
  0x13   : > { %s40_s23 = ssub.s32 %s3708_s14, %s5030_s18  ;;  %p3833_p8 = scmp.eq.s32.totalorder %s2570_s16, 0 }
  0x14   : > { %s5005_s22 = scalar_select %p3827_p7, 1, 0 }
  0x15   : > { %s5006_s24 = scalar_select %p3833_p8, 1, 0 }
  0x16   : > { %s42_s25 = sor.u32 %s41_s20, %s40_s23  ;;  %p3390_p9 = pneg %p3827_p7 }
  0x17   : > { %p43_p10 = scmp.eq.s32.totalorder %s42_s25, 0  ;;  %s3714_s28 = smov [#allocation5]  }
  0x18   : > { %p3841_p11 = pnand %p3833_p8, %p3390_p9  ;;  %s304_s29 = sshll.u32 %s3714_s28, 4  ;;  %s305_s29 = int_to_ptr.vmem [resolvable:$true] %s304_s29 }
  0x19   : > { %s3846_s27 = scalar_select %p43_p10, %s3692_s10, %s45_s19  }
  0x1a   : > { %s3715_s16 = smov [#allocation8]   ;;  %p3850_p12 = pneg %p3841_p11 }
  0x1b   : > { %5008 = sst [smem:[#allocation19_spill]] %s3846_s27  ;;  %s331_s18 = sshll.u32 %s3715_s16, 4  ;;  %s332_s18 = int_to_ptr.vmem [resolvable:$true] %s331_s18 }
  0x1c   : > { %s3497_s20 = scalar_lea.vmem %s305_s29, 1024  ;;  %p3505_p2 = scmp.lt.s32.totalorder %s305_s29, %s305_s29 }
  0x1d   : > { %p3498_p13 = scmp.ne.s32.totalorder %s305_s29, %s3497_s20  ;;  %p3506_p3 = scmp.lt.s32.totalorder %s3497_s20, %s3497_s20 }
  0x1f   : > { %p3500_p0 = pnand %p3498_p13, %p3850_p12  ;;  %p3507_p4 = por %p3506_p3, %p3505_p2 }
  0x21   : > { %p3501_p1 = pneg %p3500_p0 }
  0x23   : > { %p3508_p6 = pnand %p3507_p4, %p3501_p1 }
  0x25   : > { %3511 = shalt.err (!%p3508_p6)
}
  0x26   : > { %s4993_s19 = smov 128   ;;  %s4995_s23 = smov 8  }
  0x27   : > { %3396 = dma.hbm_to_vmem [thread:$0]  (!%p3841_p11), %s4983_s2, 1024, %s305_s29, [#allocation6], %s4993_s19, %s4993_s19, %s4995_s23  }
  0x28   : > { %s3523_s16 = scalar_lea.vmem %s332_s18, 16  ;;  %s3530_s20 = scalar_lea.vmem %s332_s18, 32 }
  0x29   : > { %p3524_p9 = scmp.ne.s32.totalorder %s332_s18, %s3523_s16  ;;  %p3531_p0 = scmp.lt.s32.totalorder %s332_s18, %s332_s18 }
  0x2a   : > { %p3532_p1 = scmp.lt.s32.totalorder %s3530_s20, %s3523_s16 }
  0x2b   : > { %p3526_p10 = pnand %p3524_p9, %p3850_p12 }
  0x2c   : > { %p3533_p2 = por %p3532_p1, %p3531_p0 }
  0x2d   : > { %p3527_p13 = pneg %p3526_p10 }
  0x2f   : > { %p3534_p3 = pnand %p3533_p2, %p3527_p13 }
  0x31   : > { %3537 = shalt.err (!%p3534_p3)
}
  0x32   : > { %3402 = dma.hbm_to_vmem [thread:$0]  (!%p3841_p11), %s4985_s4, 16, %s332_s18, [#allocation9]  }
  0x33   : > { %s3718_s29 = smov [#allocation3]   ;;  %s3719_s28 = smov [#allocation7]  }
  0x34   : > { %s291_s25 = sshll.u32 %s3718_s29, 4  ;;  %s317_s19 = sshll.u32 %s3719_s28, 4  ;;  %s292_s25 = int_to_ptr.vmem [resolvable:$true] %s291_s25  ;;  %s318_s19 = int_to_ptr.vmem [resolvable:$true] %s317_s19 }
  0x35   : > { %s3549_s23 = scalar_lea.vmem %s292_s25, 1024  ;;  %p3557_p10 = scmp.lt.s32.totalorder %s292_s25, %s292_s25 }
  0x36   : > { %p3550_p4 = scmp.ne.s32.totalorder %s292_s25, %s3549_s23  ;;  %p3558_p13 = scmp.lt.s32.totalorder %s3549_s23, %s3549_s23 }
  0x38   : > { %p3552_p6 = pnand %p3550_p4, %p3850_p12  ;;  %p3559_p0 = por %p3558_p13, %p3557_p10 }
  0x3a   : > { %p3553_p9 = pneg %p3552_p6 }
  0x3c   : > { %p3560_p1 = pnand %p3559_p0, %p3553_p9 }
  0x3e   : > { %3563 = shalt.err (!%p3560_p1)
}
  0x3f   : > { %s5010_s9 = smov 8   ;;  %s5011_s27 = smov 128  }
  0x40   : > { %s5012_s1 = sld [smem:[#allocation20_spill]]  ;;  %s3575_s20 = scalar_lea.vmem %s318_s19, 1024 }
  0x41   : > { %p3576_p2 = scmp.ne.s32.totalorder %s318_s19, %s3575_s20  ;;  %p3583_p6 = scmp.lt.s32.totalorder %s318_s19, %s318_s19 }
  0x42   : > { %p3584_p10 = scmp.lt.s32.totalorder %s3575_s20, %s3575_s20 }
  0x43   : > { %p3578_p3 = pnand %p3576_p2, %p3850_p12 }
  0x44   : > { %p3585_p9 = por %p3584_p10, %p3583_p6 }
  0x45   : > { %p3579_p4 = pneg %p3578_p3 }
  0x46   : > { %3393 = dma.hbm_to_vmem [thread:$0]  (!%p3841_p11), %s5012_s1, 1024, %s292_s25, [#allocation4], %s5011_s27, %s5011_s27, %s5010_s9  }
  0x47   : > { %p3586_p13 = pnand %p3585_p9, %p3579_p4 }
  0x49   : > { %3589 = shalt.err (!%p3586_p13)
}
  0x4a   : > { %3399 = dma.hbm_to_vmem [thread:$0]  (!%p3841_p11), %s4984_s3, 1024, %s318_s19, [#allocation6], %s5011_s27, %s5011_s27, %s5010_s9  }
  0x4b   : > { %s3720_s25 = smov [#allocation10]   ;;  %s3721_s18 = smov [#allocation11]  }
  0x4c   : > { %s342_s28 = sshll.u32 %s3720_s25, 4  ;;  %s353_s16 = sshll.u32 %s3721_s18, 4  ;;  %s343_s28 = int_to_ptr.vmem [resolvable:$true] %s342_s28  ;;  %s354_s16 = int_to_ptr.vmem [resolvable:$true] %s353_s16 }
  0x4d   : > { %s3601_s1 = scalar_lea.vmem %s343_s28, 16  ;;  %s3608_s20 = scalar_lea.vmem %s343_s28, 32 }
  0x4e   : > { %p3602_p0 = scmp.ne.s32.totalorder %s343_s28, %s3601_s1  ;;  %p3609_p3 = scmp.lt.s32.totalorder %s343_s28, %s343_s28 }
  0x4f   : > { %p3610_p4 = scmp.lt.s32.totalorder %s3608_s20, %s3601_s1 }
  0x50   : > { %p3604_p1 = pnand %p3602_p0, %p3850_p12 }
  0x51   : > { %p3611_p6 = por %p3610_p4, %p3609_p3 }
  0x52   : > { %p3605_p2 = pneg %p3604_p1 }
  0x54   : > { %p3612_p10 = pnand %p3611_p6, %p3605_p2 }
  0x56   : > { %3615 = shalt.err (!%p3612_p10)
}
  0x57   : > { %3405 = dma.hbm_to_vmem [thread:$0]  (!%p3841_p11), %s4986_s5, 16, %s343_s28, [#allocation9]  }
  0x58   : > { %s3627_s9 = scalar_lea.vmem %s354_s16, 16  ;;  %s3634_s27 = scalar_lea.vmem %s354_s16, 32 }
  0x59   : > { %p3628_p9 = scmp.ne.s32.totalorder %s354_s16, %s3627_s9  ;;  %p3635_p1 = scmp.lt.s32.totalorder %s354_s16, %s354_s16 }
  0x5a   : > { %p3636_p8 = scmp.lt.s32.totalorder %s3634_s27, %s3627_s9 }
  0x5b   : > { %p3630_p13 = pnand %p3628_p9, %p3850_p12 }
  0x5c   : > { %p3637_p7 = por %p3636_p8, %p3635_p1 }
  0x5d   : > { %p3631_p0 = pneg %p3630_p13 }
  0x5f   : > { %p3638_p3 = pnand %p3637_p7, %p3631_p0 }
  0x61   : > { %3641 = shalt.err (!%p3638_p3)
}
  0x62   : > { %3408 = dma.hbm_to_vmem [thread:$0]  (!%p3841_p11), %s4987_s6, 16, %s354_s16, [#allocation12]  }
  0x63   : > { %p2579_p2 = scmp.ge.s32.totalorder %s3712_s15, 4 }
  0x65   : > { %360 = sbr.rel (%p2579_p2) target bundleno = 129 (0x81), region = 40 }
  0x6a   : > { %363 = sbr.rel (!%p3820_p5) target bundleno = 129 (0x81), region = 44  ;;  %s365_s17 = sand.u32 (%p3820_p5), 1, %s3692_s10  }
  0x6b   : > { %s2581_s25 = sshll.u32 (%p3820_p5), %s3704_s13, 2  ;;  %s2580_s28 = sshll.u32 (%p3820_p5), %s365_s17, 8 }
  0x6c   : > { %s2582_s18 = sshll.u32 (%p3820_p5), %s3708_s14, 6  ;;  %s3919_s21 = scalar_lea.vmem (%p3820_p5), [#allocation2], %s2580_s28 }
  0x6d   : > { %s370_s20 = sadd.s32 (%p3820_p5), %s2582_s18, %s2581_s25 }
  0x6e   : > { %s2583_s23 = sshll.u32 (%p3820_p5), %s370_s20, 3 }
  0x6f   : > { %s3914_s9 = scalar_lea.vmem %s4981_s0, %s2583_s23 }
  0x70   : > { %v385_v0 = vld [vmem:[%s3914_s9] sm:$0xff]  ;;  %v387_v1 = vld [vmem:[%s3914_s9 + $0x8] sm:$0xff]  ;;  %v389_v2 = vld [vmem:[%s3914_s9 + $0x10] sm:$0xff] }
  0x71   : > { %386 = vst [vmem:[%s3919_s21] sm:$0xff] %v385_v0  ;;  %388 = vst [vmem:[%s3919_s21 + $0x8] sm:$0xff] %v387_v1  ;;  %v391_v3 = vld [vmem:[%s3914_s9 + $0x18] sm:$0xff]  ;;  %v393_v4 = vld [vmem:[%s3914_s9 + $0x40] sm:$0xff] }
  0x72   : > { %390 = vst [vmem:[%s3919_s21 + $0x10] sm:$0xff] %v389_v2  ;;  %v395_v5 = vld [vmem:[%s3914_s9 + $0x48] sm:$0xff]  ;;  %392 = vst [vmem:[%s3919_s21 + $0x18] sm:$0xff] %v391_v3  ;;  %v397_v6 = vld [vmem:[%s3914_s9 + $0x50] sm:$0xff] }
  0x73   : > { %394 = vst [vmem:[%s3919_s21 + $0x20] sm:$0xff] %v393_v4  ;;  %396 = vst [vmem:[%s3919_s21 + $0x28] sm:$0xff] %v395_v5  ;;  %v399_v7 = vld [vmem:[%s3914_s9 + $0x58] sm:$0xff]  ;;  %v401_v8 = vld [vmem:[%s3914_s9 + $0x80] sm:$0xff] }
  0x74   : > { %398 = vst [vmem:[%s3919_s21 + $0x30] sm:$0xff] %v397_v6  ;;  %400 = vst [vmem:[%s3919_s21 + $0x38] sm:$0xff] %v399_v7  ;;  %v403_v9 = vld [vmem:[%s3914_s9 + $0x88] sm:$0xff]  ;;  %v405_v10 = vld [vmem:[%s3914_s9 + $0x90] sm:$0xff] }
  0x75   : > { %402 = vst [vmem:[%s3919_s21 + $0x40] sm:$0xff] %v401_v8  ;;  %v407_v11 = vld [vmem:[%s3914_s9 + $0x98] sm:$0xff]  ;;  %404 = vst [vmem:[%s3919_s21 + $0x48] sm:$0xff] %v403_v9  ;;  %v409_v12 = vld [vmem:[%s3914_s9 + $0xc0] sm:$0xff] }
  0x76   : > { %406 = vst [vmem:[%s3919_s21 + $0x50] sm:$0xff] %v405_v10  ;;  %408 = vst [vmem:[%s3919_s21 + $0x58] sm:$0xff] %v407_v11  ;;  %v411_v13 = vld [vmem:[%s3914_s9 + $0xc8] sm:$0xff]  ;;  %v413_v14 = vld [vmem:[%s3914_s9 + $0xd0] sm:$0xff] }
  0x77   : > { %410 = vst [vmem:[%s3919_s21 + $0x60] sm:$0xff] %v409_v12  ;;  %412 = vst [vmem:[%s3919_s21 + $0x68] sm:$0xff] %v411_v13  ;;  %v415_v15 = vld [vmem:[%s3914_s9 + $0xd8] sm:$0xff]  ;;  %v417_v16 = vld [vmem:[%s3914_s9 + $0x100] sm:$0xff] }
  0x78   : > { %414 = vst [vmem:[%s3919_s21 + $0x70] sm:$0xff] %v413_v14  ;;  %v419_v17 = vld [vmem:[%s3914_s9 + $0x108] sm:$0xff]  ;;  %416 = vst [vmem:[%s3919_s21 + $0x78] sm:$0xff] %v415_v15  ;;  %v421_v18 = vld [vmem:[%s3914_s9 + $0x110] sm:$0xff] }
  0x79   : > { %418 = vst [vmem:[%s3919_s21 + $0x80] sm:$0xff] %v417_v16  ;;  %420 = vst [vmem:[%s3919_s21 + $0x88] sm:$0xff] %v419_v17  ;;  %v423_v19 = vld [vmem:[%s3914_s9 + $0x118] sm:$0xff]  ;;  %v425_v20 = vld [vmem:[%s3914_s9 + $0x140] sm:$0xff] }
  0x7a   : > { %422 = vst [vmem:[%s3919_s21 + $0x90] sm:$0xff] %v421_v18  ;;  %424 = vst [vmem:[%s3919_s21 + $0x98] sm:$0xff] %v423_v19  ;;  %v427_v21 = vld [vmem:[%s3914_s9 + $0x148] sm:$0xff]  ;;  %v429_v22 = vld [vmem:[%s3914_s9 + $0x150] sm:$0xff] }
  0x7b   : > { %426 = vst [vmem:[%s3919_s21 + $0xa0] sm:$0xff] %v425_v20  ;;  %v431_v23 = vld [vmem:[%s3914_s9 + $0x158] sm:$0xff]  ;;  %428 = vst [vmem:[%s3919_s21 + $0xa8] sm:$0xff] %v427_v21  ;;  %v433_v24 = vld [vmem:[%s3914_s9 + $0x180] sm:$0xff] }
  0x7c   : > { %430 = vst [vmem:[%s3919_s21 + $0xb0] sm:$0xff] %v429_v22  ;;  %432 = vst [vmem:[%s3919_s21 + $0xb8] sm:$0xff] %v431_v23  ;;  %v435_v25 = vld [vmem:[%s3914_s9 + $0x188] sm:$0xff]  ;;  %v437_v26 = vld [vmem:[%s3914_s9 + $0x190] sm:$0xff] }
  0x7d   : > { %434 = vst [vmem:[%s3919_s21 + $0xc0] sm:$0xff] %v433_v24  ;;  %436 = vst [vmem:[%s3919_s21 + $0xc8] sm:$0xff] %v435_v25  ;;  %v439_v27 = vld [vmem:[%s3914_s9 + $0x198] sm:$0xff]  ;;  %v441_v28 = vld [vmem:[%s3914_s9 + $0x1c0] sm:$0xff] }
  0x7e   : > { %438 = vst [vmem:[%s3919_s21 + $0xd0] sm:$0xff] %v437_v26  ;;  %v443_v29 = vld [vmem:[%s3914_s9 + $0x1c8] sm:$0xff]  ;;  %440 = vst [vmem:[%s3919_s21 + $0xd8] sm:$0xff] %v439_v27  ;;  %v445_v30 = vld [vmem:[%s3914_s9 + $0x1d0] sm:$0xff] }
  0x7f   : > { %442 = vst [vmem:[%s3919_s21 + $0xe0] sm:$0xff] %v441_v28  ;;  %444 = vst [vmem:[%s3919_s21 + $0xe8] sm:$0xff] %v443_v29  ;;  %v447_v31 = vld [vmem:[%s3914_s9 + $0x1d8] sm:$0xff] }
  0x80   : > { %446 = vst [vmem:[%s3919_s21 + $0xf0] sm:$0xff] %v445_v30  ;;  %448 = vst [vmem:[%s3919_s21 + $0xf8] sm:$0xff] %v447_v31 }
  0x81 PF: > { %p5013_p5 = scmp.ne.s32.totalorder %s5005_s22, 0 }
  0x82   : > { %s460_s16 = sand.u32 (!%p5013_p5), 1, %s3688_s30   ;;  %p5014_p7 = scmp.ne.s32.totalorder (!%p5013_p5), %s5006_s24, 0 }
  0x83   : > { %457 = sbr.rel (%p5013_p5) target bundleno = 719 (0x2cf), region = 67  ;;  %s2585_s27 = sshll.u32 (!%p5013_p5), %s460_s16, 8 }
  0x84   : > { %s3985_s1 = scalar_lea.vmem (!%p5013_p5), [#allocation2], %s2585_s27 }
  0x88   : > { %3671 = dma.done.wait (%p5014_p7), [#allocation4], 1024  }
  0x89   : > { %3673 = vsyncadd (%p5014_p7), [#allocation4], 4294966272 }
  0x8a   : > { %3675 = dma.done.wait (%p5014_p7), [#allocation6], 2048  }
  0x8b   : > { %3677 = vsyncadd (%p5014_p7), [#allocation6], 4294965248 }
  0x8c   : > { %3679 = dma.done.wait (%p5014_p7), [#allocation9], 32  }
  0x8d   : > { %3681 = vsyncadd (%p5014_p7), [#allocation9], 4294967264 }
  0x8e   : > { %3683 = dma.done.wait (%p5014_p7), [#allocation12], 16  }
  0x8f   : > { %3685 = vsyncadd (%p5014_p7), [#allocation12], 4294967280  ;;  %v574_v32 = vld [vmem:[%s3985_s1 + $0x10] sm:$0xff]  ;;  %v572_v33 = vld [vmem:[%s3985_s1] sm:$0xff]  ;;  %vm747_vm0 = vcmask 523264   ;;  %s2592_s30 = sshll.u32 %s3696_s11, 6 }
  0x90   : > { %668 = vxpose.xlu1.b32.start [1/8] (short) %v574_v32, 128  ;;  %604 = vxpose.xlu0.b32.start [1/8] (short) %v572_v33, 128  ;;  %v578_v34 = vld [vmem:[%s3985_s1 + $0x30] sm:$0xff]  ;;  %v576_v35 = vld [vmem:[%s3985_s1 + $0x20] sm:$0xff]  ;;  %v739_v40 = vld [vmem:[#allocation3 + $0x38] sm:$0xff]  ;;  %p543_p8 = scmp.lt.s32.totalorder %s3700_s12, 1  ;;  %p545_p11 = scmp.lt.s32.totalorder %s2592_s30, 127 }
  0x91   : > { %v582_v36 = vld [vmem:[%s3985_s1 + $0x50] sm:$0xff]  ;;  %v580_v37 = vld [vmem:[%s3985_s1 + $0x40] sm:$0xff]  ;;  %3014 = vmatprep.subr.mxu0 %v739_v40  ;;  %3350 = vmatprep.subr.mxu1 %v739_v40  ;;  %v737_v42 = vld [vmem:[#allocation3 + $0x28] sm:$0xff]  ;;  %s5015_s26 = sld [smem:[#allocation21_spill]] }
  0x92   : > { %v586_v38 = vld [vmem:[%s3985_s1 + $0x70] sm:$0xff]  ;;  %v584_v39 = vld [vmem:[%s3985_s1 + $0x60] sm:$0xff]  ;;  %3015 = vmatpush3.msra.mxu0 %v739_v40  ;;  %3358 = vmatpush3.msra.mxu1 %v739_v40  ;;  %v735_v48 = vld [vmem:[#allocation3 + $0x18] sm:$0xff]  ;;  %s5032_s12 = smov (!%p543_p8, %s3700_s12), 1  ;;  %s5034_s30 = smov (!%p545_p11, %s2592_s30), 127 }
  0x93   : > { %v738_v41 = vld [vmem:[#allocation3 + $0x30] sm:$0xff]  ;;  %v588_v44 = vld [vmem:[%s3985_s1 + $0x80] sm:$0xff]  ;;  %v733_v52 = vld [vmem:[#allocation3 + $0x8] sm:$0xff]  ;;  %s2593_s11 = sshll.u32 %s5032_s12, 7 }
  0x94   : > { %669 = vxpose.xlu1.b32.cont [2/8] (short) %v578_v34, 128  ;;  %605 = vxpose.xlu0.b32.cont [2/8] (short) %v576_v35, 128  ;;  %v590_v43 = vld [vmem:[%s3985_s1 + $0x90] sm:$0xff]  ;;  %v736_v45 = vld [vmem:[#allocation3 + $0x20] sm:$0xff]  ;;  %v1396_v56 = vld [vmem:[#allocation5 + $0x38] sm:$0xff]  ;;  %s548_s22 = sadd.s32 %s2593_s11, %s5034_s30 }
  0x95   : > { %3016 = vmatprep.subr.mxu0 %v738_v41  ;;  %3351 = vmatprep.subr.mxu1 %v738_v41  ;;  %v594_v46 = vld [vmem:[%s3985_s1 + $0xb0] sm:$0xff]  ;;  %v592_v47 = vld [vmem:[%s3985_s1 + $0xa0] sm:$0xff]  ;;  %v1860_v57 = vld [vmem:[#allocation7 + $0x38] sm:$0xff]  ;;  %s4434_s12 = sshll.u32 %s548_s22, 3 }
  0x96   : > { %3017 = vmatpush3.msra.mxu0 %v738_v41  ;;  %3359 = vmatpush3.msra.mxu1 %v738_v41  ;;  %v734_v49 = vld [vmem:[#allocation3 + $0x10] sm:$0xff]  ;;  %v596_v51 = vld [vmem:[%s3985_s1 + $0xc0] sm:$0xff]  ;;  %v575_v58 = vld [vmem:[%s3985_s1 + $0x18] sm:$0xff]  ;;  %s4442_s17 = scalar_lea.vmem %s4988_s7, %s4434_s12  ;;  %s4694_s18 = scalar_lea.vmem %s4989_s8, %s4434_s12 }
  0x97   : > { %3018 = vmatprep.subr.mxu0 %v737_v42  ;;  %3352 = vmatprep.subr.mxu1 %v737_v42  ;;  %v598_v50 = vld [vmem:[%s3985_s1 + $0xd0] sm:$0xff]  ;;  %v600_v54 = vld [vmem:[%s3985_s1 + $0xe0] sm:$0xff]  ;;  %v573_v59 = vld [vmem:[%s3985_s1 + $0x8] sm:$0xff]  ;;  %s4700_s19 = scalar_lea.vmem %s5015_s26, %s4434_s12 }
  0x98   : > { %670 = vxpose.xlu1.b32.cont [3/8] (short) %v582_v36, 128  ;;  %606 = vxpose.xlu0.b32.cont [3/8] (short) %v580_v37, 128  ;;  %v602_v53 = vld [vmem:[%s3985_s1 + $0xf0] sm:$0xff]  ;;  %v732_v55 = vld [vmem:[#allocation3] sm:$0xff]  ;;  %v579_v60 = vld [vmem:[%s3985_s1 + $0x38] sm:$0xff] }
  0x99   : > { %3019 = vmatpush3.msra.mxu0 %v737_v42  ;;  %3360 = vmatpush3.msra.mxu1 %v737_v42  ;;  %v577_v61 = vld [vmem:[%s3985_s1 + $0x28] sm:$0xff]  ;;  %v583_v62 = vld [vmem:[%s3985_s1 + $0x58] sm:$0xff]  ;;  %v1395_v14 = vld [vmem:[#allocation5 + $0x30] sm:$0xff] }
  0x9a   : > { %3020 = vmatprep.subr.mxu0 %v736_v45  ;;  %3353 = vmatprep.subr.mxu1 %v736_v45  ;;  %v581_v63 = vld [vmem:[%s3985_s1 + $0x48] sm:$0xff]  ;;  %v587_v0 = vld [vmem:[%s3985_s1 + $0x78] sm:$0xff]  ;;  %v1859_v15 = vld [vmem:[#allocation7 + $0x30] sm:$0xff] }
  0x9b   : > { %3021 = vmatpush3.msra.mxu0 %v736_v45  ;;  %3361 = vmatpush3.msra.mxu1 %v736_v45  ;;  %v585_v1 = vld [vmem:[%s3985_s1 + $0x68] sm:$0xff]  ;;  %v591_v2 = vld [vmem:[%s3985_s1 + $0x98] sm:$0xff]  ;;  %v1393_v20 = vld [vmem:[#allocation5 + $0x20] sm:$0xff] }
  0x9c   : > { %671 = vxpose.xlu1.b32.cont [4/8] (short) %v586_v38, 128  ;;  %607 = vxpose.xlu0.b32.cont [4/8] (short) %v584_v39, 128  ;;  %v589_v3 = vld [vmem:[%s3985_s1 + $0x88] sm:$0xff]  ;;  %v595_v4 = vld [vmem:[%s3985_s1 + $0xb8] sm:$0xff]  ;;  %v1857_v21 = vld [vmem:[#allocation7 + $0x20] sm:$0xff] }
  0x9d   : > { %3022 = vmatprep.subr.mxu0 %v735_v48  ;;  %3354 = vmatprep.subr.mxu1 %v735_v48  ;;  %v593_v5 = vld [vmem:[%s3985_s1 + $0xa8] sm:$0xff]  ;;  %v599_v6 = vld [vmem:[%s3985_s1 + $0xd8] sm:$0xff]  ;;  %v1391_v26 = vld [vmem:[#allocation5 + $0x10] sm:$0xff] }
  0x9e   : > { %3023 = vmatpush3.msra.mxu0 %v735_v48  ;;  %3362 = vmatpush3.msra.mxu1 %v735_v48  ;;  %v597_v7 = vld [vmem:[%s3985_s1 + $0xc8] sm:$0xff]  ;;  %v603_v8 = vld [vmem:[%s3985_s1 + $0xf8] sm:$0xff]  ;;  %v1855_v27 = vld [vmem:[#allocation7 + $0x10] sm:$0xff] }
  0x9f   : > { %3024 = vmatprep.subr.mxu0 %v734_v49  ;;  %3355 = vmatprep.subr.mxu1 %v734_v49  ;;  %v601_v9 = vld [vmem:[%s3985_s1 + $0xe8] sm:$0xff]  ;;  %v1392_v24 = vld [vmem:[#allocation5 + $0x18] sm:$0xff]  ;;  %v1389_v34 = vld [vmem:[#allocation5] sm:$0xff] }
  0xa0   : > { %672 = vxpose.xlu1.b32.cont [5/8] (short) %v590_v43, 128  ;;  %608 = vxpose.xlu0.b32.cont [5/8] (short) %v588_v44, 128  ;;  %v1394_v16 = vld [vmem:[#allocation5 + $0x28] sm:$0xff]  ;;  %v1856_v25 = vld [vmem:[#allocation7 + $0x18] sm:$0xff]  ;;  %v1853_v35 = vld [vmem:[#allocation7] sm:$0xff] }
  0xa1   : > { %3025 = vmatpush3.msra.mxu0 %v734_v49  ;;  %3363 = vmatpush3.msra.mxu1 %v734_v49  ;;  %v1858_v17 = vld [vmem:[#allocation7 + $0x28] sm:$0xff] }
  0xa2   : > { %3026 = vmatprep.subr.mxu0 %v733_v52  ;;  %3356 = vmatprep.subr.mxu1 %v733_v52  ;;  %v1390_v30 = vld [vmem:[#allocation5 + $0x8] sm:$0xff] }
  0xa3   : > { %3027 = vmatpush3.msra.mxu0 %v733_v52  ;;  %3364 = vmatpush3.msra.mxu1 %v733_v52  ;;  %v1854_v31 = vld [vmem:[#allocation7 + $0x8] sm:$0xff] }
  0xa4   : > { %673 = vxpose.xlu1.b32.cont [6/8] (short) %v594_v46, 128  ;;  %609 = vxpose.xlu0.b32.cont [6/8] (short) %v592_v47, 128 }
  0xa5   : > { %3028 = vmatprep.subr.mxu0 %v732_v55  ;;  %3357 = vmatprep.subr.mxu1 %v732_v55 }
  0xa6   : > { %3029 = vmatpush3.msra.mxu0 %v732_v55  ;;  %3365 = vmatpush3.msra.mxu1 %v732_v55 }
  0xa7   : > { %3126 = vmatprep.subr.mxu1 %v1396_v56  ;;  %3238 = vmatprep.subr.mxu0 %v1860_v57 }
  0xa8   : > { %674 = vxpose.xlu1.b32.cont [7/8] (short) %v598_v50, 128  ;;  %610 = vxpose.xlu0.b32.cont [7/8] (short) %v596_v51, 128 }
  0xac   : > { %675 = vxpose.xlu1.b32.end [8/8] (short) %v602_v53, 128  ;;  %611 = vxpose.xlu0.b32.end [8/8] (short) %v600_v54, 128 }
  0xcd   : > { %700 = vxpose.xlu1.b32.start [1/8] (short) %v575_v58, 128  ;;  %636 = vxpose.xlu0.b32.start [1/8] (short) %v573_v59, 128 }
  0xd1   : > { %701 = vxpose.xlu1.b32.cont [2/8] (short) %v579_v60, 128  ;;  %637 = vxpose.xlu0.b32.cont [2/8] (short) %v577_v61, 128 }
  0xd5   : > { %702 = vxpose.xlu1.b32.cont [3/8] (short) %v583_v62, 128  ;;  %638 = vxpose.xlu0.b32.cont [3/8] (short) %v581_v63, 128 }
  0xd9   : > { %703 = vxpose.xlu1.b32.cont [4/8] (short) %v587_v0, 128  ;;  %639 = vxpose.xlu0.b32.cont [4/8] (short) %v585_v1, 128 }
  0xdd   : > { %704 = vxpose.xlu1.b32.cont [5/8] (short) %v591_v2, 128  ;;  %640 = vxpose.xlu0.b32.cont [5/8] (short) %v589_v3, 128 }
  0xe1   : > { %705 = vxpose.xlu1.b32.cont [6/8] (short) %v595_v4, 128  ;;  %641 = vxpose.xlu0.b32.cont [6/8] (short) %v593_v5, 128 }
  0xe5   : > { %706 = vxpose.xlu1.b32.cont [7/8] (short) %v599_v6, 128  ;;  %642 = vxpose.xlu0.b32.cont [7/8] (short) %v597_v7, 128 }
  0xe9   : > { %707 = vxpose.xlu1.b32.end [8/8] (short) %v603_v8, 128  ;;  %643 = vxpose.xlu0.b32.end [8/8] (short) %v601_v9, 128 }
 0x10c   : > { %v4035_v10 = vpop.trf.xlu1  ;;  %v4037_v11 = vpop.trf.xlu0 }
 0x10d   : > { %3030 = vmatprep.mubr.msk.f32.mxu0 %vm747_vm0, %v4037_v11  ;;  %3078 = vmatprep.mubr.msk.f32.mxu1 %vm747_vm0, %v4035_v10 }
 0x110   : > { %v4043_v12 = vpop.trf.xlu1  ;;  %v4045_v13 = vpop.trf.xlu0 }
 0x111   : > { %3031 = vmatmul.mubr.msk.f32.vlgmr.msra.gmra.mxu0 %vm747_vm0, %v4045_v13  ;;  %3079 = vmatmul.mubr.msk.f32.vlgmr.msra.gmra.mxu1 %vm747_vm0, %v4043_v12 }
 0x112   : > { %3127 = vmatpush3.msra.mxu1 %v1396_v56  ;;  %3239 = vmatpush3.msra.mxu0 %v1860_v57 }
 0x113   : > { %3128 = vmatprep.subr.mxu1 %v1395_v14  ;;  %3240 = vmatprep.subr.mxu0 %v1859_v15 }
 0x114   : > { %v4051_v18 = vpop.trf.xlu1  ;;  %v4053_v19 = vpop.trf.xlu0  ;;  %3129 = vmatpush3.msra.mxu1 %v1395_v14  ;;  %3241 = vmatpush3.msra.mxu0 %v1859_v15 }
 0x115   : > { %3033 = vmatprep.mubr.msk.f32.mxu0 %vm747_vm0, %v4053_v19  ;;  %3081 = vmatprep.mubr.msk.f32.mxu1 %vm747_vm0, %v4051_v18 }
 0x116   : > { %3130 = vmatprep.subr.mxu1 %v1394_v16  ;;  %3242 = vmatprep.subr.mxu0 %v1858_v17 }
 0x117   : > { %3131 = vmatpush3.msra.mxu1 %v1394_v16  ;;  %3243 = vmatpush3.msra.mxu0 %v1858_v17 }
 0x118   : > { %v4059_v22 = vpop.trf.xlu1  ;;  %v4061_v23 = vpop.trf.xlu0  ;;  %3132 = vmatprep.subr.mxu1 %v1393_v20  ;;  %3244 = vmatprep.subr.mxu0 %v1857_v21 }
 0x119   : > { %3034 = vmatmul.mubr.msk.f32.gmra.mxu0 %vm747_vm0, %v4061_v23  ;;  %3082 = vmatmul.mubr.msk.f32.gmra.mxu1 %vm747_vm0, %v4059_v22 }
 0x11a   : > { %3133 = vmatpush3.msra.mxu1 %v1393_v20  ;;  %3245 = vmatpush3.msra.mxu0 %v1857_v21 }
 0x11b   : > { %3134 = vmatprep.subr.mxu1 %v1392_v24  ;;  %3246 = vmatprep.subr.mxu0 %v1856_v25 }
 0x11c   : > { %v4067_v28 = vpop.trf.xlu1  ;;  %v4069_v29 = vpop.trf.xlu0  ;;  %3135 = vmatpush3.msra.mxu1 %v1392_v24  ;;  %3247 = vmatpush3.msra.mxu0 %v1856_v25 }
 0x11d   : > { %3036 = vmatprep.mubr.msk.f32.mxu0 %vm747_vm0, %v4069_v29  ;;  %3084 = vmatprep.mubr.msk.f32.mxu1 %vm747_vm0, %v4067_v28 }
 0x11e   : > { %3136 = vmatprep.subr.mxu1 %v1391_v26  ;;  %3248 = vmatprep.subr.mxu0 %v1855_v27 }
 0x11f   : > { %3137 = vmatpush3.msra.mxu1 %v1391_v26  ;;  %3249 = vmatpush3.msra.mxu0 %v1855_v27 }
 0x120   : > { %v4075_v32 = vpop.trf.xlu1  ;;  %v4077_v33 = vpop.trf.xlu0  ;;  %3138 = vmatprep.subr.mxu1 %v1390_v30  ;;  %3250 = vmatprep.subr.mxu0 %v1854_v31 }
 0x121   : > { %3037 = vmatmul.mubr.msk.f32.gmra.mxu0 %vm747_vm0, %v4077_v33  ;;  %3085 = vmatmul.mubr.msk.f32.gmra.mxu1 %vm747_vm0, %v4075_v32 }
 0x122   : > { %3139 = vmatpush3.msra.mxu1 %v1390_v30  ;;  %3251 = vmatpush3.msra.mxu0 %v1854_v31 }
 0x123   : > { %3140 = vmatprep.subr.mxu1 %v1389_v34  ;;  %3252 = vmatprep.subr.mxu0 %v1853_v35 }
 0x124   : > { %v4083_v36 = vpop.trf.xlu1  ;;  %v4085_v37 = vpop.trf.xlu0  ;;  %3141 = vmatpush3.msra.mxu1 %v1389_v34  ;;  %3253 = vmatpush3.msra.mxu0 %v1853_v35 }
 0x125   : > { %3039 = vmatprep.mubr.msk.f32.mxu0 %vm747_vm0, %v4085_v37  ;;  %3087 = vmatprep.mubr.msk.f32.mxu1 %vm747_vm0, %v4083_v36 }
 0x128   : > { %v4091_v38 = vpop.trf.xlu1  ;;  %v4093_v39 = vpop.trf.xlu0 }
 0x129   : > { %3040 = vmatmul.mubr.msk.f32.gmra.mxu0 %vm747_vm0, %v4093_v39  ;;  %3088 = vmatmul.mubr.msk.f32.gmra.mxu1 %vm747_vm0, %v4091_v38 }
 0x12c   : > { %v4099_v40 = vpop.trf.xlu1  ;;  %v4101_v41 = vpop.trf.xlu0 }
 0x12d   : > { %3042 = vmatprep.mubr.msk.f32.mxu0 %vm747_vm0, %v4101_v41  ;;  %3090 = vmatprep.mubr.msk.f32.mxu1 %vm747_vm0, %v4099_v40 }
 0x130   : > { %v4107_v42 = vpop.trf.xlu1  ;;  %v4109_v43 = vpop.trf.xlu0 }
 0x131   : > { %3043 = vmatmul.mubr.msk.f32.gmra.mxu0 %vm747_vm0, %v4109_v43  ;;  %3091 = vmatmul.mubr.msk.f32.gmra.mxu1 %vm747_vm0, %v4107_v42 }
 0x134   : > { %v4115_v44 = vpop.trf.xlu1  ;;  %v4117_v45 = vpop.trf.xlu0 }
 0x135   : > { %3045 = vmatprep.mubr.msk.f32.mxu0 %vm747_vm0, %v4117_v45  ;;  %3093 = vmatprep.mubr.msk.f32.mxu1 %vm747_vm0, %v4115_v44 }
 0x138   : > { %v4123_v46 = vpop.trf.xlu1  ;;  %v4125_v47 = vpop.trf.xlu0 }
 0x139   : > { %3046 = vmatmul.mubr.msk.f32.gmra.mxu0 %vm747_vm0, %v4125_v47  ;;  %3094 = vmatmul.mubr.msk.f32.gmra.mxu1 %vm747_vm0, %v4123_v46 }
 0x13c   : > { %v4131_v48 = vpop.trf.xlu1  ;;  %v4133_v49 = vpop.trf.xlu0 }
 0x13d   : > { %3048 = vmatprep.mubr.msk.f32.mxu0 %vm747_vm0, %v4133_v49  ;;  %3096 = vmatprep.mubr.msk.f32.mxu1 %vm747_vm0, %v4131_v48 }
 0x140   : > { %v4139_v50 = vpop.trf.xlu1  ;;  %v4141_v51 = vpop.trf.xlu0 }
 0x141   : > { %3049 = vmatmul.mubr.msk.f32.gmra.mxu0 %vm747_vm0, %v4141_v51  ;;  %3097 = vmatmul.mubr.msk.f32.gmra.mxu1 %vm747_vm0, %v4139_v50 }
 0x144   : > { %v4147_v52 = vpop.trf.xlu1  ;;  %v4149_v53 = vpop.trf.xlu0 }
 0x145   : > { %3051 = vmatprep.mubr.msk.f32.mxu0 %vm747_vm0, %v4149_v53  ;;  %3099 = vmatprep.mubr.msk.f32.mxu1 %vm747_vm0, %v4147_v52 }
 0x148   : > { %v4155_v54 = vpop.trf.xlu1  ;;  %v4157_v55 = vpop.trf.xlu0 }
 0x149   : > { %3052 = vmatmul.mubr.msk.f32.gmra.mxu0 %vm747_vm0, %v4157_v55  ;;  %3100 = vmatmul.mubr.msk.f32.gmra.mxu1 %vm747_vm0, %v4155_v54 }
 0x14c   : > { %v4163_v56 = vpop.trf.xlu1  ;;  %v4165_v57 = vpop.trf.xlu0 }
 0x14d   : > { %3054 = vmatprep.mubr.msk.f32.mxu0 %vm747_vm0, %v4165_v57  ;;  %3102 = vmatprep.mubr.msk.f32.mxu1 %vm747_vm0, %v4163_v56 }
 0x150   : > { %v4171_v58 = vpop.trf.xlu1  ;;  %v4173_v59 = vpop.trf.xlu0 }
 0x151   : > { %3055 = vmatmul.mubr.msk.f32.gmra.mxu0 %vm747_vm0, %v4173_v59  ;;  %3103 = vmatmul.mubr.msk.f32.gmra.mxu1 %vm747_vm0, %v4171_v58 }
 0x154   : > { %v4179_v60 = vpop.trf.xlu1  ;;  %v4181_v61 = vpop.trf.xlu0 }
 0x155   : > { %3057 = vmatprep.mubr.msk.f32.mxu0 %vm747_vm0, %v4181_v61  ;;  %3105 = vmatprep.mubr.msk.f32.mxu1 %vm747_vm0, %v4179_v60 }
 0x158   : > { %v4187_v62 = vpop.trf.xlu1  ;;  %v4189_v63 = vpop.trf.xlu0 }
 0x159   : > { %3058 = vmatmul.mubr.msk.f32.gmra.mxu0 %vm747_vm0, %v4189_v63  ;;  %3106 = vmatmul.mubr.msk.f32.gmra.mxu1 %vm747_vm0, %v4187_v62 }
 0x15c   : > { %v4195_v0 = vpop.trf.xlu1  ;;  %v4197_v1 = vpop.trf.xlu0 }
 0x15d   : > { %3060 = vmatprep.mubr.msk.f32.mxu0 %vm747_vm0, %v4197_v1  ;;  %3108 = vmatprep.mubr.msk.f32.mxu1 %vm747_vm0, %v4195_v0 }
 0x160   : > { %v4203_v2 = vpop.trf.xlu1  ;;  %v4205_v3 = vpop.trf.xlu0 }
 0x161   : > { %3061 = vmatmul.mubr.msk.f32.gmra.mxu0 %vm747_vm0, %v4205_v3  ;;  %3109 = vmatmul.mubr.msk.f32.gmra.mxu1 %vm747_vm0, %v4203_v2 }
 0x164   : > { %v4211_v4 = vpop.trf.xlu1  ;;  %v4213_v5 = vpop.trf.xlu0 }
 0x165   : > { %3063 = vmatprep.mubr.msk.f32.mxu0 %vm747_vm0, %v4213_v5  ;;  %3111 = vmatprep.mubr.msk.f32.mxu1 %vm747_vm0, %v4211_v4 }
 0x168   : > { %v4219_v6 = vpop.trf.xlu1  ;;  %v4221_v7 = vpop.trf.xlu0 }
 0x169   : > { %3064 = vmatmul.mubr.msk.f32.gmra.mxu0 %vm747_vm0, %v4221_v7  ;;  %3112 = vmatmul.mubr.msk.f32.gmra.mxu1 %vm747_vm0, %v4219_v6 }
 0x16c   : > { %v4227_v8 = vpop.trf.xlu1  ;;  %v4229_v9 = vpop.trf.xlu0 }
 0x16d   : > { %3066 = vmatprep.mubr.msk.f32.mxu0 %vm747_vm0, %v4229_v9  ;;  %3114 = vmatprep.mubr.msk.f32.mxu1 %vm747_vm0, %v4227_v8 }
 0x170   : > { %v4235_v14 = vpop.trf.xlu1  ;;  %v4237_v15 = vpop.trf.xlu0 }
 0x171   : > { %3067 = vmatmul.mubr.msk.f32.gmra.mxu0 %vm747_vm0, %v4237_v15  ;;  %3115 = vmatmul.mubr.msk.f32.gmra.mxu1 %vm747_vm0, %v4235_v14 }
 0x174   : > { %v4243_v16 = vpop.trf.xlu1  ;;  %v4245_v17 = vpop.trf.xlu0 }
 0x175   : > { %3069 = vmatprep.mubr.msk.f32.mxu0 %vm747_vm0, %v4245_v17  ;;  %3117 = vmatprep.mubr.msk.f32.mxu1 %vm747_vm0, %v4243_v16 }
 0x178   : > { %v4251_v20 = vpop.trf.xlu1  ;;  %v4253_v21 = vpop.trf.xlu0 }
 0x179   : > { %3070 = vmatmul.mubr.msk.f32.gmra.mxu0 %vm747_vm0, %v4253_v21  ;;  %3118 = vmatmul.mubr.msk.f32.gmra.mxu1 %vm747_vm0, %v4251_v20 }
 0x17c   : > { %v4259_v24 = vpop.trf.xlu1  ;;  %v4261_v25 = vpop.trf.xlu0 }
 0x17d   : > { %3072 = vmatprep.mubr.msk.f32.mxu0 %vm747_vm0, %v4261_v25  ;;  %3120 = vmatprep.mubr.msk.f32.mxu1 %vm747_vm0, %v4259_v24 }
 0x180   : > { %v4267_v26 = vpop.trf.xlu1  ;;  %v4269_v27 = vpop.trf.xlu0 }
 0x181   : > { %3073 = vmatmul.mubr.msk.f32.gmra.mxu0 %vm747_vm0, %v4269_v27  ;;  %3121 = vmatmul.mubr.msk.f32.gmra.mxu1 %vm747_vm0, %v4267_v26 }
 0x184   : > { %v4275_v30 = vpop.trf.xlu1  ;;  %v4277_v31 = vpop.trf.xlu0 }
 0x185   : > { %3075 = vmatprep.mubr.msk.f32.mxu0 %vm747_vm0, %v4277_v31  ;;  %3123 = vmatprep.mubr.msk.f32.mxu1 %vm747_vm0, %v4275_v30 }
 0x188   : > { %v4283_v34 = vpop.trf.xlu1  ;;  %v4285_v35 = vpop.trf.xlu0 }
 0x189   : > { %3076 = vmatmul.mubr.msk.f32.gmra.mxu0 %vm747_vm0, %v4285_v35  ;;  %3124 = vmatmul.mubr.msk.f32.gmra.mxu1 %vm747_vm0, %v4283_v34 }
 0x18a   : > { %3142 = vmatprep.mubr.msk.f32.mxu1 %vm747_vm0, %v4037_v11  ;;  %3254 = vmatprep.mubr.msk.f32.mxu0 %vm747_vm0, %v4037_v11  ;;  %v4436_v11 = vld [vmem:[#allocation8] ss:$0 sm:$0xff] }
 0x18d   : > { %3143 = vmatmul.mubr.msk.f32.vlgmr.msra.gmra.mxu1 %vm747_vm0, %v4045_v13  ;;  %3255 = vmatmul.mubr.msk.f32.vlgmr.msra.gmra.mxu0 %vm747_vm0, %v4045_v13 }
 0x18e   : > { %3145 = vmatprep.mubr.msk.f32.mxu1 %vm747_vm0, %v4053_v19  ;;  %3257 = vmatprep.mubr.msk.f32.mxu0 %vm747_vm0, %v4053_v19 }
 0x191   : > { %3146 = vmatmul.mubr.msk.f32.gmra.mxu1 %vm747_vm0, %v4061_v23  ;;  %3258 = vmatmul.mubr.msk.f32.gmra.mxu0 %vm747_vm0, %v4061_v23 }
 0x192   : > { %3148 = vmatprep.mubr.msk.f32.mxu1 %vm747_vm0, %v4069_v29  ;;  %3260 = vmatprep.mubr.msk.f32.mxu0 %vm747_vm0, %v4069_v29 }
 0x195   : > { %3149 = vmatmul.mubr.msk.f32.gmra.mxu1 %vm747_vm0, %v4077_v33  ;;  %3261 = vmatmul.mubr.msk.f32.gmra.mxu0 %vm747_vm0, %v4077_v33 }
 0x196   : > { %3151 = vmatprep.mubr.msk.f32.mxu1 %vm747_vm0, %v4085_v37  ;;  %3263 = vmatprep.mubr.msk.f32.mxu0 %vm747_vm0, %v4085_v37 }
 0x199   : > { %3152 = vmatmul.mubr.msk.f32.gmra.mxu1 %vm747_vm0, %v4093_v39  ;;  %3264 = vmatmul.mubr.msk.f32.gmra.mxu0 %vm747_vm0, %v4093_v39 }
 0x19a   : > { %3154 = vmatprep.mubr.msk.f32.mxu1 %vm747_vm0, %v4101_v41  ;;  %3266 = vmatprep.mubr.msk.f32.mxu0 %vm747_vm0, %v4101_v41 }
 0x19d   : > { %3155 = vmatmul.mubr.msk.f32.gmra.mxu1 %vm747_vm0, %v4109_v43  ;;  %3267 = vmatmul.mubr.msk.f32.gmra.mxu0 %vm747_vm0, %v4109_v43 }
 0x19e   : > { %3157 = vmatprep.mubr.msk.f32.mxu1 %vm747_vm0, %v4117_v45  ;;  %3269 = vmatprep.mubr.msk.f32.mxu0 %vm747_vm0, %v4117_v45 }
 0x1a1   : > { %3158 = vmatmul.mubr.msk.f32.gmra.mxu1 %vm747_vm0, %v4125_v47  ;;  %3270 = vmatmul.mubr.msk.f32.gmra.mxu0 %vm747_vm0, %v4125_v47 }
 0x1a2   : > { %3160 = vmatprep.mubr.msk.f32.mxu1 %vm747_vm0, %v4133_v49  ;;  %3272 = vmatprep.mubr.msk.f32.mxu0 %vm747_vm0, %v4133_v49 }
 0x1a5   : > { %3161 = vmatmul.mubr.msk.f32.gmra.mxu1 %vm747_vm0, %v4141_v51  ;;  %3273 = vmatmul.mubr.msk.f32.gmra.mxu0 %vm747_vm0, %v4141_v51 }
 0x1a6   : > { %3163 = vmatprep.mubr.msk.f32.mxu1 %vm747_vm0, %v4149_v53  ;;  %3275 = vmatprep.mubr.msk.f32.mxu0 %vm747_vm0, %v4149_v53 }
 0x1a9   : > { %3164 = vmatmul.mubr.msk.f32.gmra.mxu1 %vm747_vm0, %v4157_v55  ;;  %3276 = vmatmul.mubr.msk.f32.gmra.mxu0 %vm747_vm0, %v4157_v55 }
 0x1aa   : > { %3166 = vmatprep.mubr.msk.f32.mxu1 %vm747_vm0, %v4165_v57  ;;  %3278 = vmatprep.mubr.msk.f32.mxu0 %vm747_vm0, %v4165_v57 }
 0x1ad   : > { %3167 = vmatmul.mubr.msk.f32.gmra.mxu1 %vm747_vm0, %v4173_v59  ;;  %3279 = vmatmul.mubr.msk.f32.gmra.mxu0 %vm747_vm0, %v4173_v59 }
 0x1ae   : > { %3169 = vmatprep.mubr.msk.f32.mxu1 %vm747_vm0, %v4181_v61  ;;  %3281 = vmatprep.mubr.msk.f32.mxu0 %vm747_vm0, %v4181_v61 }
 0x1b1   : > { %3170 = vmatmul.mubr.msk.f32.gmra.mxu1 %vm747_vm0, %v4189_v63  ;;  %3282 = vmatmul.mubr.msk.f32.gmra.mxu0 %vm747_vm0, %v4189_v63 }
 0x1b2   : > { %3172 = vmatprep.mubr.msk.f32.mxu1 %vm747_vm0, %v4197_v1  ;;  %3284 = vmatprep.mubr.msk.f32.mxu0 %vm747_vm0, %v4197_v1 }
 0x1b5   : > { %3173 = vmatmul.mubr.msk.f32.gmra.mxu1 %vm747_vm0, %v4205_v3  ;;  %3285 = vmatmul.mubr.msk.f32.gmra.mxu0 %vm747_vm0, %v4205_v3 }
 0x1b6   : > { %3175 = vmatprep.mubr.msk.f32.mxu1 %vm747_vm0, %v4213_v5  ;;  %3287 = vmatprep.mubr.msk.f32.mxu0 %vm747_vm0, %v4213_v5 }
 0x1b9   : > { %3176 = vmatmul.mubr.msk.f32.gmra.mxu1 %vm747_vm0, %v4221_v7  ;;  %3288 = vmatmul.mubr.msk.f32.gmra.mxu0 %vm747_vm0, %v4221_v7 }
 0x1ba   : > { %3178 = vmatprep.mubr.msk.f32.mxu1 %vm747_vm0, %v4229_v9  ;;  %3290 = vmatprep.mubr.msk.f32.mxu0 %vm747_vm0, %v4229_v9 }
 0x1bd   : > { %3179 = vmatmul.mubr.msk.f32.gmra.mxu1 %vm747_vm0, %v4237_v15  ;;  %3291 = vmatmul.mubr.msk.f32.gmra.mxu0 %vm747_vm0, %v4237_v15 }
 0x1be   : > { %3181 = vmatprep.mubr.msk.f32.mxu1 %vm747_vm0, %v4245_v17  ;;  %3293 = vmatprep.mubr.msk.f32.mxu0 %vm747_vm0, %v4245_v17 }
 0x1c1   : > { %3182 = vmatmul.mubr.msk.f32.gmra.mxu1 %vm747_vm0, %v4253_v21  ;;  %3294 = vmatmul.mubr.msk.f32.gmra.mxu0 %vm747_vm0, %v4253_v21 }
 0x1c2   : > { %3184 = vmatprep.mubr.msk.f32.mxu1 %vm747_vm0, %v4261_v25  ;;  %3296 = vmatprep.mubr.msk.f32.mxu0 %vm747_vm0, %v4261_v25 }
 0x1c5   : > { %3185 = vmatmul.mubr.msk.f32.gmra.mxu1 %vm747_vm0, %v4269_v27  ;;  %3297 = vmatmul.mubr.msk.f32.gmra.mxu0 %vm747_vm0, %v4269_v27 }
 0x1c6   : > { %3187 = vmatprep.mubr.msk.f32.mxu1 %vm747_vm0, %v4277_v31  ;;  %3299 = vmatprep.mubr.msk.f32.mxu0 %vm747_vm0, %v4277_v31 }
 0x1c9   : > { %3188 = vmatmul.mubr.msk.f32.gmra.mxu1 %vm747_vm0, %v4285_v35  ;;  %3300 = vmatmul.mubr.msk.f32.gmra.mxu0 %vm747_vm0, %v4285_v35 }
 0x1ca   : > { %3190 = vmatprep.mubr.msk.f32.mxu1 %vm747_vm0, %v4035_v10  ;;  %3302 = vmatprep.mubr.msk.f32.mxu0 %vm747_vm0, %v4035_v10 }
 0x1cd   : > { %3191 = vmatmul.mubr.msk.f32.gmra.mxu1 %vm747_vm0, %v4043_v12  ;;  %3303 = vmatmul.mubr.msk.f32.gmra.mxu0 %vm747_vm0, %v4043_v12 }
 0x1ce   : > { %3193 = vmatprep.mubr.msk.f32.mxu1 %vm747_vm0, %v4051_v18  ;;  %3305 = vmatprep.mubr.msk.f32.mxu0 %vm747_vm0, %v4051_v18 }
 0x1d1   : > { %v3032_v10 = vpop.f32.mrf.mxu0  ;;  %v3080_v12 = vpop.f32.mrf.mxu1  ;;  %3194 = vmatmul.mubr.msk.f32.gmra.mxu1 %vm747_vm0, %v4059_v22  ;;  %3306 = vmatmul.mubr.msk.f32.gmra.mxu0 %vm747_vm0, %v4059_v22 }
 0x1d2   : > { %v1012_v13 = vadd.f32 %v3032_v10, %v4436_v11  ;;  %v1172_v18 = vadd.f32 %v3080_v12, %v4436_v11  ;;  %3196 = vmatprep.mubr.msk.f32.mxu1 %vm747_vm0, %v4067_v28  ;;  %3308 = vmatprep.mubr.msk.f32.mxu0 %vm747_vm0, %v4067_v28 }
 0x1d3   : > { %v1006_v19 = vpop.f32.mrf.mxu0  ;;  %v1166_v23 = vpop.f32.mrf.mxu1 }
 0x1d4   : > { %1326 = vst [vmem:[%s4442_s17 + $0x8] sm:$0xff] %v1012_v13  ;;  %1358 = vst [vmem:[%s4442_s17 + $0x108] sm:$0xff] %v1172_v18  ;;  %v1007_v29 = vadd.f32 %v4436_v11, %v1006_v19  ;;  %v1167_v33 = vadd.f32 %v4436_v11, %v1166_v23 }
 0x1d5   : > { %3197 = vmatmul.mubr.msk.f32.gmra.mxu1 %vm747_vm0, %v4075_v32  ;;  %3309 = vmatmul.mubr.msk.f32.gmra.mxu0 %vm747_vm0, %v4075_v32 }
 0x1d6   : > { %1325 = vst [vmem:[%s4442_s17] sm:$0xff] %v1007_v29  ;;  %1357 = vst [vmem:[%s4442_s17 + $0x100] sm:$0xff] %v1167_v33  ;;  %3199 = vmatprep.mubr.msk.f32.mxu1 %vm747_vm0, %v4083_v36  ;;  %3311 = vmatprep.mubr.msk.f32.mxu0 %vm747_vm0, %v4083_v36 }
 0x1d9   : > { %v3035_v22 = vpop.f32.mrf.mxu0  ;;  %v3083_v28 = vpop.f32.mrf.mxu1  ;;  %3200 = vmatmul.mubr.msk.f32.gmra.mxu1 %vm747_vm0, %v4091_v38  ;;  %3312 = vmatmul.mubr.msk.f32.gmra.mxu0 %vm747_vm0, %v4091_v38 }
 0x1da   : > { %v1022_v32 = vadd.f32 %v3035_v22, %v4436_v11  ;;  %v1182_v37 = vadd.f32 %v3083_v28, %v4436_v11  ;;  %3202 = vmatprep.mubr.msk.f32.mxu1 %vm747_vm0, %v4099_v40  ;;  %3314 = vmatprep.mubr.msk.f32.mxu0 %vm747_vm0, %v4099_v40 }
 0x1db   : > { %v1016_v36 = vpop.f32.mrf.mxu0  ;;  %v1176_v39 = vpop.f32.mrf.mxu1 }
 0x1dc   : > { %1328 = vst [vmem:[%s4442_s17 + $0x18] sm:$0xff] %v1022_v32  ;;  %1360 = vst [vmem:[%s4442_s17 + $0x118] sm:$0xff] %v1182_v37  ;;  %v1017_v41 = vadd.f32 %v4436_v11, %v1016_v36  ;;  %v1177_v43 = vadd.f32 %v4436_v11, %v1176_v39 }
 0x1dd   : > { %3203 = vmatmul.mubr.msk.f32.gmra.mxu1 %vm747_vm0, %v4107_v42  ;;  %3315 = vmatmul.mubr.msk.f32.gmra.mxu0 %vm747_vm0, %v4107_v42 }
 0x1de   : > { %1327 = vst [vmem:[%s4442_s17 + $0x10] sm:$0xff] %v1017_v41  ;;  %1359 = vst [vmem:[%s4442_s17 + $0x110] sm:$0xff] %v1177_v43  ;;  %3205 = vmatprep.mubr.msk.f32.mxu1 %vm747_vm0, %v4115_v44  ;;  %3317 = vmatprep.mubr.msk.f32.mxu0 %vm747_vm0, %v4115_v44 }
 0x1e1   : > { %v3038_v38 = vpop.f32.mrf.mxu0  ;;  %v3086_v40 = vpop.f32.mrf.mxu1  ;;  %3206 = vmatmul.mubr.msk.f32.gmra.mxu1 %vm747_vm0, %v4123_v46  ;;  %3318 = vmatmul.mubr.msk.f32.gmra.mxu0 %vm747_vm0, %v4123_v46 }
 0x1e2   : > { %v1032_v42 = vadd.f32 %v3038_v38, %v4436_v11  ;;  %v1192_v45 = vadd.f32 %v3086_v40, %v4436_v11  ;;  %3208 = vmatprep.mubr.msk.f32.mxu1 %vm747_vm0, %v4131_v48  ;;  %3320 = vmatprep.mubr.msk.f32.mxu0 %vm747_vm0, %v4131_v48 }
 0x1e3   : > { %v1026_v44 = vpop.f32.mrf.mxu0  ;;  %v1186_v47 = vpop.f32.mrf.mxu1 }
 0x1e4   : > { %1330 = vst [vmem:[%s4442_s17 + $0x28] sm:$0xff] %v1032_v42  ;;  %1362 = vst [vmem:[%s4442_s17 + $0x128] sm:$0xff] %v1192_v45  ;;  %v1027_v49 = vadd.f32 %v4436_v11, %v1026_v44  ;;  %v1187_v51 = vadd.f32 %v4436_v11, %v1186_v47 }
 0x1e5   : > { %3209 = vmatmul.mubr.msk.f32.gmra.mxu1 %vm747_vm0, %v4139_v50  ;;  %3321 = vmatmul.mubr.msk.f32.gmra.mxu0 %vm747_vm0, %v4139_v50 }
 0x1e6   : > { %1329 = vst [vmem:[%s4442_s17 + $0x20] sm:$0xff] %v1027_v49  ;;  %1361 = vst [vmem:[%s4442_s17 + $0x120] sm:$0xff] %v1187_v51  ;;  %3211 = vmatprep.mubr.msk.f32.mxu1 %vm747_vm0, %v4147_v52  ;;  %3323 = vmatprep.mubr.msk.f32.mxu0 %vm747_vm0, %v4147_v52 }
 0x1e9   : > { %v3041_v46 = vpop.f32.mrf.mxu0  ;;  %v3089_v48 = vpop.f32.mrf.mxu1  ;;  %3212 = vmatmul.mubr.msk.f32.gmra.mxu1 %vm747_vm0, %v4155_v54  ;;  %3324 = vmatmul.mubr.msk.f32.gmra.mxu0 %vm747_vm0, %v4155_v54 }
 0x1ea   : > { %v1042_v50 = vadd.f32 %v3041_v46, %v4436_v11  ;;  %v1202_v53 = vadd.f32 %v3089_v48, %v4436_v11  ;;  %3214 = vmatprep.mubr.msk.f32.mxu1 %vm747_vm0, %v4163_v56  ;;  %3326 = vmatprep.mubr.msk.f32.mxu0 %vm747_vm0, %v4163_v56 }
 0x1eb   : > { %v1036_v52 = vpop.f32.mrf.mxu0  ;;  %v1196_v55 = vpop.f32.mrf.mxu1 }
 0x1ec   : > { %1332 = vst [vmem:[%s4442_s17 + $0x38] sm:$0xff] %v1042_v50  ;;  %1364 = vst [vmem:[%s4442_s17 + $0x138] sm:$0xff] %v1202_v53  ;;  %v1037_v57 = vadd.f32 %v4436_v11, %v1036_v52  ;;  %v1197_v59 = vadd.f32 %v4436_v11, %v1196_v55 }
 0x1ed   : > { %3215 = vmatmul.mubr.msk.f32.gmra.mxu1 %vm747_vm0, %v4171_v58  ;;  %3327 = vmatmul.mubr.msk.f32.gmra.mxu0 %vm747_vm0, %v4171_v58 }
 0x1ee   : > { %1331 = vst [vmem:[%s4442_s17 + $0x30] sm:$0xff] %v1037_v57  ;;  %1363 = vst [vmem:[%s4442_s17 + $0x130] sm:$0xff] %v1197_v59  ;;  %3217 = vmatprep.mubr.msk.f32.mxu1 %vm747_vm0, %v4179_v60  ;;  %3329 = vmatprep.mubr.msk.f32.mxu0 %vm747_vm0, %v4179_v60 }
 0x1f1   : > { %v3044_v54 = vpop.f32.mrf.mxu0  ;;  %v3092_v56 = vpop.f32.mrf.mxu1  ;;  %3218 = vmatmul.mubr.msk.f32.gmra.mxu1 %vm747_vm0, %v4187_v62  ;;  %3330 = vmatmul.mubr.msk.f32.gmra.mxu0 %vm747_vm0, %v4187_v62 }
 0x1f2   : > { %v1052_v58 = vadd.f32 %v3044_v54, %v4436_v11  ;;  %v1212_v61 = vadd.f32 %v3092_v56, %v4436_v11  ;;  %3220 = vmatprep.mubr.msk.f32.mxu1 %vm747_vm0, %v4195_v0  ;;  %3332 = vmatprep.mubr.msk.f32.mxu0 %vm747_vm0, %v4195_v0 }
 0x1f3   : > { %v1046_v60 = vpop.f32.mrf.mxu0  ;;  %v1206_v63 = vpop.f32.mrf.mxu1 }
 0x1f4   : > { %1334 = vst [vmem:[%s4442_s17 + $0x48] sm:$0xff] %v1052_v58  ;;  %1366 = vst [vmem:[%s4442_s17 + $0x148] sm:$0xff] %v1212_v61  ;;  %v1047_v1 = vadd.f32 %v4436_v11, %v1046_v60  ;;  %v1207_v3 = vadd.f32 %v4436_v11, %v1206_v63 }
 0x1f5   : > { %3221 = vmatmul.mubr.msk.f32.gmra.mxu1 %vm747_vm0, %v4203_v2  ;;  %3333 = vmatmul.mubr.msk.f32.gmra.mxu0 %vm747_vm0, %v4203_v2 }
 0x1f6   : > { %1333 = vst [vmem:[%s4442_s17 + $0x40] sm:$0xff] %v1047_v1  ;;  %1365 = vst [vmem:[%s4442_s17 + $0x140] sm:$0xff] %v1207_v3  ;;  %3223 = vmatprep.mubr.msk.f32.mxu1 %vm747_vm0, %v4211_v4  ;;  %3335 = vmatprep.mubr.msk.f32.mxu0 %vm747_vm0, %v4211_v4 }
 0x1f9   : > { %v3047_v62 = vpop.f32.mrf.mxu0  ;;  %v3095_v0 = vpop.f32.mrf.mxu1  ;;  %3224 = vmatmul.mubr.msk.f32.gmra.mxu1 %vm747_vm0, %v4219_v6  ;;  %3336 = vmatmul.mubr.msk.f32.gmra.mxu0 %vm747_vm0, %v4219_v6 }
 0x1fa   : > { %v1062_v2 = vadd.f32 %v3047_v62, %v4436_v11  ;;  %v1222_v5 = vadd.f32 %v3095_v0, %v4436_v11  ;;  %3226 = vmatprep.mubr.msk.f32.mxu1 %vm747_vm0, %v4227_v8  ;;  %3338 = vmatprep.mubr.msk.f32.mxu0 %vm747_vm0, %v4227_v8 }
 0x1fb   : > { %v1056_v4 = vpop.f32.mrf.mxu0  ;;  %v1216_v7 = vpop.f32.mrf.mxu1 }
 0x1fc   : > { %1336 = vst [vmem:[%s4442_s17 + $0x58] sm:$0xff] %v1062_v2  ;;  %1368 = vst [vmem:[%s4442_s17 + $0x158] sm:$0xff] %v1222_v5  ;;  %v1057_v9 = vadd.f32 %v4436_v11, %v1056_v4  ;;  %v1217_v15 = vadd.f32 %v4436_v11, %v1216_v7 }
 0x1fd   : > { %3227 = vmatmul.mubr.msk.f32.gmra.mxu1 %vm747_vm0, %v4235_v14  ;;  %3339 = vmatmul.mubr.msk.f32.gmra.mxu0 %vm747_vm0, %v4235_v14 }
 0x1fe   : > { %1335 = vst [vmem:[%s4442_s17 + $0x50] sm:$0xff] %v1057_v9  ;;  %1367 = vst [vmem:[%s4442_s17 + $0x150] sm:$0xff] %v1217_v15  ;;  %3229 = vmatprep.mubr.msk.f32.mxu1 %vm747_vm0, %v4243_v16  ;;  %3341 = vmatprep.mubr.msk.f32.mxu0 %vm747_vm0, %v4243_v16 }
 0x201   : > { %v3050_v6 = vpop.f32.mrf.mxu0  ;;  %v3098_v8 = vpop.f32.mrf.mxu1  ;;  %3230 = vmatmul.mubr.msk.f32.gmra.mxu1 %vm747_vm0, %v4251_v20  ;;  %3342 = vmatmul.mubr.msk.f32.gmra.mxu0 %vm747_vm0, %v4251_v20 }
 0x202   : > { %v1072_v14 = vadd.f32 %v3050_v6, %v4436_v11  ;;  %v1232_v17 = vadd.f32 %v3098_v8, %v4436_v11  ;;  %3232 = vmatprep.mubr.msk.f32.mxu1 %vm747_vm0, %v4259_v24  ;;  %3344 = vmatprep.mubr.msk.f32.mxu0 %vm747_vm0, %v4259_v24 }
 0x203   : > { %v1066_v16 = vpop.f32.mrf.mxu0  ;;  %v1226_v21 = vpop.f32.mrf.mxu1 }
 0x204   : > { %1338 = vst [vmem:[%s4442_s17 + $0x68] sm:$0xff] %v1072_v14  ;;  %1370 = vst [vmem:[%s4442_s17 + $0x168] sm:$0xff] %v1232_v17  ;;  %v1067_v25 = vadd.f32 %v4436_v11, %v1066_v16  ;;  %v1227_v27 = vadd.f32 %v4436_v11, %v1226_v21 }
 0x205   : > { %3233 = vmatmul.mubr.msk.f32.gmra.mxu1 %vm747_vm0, %v4267_v26  ;;  %3345 = vmatmul.mubr.msk.f32.gmra.mxu0 %vm747_vm0, %v4267_v26 }
 0x206   : > { %1337 = vst [vmem:[%s4442_s17 + $0x60] sm:$0xff] %v1067_v25  ;;  %1369 = vst [vmem:[%s4442_s17 + $0x160] sm:$0xff] %v1227_v27  ;;  %3235 = vmatprep.mubr.msk.f32.mxu1 %vm747_vm0, %v4275_v30  ;;  %3347 = vmatprep.mubr.msk.f32.mxu0 %vm747_vm0, %v4275_v30 }
 0x209   : > { %v3053_v20 = vpop.f32.mrf.mxu0  ;;  %v3101_v24 = vpop.f32.mrf.mxu1  ;;  %3236 = vmatmul.mubr.msk.f32.gmra.mxu1 %vm747_vm0, %v4283_v34  ;;  %3348 = vmatmul.mubr.msk.f32.gmra.mxu0 %vm747_vm0, %v4283_v34 }
 0x20a   : > { %v1082_v26 = vadd.f32 %v3053_v20, %v4436_v11  ;;  %v1242_v31 = vadd.f32 %v3101_v24, %v4436_v11 }
 0x20b   : > { %v1076_v35 = vpop.f32.mrf.mxu0  ;;  %v1236_v10 = vpop.f32.mrf.mxu1 }
 0x20c   : > { %1340 = vst [vmem:[%s4442_s17 + $0x78] sm:$0xff] %v1082_v26  ;;  %1372 = vst [vmem:[%s4442_s17 + $0x178] sm:$0xff] %v1242_v31  ;;  %v1077_v30 = vadd.f32 %v4436_v11, %v1076_v35  ;;  %v1237_v12 = vadd.f32 %v4436_v11, %v1236_v10 }
 0x20e   : > { %1339 = vst [vmem:[%s4442_s17 + $0x70] sm:$0xff] %v1077_v30  ;;  %1371 = vst [vmem:[%s4442_s17 + $0x170] sm:$0xff] %v1237_v12  ;;  %v4682_v12 = vld [vmem:[#allocation10] ss:$0 sm:$0xff] }
 0x211   : > { %v3056_v13 = vpop.f32.mrf.mxu0  ;;  %v3104_v34 = vpop.f32.mrf.mxu1 }
 0x212   : > { %v1092_v18 = vadd.f32 %v3056_v13, %v4436_v11  ;;  %v1252_v19 = vadd.f32 %v3104_v34, %v4436_v11  ;;  %v4684_v13 = vld [vmem:[#allocation11] ss:$0 sm:$0xff] }
 0x213   : > { %v1086_v23 = vpop.f32.mrf.mxu0  ;;  %v1246_v29 = vpop.f32.mrf.mxu1 }
 0x214   : > { %1342 = vst [vmem:[%s4442_s17 + $0x88] sm:$0xff] %v1092_v18  ;;  %1374 = vst [vmem:[%s4442_s17 + $0x188] sm:$0xff] %v1252_v19  ;;  %v1087_v33 = vadd.f32 %v4436_v11, %v1086_v23  ;;  %v1247_v22 = vadd.f32 %v4436_v11, %v1246_v29 }
 0x216   : > { %1341 = vst [vmem:[%s4442_s17 + $0x80] sm:$0xff] %v1087_v33  ;;  %1373 = vst [vmem:[%s4442_s17 + $0x180] sm:$0xff] %v1247_v22 }
 0x219   : > { %v3059_v28 = vpop.f32.mrf.mxu0  ;;  %v3107_v32 = vpop.f32.mrf.mxu1 }
 0x21a   : > { %v1102_v37 = vadd.f32 %v3059_v28, %v4436_v11  ;;  %v1262_v36 = vadd.f32 %v3107_v32, %v4436_v11 }
 0x21b   : > { %v1096_v39 = vpop.f32.mrf.mxu0  ;;  %v1256_v41 = vpop.f32.mrf.mxu1 }
 0x21c   : > { %1344 = vst [vmem:[%s4442_s17 + $0x98] sm:$0xff] %v1102_v37  ;;  %1376 = vst [vmem:[%s4442_s17 + $0x198] sm:$0xff] %v1262_v36  ;;  %v1097_v43 = vadd.f32 %v4436_v11, %v1096_v39  ;;  %v1257_v38 = vadd.f32 %v4436_v11, %v1256_v41 }
 0x21e   : > { %1343 = vst [vmem:[%s4442_s17 + $0x90] sm:$0xff] %v1097_v43  ;;  %1375 = vst [vmem:[%s4442_s17 + $0x190] sm:$0xff] %v1257_v38 }
 0x221   : > { %v3062_v40 = vpop.f32.mrf.mxu0  ;;  %v3110_v42 = vpop.f32.mrf.mxu1 }
 0x222   : > { %v1112_v45 = vadd.f32 %v3062_v40, %v4436_v11  ;;  %v1272_v44 = vadd.f32 %v3110_v42, %v4436_v11 }
 0x223   : > { %v1106_v47 = vpop.f32.mrf.mxu0  ;;  %v1266_v49 = vpop.f32.mrf.mxu1 }
 0x224   : > { %1346 = vst [vmem:[%s4442_s17 + $0xa8] sm:$0xff] %v1112_v45  ;;  %1378 = vst [vmem:[%s4442_s17 + $0x1a8] sm:$0xff] %v1272_v44  ;;  %v1107_v51 = vadd.f32 %v4436_v11, %v1106_v47  ;;  %v1267_v46 = vadd.f32 %v4436_v11, %v1266_v49 }
 0x226   : > { %1345 = vst [vmem:[%s4442_s17 + $0xa0] sm:$0xff] %v1107_v51  ;;  %1377 = vst [vmem:[%s4442_s17 + $0x1a0] sm:$0xff] %v1267_v46 }
 0x229   : > { %v3065_v48 = vpop.f32.mrf.mxu0  ;;  %v3113_v50 = vpop.f32.mrf.mxu1 }
 0x22a   : > { %v1122_v53 = vadd.f32 %v3065_v48, %v4436_v11  ;;  %v1282_v52 = vadd.f32 %v3113_v50, %v4436_v11 }
 0x22b   : > { %v1116_v55 = vpop.f32.mrf.mxu0  ;;  %v1276_v57 = vpop.f32.mrf.mxu1 }
 0x22c   : > { %1348 = vst [vmem:[%s4442_s17 + $0xb8] sm:$0xff] %v1122_v53  ;;  %1380 = vst [vmem:[%s4442_s17 + $0x1b8] sm:$0xff] %v1282_v52  ;;  %v1117_v59 = vadd.f32 %v4436_v11, %v1116_v55  ;;  %v1277_v54 = vadd.f32 %v4436_v11, %v1276_v57 }
 0x22e   : > { %1347 = vst [vmem:[%s4442_s17 + $0xb0] sm:$0xff] %v1117_v59  ;;  %1379 = vst [vmem:[%s4442_s17 + $0x1b0] sm:$0xff] %v1277_v54 }
 0x231   : > { %v3068_v56 = vpop.f32.mrf.mxu0  ;;  %v3116_v58 = vpop.f32.mrf.mxu1 }
 0x232   : > { %v1132_v61 = vadd.f32 %v3068_v56, %v4436_v11  ;;  %v1292_v60 = vadd.f32 %v3116_v58, %v4436_v11 }
 0x233   : > { %v1126_v63 = vpop.f32.mrf.mxu0  ;;  %v1286_v1 = vpop.f32.mrf.mxu1 }
 0x234   : > { %1350 = vst [vmem:[%s4442_s17 + $0xc8] sm:$0xff] %v1132_v61  ;;  %1382 = vst [vmem:[%s4442_s17 + $0x1c8] sm:$0xff] %v1292_v60  ;;  %v1127_v3 = vadd.f32 %v4436_v11, %v1126_v63  ;;  %v1287_v62 = vadd.f32 %v4436_v11, %v1286_v1 }
 0x236   : > { %1349 = vst [vmem:[%s4442_s17 + $0xc0] sm:$0xff] %v1127_v3  ;;  %1381 = vst [vmem:[%s4442_s17 + $0x1c0] sm:$0xff] %v1287_v62 }
 0x239   : > { %v3071_v0 = vpop.f32.mrf.mxu0  ;;  %v3119_v2 = vpop.f32.mrf.mxu1 }
 0x23a   : > { %v1142_v5 = vadd.f32 %v3071_v0, %v4436_v11  ;;  %v1302_v4 = vadd.f32 %v3119_v2, %v4436_v11 }
 0x23b   : > { %v1136_v7 = vpop.f32.mrf.mxu0  ;;  %v1296_v9 = vpop.f32.mrf.mxu1 }
 0x23c   : > { %1352 = vst [vmem:[%s4442_s17 + $0xd8] sm:$0xff] %v1142_v5  ;;  %1384 = vst [vmem:[%s4442_s17 + $0x1d8] sm:$0xff] %v1302_v4  ;;  %v1137_v15 = vadd.f32 %v4436_v11, %v1136_v7  ;;  %v1297_v6 = vadd.f32 %v4436_v11, %v1296_v9 }
 0x23e   : > { %1351 = vst [vmem:[%s4442_s17 + $0xd0] sm:$0xff] %v1137_v15  ;;  %1383 = vst [vmem:[%s4442_s17 + $0x1d0] sm:$0xff] %v1297_v6 }
 0x241   : > { %v3074_v8 = vpop.f32.mrf.mxu0  ;;  %v3122_v14 = vpop.f32.mrf.mxu1 }
 0x242   : > { %v1152_v17 = vadd.f32 %v3074_v8, %v4436_v11  ;;  %v1312_v16 = vadd.f32 %v3122_v14, %v4436_v11 }
 0x243   : > { %v1146_v21 = vpop.f32.mrf.mxu0  ;;  %v1306_v25 = vpop.f32.mrf.mxu1 }
 0x244   : > { %1354 = vst [vmem:[%s4442_s17 + $0xe8] sm:$0xff] %v1152_v17  ;;  %1386 = vst [vmem:[%s4442_s17 + $0x1e8] sm:$0xff] %v1312_v16  ;;  %v1147_v27 = vadd.f32 %v4436_v11, %v1146_v21  ;;  %v1307_v20 = vadd.f32 %v4436_v11, %v1306_v25 }
 0x246   : > { %1353 = vst [vmem:[%s4442_s17 + $0xe0] sm:$0xff] %v1147_v27  ;;  %1385 = vst [vmem:[%s4442_s17 + $0x1e0] sm:$0xff] %v1307_v20 }
 0x249   : > { %v3077_v24 = vpop.f32.mrf.mxu0  ;;  %v3125_v26 = vpop.f32.mrf.mxu1 }
 0x24a   : > { %v1162_v31 = vadd.f32 %v3077_v24, %v4436_v11  ;;  %v1322_v35 = vadd.f32 %v3125_v26, %v4436_v11 }
 0x24b   : > { %v1156_v10 = vpop.f32.mrf.mxu0  ;;  %v1316_v30 = vpop.f32.mrf.mxu1 }
 0x24c   : > { %1356 = vst [vmem:[%s4442_s17 + $0xf8] sm:$0xff] %v1162_v31  ;;  %1388 = vst [vmem:[%s4442_s17 + $0x1f8] sm:$0xff] %v1322_v35  ;;  %v1157_v34 = vadd.f32 %v4436_v11, %v1156_v10  ;;  %v1317_v18 = vadd.f32 %v4436_v11, %v1316_v30 }
 0x24d   : > { %v3144_v19 = vpop.f32.mrf.mxu1  ;;  %v3256_v23 = vpop.f32.mrf.mxu0 }
 0x24e   : > { %1355 = vst [vmem:[%s4442_s17 + $0xf0] sm:$0xff] %v1157_v34  ;;  %1387 = vst [vmem:[%s4442_s17 + $0x1f0] sm:$0xff] %v1317_v18  ;;  %v1476_v11 = vadd.f32 %v3144_v19, %v4682_v12  ;;  %v1940_v29 = vadd.f32 %v3256_v23, %v4684_v13 }
 0x24f   : > { %v1470_v33 = vpop.f32.mrf.mxu1  ;;  %v1934_v22 = vpop.f32.mrf.mxu0 }
 0x250   : > { %1790 = vst [vmem:[%s4694_s18 + $0x8] sm:$0xff] %v1476_v11  ;;  %2254 = vst [vmem:[%s4700_s19 + $0x8] sm:$0xff] %v1940_v29  ;;  %v1471_v28 = vadd.f32 %v4682_v12, %v1470_v33  ;;  %v1935_v32 = vadd.f32 %v4684_v13, %v1934_v22 }
 0x251   : > { %v3147_v37 = vpop.f32.mrf.mxu1  ;;  %v3259_v36 = vpop.f32.mrf.mxu0 }
 0x252   : > { %1789 = vst [vmem:[%s4694_s18] sm:$0xff] %v1471_v28  ;;  %2253 = vst [vmem:[%s4700_s19] sm:$0xff] %v1935_v32  ;;  %v1486_v39 = vadd.f32 %v3147_v37, %v4682_v12  ;;  %v1950_v41 = vadd.f32 %v3259_v36, %v4684_v13 }
 0x253   : > { %v1480_v43 = vpop.f32.mrf.mxu1  ;;  %v1944_v38 = vpop.f32.mrf.mxu0 }
 0x254   : > { %1792 = vst [vmem:[%s4694_s18 + $0x18] sm:$0xff] %v1486_v39  ;;  %2256 = vst [vmem:[%s4700_s19 + $0x18] sm:$0xff] %v1950_v41  ;;  %v1481_v40 = vadd.f32 %v4682_v12, %v1480_v43  ;;  %v1945_v42 = vadd.f32 %v4684_v13, %v1944_v38 }
 0x255   : > { %v3150_v45 = vpop.f32.mrf.mxu1  ;;  %v3262_v44 = vpop.f32.mrf.mxu0 }
 0x256   : > { %1791 = vst [vmem:[%s4694_s18 + $0x10] sm:$0xff] %v1481_v40  ;;  %2255 = vst [vmem:[%s4700_s19 + $0x10] sm:$0xff] %v1945_v42  ;;  %v1496_v47 = vadd.f32 %v3150_v45, %v4682_v12  ;;  %v1960_v49 = vadd.f32 %v3262_v44, %v4684_v13 }
 0x257   : > { %v1490_v51 = vpop.f32.mrf.mxu1  ;;  %v1954_v46 = vpop.f32.mrf.mxu0 }
 0x258   : > { %1794 = vst [vmem:[%s4694_s18 + $0x28] sm:$0xff] %v1496_v47  ;;  %2258 = vst [vmem:[%s4700_s19 + $0x28] sm:$0xff] %v1960_v49  ;;  %v1491_v48 = vadd.f32 %v4682_v12, %v1490_v51  ;;  %v1955_v50 = vadd.f32 %v4684_v13, %v1954_v46 }
 0x259   : > { %v3153_v53 = vpop.f32.mrf.mxu1  ;;  %v3265_v52 = vpop.f32.mrf.mxu0 }
 0x25a   : > { %1793 = vst [vmem:[%s4694_s18 + $0x20] sm:$0xff] %v1491_v48  ;;  %2257 = vst [vmem:[%s4700_s19 + $0x20] sm:$0xff] %v1955_v50  ;;  %v1506_v55 = vadd.f32 %v3153_v53, %v4682_v12  ;;  %v1970_v57 = vadd.f32 %v3265_v52, %v4684_v13 }
 0x25b   : > { %v1500_v59 = vpop.f32.mrf.mxu1  ;;  %v1964_v54 = vpop.f32.mrf.mxu0 }
 0x25c   : > { %1796 = vst [vmem:[%s4694_s18 + $0x38] sm:$0xff] %v1506_v55  ;;  %2260 = vst [vmem:[%s4700_s19 + $0x38] sm:$0xff] %v1970_v57  ;;  %v1501_v56 = vadd.f32 %v4682_v12, %v1500_v59  ;;  %v1965_v58 = vadd.f32 %v4684_v13, %v1964_v54 }
 0x25d   : > { %v3156_v61 = vpop.f32.mrf.mxu1  ;;  %v3268_v60 = vpop.f32.mrf.mxu0 }
 0x25e   : > { %1795 = vst [vmem:[%s4694_s18 + $0x30] sm:$0xff] %v1501_v56  ;;  %2259 = vst [vmem:[%s4700_s19 + $0x30] sm:$0xff] %v1965_v58  ;;  %v1516_v63 = vadd.f32 %v3156_v61, %v4682_v12  ;;  %v1980_v1 = vadd.f32 %v3268_v60, %v4684_v13 }
 0x25f   : > { %v1510_v3 = vpop.f32.mrf.mxu1  ;;  %v1974_v62 = vpop.f32.mrf.mxu0 }
 0x260   : > { %1798 = vst [vmem:[%s4694_s18 + $0x48] sm:$0xff] %v1516_v63  ;;  %2262 = vst [vmem:[%s4700_s19 + $0x48] sm:$0xff] %v1980_v1  ;;  %v1511_v0 = vadd.f32 %v4682_v12, %v1510_v3  ;;  %v1975_v2 = vadd.f32 %v4684_v13, %v1974_v62 }
 0x261   : > { %v3159_v5 = vpop.f32.mrf.mxu1  ;;  %v3271_v4 = vpop.f32.mrf.mxu0 }
 0x262   : > { %1797 = vst [vmem:[%s4694_s18 + $0x40] sm:$0xff] %v1511_v0  ;;  %2261 = vst [vmem:[%s4700_s19 + $0x40] sm:$0xff] %v1975_v2  ;;  %v1526_v7 = vadd.f32 %v3159_v5, %v4682_v12  ;;  %v1990_v9 = vadd.f32 %v3271_v4, %v4684_v13 }
 0x263   : > { %v1520_v15 = vpop.f32.mrf.mxu1  ;;  %v1984_v6 = vpop.f32.mrf.mxu0 }
 0x264   : > { %1800 = vst [vmem:[%s4694_s18 + $0x58] sm:$0xff] %v1526_v7  ;;  %2264 = vst [vmem:[%s4700_s19 + $0x58] sm:$0xff] %v1990_v9  ;;  %v1521_v8 = vadd.f32 %v4682_v12, %v1520_v15  ;;  %v1985_v14 = vadd.f32 %v4684_v13, %v1984_v6 }
 0x265   : > { %v3162_v17 = vpop.f32.mrf.mxu1  ;;  %v3274_v16 = vpop.f32.mrf.mxu0 }
 0x266   : > { %1799 = vst [vmem:[%s4694_s18 + $0x50] sm:$0xff] %v1521_v8  ;;  %2263 = vst [vmem:[%s4700_s19 + $0x50] sm:$0xff] %v1985_v14  ;;  %v1536_v21 = vadd.f32 %v3162_v17, %v4682_v12  ;;  %v2000_v25 = vadd.f32 %v3274_v16, %v4684_v13 }
 0x267   : > { %v1530_v27 = vpop.f32.mrf.mxu1  ;;  %v1994_v20 = vpop.f32.mrf.mxu0 }
 0x268   : > { %1802 = vst [vmem:[%s4694_s18 + $0x68] sm:$0xff] %v1536_v21  ;;  %2266 = vst [vmem:[%s4700_s19 + $0x68] sm:$0xff] %v2000_v25  ;;  %v1531_v24 = vadd.f32 %v4682_v12, %v1530_v27  ;;  %v1995_v26 = vadd.f32 %v4684_v13, %v1994_v20 }
 0x269   : > { %v3165_v31 = vpop.f32.mrf.mxu1  ;;  %v3277_v35 = vpop.f32.mrf.mxu0 }
 0x26a   : > { %1801 = vst [vmem:[%s4694_s18 + $0x60] sm:$0xff] %v1531_v24  ;;  %2265 = vst [vmem:[%s4700_s19 + $0x60] sm:$0xff] %v1995_v26  ;;  %v1546_v10 = vadd.f32 %v3165_v31, %v4682_v12  ;;  %v2010_v30 = vadd.f32 %v3277_v35, %v4684_v13 }
 0x26b   : > { %v1540_v34 = vpop.f32.mrf.mxu1  ;;  %v2004_v18 = vpop.f32.mrf.mxu0 }
 0x26c   : > { %1804 = vst [vmem:[%s4694_s18 + $0x78] sm:$0xff] %v1546_v10  ;;  %2268 = vst [vmem:[%s4700_s19 + $0x78] sm:$0xff] %v2010_v30  ;;  %v1541_v19 = vadd.f32 %v4682_v12, %v1540_v34  ;;  %v2005_v23 = vadd.f32 %v4684_v13, %v2004_v18 }
 0x26d   : > { %v3168_v11 = vpop.f32.mrf.mxu1  ;;  %v3280_v29 = vpop.f32.mrf.mxu0 }
 0x26e   : > { %1803 = vst [vmem:[%s4694_s18 + $0x70] sm:$0xff] %v1541_v19  ;;  %2267 = vst [vmem:[%s4700_s19 + $0x70] sm:$0xff] %v2005_v23  ;;  %v1556_v33 = vadd.f32 %v3168_v11, %v4682_v12  ;;  %v2020_v22 = vadd.f32 %v3280_v29, %v4684_v13 }
 0x26f   : > { %v1550_v28 = vpop.f32.mrf.mxu1  ;;  %v2014_v32 = vpop.f32.mrf.mxu0 }
 0x270   : > { %1806 = vst [vmem:[%s4694_s18 + $0x88] sm:$0xff] %v1556_v33  ;;  %2270 = vst [vmem:[%s4700_s19 + $0x88] sm:$0xff] %v2020_v22  ;;  %v1551_v37 = vadd.f32 %v4682_v12, %v1550_v28  ;;  %v2015_v36 = vadd.f32 %v4684_v13, %v2014_v32 }
 0x271   : > { %v3171_v39 = vpop.f32.mrf.mxu1  ;;  %v3283_v41 = vpop.f32.mrf.mxu0 }
 0x272   : > { %1805 = vst [vmem:[%s4694_s18 + $0x80] sm:$0xff] %v1551_v37  ;;  %2269 = vst [vmem:[%s4700_s19 + $0x80] sm:$0xff] %v2015_v36  ;;  %v1566_v43 = vadd.f32 %v3171_v39, %v4682_v12  ;;  %v2030_v38 = vadd.f32 %v3283_v41, %v4684_v13 }
 0x273   : > { %v1560_v40 = vpop.f32.mrf.mxu1  ;;  %v2024_v42 = vpop.f32.mrf.mxu0 }
 0x274   : > { %1808 = vst [vmem:[%s4694_s18 + $0x98] sm:$0xff] %v1566_v43  ;;  %2272 = vst [vmem:[%s4700_s19 + $0x98] sm:$0xff] %v2030_v38  ;;  %v1561_v45 = vadd.f32 %v4682_v12, %v1560_v40  ;;  %v2025_v44 = vadd.f32 %v4684_v13, %v2024_v42 }
 0x275   : > { %v3174_v47 = vpop.f32.mrf.mxu1  ;;  %v3286_v49 = vpop.f32.mrf.mxu0 }
 0x276   : > { %1807 = vst [vmem:[%s4694_s18 + $0x90] sm:$0xff] %v1561_v45  ;;  %2271 = vst [vmem:[%s4700_s19 + $0x90] sm:$0xff] %v2025_v44  ;;  %v1576_v51 = vadd.f32 %v3174_v47, %v4682_v12  ;;  %v2040_v46 = vadd.f32 %v3286_v49, %v4684_v13 }
 0x277   : > { %v1570_v48 = vpop.f32.mrf.mxu1  ;;  %v2034_v50 = vpop.f32.mrf.mxu0 }
 0x278   : > { %1810 = vst [vmem:[%s4694_s18 + $0xa8] sm:$0xff] %v1576_v51  ;;  %2274 = vst [vmem:[%s4700_s19 + $0xa8] sm:$0xff] %v2040_v46  ;;  %v1571_v53 = vadd.f32 %v4682_v12, %v1570_v48  ;;  %v2035_v52 = vadd.f32 %v4684_v13, %v2034_v50 }
 0x279   : > { %v3177_v55 = vpop.f32.mrf.mxu1  ;;  %v3289_v57 = vpop.f32.mrf.mxu0 }
 0x27a   : > { %1809 = vst [vmem:[%s4694_s18 + $0xa0] sm:$0xff] %v1571_v53  ;;  %2273 = vst [vmem:[%s4700_s19 + $0xa0] sm:$0xff] %v2035_v52  ;;  %v1586_v59 = vadd.f32 %v3177_v55, %v4682_v12  ;;  %v2050_v54 = vadd.f32 %v3289_v57, %v4684_v13 }
 0x27b   : > { %v1580_v56 = vpop.f32.mrf.mxu1  ;;  %v2044_v58 = vpop.f32.mrf.mxu0 }
 0x27c   : > { %1812 = vst [vmem:[%s4694_s18 + $0xb8] sm:$0xff] %v1586_v59  ;;  %2276 = vst [vmem:[%s4700_s19 + $0xb8] sm:$0xff] %v2050_v54  ;;  %v1581_v61 = vadd.f32 %v4682_v12, %v1580_v56  ;;  %v2045_v60 = vadd.f32 %v4684_v13, %v2044_v58 }
 0x27d   : > { %v3180_v63 = vpop.f32.mrf.mxu1  ;;  %v3292_v1 = vpop.f32.mrf.mxu0 }
 0x27e   : > { %1811 = vst [vmem:[%s4694_s18 + $0xb0] sm:$0xff] %v1581_v61  ;;  %2275 = vst [vmem:[%s4700_s19 + $0xb0] sm:$0xff] %v2045_v60  ;;  %v1596_v3 = vadd.f32 %v3180_v63, %v4682_v12  ;;  %v2060_v62 = vadd.f32 %v3292_v1, %v4684_v13 }
 0x27f   : > { %v1590_v0 = vpop.f32.mrf.mxu1  ;;  %v2054_v2 = vpop.f32.mrf.mxu0 }
 0x280   : > { %1814 = vst [vmem:[%s4694_s18 + $0xc8] sm:$0xff] %v1596_v3  ;;  %2278 = vst [vmem:[%s4700_s19 + $0xc8] sm:$0xff] %v2060_v62  ;;  %v1591_v5 = vadd.f32 %v4682_v12, %v1590_v0  ;;  %v2055_v4 = vadd.f32 %v4684_v13, %v2054_v2 }
 0x281   : > { %v3183_v7 = vpop.f32.mrf.mxu1  ;;  %v3295_v9 = vpop.f32.mrf.mxu0 }
 0x282   : > { %1813 = vst [vmem:[%s4694_s18 + $0xc0] sm:$0xff] %v1591_v5  ;;  %2277 = vst [vmem:[%s4700_s19 + $0xc0] sm:$0xff] %v2055_v4  ;;  %v1606_v15 = vadd.f32 %v3183_v7, %v4682_v12  ;;  %v2070_v6 = vadd.f32 %v3295_v9, %v4684_v13 }
 0x283   : > { %v1600_v8 = vpop.f32.mrf.mxu1  ;;  %v2064_v14 = vpop.f32.mrf.mxu0 }
 0x284   : > { %1816 = vst [vmem:[%s4694_s18 + $0xd8] sm:$0xff] %v1606_v15  ;;  %2280 = vst [vmem:[%s4700_s19 + $0xd8] sm:$0xff] %v2070_v6  ;;  %v1601_v17 = vadd.f32 %v4682_v12, %v1600_v8  ;;  %v2065_v16 = vadd.f32 %v4684_v13, %v2064_v14 }
 0x285   : > { %v3186_v21 = vpop.f32.mrf.mxu1  ;;  %v3298_v25 = vpop.f32.mrf.mxu0 }
 0x286   : > { %1815 = vst [vmem:[%s4694_s18 + $0xd0] sm:$0xff] %v1601_v17  ;;  %2279 = vst [vmem:[%s4700_s19 + $0xd0] sm:$0xff] %v2065_v16  ;;  %v1616_v27 = vadd.f32 %v3186_v21, %v4682_v12  ;;  %v2080_v20 = vadd.f32 %v3298_v25, %v4684_v13 }
 0x287   : > { %v1610_v24 = vpop.f32.mrf.mxu1  ;;  %v2074_v26 = vpop.f32.mrf.mxu0 }
 0x288   : > { %1818 = vst [vmem:[%s4694_s18 + $0xe8] sm:$0xff] %v1616_v27  ;;  %2282 = vst [vmem:[%s4700_s19 + $0xe8] sm:$0xff] %v2080_v20  ;;  %v1611_v31 = vadd.f32 %v4682_v12, %v1610_v24  ;;  %v2075_v35 = vadd.f32 %v4684_v13, %v2074_v26 }
 0x289   : > { %v3189_v10 = vpop.f32.mrf.mxu1  ;;  %v3301_v30 = vpop.f32.mrf.mxu0 }
 0x28a   : > { %1817 = vst [vmem:[%s4694_s18 + $0xe0] sm:$0xff] %v1611_v31  ;;  %2281 = vst [vmem:[%s4700_s19 + $0xe0] sm:$0xff] %v2075_v35  ;;  %v1626_v34 = vadd.f32 %v3189_v10, %v4682_v12  ;;  %v2090_v18 = vadd.f32 %v3301_v30, %v4684_v13 }
 0x28b   : > { %v1620_v19 = vpop.f32.mrf.mxu1  ;;  %v2084_v23 = vpop.f32.mrf.mxu0 }
 0x28c   : > { %1820 = vst [vmem:[%s4694_s18 + $0xf8] sm:$0xff] %v1626_v34  ;;  %2284 = vst [vmem:[%s4700_s19 + $0xf8] sm:$0xff] %v2090_v18  ;;  %v1621_v11 = vadd.f32 %v4682_v12, %v1620_v19  ;;  %v2085_v29 = vadd.f32 %v4684_v13, %v2084_v23 }
 0x28d   : > { %v3192_v33 = vpop.f32.mrf.mxu1  ;;  %v3304_v22 = vpop.f32.mrf.mxu0 }
 0x28e   : > { %1819 = vst [vmem:[%s4694_s18 + $0xf0] sm:$0xff] %v1621_v11  ;;  %2283 = vst [vmem:[%s4700_s19 + $0xf0] sm:$0xff] %v2085_v29  ;;  %v1636_v28 = vadd.f32 %v3192_v33, %v4682_v12  ;;  %v2100_v32 = vadd.f32 %v3304_v22, %v4684_v13 }
 0x28f   : > { %v1630_v37 = vpop.f32.mrf.mxu1  ;;  %v2094_v36 = vpop.f32.mrf.mxu0 }
 0x290   : > { %1822 = vst [vmem:[%s4694_s18 + $0x108] sm:$0xff] %v1636_v28  ;;  %2286 = vst [vmem:[%s4700_s19 + $0x108] sm:$0xff] %v2100_v32  ;;  %v1631_v39 = vadd.f32 %v4682_v12, %v1630_v37  ;;  %v2095_v41 = vadd.f32 %v4684_v13, %v2094_v36 }
 0x291   : > { %v3195_v43 = vpop.f32.mrf.mxu1  ;;  %v3307_v38 = vpop.f32.mrf.mxu0 }
 0x292   : > { %1821 = vst [vmem:[%s4694_s18 + $0x100] sm:$0xff] %v1631_v39  ;;  %2285 = vst [vmem:[%s4700_s19 + $0x100] sm:$0xff] %v2095_v41  ;;  %v1646_v40 = vadd.f32 %v3195_v43, %v4682_v12  ;;  %v2110_v42 = vadd.f32 %v3307_v38, %v4684_v13 }
 0x293   : > { %v1640_v45 = vpop.f32.mrf.mxu1  ;;  %v2104_v44 = vpop.f32.mrf.mxu0 }
 0x294   : > { %1824 = vst [vmem:[%s4694_s18 + $0x118] sm:$0xff] %v1646_v40  ;;  %2288 = vst [vmem:[%s4700_s19 + $0x118] sm:$0xff] %v2110_v42  ;;  %v1641_v47 = vadd.f32 %v4682_v12, %v1640_v45  ;;  %v2105_v49 = vadd.f32 %v4684_v13, %v2104_v44 }
 0x295   : > { %v3198_v51 = vpop.f32.mrf.mxu1  ;;  %v3310_v46 = vpop.f32.mrf.mxu0 }
 0x296   : > { %1823 = vst [vmem:[%s4694_s18 + $0x110] sm:$0xff] %v1641_v47  ;;  %2287 = vst [vmem:[%s4700_s19 + $0x110] sm:$0xff] %v2105_v49  ;;  %v1656_v48 = vadd.f32 %v3198_v51, %v4682_v12  ;;  %v2120_v50 = vadd.f32 %v3310_v46, %v4684_v13 }
 0x297   : > { %v1650_v53 = vpop.f32.mrf.mxu1  ;;  %v2114_v52 = vpop.f32.mrf.mxu0 }
 0x298   : > { %1826 = vst [vmem:[%s4694_s18 + $0x128] sm:$0xff] %v1656_v48  ;;  %2290 = vst [vmem:[%s4700_s19 + $0x128] sm:$0xff] %v2120_v50  ;;  %v1651_v55 = vadd.f32 %v4682_v12, %v1650_v53  ;;  %v2115_v57 = vadd.f32 %v4684_v13, %v2114_v52 }
 0x299   : > { %v3201_v59 = vpop.f32.mrf.mxu1  ;;  %v3313_v54 = vpop.f32.mrf.mxu0 }
 0x29a   : > { %1825 = vst [vmem:[%s4694_s18 + $0x120] sm:$0xff] %v1651_v55  ;;  %2289 = vst [vmem:[%s4700_s19 + $0x120] sm:$0xff] %v2115_v57  ;;  %v1666_v56 = vadd.f32 %v3201_v59, %v4682_v12  ;;  %v2130_v58 = vadd.f32 %v3313_v54, %v4684_v13 }
 0x29b   : > { %v1660_v61 = vpop.f32.mrf.mxu1  ;;  %v2124_v60 = vpop.f32.mrf.mxu0 }
 0x29c   : > { %1828 = vst [vmem:[%s4694_s18 + $0x138] sm:$0xff] %v1666_v56  ;;  %2292 = vst [vmem:[%s4700_s19 + $0x138] sm:$0xff] %v2130_v58  ;;  %v1661_v63 = vadd.f32 %v4682_v12, %v1660_v61  ;;  %v2125_v1 = vadd.f32 %v4684_v13, %v2124_v60 }
 0x29d   : > { %v3204_v3 = vpop.f32.mrf.mxu1  ;;  %v3316_v62 = vpop.f32.mrf.mxu0 }
 0x29e   : > { %1827 = vst [vmem:[%s4694_s18 + $0x130] sm:$0xff] %v1661_v63  ;;  %2291 = vst [vmem:[%s4700_s19 + $0x130] sm:$0xff] %v2125_v1  ;;  %v1676_v0 = vadd.f32 %v3204_v3, %v4682_v12  ;;  %v2140_v2 = vadd.f32 %v3316_v62, %v4684_v13 }
 0x29f   : > { %v1670_v5 = vpop.f32.mrf.mxu1  ;;  %v2134_v4 = vpop.f32.mrf.mxu0 }
 0x2a0   : > { %1830 = vst [vmem:[%s4694_s18 + $0x148] sm:$0xff] %v1676_v0  ;;  %2294 = vst [vmem:[%s4700_s19 + $0x148] sm:$0xff] %v2140_v2  ;;  %v1671_v7 = vadd.f32 %v4682_v12, %v1670_v5  ;;  %v2135_v9 = vadd.f32 %v4684_v13, %v2134_v4 }
 0x2a1   : > { %v3207_v15 = vpop.f32.mrf.mxu1  ;;  %v3319_v6 = vpop.f32.mrf.mxu0 }
 0x2a2   : > { %1829 = vst [vmem:[%s4694_s18 + $0x140] sm:$0xff] %v1671_v7  ;;  %2293 = vst [vmem:[%s4700_s19 + $0x140] sm:$0xff] %v2135_v9  ;;  %v1686_v8 = vadd.f32 %v3207_v15, %v4682_v12  ;;  %v2150_v14 = vadd.f32 %v3319_v6, %v4684_v13 }
 0x2a3   : > { %v1680_v17 = vpop.f32.mrf.mxu1  ;;  %v2144_v16 = vpop.f32.mrf.mxu0 }
 0x2a4   : > { %1832 = vst [vmem:[%s4694_s18 + $0x158] sm:$0xff] %v1686_v8  ;;  %2296 = vst [vmem:[%s4700_s19 + $0x158] sm:$0xff] %v2150_v14  ;;  %v1681_v21 = vadd.f32 %v4682_v12, %v1680_v17  ;;  %v2145_v25 = vadd.f32 %v4684_v13, %v2144_v16 }
 0x2a5   : > { %v3210_v27 = vpop.f32.mrf.mxu1  ;;  %v3322_v20 = vpop.f32.mrf.mxu0 }
 0x2a6   : > { %1831 = vst [vmem:[%s4694_s18 + $0x150] sm:$0xff] %v1681_v21  ;;  %2295 = vst [vmem:[%s4700_s19 + $0x150] sm:$0xff] %v2145_v25  ;;  %v1696_v24 = vadd.f32 %v3210_v27, %v4682_v12  ;;  %v2160_v26 = vadd.f32 %v3322_v20, %v4684_v13 }
 0x2a7   : > { %v1690_v31 = vpop.f32.mrf.mxu1  ;;  %v2154_v35 = vpop.f32.mrf.mxu0 }
 0x2a8   : > { %1834 = vst [vmem:[%s4694_s18 + $0x168] sm:$0xff] %v1696_v24  ;;  %2298 = vst [vmem:[%s4700_s19 + $0x168] sm:$0xff] %v2160_v26  ;;  %v1691_v10 = vadd.f32 %v4682_v12, %v1690_v31  ;;  %v2155_v30 = vadd.f32 %v4684_v13, %v2154_v35 }
 0x2a9   : > { %v3213_v34 = vpop.f32.mrf.mxu1  ;;  %v3325_v18 = vpop.f32.mrf.mxu0 }
 0x2aa   : > { %1833 = vst [vmem:[%s4694_s18 + $0x160] sm:$0xff] %v1691_v10  ;;  %2297 = vst [vmem:[%s4700_s19 + $0x160] sm:$0xff] %v2155_v30  ;;  %v1706_v19 = vadd.f32 %v3213_v34, %v4682_v12  ;;  %v2170_v23 = vadd.f32 %v3325_v18, %v4684_v13 }
 0x2ab   : > { %v1700_v11 = vpop.f32.mrf.mxu1  ;;  %v2164_v29 = vpop.f32.mrf.mxu0 }
 0x2ac   : > { %1836 = vst [vmem:[%s4694_s18 + $0x178] sm:$0xff] %v1706_v19  ;;  %2300 = vst [vmem:[%s4700_s19 + $0x178] sm:$0xff] %v2170_v23  ;;  %v1701_v33 = vadd.f32 %v4682_v12, %v1700_v11  ;;  %v2165_v22 = vadd.f32 %v4684_v13, %v2164_v29 }
 0x2ad   : > { %v3216_v28 = vpop.f32.mrf.mxu1  ;;  %v3328_v32 = vpop.f32.mrf.mxu0 }
 0x2ae   : > { %1835 = vst [vmem:[%s4694_s18 + $0x170] sm:$0xff] %v1701_v33  ;;  %2299 = vst [vmem:[%s4700_s19 + $0x170] sm:$0xff] %v2165_v22  ;;  %v1716_v37 = vadd.f32 %v3216_v28, %v4682_v12  ;;  %v2180_v36 = vadd.f32 %v3328_v32, %v4684_v13 }
 0x2af   : > { %v1710_v39 = vpop.f32.mrf.mxu1  ;;  %v2174_v41 = vpop.f32.mrf.mxu0 }
 0x2b0   : > { %1838 = vst [vmem:[%s4694_s18 + $0x188] sm:$0xff] %v1716_v37  ;;  %2302 = vst [vmem:[%s4700_s19 + $0x188] sm:$0xff] %v2180_v36  ;;  %v1711_v43 = vadd.f32 %v4682_v12, %v1710_v39  ;;  %v2175_v38 = vadd.f32 %v4684_v13, %v2174_v41 }
 0x2b1   : > { %v3219_v40 = vpop.f32.mrf.mxu1  ;;  %v3331_v42 = vpop.f32.mrf.mxu0 }
 0x2b2   : > { %1837 = vst [vmem:[%s4694_s18 + $0x180] sm:$0xff] %v1711_v43  ;;  %2301 = vst [vmem:[%s4700_s19 + $0x180] sm:$0xff] %v2175_v38  ;;  %v1726_v45 = vadd.f32 %v3219_v40, %v4682_v12  ;;  %v2190_v44 = vadd.f32 %v3331_v42, %v4684_v13 }
 0x2b3   : > { %v1720_v47 = vpop.f32.mrf.mxu1  ;;  %v2184_v49 = vpop.f32.mrf.mxu0 }
 0x2b4   : > { %1840 = vst [vmem:[%s4694_s18 + $0x198] sm:$0xff] %v1726_v45  ;;  %2304 = vst [vmem:[%s4700_s19 + $0x198] sm:$0xff] %v2190_v44  ;;  %v1721_v51 = vadd.f32 %v4682_v12, %v1720_v47  ;;  %v2185_v46 = vadd.f32 %v4684_v13, %v2184_v49 }
 0x2b5   : > { %v3222_v48 = vpop.f32.mrf.mxu1  ;;  %v3334_v50 = vpop.f32.mrf.mxu0 }
 0x2b6   : > { %1839 = vst [vmem:[%s4694_s18 + $0x190] sm:$0xff] %v1721_v51  ;;  %2303 = vst [vmem:[%s4700_s19 + $0x190] sm:$0xff] %v2185_v46  ;;  %v1736_v53 = vadd.f32 %v3222_v48, %v4682_v12  ;;  %v2200_v52 = vadd.f32 %v3334_v50, %v4684_v13 }
 0x2b7   : > { %v1730_v55 = vpop.f32.mrf.mxu1  ;;  %v2194_v57 = vpop.f32.mrf.mxu0 }
 0x2b8   : > { %1842 = vst [vmem:[%s4694_s18 + $0x1a8] sm:$0xff] %v1736_v53  ;;  %2306 = vst [vmem:[%s4700_s19 + $0x1a8] sm:$0xff] %v2200_v52  ;;  %v1731_v59 = vadd.f32 %v4682_v12, %v1730_v55  ;;  %v2195_v54 = vadd.f32 %v4684_v13, %v2194_v57 }
 0x2b9   : > { %v3225_v56 = vpop.f32.mrf.mxu1  ;;  %v3337_v58 = vpop.f32.mrf.mxu0 }
 0x2ba   : > { %1841 = vst [vmem:[%s4694_s18 + $0x1a0] sm:$0xff] %v1731_v59  ;;  %2305 = vst [vmem:[%s4700_s19 + $0x1a0] sm:$0xff] %v2195_v54  ;;  %v1746_v61 = vadd.f32 %v3225_v56, %v4682_v12  ;;  %v2210_v60 = vadd.f32 %v3337_v58, %v4684_v13 }
 0x2bb   : > { %v1740_v63 = vpop.f32.mrf.mxu1  ;;  %v2204_v1 = vpop.f32.mrf.mxu0 }
 0x2bc   : > { %1844 = vst [vmem:[%s4694_s18 + $0x1b8] sm:$0xff] %v1746_v61  ;;  %2308 = vst [vmem:[%s4700_s19 + $0x1b8] sm:$0xff] %v2210_v60  ;;  %v1741_v3 = vadd.f32 %v4682_v12, %v1740_v63  ;;  %v2205_v62 = vadd.f32 %v4684_v13, %v2204_v1 }
 0x2bd   : > { %v3228_v0 = vpop.f32.mrf.mxu1  ;;  %v3340_v2 = vpop.f32.mrf.mxu0 }
 0x2be   : > { %1843 = vst [vmem:[%s4694_s18 + $0x1b0] sm:$0xff] %v1741_v3  ;;  %2307 = vst [vmem:[%s4700_s19 + $0x1b0] sm:$0xff] %v2205_v62  ;;  %v1756_v5 = vadd.f32 %v3228_v0, %v4682_v12  ;;  %v2220_v4 = vadd.f32 %v3340_v2, %v4684_v13 }
 0x2bf   : > { %v1750_v7 = vpop.f32.mrf.mxu1  ;;  %v2214_v9 = vpop.f32.mrf.mxu0 }
 0x2c0   : > { %1846 = vst [vmem:[%s4694_s18 + $0x1c8] sm:$0xff] %v1756_v5  ;;  %2310 = vst [vmem:[%s4700_s19 + $0x1c8] sm:$0xff] %v2220_v4  ;;  %v1751_v15 = vadd.f32 %v4682_v12, %v1750_v7  ;;  %v2215_v6 = vadd.f32 %v4684_v13, %v2214_v9 }
 0x2c1   : > { %v3231_v8 = vpop.f32.mrf.mxu1  ;;  %v3343_v14 = vpop.f32.mrf.mxu0 }
 0x2c2   : > { %1845 = vst [vmem:[%s4694_s18 + $0x1c0] sm:$0xff] %v1751_v15  ;;  %2309 = vst [vmem:[%s4700_s19 + $0x1c0] sm:$0xff] %v2215_v6  ;;  %v1766_v17 = vadd.f32 %v3231_v8, %v4682_v12  ;;  %v2230_v16 = vadd.f32 %v3343_v14, %v4684_v13 }
 0x2c3   : > { %v1760_v21 = vpop.f32.mrf.mxu1  ;;  %v2224_v25 = vpop.f32.mrf.mxu0 }
 0x2c4   : > { %1848 = vst [vmem:[%s4694_s18 + $0x1d8] sm:$0xff] %v1766_v17  ;;  %2312 = vst [vmem:[%s4700_s19 + $0x1d8] sm:$0xff] %v2230_v16  ;;  %v1761_v27 = vadd.f32 %v4682_v12, %v1760_v21  ;;  %v2225_v20 = vadd.f32 %v4684_v13, %v2224_v25 }
 0x2c5   : > { %v3234_v24 = vpop.f32.mrf.mxu1  ;;  %v3346_v26 = vpop.f32.mrf.mxu0 }
 0x2c6   : > { %1847 = vst [vmem:[%s4694_s18 + $0x1d0] sm:$0xff] %v1761_v27  ;;  %2311 = vst [vmem:[%s4700_s19 + $0x1d0] sm:$0xff] %v2225_v20  ;;  %v1776_v31 = vadd.f32 %v3234_v24, %v4682_v12  ;;  %v2240_v35 = vadd.f32 %v3346_v26, %v4684_v13 }
 0x2c7   : > { %v1770_v10 = vpop.f32.mrf.mxu1  ;;  %v2234_v30 = vpop.f32.mrf.mxu0 }
 0x2c8   : > { %1850 = vst [vmem:[%s4694_s18 + $0x1e8] sm:$0xff] %v1776_v31  ;;  %2314 = vst [vmem:[%s4700_s19 + $0x1e8] sm:$0xff] %v2240_v35  ;;  %v1771_v34 = vadd.f32 %v4682_v12, %v1770_v10  ;;  %v2235_v18 = vadd.f32 %v4684_v13, %v2234_v30 }
 0x2c9   : > { %v3237_v19 = vpop.f32.mrf.mxu1  ;;  %v3349_v23 = vpop.f32.mrf.mxu0 }
 0x2ca   : > { %1849 = vst [vmem:[%s4694_s18 + $0x1e0] sm:$0xff] %v1771_v34  ;;  %2313 = vst [vmem:[%s4700_s19 + $0x1e0] sm:$0xff] %v2235_v18  ;;  %v1786_v11 = vadd.f32 %v3237_v19, %v4682_v12  ;;  %v2250_v29 = vadd.f32 %v3349_v23, %v4684_v13 }
 0x2cb   : > { %v1780_v33 = vpop.f32.mrf.mxu1  ;;  %v2244_v22 = vpop.f32.mrf.mxu0 }
 0x2cc   : > { %1852 = vst [vmem:[%s4694_s18 + $0x1f8] sm:$0xff] %v1786_v11  ;;  %2316 = vst [vmem:[%s4700_s19 + $0x1f8] sm:$0xff] %v2250_v29  ;;  %v1781_v28 = vadd.f32 %v4682_v12, %v1780_v33  ;;  %v2245_v32 = vadd.f32 %v4684_v13, %v2244_v22 }
 0x2ce   : > { %1851 = vst [vmem:[%s4694_s18 + $0x1f0] sm:$0xff] %v1781_v28  ;;  %2315 = vst [vmem:[%s4700_s19 + $0x1f0] sm:$0xff] %v2245_v32 }
 0x2cf PF: > { %s24_s15 = sadd.s32 1, %s3712_s15   ;;  %s5016_s9 = sld [smem:[#allocation19_spill]] }
 0x2d0   : > { %p21_p12 = scmp.ge.s32.totalorder %s24_s15, 6   ;;  %s5017_s21 = sld [smem:[#allocation17_spill]] }
 0x2d1   : > { %s5018_s16 = sld [smem:[#allocation18_spill]]  ;;  %s5019_s30 = smov %s3692_s10 }
 0x2d2   : > { %s5021_s11 = smov %s3704_s13  ;;  %s5022_s12 = smov %s3708_s14 }
 0x2d3   :  { %23 = sbr.rel (!%p21_p12) target bundleno = 10 (0xa), region = 155 }
 0x2d5   : > { %s5020_s10 = smov %s5016_s9 }
 0x2d6   : > { %s5023_s13 = smov %s5017_s21 }
 0x2d7   : > { %s5024_s14 = smov %s5018_s16 }
 0x2d8   :  { %2397 = vsyncpa [#allocation4], 1 }
 0x2d9   :  { %2399 = vsyncpa [#allocation4 + $0x1], 1 }
 0x2da   :  { %2400 = vsyncpa [#allocation6], 1 }
 0x2db   :  { %2401 = vsyncpa [#allocation9], 1 }
 0x2dc   :  { %2402 = vsyncpa [#allocation12], 1 }

// kernel: e_mhsa_forward.4
= control target key start
LH: loop header
LB: loop body
LE: loop exit
PB: predicated region body
PF: predicated region fallthrough
CT: control target
= control target key end

     0   :  { %s6785_s12 = smov 0   ;;  %s6787_s13 = smov 0   ;;  %s11475_s0 = inlined_call_operand.vmem [shape: f32[2,1024,128], index: 0, kind: input, shape index: {}]   ;;  %s11476_s1 = inlined_call_operand.vmem [shape: f32[2,4,32,256], index: 1, kind: input, shape index: {}]   ;;  %s11477_s2 = inlined_call_operand.vmem [shape: f32[2,4,256,32], index: 2, kind: input, shape index: {}]   ;;  %s11478_s3 = inlined_call_operand.vmem [shape: f32[2,1024,128], index: 3, kind: output, shape index: {}]  }
   0x1   :  { %s6789_s14 = smov 0   ;;  %s6791_s15 = smov 0  }
   0x2   :  { %s6793_s16 = smov 0  }
   0x3 LB: > { %s22_s17 = sadd.s32 1, %s6751_s14  ;;  %s25_s18 = sadd.s32 1, %s6755_s15  ;;  %s6759_s16 = sphi %s6793_s16, %s13_s16   ;;  %s6755_s15 = sphi %s6791_s15, %s12432_s15   ;;  %s6751_s14 = sphi %s6789_s14, %s12431_s14   ;;  %s6747_s13 = sphi %s6787_s13, %s12430_s13   ;;  %s6743_s12 = sphi %s6785_s12, %s12429_s12  }
   0x4   : > { %p23_p0 = scmp.ge.s32.totalorder %s22_s17, 4  ;;  %p5537_p1 = scmp.ge.s32.totalorder %s6759_s16, 1 }
   0x5   : > { %p178_p2 = scmp.lt.s32.totalorder %s6759_s16, 9 }
   0x6   : > { %s12434_s17 = smov (%p23_p0, %s22_s17), 0  ;;  %s12436_s18 = smov (!%p23_p0, %s25_s18), %s6755_s15 }
   0x7   : > { %p179_p3 = pnand %p5537_p1, %p178_p2  ;;  %p27_p4 = scmp.ge.s32.totalorder %s12436_s18, 2 }
   0x9   : > { %s12438_s18 = smov (%p27_p4, %s12436_s18), 0  ;;  %182 = sbr.rel (%p179_p3) target bundleno = 2481 (0x9b1), region = 32 }
   0xe   : > { %p221_p5 = scmp.lt.s32.totalorder %s6747_s13, 1  ;;  %s5538_s19 = sshll.u32 %s6743_s12, 5  ;;  %v11479_v0 = vmov 0.0   ;;  %vm290_vm0 = vcmask 261120   ;;  %vm5321_vm1 = vcmask 523264   ;;  %vm5354_vm2 = vcmask 785408  }
   0xf   : > { %451 = vmatprep.mubr.f32.mxu0 %v11479_v0  ;;  %p223_p6 = scmp.lt.s32.totalorder %s5538_s19, 127  ;;  %5800 = vmatprep.subr.mxu1 %v11479_v0  ;;  %s6762_s30 = smov 96  }
  0x10   : > { %s12440_s13 = smov (!%p221_p5, %s6747_s13), 1  ;;  %s6763_s4 = smov 64  }
  0x11   : > { %s12442_s19 = smov (!%p223_p6, %s5538_s19), 127  ;;  %s5798_s20 = sshll.u32 %s12440_s13, 8 }
  0x12   : > { %s6823_s23 = scalar_lea.vmem %s11476_s1, %s5798_s20  ;;  %s5539_s24 = sshll.u32 %s12440_s13, 7 }
  0x13   : > { %v289_v1 = vld [vmem:[%s6823_s23 + $0x38] sm:$0xff]  ;;  %v288_v2 = vld [vmem:[%s6823_s23 + $0x30] sm:$0xff]  ;;  %v287_v3 = vld [vmem:[%s6823_s23 + $0x28] sm:$0xff]  ;;  %s6830_s25 = sadd.s32 %s5539_s24, %s12442_s19  ;;  %s5799_s5 = sshll.u32 %s12440_s13, 10 }
  0x14   : > { %411 = vmatprep.subr.mxu0 %v289_v1  ;;  %v286_v4 = vld [vmem:[%s6823_s23 + $0x20] sm:$0xff]  ;;  %v285_v5 = vld [vmem:[%s6823_s23 + $0x18] sm:$0xff]  ;;  %s5540_s26 = sshll.u32 %s6830_s25, 3  ;;  %v284_v6 = vld [vmem:[%s6823_s23 + $0x10] sm:$0xff]  ;;  %s7100_s8 = scalar_lea.vmem %s11477_s2, %s5799_s5 }
  0x15   : > { %412 = vmatpush1.msra.mxu0 %v288_v2  ;;  %s6840_s29 = scalar_lea.vmem %s11475_s0, %s5540_s26  ;;  %v283_v7 = vld [vmem:[%s6823_s23 + $0x8] sm:$0xff]  ;;  %v282_v9 = vld [vmem:[%s6823_s23] sm:$0xff]  ;;  %v1107_v41 = vld [vmem:[%s7100_s8 + $0x78] sm:$0xff]  ;;  %s6764_s9 = smov 32  }
  0x16   : > { %413 = vmatprep.subr.mxu0 %v287_v3  ;;  %v6844_v8 = vld [vmem:[%s6840_s29] sm:$0xff]  ;;  %v6848_v10 = vld [vmem:[%s6840_s29 + $0x8] sm:$0xff]  ;;  %v6855_v11 = vld [vmem:[%s6840_s29 + $0x10] sm:$0xff]  ;;  %5832 = vmatpush1.msra.mxu1 %v1107_v41  ;;  %s11219_s12 = scalar_lea.vmem %s11478_s3, %s5540_s26 }
  0x17   : > { %414 = vmatpush1.msra.mxu0 %v286_v4  ;;  %1422 = vrot.lane.b32.xlu1 %v6844_v8, %s6762_s30  ;;  %v6860_v12 = vld [vmem:[%s6840_s29 + $0x28] sm:$0xff]  ;;  %v6869_v13 = vld [vmem:[%s6840_s29 + $0x18] sm:$0xff]  ;;  %v6882_v15 = vld [vmem:[%s6840_s29 + $0x20] sm:$0xff] }
  0x18   : > { %415 = vmatprep.subr.mxu0 %v285_v5  ;;  %1424 = vrot.lane.b32.xlu0 %v6848_v10, %s6762_s30  ;;  %v6874_v14 = vld [vmem:[%s6840_s29 + $0x38] sm:$0xff]  ;;  %v6887_v16 = vld [vmem:[%s6840_s29 + $0x48] sm:$0xff]  ;;  %v6895_v17 = vld [vmem:[%s6840_s29 + $0x30] sm:$0xff] }
  0x19   : > { %416 = vmatpush1.msra.mxu0 %v284_v6  ;;  %v6900_v18 = vld [vmem:[%s6840_s29 + $0x58] sm:$0xff]  ;;  %v6908_v19 = vld [vmem:[%s6840_s29 + $0x40] sm:$0xff]  ;;  %v6913_v20 = vld [vmem:[%s6840_s29 + $0x68] sm:$0xff]  ;;  %5801 = vmatprep.subr.mxu1 %v11479_v0 }
  0x1a   : > { %417 = vmatprep.subr.mxu0 %v283_v7  ;;  %v6921_v21 = vld [vmem:[%s6840_s29 + $0xb0] sm:$0xff]  ;;  %v6934_v23 = vld [vmem:[%s6840_s29 + $0xe0] sm:$0xff]  ;;  %v6947_v25 = vld [vmem:[%s6840_s29 + $0xe8] sm:$0xff] }
  0x1b   : > { %418 = vmatpush1.msra.mxu0 %v282_v9  ;;  %1426 = vrot.lane.b32.xlu1 %v6855_v11, %s6762_s30  ;;  %v6924_v22 = vld [vmem:[%s6840_s29 + $0x50] sm:$0xff]  ;;  %v6937_v24 = vld [vmem:[%s6840_s29 + $0x60] sm:$0xff]  ;;  %v6963_v28 = vld [vmem:[%s6840_s29 + $0x78] sm:$0xff] }
  0x1c   : > { %5548 = vmatmul.mubr.msk.f32.vlgmr.msra.gmra.mxu0 %vm290_vm0, %v6844_v8  ;;  %1432 = vrot.lane.b32.xlu0 %v6860_v12, %s6762_s30  ;;  %v6950_v26 = vld [vmem:[%s6840_s29 + $0x70] sm:$0xff]  ;;  %v6971_v29 = vld [vmem:[%s6840_s29 + $0x80] sm:$0xff]  ;;  %v6976_v30 = vld [vmem:[%s6840_s29 + $0xf8] sm:$0xff] }
  0x1d   : > { %457 = vmatprep.mubr.f32.mxu0 %v11479_v0  ;;  %1124 = vmatprep.subr.mxu0 %v11479_v0  ;;  %v6960_v27 = vld [vmem:[%s6840_s29 + $0xf0] sm:$0xff]  ;;  %v6984_v31 = vld [vmem:[%s6840_s29 + $0x88] sm:$0xff]  ;;  %v269_v33 = vld [vmem:[%s6840_s29 + $0x98] sm:$0xff] }
  0x1e   : > { %v6994_v32 = vld [vmem:[%s6840_s29 + $0x90] sm:$0xff]  ;;  %v270_v34 = vld [vmem:[%s6840_s29 + $0xa0] sm:$0xff]  ;;  %v271_v35 = vld [vmem:[%s6840_s29 + $0xa8] sm:$0xff]  ;;  %1125 = vmatpush1.msra.mxu0 %v1107_v41 }
  0x1f   : > { %1428 = vrot.lane.b32.xlu1 %v6869_v13, %s6762_s30  ;;  %v273_v36 = vld [vmem:[%s6840_s29 + $0xb8] sm:$0xff]  ;;  %v274_v37 = vld [vmem:[%s6840_s29 + $0xc0] sm:$0xff]  ;;  %v275_v38 = vld [vmem:[%s6840_s29 + $0xc8] sm:$0xff]  ;;  %1126 = vmatprep.subr.mxu0 %v11479_v0 }
  0x20   : > { %5549 = vmatmul.mubr.msk.f32.gmra.mxu0 %vm290_vm0, %v6848_v10  ;;  %1436 = vrot.lane.b32.xlu0 %v6874_v14, %s6762_s30  ;;  %v276_v39 = vld [vmem:[%s6840_s29 + $0xd0] sm:$0xff]  ;;  %v277_v40 = vld [vmem:[%s6840_s29 + $0xd8] sm:$0xff]  ;;  %v1105_v43 = vld [vmem:[%s7100_s8 + $0x68] sm:$0xff] }
  0x21   : > { %463 = vmatprep.mubr.f32.mxu0 %v11479_v0  ;;  %v1106_v42 = vld [vmem:[%s7100_s8 + $0x70] sm:$0xff]  ;;  %v1104_v44 = vld [vmem:[%s7100_s8 + $0x60] sm:$0xff]  ;;  %v1103_v45 = vld [vmem:[%s7100_s8 + $0x58] sm:$0xff] }
  0x22   : > { %1127 = vmatpush1.msra.mxu0 %v1106_v42  ;;  %5833 = vmatpush1.msra.mxu1 %v1106_v42  ;;  %v1102_v46 = vld [vmem:[%s7100_s8 + $0x50] sm:$0xff]  ;;  %v1101_v47 = vld [vmem:[%s7100_s8 + $0x48] sm:$0xff]  ;;  %v1100_v48 = vld [vmem:[%s7100_s8 + $0x40] sm:$0xff] }
  0x23   : > { %1430 = vrot.lane.b32.xlu1 %v6882_v15, %s6762_s30  ;;  %1128 = vmatprep.subr.mxu0 %v11479_v0  ;;  %v1099_v49 = vld [vmem:[%s7100_s8 + $0x38] sm:$0xff]  ;;  %v1098_v50 = vld [vmem:[%s7100_s8 + $0x30] sm:$0xff]  ;;  %v1097_v51 = vld [vmem:[%s7100_s8 + $0x28] sm:$0xff] }
  0x24   : > { %5550 = vmatmul.mubr.msk.f32.gmra.mxu0 %vm290_vm0, %v6855_v11  ;;  %1440 = vrot.lane.b32.xlu0 %v6887_v16, %s6762_s30  ;;  %v1096_v52 = vld [vmem:[%s7100_s8 + $0x20] sm:$0xff]  ;;  %v1095_v53 = vld [vmem:[%s7100_s8 + $0x18] sm:$0xff]  ;;  %v1094_v55 = vld [vmem:[%s7100_s8 + $0x10] sm:$0xff] }
  0x25   : > { %469 = vmatprep.mubr.f32.mxu0 %v11479_v0  ;;  %5802 = vmatprep.subr.mxu1 %v11479_v0  ;;  %v1093_v56 = vld [vmem:[%s7100_s8 + $0x8] sm:$0xff]  ;;  %v1092_v58 = vld [vmem:[%s7100_s8] sm:$0xff]  ;;  %v1123_v60 = vld [vmem:[%s7100_s8 + $0xf8] sm:$0xff] }
  0x26   : > { %1129 = vmatpush1.msra.mxu0 %v1105_v43  ;;  %5834 = vmatpush1.msra.mxu1 %v1105_v43  ;;  %v1122_v4 = vld [vmem:[%s7100_s8 + $0xf0] sm:$0xff]  ;;  %v1121_v5 = vld [vmem:[%s7100_s8 + $0xe8] sm:$0xff]  ;;  %v1120_v9 = vld [vmem:[%s7100_s8 + $0xe0] sm:$0xff] }
  0x27   : > { %1434 = vrot.lane.b32.xlu1 %v6895_v17, %s6762_s30  ;;  %1130 = vmatprep.subr.mxu0 %v11479_v0  ;;  %v1114_v42 = vld [vmem:[%s7100_s8 + $0xb0] sm:$0xff] }
  0x28   : > { %5551 = vmatmul.mubr.msk.f32.gmra.mxu0 %vm290_vm0, %v6869_v13  ;;  %1444 = vrot.lane.b32.xlu0 %v6900_v18, %s6762_s30 }
  0x29   : > { %475 = vmatprep.mubr.f32.mxu0 %v11479_v0  ;;  %5803 = vmatprep.subr.mxu1 %v11479_v0 }
  0x2a   : > { %1131 = vmatpush1.msra.mxu0 %v1104_v44  ;;  %5835 = vmatpush1.msra.mxu1 %v1104_v44 }
  0x2b   : > { %1438 = vrot.lane.b32.xlu1 %v6908_v19, %s6762_s30  ;;  %1132 = vmatprep.subr.mxu0 %v11479_v0 }
  0x2c   : > { %5552 = vmatmul.mubr.msk.f32.gmra.mxu0 %vm290_vm0, %v6882_v15  ;;  %1448 = vrot.lane.b32.xlu0 %v6913_v20, %s6762_s30 }
  0x2d   : > { %481 = vmatprep.mubr.f32.mxu0 %v11479_v0  ;;  %5804 = vmatprep.subr.mxu1 %v11479_v0 }
  0x2e   : > { %1133 = vmatpush1.msra.mxu0 %v1103_v45  ;;  %5836 = vmatpush1.msra.mxu1 %v1103_v45  ;;  %v1113_v45 = vld [vmem:[%s7100_s8 + $0xa8] sm:$0xff] }
  0x2f   : > { %1442 = vrot.lane.b32.xlu1 %v6924_v22, %s6762_s30  ;;  %1134 = vmatprep.subr.mxu0 %v11479_v0 }
  0x30   : > { %5553 = vmatmul.mubr.msk.f32.gmra.mxu0 %vm290_vm0, %v6860_v12  ;;  %1466 = vrot.lane.b32.xlu0 %v6921_v21, %s6762_s30 }
  0x31   : > { %487 = vmatprep.mubr.f32.mxu0 %v11479_v0  ;;  %5805 = vmatprep.subr.mxu1 %v11479_v0 }
  0x32   : > { %1135 = vmatpush1.msra.mxu0 %v1102_v46  ;;  %5837 = vmatpush1.msra.mxu1 %v1102_v46 }
  0x33   : > { %1446 = vrot.lane.b32.xlu1 %v6937_v24, %s6762_s30  ;;  %1136 = vmatprep.subr.mxu0 %v11479_v0 }
  0x34   : > { %5554 = vmatmul.mubr.msk.f32.gmra.mxu0 %vm290_vm0, %v6895_v17  ;;  %1478 = vrot.lane.b32.xlu0 %v6934_v23, %s6762_s30 }
  0x35   : > { %493 = vmatprep.mubr.f32.mxu0 %v11479_v0  ;;  %5806 = vmatprep.subr.mxu1 %v11479_v0 }
  0x36   : > { %1137 = vmatpush1.msra.mxu0 %v1101_v47  ;;  %5838 = vmatpush1.msra.mxu1 %v1101_v47 }
  0x37   : > { %1450 = vrot.lane.b32.xlu1 %v6950_v26, %s6762_s30  ;;  %1138 = vmatprep.subr.mxu0 %v11479_v0 }
  0x38   : > { %5555 = vmatmul.mubr.msk.f32.gmra.mxu0 %vm290_vm0, %v6874_v14  ;;  %1480 = vrot.lane.b32.xlu0 %v6947_v25, %s6762_s30 }
  0x39   : > { %499 = vmatprep.mubr.f32.mxu0 %v11479_v0  ;;  %5807 = vmatprep.subr.mxu1 %v11479_v0 }
  0x3a   : > { %1139 = vmatpush1.msra.mxu0 %v1100_v48  ;;  %5839 = vmatpush1.msra.mxu1 %v1100_v48 }
  0x3b   : > { %1452 = vrot.lane.b32.xlu1 %v6963_v28, %s6762_s30  ;;  %1140 = vmatprep.subr.mxu0 %v11479_v0 }
  0x3c   : > { %5556 = vmatmul.mubr.msk.f32.gmra.mxu0 %vm290_vm0, %v6908_v19  ;;  %1482 = vrot.lane.b32.xlu0 %v6960_v27, %s6762_s30 }
  0x3d   : > { %505 = vmatprep.mubr.f32.mxu0 %v11479_v0  ;;  %5808 = vmatprep.subr.mxu1 %v11479_v0 }
  0x3e   : > { %1141 = vmatpush1.msra.mxu0 %v1099_v49  ;;  %5840 = vmatpush1.msra.mxu1 %v1099_v49 }
  0x3f   : > { %1454 = vrot.lane.b32.xlu1 %v6971_v29, %s6762_s30  ;;  %1142 = vmatprep.subr.mxu0 %v11479_v0 }
  0x40   : > { %5557 = vmatmul.mubr.msk.f32.gmra.mxu0 %vm290_vm0, %v6887_v16  ;;  %1484 = vrot.lane.b32.xlu0 %v6976_v30, %s6762_s30 }
  0x41   : > { %511 = vmatprep.mubr.f32.mxu0 %v11479_v0  ;;  %5809 = vmatprep.subr.mxu1 %v11479_v0 }
  0x42   : > { %1143 = vmatpush1.msra.mxu0 %v1098_v50  ;;  %5841 = vmatpush1.msra.mxu1 %v1098_v50 }
  0x43   : > { %1456 = vrot.lane.b32.xlu1 %v6984_v31, %s6762_s30  ;;  %1144 = vmatprep.subr.mxu0 %v11479_v0 }
  0x44   : > { %5558 = vmatmul.mubr.msk.f32.gmra.mxu0 %vm290_vm0, %v6924_v22  ;;  %2586 = vrot.lane.b32.xlu0 %v6844_v8, %s6763_s4 }
  0x45   : > { %517 = vmatprep.mubr.f32.mxu0 %v11479_v0  ;;  %5810 = vmatprep.subr.mxu1 %v11479_v0 }
  0x46   : > { %1145 = vmatpush1.msra.mxu0 %v1097_v51  ;;  %5842 = vmatpush1.msra.mxu1 %v1097_v51  ;;  %v1112_v51 = vld [vmem:[%s7100_s8 + $0xa0] sm:$0xff] }
  0x47   : > { %1458 = vrot.lane.b32.xlu1 %v6994_v32, %s6762_s30  ;;  %1146 = vmatprep.subr.mxu0 %v11479_v0 }
  0x48   : > { %5559 = vmatmul.mubr.msk.f32.gmra.mxu0 %vm290_vm0, %v6900_v18  ;;  %2588 = vrot.lane.b32.xlu0 %v6848_v10, %s6763_s4 }
  0x49   : > { %523 = vmatprep.mubr.f32.mxu0 %v11479_v0  ;;  %5811 = vmatprep.subr.mxu1 %v11479_v0 }
  0x4a   : > { %1147 = vmatpush1.msra.mxu0 %v1096_v52  ;;  %5843 = vmatpush1.msra.mxu1 %v1096_v52 }
  0x4b   : > { %1460 = vrot.lane.b32.xlu1 %v269_v33, %s6762_s30  ;;  %1148 = vmatprep.subr.mxu0 %v11479_v0 }
  0x4c   : > { %5560 = vmatmul.mubr.msk.f32.gmra.mxu0 %vm290_vm0, %v6937_v24  ;;  %2590 = vrot.lane.b32.xlu0 %v6855_v11, %s6763_s4 }
  0x4d   : > { %529 = vmatprep.mubr.f32.mxu0 %v11479_v0  ;;  %5812 = vmatprep.subr.mxu1 %v11479_v0 }
  0x4e   : > { %1149 = vmatpush1.msra.mxu0 %v1095_v53  ;;  %5844 = vmatpush1.msra.mxu1 %v1095_v53 }
  0x4f   : > { %1462 = vrot.lane.b32.xlu1 %v270_v34, %s6762_s30  ;;  %1150 = vmatprep.subr.mxu0 %v11479_v0 }
  0x50   : > { %5561 = vmatmul.mubr.msk.f32.gmra.mxu0 %vm290_vm0, %v6913_v20  ;;  %2592 = vrot.lane.b32.xlu0 %v6869_v13, %s6763_s4  ;;  %v1119_v13 = vld [vmem:[%s7100_s8 + $0xd8] sm:$0xff] }
  0x51   : > { %535 = vmatprep.mubr.f32.mxu0 %v11479_v0  ;;  %5813 = vmatprep.subr.mxu1 %v11479_v0 }
  0x52   : > { %1151 = vmatpush1.msra.mxu0 %v1094_v55  ;;  %5845 = vmatpush1.msra.mxu1 %v1094_v55  ;;  %v1111_v55 = vld [vmem:[%s7100_s8 + $0x98] sm:$0xff] }
  0x53   : > { %1464 = vrot.lane.b32.xlu1 %v271_v35, %s6762_s30  ;;  %1152 = vmatprep.subr.mxu0 %v11479_v0 }
  0x54   : > { %5562 = vmatmul.mubr.msk.f32.gmra.mxu0 %vm290_vm0, %v6950_v26  ;;  %2594 = vrot.lane.b32.xlu0 %v6882_v15, %s6763_s4 }
  0x55   : > { %541 = vmatprep.mubr.f32.mxu0 %v11479_v0  ;;  %5814 = vmatprep.subr.mxu1 %v11479_v0 }
  0x56   : > { %1153 = vmatpush1.msra.mxu0 %v1093_v56  ;;  %5846 = vmatpush1.msra.mxu1 %v1093_v56 }
  0x57   : > { %1468 = vrot.lane.b32.xlu1 %v273_v36, %s6762_s30  ;;  %1154 = vmatprep.subr.mxu0 %v11479_v0 }
  0x58   : > { %5563 = vmatmul.mubr.msk.f32.gmra.mxu0 %vm290_vm0, %v6963_v28  ;;  %2598 = vrot.lane.b32.xlu0 %v6895_v17, %s6763_s4  ;;  %v1118_v17 = vld [vmem:[%s7100_s8 + $0xd0] sm:$0xff] }
  0x59   : > { %547 = vmatprep.mubr.f32.mxu0 %v11479_v0  ;;  %5815 = vmatprep.subr.mxu1 %v11479_v0 }
  0x5a   : > { %1155 = vmatpush1.msra.mxu0 %v1092_v58  ;;  %5847 = vmatpush1.msra.mxu1 %v1092_v58 }
  0x5b   : > { %1470 = vrot.lane.b32.xlu1 %v274_v37, %s6762_s30  ;;  %1156 = vmatprep.subr.mxu0 %v11479_v0 }
  0x5c   : > { %5564 = vmatmul.mubr.msk.f32.gmra.mxu0 %vm290_vm0, %v6971_v29  ;;  %2600 = vrot.lane.b32.xlu0 %v6874_v14, %s6763_s4 }
  0x5d   : > { %553 = vmatprep.mubr.f32.mxu0 %v11479_v0  ;;  %5816 = vmatprep.subr.mxu1 %v11479_v0 }
  0x5e   : > { %1157 = vmatpush2.msra.mxu0 %v1123_v60  ;;  %5848 = vmatpush2.msra.mxu1 %v1123_v60 }
  0x5f   : > { %1472 = vrot.lane.b32.xlu1 %v275_v38, %s6762_s30  ;;  %1158 = vmatprep.subr.mxu0 %v11479_v0 }
  0x60   : > { %5565 = vmatmul.mubr.msk.f32.gmra.mxu0 %vm290_vm0, %v6984_v31  ;;  %2608 = vrot.lane.b32.xlu0 %v6900_v18, %s6763_s4 }
  0x61   : > { %559 = vmatprep.mubr.f32.mxu0 %v11479_v0  ;;  %5817 = vmatprep.subr.mxu1 %v11479_v0 }
  0x62   : > { %1159 = vmatpush2.msra.mxu0 %v1122_v4  ;;  %5849 = vmatpush2.msra.mxu1 %v1122_v4  ;;  %v1109_v4 = vld [vmem:[%s7100_s8 + $0x88] sm:$0xff] }
  0x63   : > { %1474 = vrot.lane.b32.xlu1 %v276_v39, %s6762_s30  ;;  %1160 = vmatprep.subr.mxu0 %v11479_v0 }
  0x64   : > { %5566 = vmatmul.mubr.msk.f32.gmra.mxu0 %vm290_vm0, %v6994_v32  ;;  %2612 = vrot.lane.b32.xlu0 %v6913_v20, %s6763_s4 }
  0x65   : > { %565 = vmatprep.mubr.f32.mxu0 %v11479_v0  ;;  %1161 = vmatpush2.msra.mxu0 %v1121_v5 }
  0x66   : > { %5818 = vmatprep.subr.mxu1 %v11479_v0  ;;  %1162 = vmatprep.subr.mxu0 %v11479_v0 }
  0x67   : > { %1476 = vrot.lane.b32.xlu1 %v277_v40, %s6762_s30  ;;  %5850 = vmatpush2.msra.mxu1 %v1121_v5 }
  0x68   : > { %5567 = vmatmul.mubr.msk.f32.gmra.mxu0 %vm290_vm0, %v269_v33  ;;  %5819 = vmatprep.subr.mxu1 %v11479_v0 }
  0x69   : > { %571 = vmatprep.mubr.f32.mxu0 %v11479_v0  ;;  %1163 = vmatpush2.msra.mxu0 %v1120_v9 }
  0x6a   : > { %1164 = vmatprep.subr.mxu0 %v11479_v0  ;;  %5851 = vmatpush2.msra.mxu1 %v1120_v9 }
  0x6b   : > { %2596 = vrot.lane.b32.xlu1 %v6860_v12, %s6763_s4  ;;  %1165 = vmatpush2.msra.mxu0 %v1119_v13 }
  0x6c   : > { %5568 = vmatmul.mubr.msk.f32.gmra.mxu0 %vm290_vm0, %v270_v34  ;;  %1166 = vmatprep.subr.mxu0 %v11479_v0  ;;  %v1116_v34 = vld [vmem:[%s7100_s8 + $0xc0] sm:$0xff] }
  0x6d   : > { %577 = vmatprep.mubr.f32.mxu0 %v11479_v0  ;;  %5820 = vmatprep.subr.mxu1 %v11479_v0 }
  0x6e   : > { %1167 = vmatpush2.msra.mxu0 %v1118_v17  ;;  %5852 = vmatpush2.msra.mxu1 %v1119_v13 }
  0x6f   : > { %2602 = vrot.lane.b32.xlu1 %v6908_v19, %s6763_s4  ;;  %1168 = vmatprep.subr.mxu0 %v11479_v0 }
  0x70   : > { %5569 = vmatmul.mubr.msk.f32.gmra.mxu0 %vm290_vm0, %v271_v35  ;;  %5821 = vmatprep.subr.mxu1 %v11479_v0 }
  0x71   : > { %583 = vmatprep.mubr.f32.mxu0 %v11479_v0  ;;  %5853 = vmatpush2.msra.mxu1 %v1118_v17 }
  0x72   : > { %5822 = vmatprep.subr.mxu1 %v11479_v0 }
  0x73   : > { %2604 = vrot.lane.b32.xlu1 %v6887_v16, %s6763_s4 }
  0x74   : > { %5570 = vmatmul.mubr.msk.f32.gmra.mxu0 %vm290_vm0, %v6921_v21 }
  0x75   : > { %589 = vmatprep.mubr.f32.mxu0 %v11479_v0 }
  0x77   : > { %2606 = vrot.lane.b32.xlu1 %v6924_v22, %s6763_s4 }
  0x78   : > { %5571 = vmatmul.mubr.msk.f32.gmra.mxu0 %vm290_vm0, %v273_v36 }
  0x79   : > { %595 = vmatprep.mubr.f32.mxu0 %v11479_v0 }
  0x7b   : > { %2610 = vrot.lane.b32.xlu1 %v6937_v24, %s6763_s4 }
  0x7c   : > { %5572 = vmatmul.mubr.msk.f32.gmra.mxu0 %vm290_vm0, %v274_v37 }
  0x7d   : > { %601 = vmatprep.mubr.f32.mxu0 %v11479_v0 }
  0x80   : > { %5573 = vmatmul.mubr.msk.f32.gmra.mxu0 %vm290_vm0, %v275_v38  ;;  %v1115_v38 = vld [vmem:[%s7100_s8 + $0xb8] sm:$0xff] }
  0x81   : > { %607 = vmatprep.mubr.f32.mxu0 %v11479_v0 }
  0x84   : > { %5574 = vmatmul.mubr.msk.f32.gmra.mxu0 %vm290_vm0, %v276_v39 }
  0x85   : > { %613 = vmatprep.mubr.f32.mxu0 %v11479_v0 }
  0x88   : > { %5575 = vmatmul.mubr.msk.f32.gmra.mxu0 %vm290_vm0, %v277_v40 }
  0x89   : > { %619 = vmatprep.mubr.f32.mxu0 %v11479_v0  ;;  %v7139_v54 = vpop.permute.xlu1 %1422 }
  0x8a   : > { %v7225_v47 = vpop.permute.xlu0 %1424 }
  0x8c   : > { %5576 = vmatmul.mubr.msk.f32.gmra.mxu0 %vm290_vm0, %v6934_v23 }
  0x8d   : > { %625 = vmatprep.mubr.f32.mxu0 %v11479_v0  ;;  %v7155_v63 = vpop.permute.xlu1 %1426 }
  0x90   : > { %5577 = vmatmul.mubr.msk.f32.gmra.mxu0 %vm290_vm0, %v6947_v25  ;;  %v1117_v25 = vld [vmem:[%s7100_s8 + $0xc8] sm:$0xff] }
  0x91   : > { %631 = vmatprep.mubr.f32.mxu0 %v11479_v0  ;;  %v7173_v11 = vpop.permute.xlu1 %1428  ;;  %1169 = vmatpush2.msra.mxu0 %v1117_v25 }
  0x92   : > { %1170 = vmatprep.subr.mxu0 %v11479_v0  ;;  %5854 = vmatpush2.msra.mxu1 %v1117_v25 }
  0x93   : > { %1171 = vmatpush2.msra.mxu0 %v1116_v34  ;;  %5823 = vmatprep.subr.mxu1 %v11479_v0 }
  0x94   : > { %5578 = vmatmul.mubr.msk.f32.gmra.mxu0 %vm290_vm0, %v6960_v27  ;;  %1172 = vmatprep.subr.mxu0 %v11479_v0 }
  0x95   : > { %637 = vmatprep.mubr.f32.mxu0 %v11479_v0  ;;  %v7193_v22 = vpop.permute.xlu1 %1430  ;;  %1173 = vmatpush2.msra.mxu0 %v1115_v38 }
  0x96   : > { %1174 = vmatprep.subr.mxu0 %v11479_v0  ;;  %5855 = vmatpush2.msra.mxu1 %v1116_v34 }
  0x97   : > { %1175 = vmatpush2.msra.mxu0 %v1114_v42  ;;  %5824 = vmatprep.subr.mxu1 %v11479_v0 }
  0x98   : > { %5579 = vmatmul.mubr.msk.f32.gmra.mxu0 %vm290_vm0, %v6976_v30  ;;  %1176 = vmatprep.subr.mxu0 %v11479_v0 }
  0x99   : > { %v7209_v37 = vpop.permute.xlu1 %1434  ;;  %1177 = vmatpush2.msra.mxu0 %v1113_v45  ;;  %5856 = vmatpush2.msra.mxu1 %v1115_v38 }
  0x9a   : > { %1178 = vmatprep.subr.mxu0 %v11479_v0  ;;  %5825 = vmatprep.subr.mxu1 %v11479_v0 }
  0x9b   : > { %1179 = vmatpush2.msra.mxu0 %v1112_v51  ;;  %5857 = vmatpush2.msra.mxu1 %v1114_v42 }
  0x9c   : > { %1180 = vmatprep.subr.mxu0 %v11479_v0  ;;  %5826 = vmatprep.subr.mxu1 %v11479_v0 }
  0x9d   : > { %v7231_v50 = vpop.permute.xlu1 %1438  ;;  %1181 = vmatpush2.msra.mxu0 %v1111_v55  ;;  %5858 = vmatpush2.msra.mxu1 %v1113_v45 }
  0x9e   : > { %1182 = vmatprep.subr.mxu0 %v11479_v0  ;;  %5827 = vmatprep.subr.mxu1 %v11479_v0 }
  0x9f   : > { %5859 = vmatpush2.msra.mxu1 %v1112_v51 }
  0xa0   : > { %5828 = vmatprep.subr.mxu1 %v11479_v0 }
  0xa1   : > { %5860 = vmatpush2.msra.mxu1 %v1111_v55 }
  0xa2   : > { %5829 = vmatprep.subr.mxu1 %v11479_v0 }
  0xdc   : > { %v453_v57 = vpop.f32.mrf.mxu0 }
  0xdd   : > { %v7151_v61 = vmul.f32 0.17677669, %v453_v57 }
  0xde   : > { %v455_v59 = vpop.f32.mrf.mxu0 }
  0xdf   : > { %v7153_v62 = vmul.f32 0.17677669, %v455_v59  ;;  %v1110_v59 = vld [vmem:[%s7100_s8 + $0x90] sm:$0xff] }
  0xe0   : > { %v459_v1 = vpop.f32.mrf.mxu0  ;;  %1183 = vmatpush2.msra.mxu0 %v1110_v59  ;;  %5861 = vmatpush2.msra.mxu1 %v1110_v59 }
  0xe1   : > { %v708_v2 = vmax.f32 %v7151_v61, %v7153_v62  ;;  %v7165_v6 = vmul.f32 0.17677669, %v459_v1  ;;  %v7247_v1 = vpop.permute.xlu0 %1432  ;;  %1184 = vmatprep.subr.mxu0 %v11479_v0  ;;  %5830 = vmatprep.subr.mxu1 %v11479_v0 }
  0xe2   : > { %v461_v3 = vpop.f32.mrf.mxu0  ;;  %1185 = vmatpush2.msra.mxu0 %v1109_v4  ;;  %5862 = vmatpush2.msra.mxu1 %v1109_v4 }
  0xe3   : > { %v7167_v7 = vmul.f32 0.17677669, %v461_v3  ;;  %709 = vmax.xlane.f32.xlu0 %v708_v2  ;;  %v7251_v3 = vpop.permute.xlu1 %1442  ;;  %1186 = vmatprep.subr.mxu0 %v11479_v0 }
  0xe4   : > { %v465_v8 = vpop.f32.mrf.mxu0  ;;  %5831 = vmatprep.subr.mxu1 %v11479_v0 }
  0xe5   : > { %v711_v10 = vmax.f32 %v7165_v6, %v7167_v7  ;;  %v7178_v14 = vmul.f32 0.17677669, %v465_v8  ;;  %v7265_v17 = vpop.permute.xlu0 %1436 }
  0xe6   : > { %v467_v12 = vpop.f32.mrf.mxu0 }
  0xe7   : > { %v7180_v15 = vmul.f32 0.17677669, %v467_v12  ;;  %712 = vmax.xlane.f32.xlu0 %v711_v10  ;;  %v1108_v10 = vld [vmem:[%s7100_s8 + $0x80] sm:$0xff] }
  0xe8   : > { %v471_v16 = vpop.f32.mrf.mxu0  ;;  %1187 = vmatpush2.msra.mxu0 %v1108_v10  ;;  %5863 = vmatpush2.msra.mxu1 %v1108_v10 }
  0xe9   : > { %v714_v18 = vmax.f32 %v7178_v14, %v7180_v15  ;;  %v7189_v20 = vmul.f32 0.17677669, %v471_v16  ;;  %v7282_v38 = vpop.permute.xlu0 %1440  ;;  %2288 = vmatprep.subr.mxu1 %v11479_v0 }
  0xea   : > { %v473_v19 = vpop.f32.mrf.mxu0 }
  0xeb   : > { %v7191_v21 = vmul.f32 0.17677669, %v473_v19  ;;  %715 = vmax.xlane.f32.xlu1 %v714_v18 }
  0xec   : > { %v477_v23 = vpop.f32.mrf.mxu0 }
  0xed   : > { %v717_v24 = vmax.f32 %v7189_v20, %v7191_v21  ;;  %v7200_v30 = vmul.f32 0.17677669, %v477_v23  ;;  %v7272_v23 = vpop.permute.xlu1 %1446 }
  0xee   : > { %v479_v27 = vpop.f32.mrf.mxu0 }
  0xef   : > { %v7202_v33 = vmul.f32 0.17677669, %v479_v27  ;;  %718 = vmax.xlane.f32.xlu1 %v717_v24 }
  0xf0   : > { %v483_v35 = vpop.f32.mrf.mxu0 }
  0xf1   : > { %v720_v36 = vmax.f32 %v7200_v30, %v7202_v33  ;;  %v7214_v40 = vmul.f32 0.17677669, %v483_v35 }
  0xf2   : > { %v485_v39 = vpop.f32.mrf.mxu0 }
  0xf3   : > { %v7216_v41 = vmul.f32 0.17677669, %v485_v39  ;;  %721 = vmax.xlane.f32.xlu0 %v720_v36  ;;  %v7285_v39 = vpop.permute.xlu1 %1450 }
  0xf4   : > { %v489_v43 = vpop.f32.mrf.mxu0 }
  0xf5   : > { %v723_v44 = vmax.f32 %v7214_v40, %v7216_v41  ;;  %v7227_v48 = vmul.f32 0.17677669, %v489_v43 }
  0xf6   : > { %v491_v46 = vpop.f32.mrf.mxu0 }
  0xf7   : > { %v7229_v49 = vmul.f32 0.17677669, %v491_v46  ;;  %724 = vmax.xlane.f32.xlu1 %v723_v44 }
  0xf8   : > { %v495_v52 = vpop.f32.mrf.mxu0 }
  0xf9   : > { %v726_v53 = vmax.f32 %v7227_v48, %v7229_v49  ;;  %v7241_v57 = vmul.f32 0.17677669, %v495_v52 }
  0xfa   : > { %v497_v56 = vpop.f32.mrf.mxu0 }
  0xfb   : > { %v7243_v58 = vmul.f32 0.17677669, %v497_v56  ;;  %727 = vmax.xlane.f32.xlu0 %v726_v53  ;;  %v7295_v53 = vpop.permute.xlu0 %1444  ;;  %v7299_v56 = vpop.permute.xlu1 %1452 }
  0xfc   : > { %v501_v60 = vpop.f32.mrf.mxu0 }
  0xfd   : > { %v729_v2 = vmax.f32 %v7241_v57, %v7243_v58  ;;  %v7256_v8 = vmul.f32 0.17677669, %v501_v60 }
  0xfe   : > { %v503_v5 = vpop.f32.mrf.mxu0 }
  0xff   : > { %v7258_v9 = vmul.f32 0.17677669, %v503_v5  ;;  %730 = vmax.xlane.f32.xlu0 %v729_v2 }
 0x100   : > { %v507_v12 = vpop.f32.mrf.mxu0 }
 0x101   : > { %v732_v13 = vmax.f32 %v7256_v8, %v7258_v9  ;;  %v7268_v18 = vmul.f32 0.17677669, %v507_v12  ;;  %v7309_v12 = vpop.permute.xlu0 %1448 }
 0x102   : > { %v509_v16 = vpop.f32.mrf.mxu0 }
 0x103   : > { %v7270_v19 = vmul.f32 0.17677669, %v509_v16  ;;  %733 = vmax.xlane.f32.xlu1 %v732_v13  ;;  %v5587_v13 = vld [vmem:[%s6823_s23 + $0x78] sm:$0xff]  ;;  %v7312_v16 = vpop.permute.xlu1 %1454 }
 0x104   : > { %v513_v24 = vpop.f32.mrf.mxu0  ;;  %11576 = vst [vmem:[#allocation2_spill] sm:$0xff] %v7312_v16  ;;  %1574 = vmatprep.subr.mxu0 %v5587_v13 }
 0x105   : > { %v735_v25 = vmax.f32 %v7268_v18, %v7270_v19  ;;  %v7278_v34 = vmul.f32 0.17677669, %v513_v24 }
 0x106   : > { %v515_v27 = vpop.f32.mrf.mxu0 }
 0x107   : > { %v7280_v35 = vmul.f32 0.17677669, %v515_v27  ;;  %736 = vmax.xlane.f32.xlu0 %v735_v25  ;;  %v7316_v25 = vpop.permute.xlu0 %1466  ;;  %v7318_v27 = vpop.permute.xlu1 %1456 }
 0x108   : > { %v519_v36 = vpop.f32.mrf.mxu0  ;;  %11577 = vst [vmem:[#allocation3_spill] sm:$0xff] %v7316_v25  ;;  %11578 = vst [vmem:[#allocation4_spill] sm:$0xff] %v7318_v27 }
 0x109   : > { %v738_v42 = vmax.f32 %v7278_v34, %v7280_v35  ;;  %v7289_v44 = vmul.f32 0.17677669, %v519_v36 }
 0x10a   : > { %v521_v43 = vpop.f32.mrf.mxu0 }
 0x10b   : > { %v7291_v45 = vmul.f32 0.17677669, %v521_v43  ;;  %739 = vmax.xlane.f32.xlu1 %v738_v42  ;;  %v7320_v36 = vpop.permute.xlu0 %1478  ;;  %v7322_v42 = vpop.permute.xlu1 %1458 }
 0x10c   : > { %v525_v46 = vpop.f32.mrf.mxu0  ;;  %11579 = vst [vmem:[#allocation5_spill] sm:$0xff] %v7320_v36  ;;  %11580 = vst [vmem:[#allocation6_spill] sm:$0xff] %v7322_v42 }
 0x10d   : > { %v741_v51 = vmax.f32 %v7289_v44, %v7291_v45  ;;  %v7297_v55 = vmul.f32 0.17677669, %v525_v46 }
 0x10e   : > { %v527_v52 = vpop.f32.mrf.mxu0 }
 0x10f   : > { %v7301_v59 = vmul.f32 0.17677669, %v527_v52  ;;  %742 = vmax.xlane.f32.xlu0 %v741_v51  ;;  %v7326_v43 = vpop.permute.xlu0 %1480  ;;  %v7328_v46 = vpop.permute.xlu1 %1460 }
 0x110   : > { %v531_v60 = vpop.f32.mrf.mxu0  ;;  %11581 = vst [vmem:[#allocation7_spill] sm:$0xff] %v7326_v43  ;;  %11582 = vst [vmem:[#allocation8_spill] sm:$0xff] %v7328_v46 }
 0x111   : > { %v744_v2 = vmax.f32 %v7297_v55, %v7301_v59  ;;  %v7305_v5 = vmul.f32 0.17677669, %v531_v60 }
 0x112   : > { %v533_v4 = vpop.f32.mrf.mxu0 }
 0x113   : > { %v7307_v10 = vmul.f32 0.17677669, %v533_v4  ;;  %745 = vmax.xlane.f32.xlu1 %v744_v2  ;;  %v7330_v51 = vpop.permute.xlu0 %1482  ;;  %v7332_v52 = vpop.permute.xlu1 %1462 }
 0x114   : > { %11583 = vst [vmem:[#allocation9_spill] sm:$0xff] %v7330_v51  ;;  %11584 = vst [vmem:[#allocation10_spill] sm:$0xff] %v7332_v52  ;;  %v537_v4 = vpop.f32.mrf.mxu0 }
 0x115   : > { %v747_v24 = vmax.f32 %v7305_v5, %v7307_v10  ;;  %v7348_v36 = vmul.f32 0.17677669, %v537_v4 }
 0x117   : > { %748 = vmax.xlane.f32.xlu0 %v747_v24  ;;  %v7336_v60 = vpop.permute.xlu0 %1484  ;;  %v7338_v2 = vpop.permute.xlu1 %1464 }
 0x118   : > { %11585 = vst [vmem:[#allocation11_spill] sm:$0xff] %v7336_v60  ;;  %11586 = vst [vmem:[#allocation12_spill] sm:$0xff] %v7338_v2 }
 0x11b   : > { %v7340_v13 = vpop.permute.xlu0 %2586  ;;  %v7342_v24 = vpop.permute.xlu1 %1468 }
 0x11c   : > { %11587 = vst [vmem:[#allocation13_spill] sm:$0xff] %v7340_v13  ;;  %11588 = vst [vmem:[#allocation14_spill] sm:$0xff] %v7342_v24 }
 0x11f   : > { %v7344_v0 = vpop.permute.xlu0 %2588  ;;  %v7346_v43 = vpop.permute.xlu1 %1470 }
 0x120   : > { %11589 = vst [vmem:[#allocation15_spill] sm:$0xff] %v7344_v0  ;;  %11590 = vst [vmem:[#allocation16_spill] sm:$0xff] %v7346_v43 }
 0x123   : > { %v7352_v52 = vpop.permute.xlu0 %2590  ;;  %v7354_v60 = vpop.permute.xlu1 %1472 }
 0x124   : > { %2614 = vrot.lane.b32.xlu1 %v6950_v26, %s6763_s4  ;;  %v539_v26 = vpop.f32.mrf.mxu0  ;;  %11591 = vst [vmem:[#allocation17_spill] sm:$0xff] %v7352_v52  ;;  %11592 = vst [vmem:[#allocation18_spill] sm:$0xff] %v7354_v60 }
 0x125   : > { %v7350_v25 = vmul.f32 0.17677669, %v539_v26 }
 0x126   : > { %v543_v51 = vpop.f32.mrf.mxu0 }
 0x127   : > { %v7356_v2 = vmul.f32 0.17677669, %v543_v51  ;;  %v750_v24 = vmax.f32 %v7348_v36, %v7350_v25  ;;  %v7362_v0 = vpop.permute.xlu0 %2592  ;;  %v7366_v26 = vpop.permute.xlu1 %1474 }
 0x128   : > { %11593 = vst [vmem:[#allocation19_spill] sm:$0xff] %v7362_v0  ;;  %11594 = vst [vmem:[#allocation20_spill] sm:$0xff] %v7366_v26 }
 0x12b   : > { %v7368_v43 = vpop.permute.xlu0 %2594  ;;  %v7370_v52 = vpop.permute.xlu1 %1476 }
 0x12c   : > { %11595 = vst [vmem:[#allocation21_spill] sm:$0xff] %v7368_v43  ;;  %11596 = vst [vmem:[#allocation22_spill] sm:$0xff] %v7370_v52 }
 0x12d   : > { %2616 = vrot.lane.b32.xlu0 %v6963_v28, %s6763_s4  ;;  %v545_v28 = vpop.f32.mrf.mxu0 }
 0x12e   : > { %v7358_v13 = vmul.f32 0.17677669, %v545_v28 }
 0x12f   : > { %v7372_v51 = vpop.permute.xlu0 %2598  ;;  %v7374_v28 = vpop.permute.xlu1 %2596 }
 0x130   : > { %v753_v4 = vmax.f32 %v7356_v2, %v7358_v13  ;;  %11597 = vst [vmem:[#allocation23_spill] sm:$0xff] %v7372_v51  ;;  %11598 = vst [vmem:[#allocation24_spill] sm:$0xff] %v7374_v28  ;;  %v549_v28 = vpop.f32.mrf.mxu0 }
 0x132   : > { %v551_v42 = vpop.f32.mrf.mxu0 }
 0x133   : > { %v7380_v0 = vpop.permute.xlu1 %2602 }
 0x134   : > { %11600 = vst [vmem:[#allocation26_spill] sm:$0xff] %v7380_v0  ;;  %v555_v16 = vpop.f32.mrf.mxu0 }
 0x148   : > { %751 = vmax.xlane.f32.xlu1 %v750_v24  ;;  %v7378_v24 = vpop.permute.xlu0 %2600 }
 0x149   : > { %11599 = vst [vmem:[#allocation25_spill] sm:$0xff] %v7378_v24 }
 0x14c   : > { %754 = vmax.xlane.f32.xlu0 %v753_v4  ;;  %v7382_v60 = vpop.permute.xlu0 %2608  ;;  %v7386_v4 = vpop.permute.xlu1 %2604 }
 0x14d   : > { %11601 = vst [vmem:[#allocation27_spill] sm:$0xff] %v7382_v60  ;;  %11602 = vst [vmem:[#allocation28_spill] sm:$0xff] %v7386_v4 }
 0x150   : > { %v7388_v43 = vpop.permute.xlu0 %2612  ;;  %v7390_v52 = vpop.permute.xlu1 %2606 }
 0x151   : > { %11603 = vst [vmem:[#allocation29_spill] sm:$0xff] %v7388_v43  ;;  %11604 = vst [vmem:[#allocation30_spill] sm:$0xff] %v7390_v52 }
 0x154   : > { %v7394_v24 = vpop.permute.xlu1 %2610 }
 0x155   : > { %11605 = vst [vmem:[#allocation31_spill] sm:$0xff] %v7394_v24  ;;  %v557_v24 = vpop.f32.mrf.mxu0 }
 0x159   : > { %2618 = vrot.lane.b32.xlu1 %v6971_v29, %s6763_s4 }
 0x162   : > { %2620 = vrot.lane.b32.xlu0 %v6984_v31, %s6763_s4 }
 0x16c   : > { %v710_v51 = vpop.xlane.xlu0 %709 }
 0x16d   : > { %v804_v26 = vsub.f32 %v7151_v61, %v710_v51  ;;  %v805_v29 = vsub.f32 %v7153_v62, %v710_v51 }
 0x16f   : > { %v868_v0 = vmul.f32 1.442695, %v804_v26  ;;  %v870_v46 = vmul.f32 1.442695, %v805_v29  ;;  %v7400_v26 = vmul.f32 0.17677669, %v549_v28 }
 0x170   : > { %v713_v60 = vpop.xlane.xlu0 %712 }
 0x171   : > { %5908 = vpow2.f32 %v868_v0  ;;  %v806_v31 = vsub.f32 %v7165_v6, %v713_v60  ;;  %v807_v4 = vsub.f32 %v7167_v7, %v713_v60  ;;  %v7402_v0 = vmul.f32 0.17677669, %v551_v42 }
 0x172   : > { %5910 = vpow2.f32 %v870_v46 }
 0x173   : > { %v872_v43 = vmul.f32 1.442695, %v806_v31  ;;  %v874_v52 = vmul.f32 1.442695, %v807_v4  ;;  %v756_v42 = vmax.f32 %v7400_v26, %v7402_v0  ;;  %v5586_v31 = vld [vmem:[%s6823_s23 + $0x70] sm:$0xff] }
 0x174   : > { %v716_v27 = vpop.xlane.xlu1 %715 }
 0x175   : > { %5912 = vpow2.f32 %v872_v43  ;;  %v808_v61 = vsub.f32 %v7178_v14, %v716_v27  ;;  %v809_v62 = vsub.f32 %v7180_v15, %v716_v27  ;;  %v7406_v43 = vmul.f32 0.17677669, %v555_v16 }
 0x176   : > { %5914 = vpow2.f32 %v874_v52  ;;  %v7408_v27 = vmul.f32 0.17677669, %v557_v24 }
 0x177   : > { %v876_v51 = vmul.f32 1.442695, %v808_v61  ;;  %v878_v29 = vmul.f32 1.442695, %v809_v62  ;;  %v5585_v62 = vld [vmem:[%s6823_s23 + $0x68] sm:$0xff] }
 0x178   : > { %v719_v6 = vpop.xlane.xlu1 %718  ;;  %v759_v24 = vmax.f32 %v7406_v43, %v7408_v27 }
 0x179   : > { %5916 = vpow2.f32 %v876_v51  ;;  %v810_v7 = vsub.f32 %v7189_v20, %v719_v6  ;;  %v811_v46 = vsub.f32 %v7191_v21, %v719_v6 }
 0x17a   : > { %5918 = vpow2.f32 %v878_v29  ;;  %v5584_v29 = vld [vmem:[%s6823_s23 + $0x60] sm:$0xff] }
 0x17b   : > { %v880_v14 = vmul.f32 1.442695, %v810_v7  ;;  %v882_v15 = vmul.f32 1.442695, %v811_v46  ;;  %v5583_v7 = vld [vmem:[%s6823_s23 + $0x58] sm:$0xff] }
 0x17c   : > { %v722_v52 = vpop.xlane.xlu0 %721 }
 0x17d   : > { %5920 = vpow2.f32 %v880_v14  ;;  %v812_v60 = vsub.f32 %v7200_v30, %v722_v52  ;;  %v813_v20 = vsub.f32 %v7202_v33, %v722_v52  ;;  %757 = vmax.xlane.f32.xlu1 %v756_v42  ;;  %v5582_v42 = vld [vmem:[%s6823_s23 + $0x50] sm:$0xff] }
 0x17e   : > { %v5909_v21 = vpop.eup %5908  ;;  %5922 = vpow2.f32 %v882_v15 }
 0x17f   : > { %v5911_v16 = vpop.eup %5910  ;;  %v884_v28 = vmul.f32 1.442695, %v812_v60  ;;  %v886_v4 = vmul.f32 1.442695, %v813_v20  ;;  %v5581_v60 = vld [vmem:[%s6823_s23 + $0x48] sm:$0xff] }
 0x180   : > { %1188 = vmatprep.mubr.f32.mxu0 %v5911_v16  ;;  %v725_v61 = vpop.xlane.xlu1 %724  ;;  %v7418_v51 = vadd.f32 %v5911_v16, %v5909_v21 }
 0x181   : > { %5924 = vpow2.f32 %v884_v28  ;;  %1189 = vmatmul.mubr.f32.vlgmr.msra.gmra.mxu0 %v5909_v21  ;;  %v814_v30 = vsub.f32 %v7214_v40, %v725_v61  ;;  %v815_v33 = vsub.f32 %v7216_v41, %v725_v61  ;;  %760 = vmax.xlane.f32.xlu0 %v759_v24  ;;  %v5580_v21 = vld [vmem:[%s6823_s23 + $0x40] sm:$0xff] }
 0x182   : > { %11606 = vst [vmem:[#allocation32_spill] sm:$0xff] %v7418_v51  ;;  %v5913_v6 = vpop.eup %5912  ;;  %5926 = vpow2.f32 %v886_v4  ;;  %1575 = vmatpush1.msra.mxu0 %v5586_v31 }
 0x183   : > { %v5915_v46 = vpop.eup %5914  ;;  %v888_v14 = vmul.f32 1.442695, %v814_v30  ;;  %v890_v15 = vmul.f32 1.442695, %v815_v33  ;;  %1576 = vmatprep.subr.mxu0 %v5585_v62 }
 0x184   : > { %1193 = vmatprep.mubr.f32.mxu0 %v5915_v46  ;;  %v728_v52 = vpop.xlane.xlu0 %727  ;;  %1577 = vmatpush1.msra.mxu0 %v5584_v29  ;;  %v7426_v40 = vadd.f32 %v5915_v46, %v5913_v6 }
 0x185   : > { %5928 = vpow2.f32 %v888_v14  ;;  %1194 = vmatmul.mubr.f32.gmra.mxu0 %v5913_v6  ;;  %v816_v41 = vsub.f32 %v7227_v48, %v728_v52  ;;  %v817_v20 = vsub.f32 %v7229_v49, %v728_v52  ;;  %1578 = vmatprep.subr.mxu0 %v5583_v7 }
 0x186   : > { %11607 = vst [vmem:[#allocation33_spill] sm:$0xff] %v7426_v40  ;;  %v5917_v16 = vpop.eup %5916  ;;  %5930 = vpow2.f32 %v890_v15  ;;  %1579 = vmatpush1.msra.mxu0 %v5582_v42 }
 0x187   : > { %v5919_v28 = vpop.eup %5918  ;;  %v892_v4 = vmul.f32 1.442695, %v816_v41  ;;  %v894_v24 = vmul.f32 1.442695, %v817_v20  ;;  %1580 = vmatprep.subr.mxu0 %v5581_v60 }
 0x188   : > { %1198 = vmatprep.mubr.f32.mxu0 %v5919_v28  ;;  %v731_v31 = vpop.xlane.xlu0 %730  ;;  %1581 = vmatpush1.msra.mxu0 %v5580_v21  ;;  %v7431_v61 = vadd.f32 %v5919_v28, %v5917_v16  ;;  %v5659_v28 = vld [vmem:[%s6823_s23 + $0xb8] sm:$0xff] }
 0x189   : > { %5932 = vpow2.f32 %v892_v4  ;;  %1199 = vmatmul.mubr.f32.gmra.mxu0 %v5917_v16  ;;  %v818_v48 = vsub.f32 %v7241_v57, %v731_v31  ;;  %v819_v49 = vsub.f32 %v7243_v58, %v731_v31  ;;  %2738 = vmatprep.subr.mxu0 %v5659_v28 }
 0x18a   : > { %11608 = vst [vmem:[#allocation34_spill] sm:$0xff] %v7431_v61  ;;  %v5921_v62 = vpop.eup %5920  ;;  %5934 = vpow2.f32 %v894_v24  ;;  %v6710_v61 = vld [vmem:[%s6840_s29 + $0xa8] sm:$0xff] }
 0x18b   : > { %v5923_v30 = vpop.eup %5922  ;;  %v896_v33 = vmul.f32 1.442695, %v818_v48  ;;  %v898_v29 = vmul.f32 1.442695, %v819_v49 }
 0x18c   : > { %1203 = vmatprep.mubr.f32.mxu0 %v5923_v30  ;;  %v734_v6 = vpop.xlane.xlu1 %733  ;;  %v7435_v7 = vadd.f32 %v5923_v30, %v5921_v62 }
 0x18d   : > { %5936 = vpow2.f32 %v896_v33  ;;  %1204 = vmatmul.mubr.f32.gmra.mxu0 %v5921_v62  ;;  %v820_v46 = vsub.f32 %v7256_v8, %v734_v6  ;;  %v821_v14 = vsub.f32 %v7258_v9, %v734_v6  ;;  %v6676_v62 = vld [vmem:[%s6840_s29 + $0x98] sm:$0xff]  ;;  %v11613_v6 = vmov 0.0  }
 0x18e   : > { %11609 = vst [vmem:[#allocation35_spill] sm:$0xff] %v7435_v7  ;;  %v5925_v15 = vpop.eup %5924  ;;  %5938 = vpow2.f32 %v898_v29  ;;  %2622 = vrot.lane.b32.xlu1 %v6994_v32, %s6763_s4 }
 0x18f   : > { %v5927_v57 = vpop.eup %5926  ;;  %v900_v58 = vmul.f32 1.442695, %v820_v46  ;;  %v902_v42 = vmul.f32 1.442695, %v821_v14 }
 0x190   : > { %1208 = vmatprep.mubr.f32.mxu0 %v5927_v57  ;;  %v737_v52 = vpop.xlane.xlu0 %736  ;;  %v7441_v60 = vadd.f32 %v5927_v57, %v5925_v15  ;;  %v5658_v57 = vld [vmem:[%s6823_s23 + $0xb0] sm:$0xff] }
 0x191   : > { %5940 = vpow2.f32 %v900_v58  ;;  %1209 = vmatmul.mubr.f32.gmra.mxu0 %v5925_v15  ;;  %v822_v41 = vsub.f32 %v7268_v18, %v737_v52  ;;  %v823_v8 = vsub.f32 %v7270_v19, %v737_v52 }
 0x192   : > { %11610 = vst [vmem:[#allocation36_spill] sm:$0xff] %v7441_v60  ;;  %v5929_v9 = vpop.eup %5928  ;;  %5942 = vpow2.f32 %v902_v42  ;;  %v5657_v42 = vld [vmem:[%s6823_s23 + $0xa8] sm:$0xff] }
 0x193   : > { %v5931_v20 = vpop.eup %5930  ;;  %v904_v21 = vmul.f32 1.442695, %v822_v41  ;;  %v906_v32 = vmul.f32 1.442695, %v823_v8  ;;  %v5656_v41 = vld [vmem:[%s6823_s23 + $0xa0] sm:$0xff] }
 0x194   : > { %1213 = vmatprep.mubr.f32.mxu0 %v5931_v20  ;;  %v740_v16 = vpop.xlane.xlu1 %739  ;;  %v7446_v4 = vadd.f32 %v5931_v20, %v5929_v9 }
 0x195   : > { %5944 = vpow2.f32 %v904_v21  ;;  %1214 = vmatmul.mubr.f32.gmra.mxu0 %v5929_v9  ;;  %v824_v24 = vsub.f32 %v7278_v34, %v740_v16  ;;  %v825_v31 = vsub.f32 %v7280_v35, %v740_v16 }
 0x196   : > { %11611 = vst [vmem:[#allocation37_spill] sm:$0xff] %v7446_v4  ;;  %v5933_v18 = vpop.eup %5932  ;;  %5946 = vpow2.f32 %v906_v32  ;;  %v5655_v32 = vld [vmem:[%s6823_s23 + $0x98] sm:$0xff] }
 0x197   : > { %v5935_v19 = vpop.eup %5934  ;;  %v908_v48 = vmul.f32 1.442695, %v824_v24  ;;  %v910_v49 = vmul.f32 1.442695, %v825_v31  ;;  %2624 = vrot.lane.b32.xlu0 %v6676_v62, %s6763_s4  ;;  %v561_v24 = vpop.f32.mrf.mxu0  ;;  %v5653_v31 = vld [vmem:[%s6823_s23 + $0x88] sm:$0xff]  ;;  %v5652_v62 = vld [vmem:[%s6823_s23 + $0x80] sm:$0xff] }
 0x198   : > { %1218 = vmatprep.mubr.f32.mxu0 %v5935_v19  ;;  %v743_v30 = vpop.xlane.xlu0 %742  ;;  %v7452_v33 = vadd.f32 %v5935_v19, %v5933_v18 }
 0x199   : > { %5948 = vpow2.f32 %v908_v48  ;;  %1219 = vmatmul.mubr.f32.gmra.mxu0 %v5933_v18  ;;  %v826_v34 = vsub.f32 %v7289_v44, %v743_v30  ;;  %v827_v35 = vsub.f32 %v7291_v45, %v743_v30 }
 0x19a   : > { %11612 = vst [vmem:[#allocation38_spill] sm:$0xff] %v7452_v33  ;;  %v5937_v29 = vpop.eup %5936  ;;  %5950 = vpow2.f32 %v910_v49  ;;  %1614 = vmatprep.mubr.f32.mxu0 %v11613_v6 }
 0x19b   : > { %v5939_v46 = vpop.eup %5938  ;;  %v912_v14 = vmul.f32 1.442695, %v826_v34  ;;  %v914_v15 = vmul.f32 1.442695, %v827_v35 }
 0x19c   : > { %1223 = vmatprep.mubr.f32.mxu1 %v5939_v46  ;;  %v746_v58 = vpop.xlane.xlu1 %745  ;;  %v7459_v52 = vadd.f32 %v5939_v46, %v5937_v29 }
 0x19d   : > { %5952 = vpow2.f32 %v912_v14  ;;  %1224 = vmatmul.mubr.f32.vlgmr.msra.gmra.mxu1 %v5937_v29  ;;  %5588 = vmatmul.mubr.msk.f32.vlgmr.msra.gmra.mxu0 %vm290_vm0, %v7139_v54  ;;  %v828_v44 = vsub.f32 %v7297_v55, %v746_v58  ;;  %v829_v45 = vsub.f32 %v7301_v59, %v746_v58  ;;  %v5654_v54 = vld [vmem:[%s6823_s23 + $0x90] sm:$0xff] }
 0x19e   : > { %11614 = vst [vmem:[#allocation39_spill] sm:$0xff] %v7459_v52  ;;  %v5941_v8 = vpop.eup %5940  ;;  %5954 = vpow2.f32 %v914_v15  ;;  %1620 = vmatprep.mubr.f32.mxu0 %v11613_v6  ;;  %2739 = vmatpush1.msra.mxu0 %v5658_v57 }
 0x19f   : > { %v5943_v9 = vpop.eup %5942  ;;  %v916_v20 = vmul.f32 1.442695, %v828_v44  ;;  %v918_v21 = vmul.f32 1.442695, %v829_v45  ;;  %2740 = vmatprep.subr.mxu0 %v5657_v42 }
 0x1a0   : > { %1228 = vmatprep.mubr.f32.mxu1 %v5943_v9  ;;  %v749_v16 = vpop.xlane.xlu0 %748  ;;  %2741 = vmatpush1.msra.mxu0 %v5656_v41  ;;  %v7469_v28 = vadd.f32 %v5943_v9, %v5941_v8 }
 0x1a1   : > { %5956 = vpow2.f32 %v916_v20  ;;  %1229 = vmatmul.mubr.f32.gmra.mxu1 %v5941_v8  ;;  %5589 = vmatmul.mubr.msk.f32.gmra.mxu0 %vm290_vm0, %v7225_v47  ;;  %v830_v55 = vsub.f32 %v7305_v5, %v749_v16  ;;  %v831_v59 = vsub.f32 %v7307_v10, %v749_v16  ;;  %v563_v47 = vpop.f32.mrf.mxu0 }
 0x1a2   : > { %11615 = vst [vmem:[#allocation40_spill] sm:$0xff] %v7469_v28  ;;  %v5945_v18 = vpop.eup %5944  ;;  %5958 = vpow2.f32 %v918_v21  ;;  %1626 = vmatprep.mubr.f32.mxu0 %v11613_v6  ;;  %2742 = vmatprep.subr.mxu0 %v5655_v32  ;;  %v7490_v14 = vmul.f32 0.17677669, %v563_v47 }
 0x1a3   : > { %v5947_v19 = vpop.eup %5946  ;;  %v920_v48 = vmul.f32 1.442695, %v830_v55  ;;  %v922_v49 = vmul.f32 1.442695, %v831_v59  ;;  %2743 = vmatpush1.msra.mxu0 %v5654_v54  ;;  %v567_v35 = vpop.f32.mrf.mxu0 }
 0x1a4   : > { %1233 = vmatprep.mubr.f32.mxu1 %v5947_v19  ;;  %2744 = vmatprep.subr.mxu0 %v5653_v31  ;;  %v7478_v30 = vadd.f32 %v5947_v19, %v5945_v18  ;;  %v7497_v42 = vmul.f32 0.17677669, %v567_v35  ;;  %v11625_v35 = vld [vmem:[#allocation8_spill] sm:$0xff] }
 0x1a5   : > { %5960 = vpow2.f32 %v920_v48  ;;  %1234 = vmatmul.mubr.f32.gmra.mxu1 %v5945_v18  ;;  %5590 = vmatmul.mubr.msk.f32.gmra.mxu0 %vm290_vm0, %v7155_v63  ;;  %v7488_v63 = vmul.f32 0.17677669, %v561_v24  ;;  %v569_v57 = vpop.f32.mrf.mxu0  ;;  %v11622_v24 = vld [vmem:[#allocation4_spill] sm:$0xff] }
 0x1a6   : > { %11616 = vst [vmem:[#allocation41_spill] sm:$0xff] %v7478_v30  ;;  %v5949_v5 = vpop.eup %5948  ;;  %5962 = vpow2.f32 %v922_v49  ;;  %1632 = vmatprep.mubr.f32.mxu0 %v11613_v6  ;;  %2745 = vmatpush1.msra.mxu0 %v5652_v62  ;;  %v7499_v44 = vmul.f32 0.17677669, %v569_v57  ;;  %v11623_v49 = vld [vmem:[#allocation6_spill] sm:$0xff] }
 0x1a7   : > { %v5951_v10 = vpop.eup %5950  ;;  %v762_v45 = vmax.f32 %v7488_v63, %v7490_v14  ;;  %v11627_v57 = vld [vmem:[#allocation10_spill] sm:$0xff] }
 0x1a8   : > { %1238 = vmatprep.mubr.f32.mxu1 %v5951_v10  ;;  %v7483_v34 = vadd.f32 %v5951_v10, %v5949_v5  ;;  %v765_v9 = vmax.f32 %v7497_v42, %v7499_v44 }
 0x1a9   : > { %1239 = vmatmul.mubr.f32.gmra.mxu1 %v5949_v5  ;;  %5591 = vmatmul.mubr.msk.f32.gmra.mxu0 %vm290_vm0, %v7173_v11 }
 0x1aa   : > { %11617 = vst [vmem:[#allocation42_spill] sm:$0xff] %v7483_v34  ;;  %v5953_v29 = vpop.eup %5952  ;;  %1638 = vmatprep.mubr.f32.mxu0 %v11613_v6 }
 0x1ab   : > { %v5955_v46 = vpop.eup %5954 }
 0x1ac   : > { %1243 = vmatprep.mubr.f32.mxu1 %v5955_v46  ;;  %v7492_v15 = vadd.f32 %v5955_v46, %v5953_v29 }
 0x1ad   : > { %1244 = vmatmul.mubr.f32.gmra.mxu1 %v5953_v29  ;;  %5592 = vmatmul.mubr.msk.f32.gmra.mxu0 %vm290_vm0, %v7193_v22 }
 0x1ae   : > { %11618 = vst [vmem:[#allocation43_spill] sm:$0xff] %v7492_v15  ;;  %v5957_v58 = vpop.eup %5956  ;;  %1644 = vmatprep.mubr.f32.mxu0 %v11613_v6  ;;  %v6708_v15 = vld [vmem:[%s6840_s29 + $0x98] sm:$0xff] }
 0x1af   : > { %v5959_v11 = vpop.eup %5958 }
 0x1b0   : > { %1248 = vmatprep.mubr.f32.mxu1 %v5959_v11  ;;  %v7503_v41 = vadd.f32 %v5959_v11, %v5957_v58 }
 0x1b1   : > { %1249 = vmatmul.mubr.f32.gmra.mxu1 %v5957_v58  ;;  %5593 = vmatmul.mubr.msk.f32.gmra.mxu0 %vm290_vm0, %v7247_v1  ;;  %v6677_v1 = vld [vmem:[%s6840_s29 + $0xa0] sm:$0xff]  ;;  %v11628_v58 = vld [vmem:[#allocation12_spill] sm:$0xff] }
 0x1b2   : > { %11619 = vst [vmem:[#allocation44_spill] sm:$0xff] %v7503_v41  ;;  %v5961_v22 = vpop.eup %5960  ;;  %763 = vmax.xlane.f32.xlu1 %v762_v45  ;;  %1650 = vmatprep.mubr.f32.mxu0 %v11613_v6  ;;  %v11629_v45 = vld [vmem:[#allocation3_spill] sm:$0xff] }
 0x1b3   : > { %v5963_v8 = vpop.eup %5962 }
 0x1b4   : > { %1253 = vmatprep.mubr.f32.mxu1 %v5963_v8  ;;  %v7510_v20 = vadd.f32 %v5963_v8, %v5961_v22  ;;  %v6679_v8 = vld [vmem:[%s6840_s29 + $0xb0] sm:$0xff] }
 0x1b5   : > { %1254 = vmatmul.mubr.f32.gmra.mxu1 %v5961_v22  ;;  %5594 = vmatmul.mubr.msk.f32.gmra.mxu0 %vm290_vm0, %v7209_v37  ;;  %v6678_v37 = vld [vmem:[%s6840_s29 + $0xa8] sm:$0xff] }
 0x1b6   : > { %11620 = vst [vmem:[#allocation45_spill] sm:$0xff] %v7510_v20  ;;  %766 = vmax.xlane.f32.xlu0 %v765_v9  ;;  %1656 = vmatprep.mubr.f32.mxu0 %v11613_v6  ;;  %v11630_v9 = vld [vmem:[#allocation14_spill] sm:$0xff] }
 0x1b9   : > { %5595 = vmatmul.mubr.msk.f32.gmra.mxu0 %vm290_vm0, %v7265_v17  ;;  %v7539_v17 = vpop.permute.xlu0 %2616 }
 0x1ba   : > { %1662 = vmatprep.mubr.f32.mxu0 %v11613_v6 }
 0x1bd   : > { %5596 = vmatmul.mubr.msk.f32.gmra.mxu0 %vm290_vm0, %v7231_v50  ;;  %v7534_v50 = vpop.permute.xlu1 %2614 }
 0x1be   : > { %1668 = vmatprep.mubr.f32.mxu0 %v11613_v6 }
 0x1c1   : > { %5597 = vmatmul.mubr.msk.f32.gmra.mxu0 %vm290_vm0, %v7282_v38 }
 0x1c2   : > { %1674 = vmatprep.mubr.f32.mxu0 %v11613_v6 }
 0x1c3   : > { %2626 = vrot.lane.b32.xlu1 %v6677_v1, %s6763_s4 }
 0x1c5   : > { %5598 = vmatmul.mubr.msk.f32.gmra.mxu0 %vm290_vm0, %v7251_v3 }
 0x1c6   : > { %1680 = vmatprep.mubr.f32.mxu0 %v11613_v6 }
 0x1c9   : > { %5599 = vmatmul.mubr.msk.f32.gmra.mxu0 %vm290_vm0, %v7295_v53 }
 0x1ca   : > { %1686 = vmatprep.mubr.f32.mxu0 %v11613_v6 }
 0x1cc   : > { %2628 = vrot.lane.b32.xlu0 %v6678_v37, %s6763_s4  ;;  %v11631_v37 = vld [vmem:[#allocation16_spill] sm:$0xff] }
 0x1cd   : > { %5600 = vmatmul.mubr.msk.f32.gmra.mxu0 %vm290_vm0, %v7272_v23 }
 0x1ce   : > { %1692 = vmatprep.mubr.f32.mxu0 %v11613_v6 }
 0x1d1   : > { %5601 = vmatmul.mubr.msk.f32.gmra.mxu0 %vm290_vm0, %v7309_v12  ;;  %v752_v3 = vpop.xlane.xlu1 %751  ;;  %v573_v12 = vpop.f32.mrf.mxu0 }
 0x1d2   : > { %v832_v38 = vsub.f32 %v7348_v36, %v752_v3  ;;  %v833_v53 = vsub.f32 %v7350_v25, %v752_v3  ;;  %1698 = vmatprep.mubr.f32.mxu0 %v11613_v6 }
 0x1d3   : > { %v575_v25 = vpop.f32.mrf.mxu0 }
 0x1d4   : > { %v924_v21 = vmul.f32 1.442695, %v832_v38  ;;  %v926_v32 = vmul.f32 1.442695, %v833_v53  ;;  %v7559_v59 = vmul.f32 0.17677669, %v575_v25 }
 0x1d5   : > { %5602 = vmatmul.mubr.msk.f32.gmra.mxu0 %vm290_vm0, %v7285_v39  ;;  %v755_v23 = vpop.xlane.xlu0 %754  ;;  %v11621_v39 = vld [vmem:[#allocation2_spill] sm:$0xff]  ;;  %v6680_v53 = vld [vmem:[%s6840_s29 + $0xb8] sm:$0xff] }
 0x1d6   : > { %5964 = vpow2.f32 %v924_v21  ;;  %v834_v16 = vsub.f32 %v7356_v2, %v755_v23  ;;  %v835_v54 = vsub.f32 %v7358_v13, %v755_v23  ;;  %1704 = vmatprep.mubr.f32.mxu0 %v11613_v6  ;;  %v579_v2 = vpop.f32.mrf.mxu0  ;;  %v7557_v13 = vmul.f32 0.17677669, %v573_v12  ;;  %v11632_v38 = vld [vmem:[#allocation18_spill] sm:$0xff]  ;;  %v11633_v23 = vld [vmem:[#allocation20_spill] sm:$0xff] }
 0x1d7   : > { %5966 = vpow2.f32 %v926_v32  ;;  %v7564_v19 = vmul.f32 0.17677669, %v579_v2  ;;  %v7605_v32 = vpop.permute.xlu1 %2618  ;;  %v11634_v2 = vld [vmem:[#allocation22_spill] sm:$0xff] }
 0x1d8   : > { %v928_v36 = vmul.f32 1.442695, %v834_v16  ;;  %v930_v55 = vmul.f32 1.442695, %v835_v54  ;;  %v768_v62 = vmax.f32 %v7557_v13, %v7559_v59 }
 0x1d9   : > { %5603 = vmatmul.mubr.msk.f32.gmra.mxu0 %vm290_vm0, %v7299_v56  ;;  %v581_v56 = vpop.f32.mrf.mxu0  ;;  %v7612_v54 = vpop.permute.xlu0 %2620 }
 0x1da   : > { %5968 = vpow2.f32 %v928_v36  ;;  %1710 = vmatprep.mubr.f32.mxu0 %v11613_v6  ;;  %v7566_v48 = vmul.f32 0.17677669, %v581_v56 }
 0x1db   : > { %5970 = vpow2.f32 %v930_v55  ;;  %v585_v11 = vpop.f32.mrf.mxu0 }
 0x1dc   : > { %v771_v29 = vmax.f32 %v7564_v19, %v7566_v48 }
 0x1dd   : > { %5604 = vmatmul.mubr.msk.f32.gmra.mxu0 %vm290_vm0, %v11621_v39  ;;  %v587_v22 = vpop.f32.mrf.mxu0 }
 0x1de   : > { %1716 = vmatprep.mubr.f32.mxu0 %v11613_v6 }
 0x1df   : > { %v591_v1 = vpop.f32.mrf.mxu0 }
 0x1e1   : > { %5605 = vmatmul.mubr.msk.f32.gmra.mxu0 %vm290_vm0, %v11622_v24  ;;  %v593_v3 = vpop.f32.mrf.mxu0 }
 0x1e2   : > { %1722 = vmatprep.mubr.f32.mxu0 %v11613_v6 }
 0x1e3   : > { %v5965_v31 = vpop.eup %5964  ;;  %v7603_v21 = vpop.f32.mrf.mxu0 }
 0x1e4   : > { %v5967_v18 = vpop.eup %5966 }
 0x1e5   : > { %1258 = vmatprep.mubr.f32.mxu1 %v5967_v18  ;;  %5606 = vmatmul.mubr.msk.f32.gmra.mxu0 %vm290_vm0, %v11623_v49  ;;  %v7572_v47 = vadd.f32 %v5967_v18, %v5965_v31  ;;  %v7610_v16 = vpop.f32.mrf.mxu0 }
 0x1e6   : > { %1259 = vmatmul.mubr.f32.gmra.mxu1 %v5965_v31  ;;  %1728 = vmatprep.mubr.f32.mxu0 %v11613_v6 }
 0x1e7   : > { %11624 = vst [vmem:[#allocation2_spill] sm:$0xff] %v7572_v47  ;;  %v5969_v5 = vpop.eup %5968  ;;  %769 = vmax.xlane.f32.xlu1 %v768_v62  ;;  %v7619_v24 = vpop.f32.mrf.mxu0  ;;  %v11635_v62 = vld [vmem:[#allocation5_spill] sm:$0xff] }
 0x1e8   : > { %v5971_v10 = vpop.eup %5970 }
 0x1e9   : > { %1263 = vmatprep.mubr.f32.mxu1 %v5971_v10  ;;  %5607 = vmatmul.mubr.msk.f32.gmra.mxu0 %vm290_vm0, %v11625_v35  ;;  %v7579_v46 = vadd.f32 %v5971_v10, %v5969_v5  ;;  %v7638_v35 = vmul.f32 0.17677669, %v585_v11 }
 0x1ea   : > { %1264 = vmatmul.mubr.f32.gmra.mxu1 %v5969_v5  ;;  %1734 = vmatprep.mubr.f32.mxu0 %v11613_v6  ;;  %v11636_v5 = vld [vmem:[#allocation7_spill] sm:$0xff] }
 0x1eb   : > { %11626 = vst [vmem:[#allocation4_spill] sm:$0xff] %v7579_v46  ;;  %772 = vmax.xlane.f32.xlu0 %v771_v29  ;;  %v7640_v29 = vmul.f32 0.17677669, %v587_v22 }
 0x1ed   : > { %5608 = vmatmul.mubr.msk.f32.gmra.mxu0 %vm290_vm0, %v11627_v57  ;;  %v774_v11 = vmax.f32 %v7638_v35, %v7640_v29 }
 0x1ee   : > { %1740 = vmatprep.mubr.f32.mxu0 %v11613_v6 }
 0x1f1   : > { %5609 = vmatmul.mubr.msk.f32.gmra.mxu0 %vm290_vm0, %v11628_v58 }
 0x1f2   : > { %1746 = vmatprep.mubr.f32.mxu0 %v11613_v6 }
 0x1f5   : > { %5610 = vmatmul.mubr.msk.f32.gmra.mxu0 %vm290_vm0, %v11629_v45  ;;  %v11638_v45 = vld [vmem:[#allocation11_spill] sm:$0xff] }
 0x1f6   : > { %1752 = vmatprep.mubr.f32.mxu0 %v11613_v6 }
 0x1f8   : > { %2630 = vrot.lane.b32.xlu1 %v6679_v8, %s6763_s4 }
 0x1f9   : > { %5611 = vmatmul.mubr.msk.f32.gmra.mxu0 %vm290_vm0, %v11630_v9  ;;  %v7647_v9 = vmul.f32 0.17677669, %v591_v1 }
 0x1fa   : > { %1758 = vmatprep.mubr.f32.mxu0 %v11613_v6 }
 0x1fd   : > { %5612 = vmatmul.mubr.msk.f32.gmra.mxu0 %vm290_vm0, %v11631_v37  ;;  %v7649_v37 = vmul.f32 0.17677669, %v593_v3 }
 0x1fe   : > { %1764 = vmatprep.mubr.f32.mxu0 %v11613_v6 }
 0x1ff   : > { %v777_v1 = vmax.f32 %v7647_v9, %v7649_v37 }
 0x201   : > { %5613 = vmatmul.mubr.msk.f32.gmra.mxu0 %vm290_vm0, %v11632_v38  ;;  %2632 = vrot.lane.b32.xlu0 %v6680_v53, %s6763_s4 }
 0x202   : > { %1770 = vmatprep.mubr.f32.mxu0 %v11613_v6 }
 0x205   : > { %5614 = vmatmul.mubr.msk.f32.gmra.mxu0 %vm290_vm0, %v11633_v23  ;;  %v11640_v23 = vld [vmem:[#allocation13_spill] sm:$0xff] }
 0x206   : > { %v758_v12 = vpop.xlane.xlu1 %757  ;;  %1776 = vmatprep.mubr.f32.mxu0 %v11613_v6 }
 0x207   : > { %v836_v36 = vsub.f32 %v7400_v26, %v758_v12  ;;  %v837_v55 = vsub.f32 %v7402_v0, %v758_v12  ;;  %v7626_v0 = vpop.f32.mrf.mxu0 }
 0x209   : > { %v932_v25 = vmul.f32 1.442695, %v836_v36  ;;  %v934_v39 = vmul.f32 1.442695, %v837_v55  ;;  %5615 = vmatmul.mubr.msk.f32.gmra.mxu0 %vm290_vm0, %v11634_v2  ;;  %v7631_v10 = vpop.f32.mrf.mxu0  ;;  %v11642_v36 = vld [vmem:[#allocation15_spill] sm:$0xff] }
 0x20a   : > { %v761_v56 = vpop.xlane.xlu0 %760  ;;  %1782 = vmatprep.mubr.f32.mxu0 %v11613_v6  ;;  %v11644_v2 = vld [vmem:[#allocation19_spill] sm:$0xff] }
 0x20b   : > { %5972 = vpow2.f32 %v932_v25  ;;  %v838_v31 = vsub.f32 %v7406_v43, %v761_v56  ;;  %v839_v18 = vsub.f32 %v7408_v27, %v761_v56  ;;  %v11637_v43 = vld [vmem:[#allocation9_spill] sm:$0xff]  ;;  %v7636_v27 = vpop.f32.mrf.mxu0 }
 0x20c   : > { %5974 = vpow2.f32 %v934_v39  ;;  %v11643_v25 = vld [vmem:[#allocation17_spill] sm:$0xff] }
 0x20d   : > { %v936_v49 = vmul.f32 1.442695, %v838_v31  ;;  %v938_v26 = vmul.f32 1.442695, %v839_v18  ;;  %5616 = vmatmul.mubr.msk.f32.gmra.mxu0 %vm290_vm0, %v11635_v62  ;;  %v7645_v8 = vpop.f32.mrf.mxu0  ;;  %v11645_v31 = vld [vmem:[#allocation21_spill] sm:$0xff]  ;;  %v6681_v18 = vld [vmem:[%s6840_s29 + $0xc0] sm:$0xff] }
 0x20e   : > { %1788 = vmatprep.mubr.f32.mxu0 %v11613_v6 }
 0x20f   : > { %5976 = vpow2.f32 %v936_v49  ;;  %v7658_v12 = vpop.f32.mrf.mxu0 }
 0x210   : > { %5978 = vpow2.f32 %v938_v26  ;;  %v11646_v26 = vld [vmem:[#allocation24_spill] sm:$0xff] }
 0x211   : > { %5617 = vmatmul.mubr.msk.f32.gmra.mxu0 %vm290_vm0, %v11636_v5  ;;  %v7667_v55 = vpop.f32.mrf.mxu0  ;;  %v11647_v5 = vld [vmem:[#allocation23_spill] sm:$0xff] }
 0x212   : > { %1794 = vmatprep.mubr.f32.mxu0 %v11613_v6 }
 0x213   : > { %v7672_v39 = vpop.f32.mrf.mxu0 }
 0x215   : > { %5618 = vmatmul.mubr.msk.f32.gmra.mxu0 %vm290_vm0, %v11637_v43  ;;  %v7677_v56 = vpop.f32.mrf.mxu0 }
 0x216   : > { %1800 = vmatprep.mubr.f32.mxu0 %v11613_v6 }
 0x217   : > { %v7684_v49 = vpop.f32.mrf.mxu0 }
 0x218   : > { %v5973_v57 = vpop.eup %5972 }
 0x219   : > { %v5975_v58 = vpop.eup %5974  ;;  %5619 = vmatmul.mubr.msk.f32.gmra.mxu0 %vm290_vm0, %v11638_v45  ;;  %v7689_v62 = vpop.f32.mrf.mxu0  ;;  %v11648_v45 = vld [vmem:[#allocation25_spill] sm:$0xff] }
 0x21a   : > { %1268 = vmatprep.mubr.f32.mxu1 %v5975_v58  ;;  %2778 = vmatprep.mubr.f32.mxu0 %v11613_v6  ;;  %v7654_v22 = vadd.f32 %v5975_v58, %v5973_v57  ;;  %v7699_v58 = vpop.permute.xlu1 %2622 }
 0x21b   : > { %1269 = vmatmul.mubr.f32.gmra.mxu1 %v5973_v57  ;;  %v7694_v43 = vpop.f32.mrf.mxu0  ;;  %v6682_v57 = vld [vmem:[%s6840_s29 + $0xc8] sm:$0xff] }
 0x21c   : > { %11639 = vst [vmem:[#allocation6_spill] sm:$0xff] %v7654_v22  ;;  %v5977_v38 = vpop.eup %5976  ;;  %775 = vmax.xlane.f32.xlu1 %v774_v11 }
 0x21d   : > { %v5979_v53 = vpop.eup %5978  ;;  %5660 = vmatmul.mubr.msk.f32.vlgmr.msra.gmra.mxu0 %vm290_vm0, %v11640_v23  ;;  %v7703_v11 = vpop.f32.mrf.mxu0 }
 0x21e   : > { %1273 = vmatprep.mubr.f32.mxu1 %v5979_v53  ;;  %2784 = vmatprep.mubr.f32.mxu0 %v11613_v6  ;;  %v7663_v3 = vadd.f32 %v5979_v53, %v5977_v38 }
 0x21f   : > { %1274 = vmatmul.mubr.f32.gmra.mxu1 %v5977_v38  ;;  %v7706_v38 = vpop.permute.xlu0 %2624 }
 0x220   : > { %11641 = vst [vmem:[#allocation8_spill] sm:$0xff] %v7663_v3  ;;  %778 = vmax.xlane.f32.xlu0 %v777_v1 }
 0x221   : > { %5661 = vmatmul.mubr.msk.f32.gmra.mxu0 %vm290_vm0, %v11642_v36  ;;  %v11649_v36 = vld [vmem:[#allocation26_spill] sm:$0xff] }
 0x222   : > { %2790 = vmatprep.mubr.f32.mxu0 %v11613_v6 }
 0x225   : > { %5662 = vmatmul.mubr.msk.f32.gmra.mxu0 %vm290_vm0, %v11643_v25  ;;  %v7712_v25 = vpop.f32.mrf.mxu0 }
 0x226   : > { %2796 = vmatprep.mubr.f32.mxu0 %v11613_v6 }
 0x229   : > { %5663 = vmatmul.mubr.msk.f32.gmra.mxu0 %vm290_vm0, %v11644_v2 }
 0x22a   : > { %2802 = vmatprep.mubr.f32.mxu0 %v11613_v6 }
 0x22d   : > { %5664 = vmatmul.mubr.msk.f32.gmra.mxu0 %vm290_vm0, %v11645_v31  ;;  %2634 = vrot.lane.b32.xlu1 %v6681_v18, %s6763_s4 }
 0x22e   : > { %2808 = vmatprep.mubr.f32.mxu0 %v11613_v6 }
 0x231   : > { %5665 = vmatmul.mubr.msk.f32.gmra.mxu0 %vm290_vm0, %v11646_v26 }
 0x232   : > { %2814 = vmatprep.mubr.f32.mxu0 %v11613_v6 }
 0x235   : > { %5666 = vmatmul.mubr.msk.f32.gmra.mxu0 %vm290_vm0, %v11647_v5 }
 0x236   : > { %2636 = vrot.lane.b32.xlu0 %v6682_v57, %s6763_s4  ;;  %2820 = vmatprep.mubr.f32.mxu0 %v11613_v6 }
 0x239   : > { %5667 = vmatmul.mubr.msk.f32.gmra.mxu0 %vm290_vm0, %v11648_v45 }
 0x23a   : > { %2826 = vmatprep.mubr.f32.mxu0 %v11613_v6 }
 0x23b   : > { %v764_v53 = vpop.xlane.xlu1 %763 }
 0x23c   : > { %v840_v23 = vsub.f32 %v7488_v63, %v764_v53  ;;  %v841_v1 = vsub.f32 %v7490_v14, %v764_v53  ;;  %v11651_v63 = vld [vmem:[#allocation28_spill] sm:$0xff] }
 0x23d   : > { %5668 = vmatmul.mubr.msk.f32.gmra.mxu0 %vm290_vm0, %v11649_v36  ;;  %v11655_v36 = vld [vmem:[#allocation27_spill] sm:$0xff] }
 0x23e   : > { %v940_v2 = vmul.f32 1.442695, %v840_v23  ;;  %v942_v31 = vmul.f32 1.442695, %v841_v1  ;;  %2832 = vmatprep.mubr.f32.mxu0 %v11613_v6  ;;  %v11653_v1 = vld [vmem:[#allocation30_spill] sm:$0xff] }
 0x23f   : > { %v767_v18 = vpop.xlane.xlu0 %766 }
 0x240   : > { %5980 = vpow2.f32 %v940_v2  ;;  %v842_v26 = vsub.f32 %v7497_v42, %v767_v18  ;;  %v843_v5 = vsub.f32 %v7499_v44, %v767_v18  ;;  %v7733_v2 = vmul.f32 0.17677669, %v7603_v21 }
 0x241   : > { %5982 = vpow2.f32 %v942_v31  ;;  %v7717_v57 = vpop.f32.mrf.mxu0  ;;  %5669 = vmatmul.mubr.msk.f32.gmra.mxu0 %vm290_vm0, %v11651_v63  ;;  %v7736_v31 = vmul.f32 0.17677669, %v7610_v16  ;;  %v11657_v63 = vld [vmem:[#allocation31_spill] sm:$0xff] }
 0x242   : > { %11650 = vst [vmem:[#allocation10_spill] sm:$0xff] %v7717_v57  ;;  %v944_v14 = vmul.f32 1.442695, %v842_v26  ;;  %v946_v45 = vmul.f32 1.442695, %v843_v5  ;;  %2838 = vmatprep.mubr.f32.mxu0 %v11613_v6 }
 0x243   : > { %v1192_v53 = vpop.f32.mrf.mxu0  ;;  %v780_v16 = vmax.f32 %v7733_v2, %v7736_v31 }
 0x244   : > { %5984 = vpow2.f32 %v944_v14  ;;  %v7747_v53 = vmul.f32 0.17677669, %v7626_v0 }
 0x245   : > { %5986 = vpow2.f32 %v946_v45  ;;  %v7722_v23 = vpop.f32.mrf.mxu0  ;;  %5670 = vmatmul.mubr.msk.f32.gmra.mxu0 %vm290_vm0, %v11653_v1  ;;  %v7744_v45 = vmul.f32 0.17677669, %v7619_v24 }
 0x246   : > { %11652 = vst [vmem:[#allocation12_spill] sm:$0xff] %v7722_v23  ;;  %2844 = vmatprep.mubr.f32.mxu0 %v11613_v6 }
 0x247   : > { %v1197_v42 = vpop.f32.mrf.mxu0 }
 0x249   : > { %v7727_v44 = vpop.f32.mrf.mxu0  ;;  %5671 = vmatmul.mubr.msk.f32.gmra.mxu0 %vm290_vm0, %v11655_v36 }
 0x24a   : > { %11654 = vst [vmem:[#allocation3_spill] sm:$0xff] %v7727_v44  ;;  %2850 = vmatprep.mubr.f32.mxu0 %v11613_v6 }
 0x24b   : > { %v1202_v18 = vpop.f32.mrf.mxu0 }
 0x24c   : > { %v11660_v18 = vld [vmem:[#allocation29_spill] sm:$0xff] }
 0x24d   : > { %v5981_v26 = vpop.eup %5980  ;;  %v7738_v5 = vpop.f32.mrf.mxu0  ;;  %5672 = vmatmul.mubr.msk.f32.gmra.mxu0 %vm290_vm0, %v11657_v63  ;;  %v783_v63 = vmax.f32 %v7744_v45, %v7747_v53 }
 0x24e   : > { %11656 = vst [vmem:[#allocation14_spill] sm:$0xff] %v7738_v5  ;;  %v5983_v14 = vpop.eup %5982  ;;  %2856 = vmatprep.mubr.f32.mxu0 %v11613_v6 }
 0x24f   : > { %v1207_v21 = vpop.f32.mrf.mxu0  ;;  %1278 = vmatprep.mubr.f32.mxu1 %v5983_v14  ;;  %v7751_v1 = vadd.f32 %v5983_v14, %v5981_v26 }
 0x250   : > { %1279 = vmatmul.mubr.f32.gmra.mxu1 %v5981_v26 }
 0x251   : > { %11658 = vst [vmem:[#allocation16_spill] sm:$0xff] %v7751_v1  ;;  %v5985_v42 = vpop.eup %5984  ;;  %v7753_v36 = vpop.f32.mrf.mxu0  ;;  %5673 = vmatmul.mubr.msk.f32.gmra.mxu0 %vm290_vm0, %v11660_v18  ;;  %781 = vmax.xlane.f32.xlu1 %v780_v16 }
 0x252   : > { %11659 = vst [vmem:[#allocation18_spill] sm:$0xff] %v7753_v36  ;;  %v5987_v24 = vpop.eup %5986  ;;  %2862 = vmatprep.mubr.f32.mxu0 %v11613_v6 }
 0x253   : > { %v1212_v0 = vpop.f32.mrf.mxu0  ;;  %1283 = vmatprep.mubr.f32.mxu1 %v5987_v24  ;;  %v7760_v21 = vadd.f32 %v5987_v24, %v5985_v42 }
 0x254   : > { %1284 = vmatmul.mubr.f32.gmra.mxu1 %v5985_v42  ;;  %v6683_v0 = vld [vmem:[%s6840_s29 + $0xd0] sm:$0xff] }
 0x255   : > { %11661 = vst [vmem:[#allocation20_spill] sm:$0xff] %v7760_v21  ;;  %v7762_v26 = vpop.f32.mrf.mxu0  ;;  %5674 = vmatmul.mubr.msk.f32.gmra.mxu0 %vm290_vm0, %v7534_v50  ;;  %784 = vmax.xlane.f32.xlu0 %v783_v63 }
 0x256   : > { %11662 = vst [vmem:[#allocation22_spill] sm:$0xff] %v7762_v26  ;;  %2868 = vmatprep.mubr.f32.mxu0 %v11613_v6 }
 0x257   : > { %v1217_v14 = vpop.f32.mrf.mxu0 }
 0x259   : > { %v7767_v16 = vpop.f32.mrf.mxu0  ;;  %5675 = vmatmul.mubr.msk.f32.gmra.mxu0 %vm290_vm0, %v7539_v17 }
 0x25a   : > { %11663 = vst [vmem:[#allocation5_spill] sm:$0xff] %v7767_v16  ;;  %2874 = vmatprep.mubr.f32.mxu0 %v11613_v6 }
 0x25b   : > { %v1222_v18 = vpop.f32.mrf.mxu0 }
 0x25c   : > { %v6684_v18 = vld [vmem:[%s6840_s29 + $0xd8] sm:$0xff] }
 0x25d   : > { %v7772_v24 = vpop.f32.mrf.mxu1  ;;  %5676 = vmatmul.mubr.msk.f32.gmra.mxu0 %vm290_vm0, %v7605_v32 }
 0x25e   : > { %11664 = vst [vmem:[#allocation7_spill] sm:$0xff] %v7772_v24  ;;  %2880 = vmatprep.mubr.f32.mxu0 %v11613_v6 }
 0x25f   : > { %v1227_v50 = vpop.f32.mrf.mxu1 }
 0x260   : > { %v2627_v50 = vpop.permute.xlu1 %2626 }
 0x261   : > { %v7777_v42 = vpop.f32.mrf.mxu1  ;;  %5677 = vmatmul.mubr.msk.f32.gmra.mxu0 %vm290_vm0, %v7612_v54 }
 0x262   : > { %11665 = vst [vmem:[#allocation9_spill] sm:$0xff] %v7777_v42  ;;  %2638 = vrot.lane.b32.xlu1 %v6683_v0, %s6763_s4  ;;  %2886 = vmatprep.mubr.f32.mxu0 %v11613_v6 }
 0x263   : > { %v1232_v17 = vpop.f32.mrf.mxu1 }
 0x264   : > { %v2629_v17 = vpop.permute.xlu0 %2628 }
 0x265   : > { %v7784_v63 = vpop.f32.mrf.mxu1  ;;  %5678 = vmatmul.mubr.msk.f32.gmra.mxu0 %vm290_vm0, %v7699_v58 }
 0x266   : > { %11666 = vst [vmem:[#allocation11_spill] sm:$0xff] %v7784_v63  ;;  %2892 = vmatprep.mubr.f32.mxu0 %v11613_v6 }
 0x267   : > { %v1237_v32 = vpop.f32.mrf.mxu1 }
 0x269   : > { %v7789_v14 = vpop.f32.mrf.mxu1  ;;  %5679 = vmatmul.mubr.msk.f32.gmra.mxu0 %vm290_vm0, %v7706_v38 }
 0x26a   : > { %11667 = vst [vmem:[#allocation13_spill] sm:$0xff] %v7789_v14  ;;  %2898 = vmatprep.mubr.f32.mxu0 %v11613_v6 }
 0x26b   : > { %v1242_v54 = vpop.f32.mrf.mxu1  ;;  %2640 = vrot.lane.b32.xlu0 %v6684_v18, %s6763_s4 }
 0x26d   : > { %v7796_v0 = vpop.f32.mrf.mxu1  ;;  %5680 = vmatmul.mubr.msk.f32.gmra.mxu0 %vm290_vm0, %v2627_v50 }
 0x26e   : > { %11668 = vst [vmem:[#allocation15_spill] sm:$0xff] %v7796_v0  ;;  %2904 = vmatprep.mubr.f32.mxu0 %v11613_v6 }
 0x26f   : > { %v1247_v58 = vpop.f32.mrf.mxu1 }
 0x270   : > { %v770_v32 = vpop.xlane.xlu1 %769 }
 0x271   : > { %v7800_v14 = vpop.f32.mrf.mxu1  ;;  %v844_v38 = vsub.f32 %v7557_v13, %v770_v32  ;;  %v845_v42 = vsub.f32 %v7559_v59, %v770_v32  ;;  %5681 = vmatmul.mubr.msk.f32.gmra.mxu0 %vm290_vm0, %v2629_v17 }
 0x272   : > { %11669 = vst [vmem:[#allocation17_spill] sm:$0xff] %v7800_v14  ;;  %2910 = vmatprep.mubr.f32.mxu0 %v11613_v6 }
 0x273   : > { %v948_v54 = vmul.f32 1.442695, %v844_v38  ;;  %v950_v18 = vmul.f32 1.442695, %v845_v42  ;;  %v1252_v0 = vpop.f32.mrf.mxu1  ;;  %v7815_v42 = vmul.f32 0.17677669, %v7631_v10 }
 0x274   : > { %v2631_v16 = vpop.permute.xlu1 %2630  ;;  %v773_v50 = vpop.xlane.xlu0 %772  ;;  %v7821_v0 = vmul.f32 0.17677669, %v7645_v8 }
 0x275   : > { %5988 = vpow2.f32 %v948_v54  ;;  %v7806_v63 = vpop.f32.mrf.mxu1  ;;  %v846_v58 = vsub.f32 %v7564_v19, %v773_v50  ;;  %v847_v14 = vsub.f32 %v7566_v48, %v773_v50  ;;  %5682 = vmatmul.mubr.msk.f32.gmra.mxu0 %vm290_vm0, %v2631_v16  ;;  %v7818_v19 = vmul.f32 0.17677669, %v7636_v27  ;;  %v6686_v50 = vld [vmem:[%s6840_s29 + $0xe8] sm:$0xff] }
 0x276   : > { %11670 = vst [vmem:[#allocation19_spill] sm:$0xff] %v7806_v63  ;;  %5990 = vpow2.f32 %v950_v18  ;;  %2916 = vmatprep.mubr.f32.mxu0 %v11613_v6 }
 0x277   : > { %v952_v13 = vmul.f32 1.442695, %v846_v58  ;;  %v954_v59 = vmul.f32 1.442695, %v847_v14  ;;  %v1257_v17 = vpop.f32.mrf.mxu1  ;;  %v7824_v14 = vmul.f32 0.17677669, %v7658_v12  ;;  %v786_v38 = vmax.f32 %v7815_v42, %v7818_v19  ;;  %v7838_v58 = vpop.f32.mrf.mxu0 }
 0x278   : > { %v2633_v32 = vpop.permute.xlu0 %2632  ;;  %v6685_v12 = vld [vmem:[%s6840_s29 + $0xe0] sm:$0xff] }
 0x279   : > { %5992 = vpow2.f32 %v952_v13  ;;  %5683 = vmatmul.mubr.msk.f32.gmra.mxu0 %vm290_vm0, %v2633_v32  ;;  %v789_v18 = vmax.f32 %v7821_v0, %v7824_v14 }
 0x27a   : > { %5994 = vpow2.f32 %v954_v59  ;;  %2922 = vmatprep.mubr.f32.mxu0 %v11613_v6 }
 0x282   : > { %v5989_v48 = vpop.eup %5988 }
 0x283   : > { %v5991_v16 = vpop.eup %5990 }
 0x284   : > { %1288 = vmatprep.mubr.f32.mxu1 %v5991_v16  ;;  %v7828_v54 = vadd.f32 %v5991_v16, %v5989_v48 }
 0x285   : > { %1289 = vmatmul.mubr.f32.gmra.mxu1 %v5989_v48  ;;  %v7844_v48 = vpop.f32.mrf.mxu0 }
 0x286   : > { %11671 = vst [vmem:[#allocation21_spill] sm:$0xff] %v7828_v54  ;;  %v5993_v10 = vpop.eup %5992  ;;  %787 = vmax.xlane.f32.xlu1 %v786_v38 }
 0x287   : > { %v5995_v27 = vpop.eup %5994 }
 0x288   : > { %1293 = vmatprep.mubr.f32.mxu1 %v5995_v27  ;;  %v7832_v8 = vadd.f32 %v5995_v27, %v5993_v10 }
 0x289   : > { %1294 = vmatmul.mubr.f32.gmra.mxu1 %v5993_v10 }
 0x28a   : > { %11672 = vst [vmem:[#allocation24_spill] sm:$0xff] %v7832_v8  ;;  %790 = vmax.xlane.f32.xlu0 %v789_v18 }
 0x297   : > { %2642 = vrot.lane.b32.xlu1 %v6685_v12, %s6763_s4 }
 0x2a0   : > { %2644 = vrot.lane.b32.xlu0 %v6686_v50, %s6763_s4  ;;  %v7849_v50 = vpop.f32.mrf.mxu0 }
 0x2a5   : > { %v776_v13 = vpop.xlane.xlu1 %775 }
 0x2a6   : > { %v7840_v59 = vpop.f32.mrf.mxu1  ;;  %v848_v17 = vsub.f32 %v7638_v35, %v776_v13  ;;  %v849_v32 = vsub.f32 %v7640_v29, %v776_v13 }
 0x2a7   : > { %11673 = vst [vmem:[#allocation23_spill] sm:$0xff] %v7840_v59 }
 0x2a8   : > { %v956_v16 = vmul.f32 1.442695, %v848_v17  ;;  %v958_v38 = vmul.f32 1.442695, %v849_v32  ;;  %v1262_v10 = vpop.f32.mrf.mxu1 }
 0x2a9   : > { %v2635_v27 = vpop.permute.xlu1 %2634  ;;  %v779_v12 = vpop.xlane.xlu0 %778 }
 0x2aa   : > { %5996 = vpow2.f32 %v956_v16  ;;  %v7846_v18 = vpop.f32.mrf.mxu1  ;;  %5684 = vmatmul.mubr.msk.f32.gmra.mxu0 %vm290_vm0, %v2635_v27  ;;  %v850_v59 = vsub.f32 %v7647_v9, %v779_v12  ;;  %v851_v35 = vsub.f32 %v7649_v37, %v779_v12  ;;  %v7854_v10 = vpop.f32.mrf.mxu0  ;;  %v7859_v16 = vmul.f32 0.17677669, %v7667_v55 }
 0x2ab   : > { %11674 = vst [vmem:[#allocation25_spill] sm:$0xff] %v7846_v18  ;;  %5998 = vpow2.f32 %v958_v38  ;;  %2928 = vmatprep.mubr.f32.mxu0 %v11613_v6  ;;  %v7862_v9 = vmul.f32 0.17677669, %v7672_v39  ;;  %v7868_v27 = vmul.f32 0.17677669, %v7684_v49  ;;  %v6687_v49 = vld [vmem:[%s6840_s29 + $0xf0] sm:$0xff] }
 0x2ac   : > { %v1267_v29 = vpop.f32.mrf.mxu1  ;;  %v960_v13 = vmul.f32 1.442695, %v850_v59  ;;  %v962_v17 = vmul.f32 1.442695, %v851_v35  ;;  %v7865_v59 = vmul.f32 0.17677669, %v7677_v56 }
 0x2ad   : > { %v2637_v32 = vpop.permute.xlu0 %2636  ;;  %v792_v12 = vmax.f32 %v7859_v16, %v7862_v9 }
 0x2ae   : > { %6000 = vpow2.f32 %v960_v13  ;;  %5685 = vmatmul.mubr.msk.f32.gmra.mxu0 %vm290_vm0, %v2637_v32  ;;  %v795_v29 = vmax.f32 %v7865_v59, %v7868_v27  ;;  %v6688_v13 = vld [vmem:[%s6840_s29 + $0xf8] sm:$0xff] }
 0x2af   : > { %6002 = vpow2.f32 %v962_v17  ;;  %2934 = vmatprep.mubr.f32.mxu0 %v11613_v6  ;;  %v7882_v17 = vpop.f32.mrf.mxu0 }
 0x2b7   : > { %v5997_v37 = vpop.eup %5996 }
 0x2b8   : > { %v5999_v38 = vpop.eup %5998 }
 0x2b9   : > { %1298 = vmatprep.mubr.f32.mxu1 %v5999_v38  ;;  %v7872_v35 = vadd.f32 %v5999_v38, %v5997_v37 }
 0x2ba   : > { %1299 = vmatmul.mubr.f32.gmra.mxu1 %v5997_v37  ;;  %v7884_v37 = vpop.f32.mrf.mxu0 }
 0x2bb   : > { %11675 = vst [vmem:[#allocation26_spill] sm:$0xff] %v7872_v35  ;;  %793 = vmax.xlane.f32.xlu1 %v792_v12  ;;  %v6001_v55 = vpop.eup %6000 }
 0x2bc   : > { %v6003_v39 = vpop.eup %6002 }
 0x2bd   : > { %1303 = vmatprep.mubr.f32.mxu1 %v6003_v39  ;;  %v7876_v56 = vadd.f32 %v6003_v39, %v6001_v55 }
 0x2be   : > { %1304 = vmatmul.mubr.f32.gmra.mxu1 %v6001_v55 }
 0x2bf   : > { %11676 = vst [vmem:[#allocation28_spill] sm:$0xff] %v7876_v56  ;;  %796 = vmax.xlane.f32.xlu0 %v795_v29 }
 0x2cc   : > { %2646 = vrot.lane.b32.xlu1 %v6687_v49, %s6763_s4  ;;  %v7890_v49 = vpop.f32.mrf.mxu0 }
 0x2d5   : > { %2648 = vrot.lane.b32.xlu0 %v6688_v13, %s6763_s4 }
 0x2da   : > { %v782_v32 = vpop.xlane.xlu1 %781 }
 0x2db   : > { %v7886_v38 = vpop.f32.mrf.mxu1  ;;  %v852_v12 = vsub.f32 %v7733_v2, %v782_v32  ;;  %v853_v39 = vsub.f32 %v7736_v31, %v782_v32 }
 0x2dc   : > { %11677 = vst [vmem:[#allocation30_spill] sm:$0xff] %v7886_v38 }
 0x2dd   : > { %v964_v18 = vmul.f32 1.442695, %v852_v12  ;;  %v966_v55 = vmul.f32 1.442695, %v853_v39  ;;  %v1272_v29 = vpop.f32.mrf.mxu1  ;;  %v7898_v39 = vpop.f32.mrf.mxu0 }
 0x2de   : > { %v2639_v63 = vpop.permute.xlu1 %2638  ;;  %v785_v36 = vpop.xlane.xlu0 %784 }
 0x2df   : > { %6004 = vpow2.f32 %v964_v18  ;;  %v7892_v13 = vpop.f32.mrf.mxu1  ;;  %v854_v24 = vsub.f32 %v7744_v45, %v785_v36  ;;  %v855_v44 = vsub.f32 %v7747_v53, %v785_v36  ;;  %5686 = vmatmul.mubr.msk.f32.gmra.mxu0 %vm290_vm0, %v2639_v63  ;;  %v7903_v45 = vmul.f32 0.17677669, %v7689_v62 }
 0x2e0   : > { %11678 = vst [vmem:[#allocation27_spill] sm:$0xff] %v7892_v13  ;;  %6006 = vpow2.f32 %v966_v55  ;;  %2940 = vmatprep.mubr.f32.mxu0 %v11613_v6  ;;  %v7906_v53 = vmul.f32 0.17677669, %v7694_v43  ;;  %v7911_v63 = vmul.f32 0.17677669, %v7703_v11  ;;  %v5628_v13 = vld [vmem:[%s7100_s8 + $0x140] sm:$0xff] }
 0x2e1   : > { %v968_v2 = vmul.f32 1.442695, %v854_v24  ;;  %v970_v31 = vmul.f32 1.442695, %v855_v44  ;;  %v1277_v32 = vpop.f32.mrf.mxu1  ;;  %v7914_v18 = vmul.f32 0.17677669, %v7712_v25 }
 0x2e2   : > { %v2641_v12 = vpop.permute.xlu0 %2640  ;;  %v798_v44 = vmax.f32 %v7903_v45, %v7906_v53  ;;  %v5731_v25 = vld [vmem:[%s6823_s23 + $0xf8] sm:$0xff]  ;;  %v5728_v32 = vld [vmem:[%s6823_s23 + $0xe0] sm:$0xff] }
 0x2e3   : > { %6008 = vpow2.f32 %v968_v2  ;;  %5687 = vmatmul.mubr.msk.f32.gmra.mxu0 %vm290_vm0, %v2641_v12  ;;  %v801_v29 = vmax.f32 %v7911_v63, %v7914_v18  ;;  %v5730_v2 = vld [vmem:[%s6823_s23 + $0xf0] sm:$0xff]  ;;  %3902 = vmatprep.subr.mxu0 %v5731_v25  ;;  %v5727_v12 = vld [vmem:[%s6823_s23 + $0xd8] sm:$0xff]  ;;  %v5633_v25 = vld [vmem:[%s7100_s8 + $0x168] sm:$0xff] }
 0x2e4   : > { %6010 = vpow2.f32 %v970_v31  ;;  %2946 = vmatprep.mubr.f32.mxu0 %v11613_v6  ;;  %v5729_v31 = vld [vmem:[%s6823_s23 + $0xe8] sm:$0xff]  ;;  %3903 = vmatpush1.msra.mxu0 %v5730_v2  ;;  %v5632_v2 = vld [vmem:[%s7100_s8 + $0x160] sm:$0xff] }
 0x2e5   : > { %3904 = vmatprep.subr.mxu0 %v5729_v31  ;;  %v5631_v31 = vld [vmem:[%s7100_s8 + $0x158] sm:$0xff] }
 0x2e6   : > { %3905 = vmatpush1.msra.mxu0 %v5728_v32  ;;  %v6690_v32 = vld [vmem:[%s6840_s29 + $0x8] sm:$0xff] }
 0x2e7   : > { %3906 = vmatprep.subr.mxu0 %v5727_v12  ;;  %v7943_v12 = vpop.f32.mrf.mxu0 }
 0x2ec   : > { %v6005_v36 = vpop.eup %6004 }
 0x2ed   : > { %v6007_v24 = vpop.eup %6006 }
 0x2ee   : > { %1308 = vmatprep.mubr.f32.mxu1 %v6007_v24  ;;  %v7916_v62 = vadd.f32 %v6007_v24, %v6005_v36  ;;  %v5725_v24 = vld [vmem:[%s6823_s23 + $0xc8] sm:$0xff] }
 0x2ef   : > { %1309 = vmatmul.mubr.f32.gmra.mxu1 %v6005_v36  ;;  %v5726_v36 = vld [vmem:[%s6823_s23 + $0xd0] sm:$0xff] }
 0x2f0   : > { %11679 = vst [vmem:[#allocation31_spill] sm:$0xff] %v7916_v62  ;;  %v6009_v43 = vpop.eup %6008  ;;  %799 = vmax.xlane.f32.xlu1 %v798_v44  ;;  %3907 = vmatpush1.msra.mxu0 %v5726_v36  ;;  %v5724_v44 = vld [vmem:[%s6823_s23 + $0xc0] sm:$0xff]  ;;  %v5630_v36 = vld [vmem:[%s7100_s8 + $0x150] sm:$0xff] }
 0x2f1   : > { %v6011_v55 = vpop.eup %6010  ;;  %3908 = vmatprep.subr.mxu0 %v5725_v24  ;;  %v5629_v24 = vld [vmem:[%s7100_s8 + $0x148] sm:$0xff] }
 0x2f2   : > { %1313 = vmatprep.mubr.f32.mxu1 %v6011_v55  ;;  %v7920_v11 = vadd.f32 %v6011_v55, %v6009_v43  ;;  %3909 = vmatpush1.msra.mxu0 %v5724_v44  ;;  %v5635_v55 = vld [vmem:[%s7100_s8 + $0x178] sm:$0xff] }
 0x2f3   : > { %1314 = vmatmul.mubr.f32.gmra.mxu1 %v6009_v43  ;;  %v6689_v43 = vld [vmem:[%s6840_s29] sm:$0xff] }
 0x2f4   : > { %11680 = vst [vmem:[#allocation29_spill] sm:$0xff] %v7920_v11  ;;  %802 = vmax.xlane.f32.xlu0 %v801_v29  ;;  %v5634_v29 = vld [vmem:[%s7100_s8 + $0x170] sm:$0xff]  ;;  %2289 = vmatpush1.msra.mxu1 %v5635_v55 }
 0x2f5   : > { %2290 = vmatprep.subr.mxu1 %v11613_v6 }
 0x2f6   : > { %2291 = vmatpush1.msra.mxu1 %v5634_v29 }
 0x2f7   : > { %2292 = vmatprep.subr.mxu1 %v11613_v6 }
 0x2f8   : > { %2293 = vmatpush1.msra.mxu1 %v5633_v25  ;;  %v7953_v25 = vpop.f32.mrf.mxu0 }
 0x2f9   : > { %2294 = vmatprep.subr.mxu1 %v11613_v6 }
 0x2fa   : > { %2295 = vmatpush1.msra.mxu1 %v5632_v2 }
 0x2fb   : > { %2296 = vmatprep.subr.mxu1 %v11613_v6 }
 0x2fc   : > { %2297 = vmatpush1.msra.mxu1 %v5631_v31 }
 0x2fd   : > { %2298 = vmatprep.subr.mxu1 %v11613_v6 }
 0x2fe   : > { %2299 = vmatpush1.msra.mxu1 %v5630_v36  ;;  %v5627_v36 = vld [vmem:[%s7100_s8 + $0x138] sm:$0xff] }
 0x2ff   : > { %2300 = vmatprep.subr.mxu1 %v11613_v6 }
 0x300   : > { %2301 = vmatpush1.msra.mxu1 %v5629_v24 }
 0x301   : > { %3750 = vrot.lane.b32.xlu1 %v6689_v43, %s6764_s9  ;;  %2302 = vmatprep.subr.mxu1 %v11613_v6 }
 0x302   : > { %2303 = vmatpush1.msra.mxu1 %v5628_v13 }
 0x303   : > { %2304 = vmatprep.subr.mxu1 %v11613_v6 }
 0x304   : > { %2305 = vmatpush1.msra.mxu1 %v5627_v36  ;;  %v5622_v36 = vld [vmem:[%s7100_s8 + $0x110] sm:$0xff] }
 0x305   : > { %2306 = vmatprep.subr.mxu1 %v11613_v6 }
 0x30a   : > { %3752 = vrot.lane.b32.xlu0 %v6690_v32, %s6764_s9 }
 0x30f   : > { %v788_v44 = vpop.xlane.xlu1 %787 }
 0x310   : > { %v7948_v43 = vpop.f32.mrf.mxu1  ;;  %v856_v55 = vsub.f32 %v7815_v42, %v788_v44  ;;  %v857_v29 = vsub.f32 %v7818_v19, %v788_v44  ;;  %v7961_v19 = vpop.f32.mrf.mxu0 }
 0x311   : > { %11681 = vst [vmem:[#allocation46_spill] sm:$0xff] %v7948_v43 }
 0x312   : > { %v972_v2 = vmul.f32 1.442695, %v856_v55  ;;  %v974_v31 = vmul.f32 1.442695, %v857_v29  ;;  %v1282_v32 = vpop.f32.mrf.mxu1  ;;  %v5626_v55 = vld [vmem:[%s7100_s8 + $0x130] sm:$0xff] }
 0x313   : > { %v2643_v38 = vpop.permute.xlu1 %2642  ;;  %v791_v42 = vpop.xlane.xlu0 %790  ;;  %2307 = vmatpush1.msra.mxu1 %v5626_v55  ;;  %v7986_v55 = vmul.f32 0.17677669, %v7838_v58  ;;  %v5651_v58 = vld [vmem:[%s7100_s8 + $0x1f8] sm:$0xff] }
 0x314   : > { %6012 = vpow2.f32 %v972_v2  ;;  %v7958_v43 = vpop.f32.mrf.mxu1  ;;  %5688 = vmatmul.mubr.msk.f32.gmra.mxu0 %vm290_vm0, %v2643_v38  ;;  %v858_v24 = vsub.f32 %v7821_v0, %v791_v42  ;;  %v859_v44 = vsub.f32 %v7824_v14, %v791_v42  ;;  %v5625_v38 = vld [vmem:[%s7100_s8 + $0x128] sm:$0xff]  ;;  %v7970_v0 = vpop.f32.mrf.mxu0  ;;  %2308 = vmatprep.subr.mxu1 %v11613_v6  ;;  %v5624_v14 = vld [vmem:[%s7100_s8 + $0x120] sm:$0xff]  ;;  %v7981_v42 = vmul.f32 0.17677669, %v7844_v48 }
 0x315   : > { %11682 = vst [vmem:[#allocation47_spill] sm:$0xff] %v7958_v43  ;;  %6014 = vpow2.f32 %v974_v31  ;;  %2952 = vmatprep.mubr.f32.mxu0 %v11613_v6  ;;  %2309 = vmatpush1.msra.mxu1 %v5625_v38  ;;  %v5623_v31 = vld [vmem:[%s7100_s8 + $0x118] sm:$0xff]  ;;  %v7993_v48 = vmul.f32 0.17677669, %v7854_v10 }
 0x316   : > { %v1287_v29 = vpop.f32.mrf.mxu1  ;;  %v976_v2 = vmul.f32 1.442695, %v858_v24  ;;  %v978_v32 = vmul.f32 1.442695, %v859_v44  ;;  %2310 = vmatprep.subr.mxu1 %v11613_v6  ;;  %v5621_v24 = vld [vmem:[%s7100_s8 + $0x108] sm:$0xff] }
 0x317   : > { %v2645_v13 = vpop.permute.xlu0 %2644  ;;  %2311 = vmatpush1.msra.mxu1 %v5624_v14 }
 0x318   : > { %6016 = vpow2.f32 %v976_v2  ;;  %5689 = vmatmul.mubr.msk.f32.gmra.mxu0 %vm290_vm0, %v2645_v13  ;;  %2312 = vmatprep.subr.mxu1 %v11613_v6  ;;  %v5620_v2 = vld [vmem:[%s7100_s8 + $0x100] sm:$0xff]  ;;  %v8000_v13 = vmul.f32 0.17677669, %v7849_v50 }
 0x319   : > { %6018 = vpow2.f32 %v978_v32  ;;  %2958 = vmatprep.mubr.f32.mxu0 %v11613_v6  ;;  %2313 = vmatpush1.msra.mxu1 %v5623_v31  ;;  %v1871_v32 = vmax.f32 %v7986_v55, %v7981_v42 }
 0x31a   : > { %2314 = vmatprep.subr.mxu1 %v11613_v6  ;;  %v1874_v31 = vmax.f32 %v8000_v13, %v7993_v48 }
 0x31b   : > { %2315 = vmatpush1.msra.mxu1 %v5622_v36  ;;  %v5650_v36 = vld [vmem:[%s7100_s8 + $0x1f0] sm:$0xff] }
 0x31c   : > { %2316 = vmatprep.subr.mxu1 %v11613_v6 }
 0x31d   : > { %2317 = vmatpush1.msra.mxu1 %v5621_v24  ;;  %v5649_v24 = vld [vmem:[%s7100_s8 + $0x1e8] sm:$0xff] }
 0x31e   : > { %2318 = vmatprep.subr.mxu1 %v11613_v6 }
 0x31f   : > { %2319 = vmatpush1.msra.mxu1 %v5620_v2  ;;  %v5646_v2 = vld [vmem:[%s7100_s8 + $0x1d0] sm:$0xff] }
 0x320   : > { %2320 = vmatprep.subr.mxu1 %v11613_v6 }
 0x321   : > { %v6013_v44 = vpop.eup %6012  ;;  %2321 = vmatpush2.msra.mxu1 %v5651_v58  ;;  %v5644_v58 = vld [vmem:[%s7100_s8 + $0x1c0] sm:$0xff] }
 0x322   : > { %v6015_v29 = vpop.eup %6014  ;;  %2322 = vmatprep.subr.mxu1 %v11613_v6 }
 0x323   : > { %1318 = vmatprep.mubr.f32.mxu1 %v6015_v29  ;;  %v7996_v38 = vadd.f32 %v6015_v29, %v6013_v44  ;;  %2323 = vmatpush2.msra.mxu1 %v5650_v36  ;;  %v5647_v29 = vld [vmem:[%s7100_s8 + $0x1d8] sm:$0xff]  ;;  %v5641_v36 = vld [vmem:[%s7100_s8 + $0x1a8] sm:$0xff] }
 0x324   : > { %1319 = vmatmul.mubr.f32.gmra.mxu1 %v6013_v44  ;;  %2324 = vmatprep.subr.mxu1 %v11613_v6  ;;  %v5648_v44 = vld [vmem:[%s7100_s8 + $0x1e0] sm:$0xff] }
 0x325   : > { %11683 = vst [vmem:[#allocation48_spill] sm:$0xff] %v7996_v38  ;;  %1872 = vmax.xlane.f32.xlu1 %v1871_v32  ;;  %v6017_v14 = vpop.eup %6016  ;;  %2325 = vmatpush2.msra.mxu1 %v5649_v24  ;;  %v5645_v32 = vld [vmem:[%s7100_s8 + $0x1c8] sm:$0xff]  ;;  %v5640_v24 = vld [vmem:[%s7100_s8 + $0x1a0] sm:$0xff] }
 0x326   : > { %v6019_v10 = vpop.eup %6018  ;;  %2326 = vmatprep.subr.mxu1 %v11613_v6 }
 0x327   : > { %1323 = vmatprep.mubr.f32.mxu1 %v6019_v10  ;;  %v8007_v50 = vadd.f32 %v6019_v10, %v6017_v14  ;;  %2327 = vmatpush2.msra.mxu1 %v5648_v44  ;;  %v6691_v10 = vld [vmem:[%s6840_s29 + $0x10] sm:$0xff]  ;;  %v5639_v44 = vld [vmem:[%s7100_s8 + $0x198] sm:$0xff] }
 0x328   : > { %1324 = vmatmul.mubr.f32.gmra.mxu1 %v6017_v14  ;;  %2328 = vmatprep.subr.mxu1 %v11613_v6  ;;  %v5643_v14 = vld [vmem:[%s7100_s8 + $0x1b8] sm:$0xff] }
 0x329   : > { %11684 = vst [vmem:[#allocation49_spill] sm:$0xff] %v8007_v50  ;;  %1875 = vmax.xlane.f32.xlu0 %v1874_v31  ;;  %2329 = vmatpush2.msra.mxu1 %v5647_v29  ;;  %v5642_v31 = vld [vmem:[%s7100_s8 + $0x1b0] sm:$0xff]  ;;  %v6692_v29 = vld [vmem:[%s6840_s29 + $0x18] sm:$0xff] }
 0x32a   : > { %2330 = vmatprep.subr.mxu1 %v11613_v6 }
 0x32b   : > { %2331 = vmatpush2.msra.mxu1 %v5646_v2  ;;  %v5638_v2 = vld [vmem:[%s7100_s8 + $0x190] sm:$0xff] }
 0x32c   : > { %2332 = vmatprep.subr.mxu1 %v11613_v6 }
 0x32d   : > { %2333 = vmatpush2.msra.mxu1 %v5645_v32  ;;  %v8036_v32 = vpop.f32.mrf.mxu0 }
 0x32e   : > { %2334 = vmatprep.subr.mxu1 %v11613_v6 }
 0x32f   : > { %2335 = vmatpush2.msra.mxu1 %v5644_v58  ;;  %v5637_v58 = vld [vmem:[%s7100_s8 + $0x188] sm:$0xff] }
 0x330   : > { %2336 = vmatprep.subr.mxu1 %v11613_v6 }
 0x331   : > { %2337 = vmatpush2.msra.mxu1 %v5643_v14  ;;  %v5636_v14 = vld [vmem:[%s7100_s8 + $0x180] sm:$0xff] }
 0x332   : > { %2338 = vmatprep.subr.mxu1 %v11613_v6 }
 0x333   : > { %2339 = vmatpush2.msra.mxu1 %v5642_v31  ;;  %v8042_v31 = vpop.f32.mrf.mxu0 }
 0x334   : > { %2340 = vmatprep.subr.mxu1 %v11613_v6 }
 0x335   : > { %2341 = vmatpush2.msra.mxu1 %v5641_v36  ;;  %v8050_v5 = vpop.f32.mrf.mxu0 }
 0x336   : > { %3754 = vrot.lane.b32.xlu1 %v6691_v10, %s6764_s9  ;;  %2342 = vmatprep.subr.mxu1 %v11613_v6 }
 0x337   : > { %2343 = vmatpush2.msra.mxu1 %v5640_v24 }
 0x338   : > { %2344 = vmatprep.subr.mxu1 %v11613_v6 }
 0x339   : > { %2345 = vmatpush2.msra.mxu1 %v5639_v44 }
 0x33a   : > { %2346 = vmatprep.subr.mxu1 %v11613_v6 }
 0x33b   : > { %2347 = vmatpush2.msra.mxu1 %v5638_v2 }
 0x33c   : > { %2348 = vmatprep.subr.mxu1 %v11613_v6 }
 0x33d   : > { %2349 = vmatpush2.msra.mxu1 %v5637_v58 }
 0x33e   : > { %2350 = vmatprep.subr.mxu1 %v11613_v6 }
 0x33f   : > { %3756 = vrot.lane.b32.xlu0 %v6692_v29, %s6764_s9  ;;  %2351 = vmatpush2.msra.mxu1 %v5636_v14 }
 0x340   : > { %3452 = vmatprep.subr.mxu1 %v11613_v6 }
 0x344   : > { %v794_v10 = vpop.xlane.xlu1 %793 }
 0x345   : > { %v8044_v36 = vpop.f32.mrf.mxu1  ;;  %v860_v24 = vsub.f32 %v7859_v16, %v794_v10  ;;  %v861_v29 = vsub.f32 %v7862_v9, %v794_v10 }
 0x346   : > { %11685 = vst [vmem:[#allocation50_spill] sm:$0xff] %v8044_v36 }
 0x347   : > { %v980_v44 = vmul.f32 1.442695, %v860_v24  ;;  %v982_v43 = vmul.f32 1.442695, %v861_v29  ;;  %v1292_v26 = vpop.f32.mrf.mxu1  ;;  %v8058_v24 = vpop.f32.mrf.mxu0  ;;  %v8071_v29 = vmul.f32 0.17677669, %v7898_v39 }
 0x348   : > { %v2647_v2 = vpop.permute.xlu1 %2646  ;;  %v797_v57 = vpop.xlane.xlu0 %796  ;;  %v6693_v39 = vld [vmem:[%s6840_s29 + $0x20] sm:$0xff] }
 0x349   : > { %6020 = vpow2.f32 %v980_v44  ;;  %v8052_v58 = vpop.f32.mrf.mxu1  ;;  %v862_v36 = vsub.f32 %v7865_v59, %v797_v57  ;;  %v863_v16 = vsub.f32 %v7868_v27, %v797_v57  ;;  %5690 = vmatmul.mubr.msk.f32.gmra.mxu0 %vm290_vm0, %v2647_v2  ;;  %v8063_v59 = vmul.f32 0.17677669, %v7884_v37 }
 0x34a   : > { %11686 = vst [vmem:[#allocation51_spill] sm:$0xff] %v8052_v58  ;;  %6022 = vpow2.f32 %v982_v43  ;;  %2964 = vmatprep.mubr.f32.mxu0 %v11613_v6  ;;  %v8066_v27 = vmul.f32 0.17677669, %v7882_v17  ;;  %v8076_v37 = vmul.f32 0.17677669, %v7890_v49 }
 0x34b   : > { %v984_v9 = vmul.f32 1.442695, %v862_v36  ;;  %v986_v26 = vmul.f32 1.442695, %v863_v16  ;;  %v1297_v14 = vpop.f32.mrf.mxu1 }
 0x34c   : > { %v2649_v10 = vpop.permute.xlu0 %2648  ;;  %v1877_v36 = vmax.f32 %v8066_v27, %v8063_v59  ;;  %v1880_v16 = vmax.f32 %v8076_v37, %v8071_v29  ;;  %v8086_v14 = vpop.f32.mrf.mxu0 }
 0x34d   : > { %6024 = vpow2.f32 %v984_v9  ;;  %5691 = vmatmul.mubr.msk.f32.gmra.mxu0 %vm290_vm0, %v2649_v10 }
 0x34e   : > { %6026 = vpow2.f32 %v986_v26  ;;  %3942 = vmatprep.mubr.f32.mxu0 %v11613_v6  ;;  %v6694_v26 = vld [vmem:[%s6840_s29 + $0x28] sm:$0xff]  ;;  %v8088_v10 = vpop.f32.mrf.mxu0 }
 0x356   : > { %v6021_v57 = vpop.eup %6020 }
 0x357   : > { %v6023_v43 = vpop.eup %6022 }
 0x358   : > { %1328 = vmatprep.mubr.f32.mxu1 %v6023_v43  ;;  %v8073_v44 = vadd.f32 %v6023_v43, %v6021_v57 }
 0x359   : > { %1329 = vmatmul.mubr.f32.gmra.mxu1 %v6021_v57 }
 0x35a   : > { %11687 = vst [vmem:[#allocation52_spill] sm:$0xff] %v8073_v44  ;;  %v6025_v2 = vpop.eup %6024  ;;  %1878 = vmax.xlane.f32.xlu1 %v1877_v36 }
 0x35b   : > { %v6027_v17 = vpop.eup %6026 }
 0x35c   : > { %1333 = vmatprep.mubr.f32.mxu1 %v6027_v17  ;;  %v8080_v9 = vadd.f32 %v6027_v17, %v6025_v2 }
 0x35d   : > { %1334 = vmatmul.mubr.f32.gmra.mxu1 %v6025_v2 }
 0x35e   : > { %11688 = vst [vmem:[#allocation53_spill] sm:$0xff] %v8080_v9  ;;  %1881 = vmax.xlane.f32.xlu0 %v1880_v16 }
 0x36b   : > { %3758 = vrot.lane.b32.xlu1 %v6693_v39, %s6764_s9  ;;  %v8094_v39 = vpop.f32.mrf.mxu0 }
 0x374   : > { %3760 = vrot.lane.b32.xlu0 %v6694_v26, %s6764_s9 }
 0x379   : > { %v800_v49 = vpop.xlane.xlu1 %799 }
 0x37a   : > { %v8090_v57 = vpop.f32.mrf.mxu1  ;;  %v864_v43 = vsub.f32 %v7903_v45, %v800_v49  ;;  %v865_v36 = vsub.f32 %v7906_v53, %v800_v49 }
 0x37b   : > { %11689 = vst [vmem:[#allocation54_spill] sm:$0xff] %v8090_v57 }
 0x37c   : > { %v988_v17 = vmul.f32 1.442695, %v864_v43  ;;  %v990_v2 = vmul.f32 1.442695, %v865_v36  ;;  %v1302_v16 = vpop.f32.mrf.mxu1  ;;  %v8102_v36 = vpop.f32.mrf.mxu0 }
 0x37d   : > { %v3751_v58 = vpop.permute.xlu1 %3750  ;;  %v803_v23 = vpop.xlane.xlu0 %802 }
 0x37e   : > { %6028 = vpow2.f32 %v988_v17  ;;  %v866_v26 = vsub.f32 %v7911_v63, %v803_v23  ;;  %v867_v9 = vsub.f32 %v7914_v18, %v803_v23  ;;  %5732 = vmatmul.mubr.msk.f32.vlgmr.msra.gmra.mxu0 %vm290_vm0, %v3751_v58  ;;  %v8099_v57 = vpop.f32.mrf.mxu1  ;;  %v8107_v23 = vmul.f32 0.17677669, %v7953_v25 }
 0x37f   : > { %6030 = vpow2.f32 %v990_v2  ;;  %11690 = vst [vmem:[#allocation55_spill] sm:$0xff] %v8099_v57  ;;  %3948 = vmatprep.mubr.f32.mxu0 %v11613_v6  ;;  %v8110_v18 = vmul.f32 0.17677669, %v7943_v12  ;;  %v8115_v17 = vmul.f32 0.17677669, %v7970_v0  ;;  %v6695_v0 = vld [vmem:[%s6840_s29 + $0x30] sm:$0xff] }
 0x380   : > { %v992_v45 = vmul.f32 1.442695, %v866_v26  ;;  %v994_v53 = vmul.f32 1.442695, %v867_v9  ;;  %v1307_v49 = vpop.f32.mrf.mxu1  ;;  %v8120_v25 = vmul.f32 0.17677669, %v7961_v19 }
 0x381   : > { %v3753_v43 = vpop.permute.xlu0 %3752  ;;  %v1883_v9 = vmax.f32 %v8110_v18, %v8107_v23  ;;  %v8130_v49 = vpop.f32.mrf.mxu0 }
 0x382   : > { %6032 = vpow2.f32 %v992_v45  ;;  %5733 = vmatmul.mubr.msk.f32.gmra.mxu0 %vm290_vm0, %v3753_v43  ;;  %v1886_v26 = vmax.f32 %v8120_v25, %v8115_v17 }
 0x383   : > { %6034 = vpow2.f32 %v994_v53  ;;  %3954 = vmatprep.mubr.f32.mxu0 %v11613_v6  ;;  %v6696_v53 = vld [vmem:[%s6840_s29 + $0x38] sm:$0xff]  ;;  %v8132_v43 = vpop.f32.mrf.mxu0 }
 0x38b   : > { %v6029_v63 = vpop.eup %6028 }
 0x38c   : > { %v6031_v58 = vpop.eup %6030 }
 0x38d   : > { %1338 = vmatprep.mubr.f32.mxu1 %v6031_v58  ;;  %v8117_v2 = vadd.f32 %v6031_v58, %v6029_v63 }
 0x38e   : > { %1339 = vmatmul.mubr.f32.gmra.mxu1 %v6029_v63 }
 0x38f   : > { %11691 = vst [vmem:[#allocation56_spill] sm:$0xff] %v8117_v2  ;;  %v6033_v16 = vpop.eup %6032  ;;  %1884 = vmax.xlane.f32.xlu1 %v1883_v9 }
 0x390   : > { %v6035_v12 = vpop.eup %6034 }
 0x391   : > { %1343 = vmatprep.mubr.f32.mxu1 %v6035_v12  ;;  %v8124_v45 = vadd.f32 %v6035_v12, %v6033_v16 }
 0x392   : > { %1344 = vmatmul.mubr.f32.gmra.mxu1 %v6033_v16 }
 0x393   : > { %11692 = vst [vmem:[#allocation57_spill] sm:$0xff] %v8124_v45  ;;  %1887 = vmax.xlane.f32.xlu0 %v1886_v26 }
 0x3a0   : > { %3762 = vrot.lane.b32.xlu1 %v6695_v0, %s6764_s9  ;;  %v8138_v0 = vpop.f32.mrf.mxu0 }
 0x3a9   : > { %3764 = vrot.lane.b32.xlu0 %v6696_v53, %s6764_s9 }
 0x3ae   : > { %v1873_v19 = vpop.xlane.xlu1 %1872 }
 0x3af   : > { %v8134_v63 = vpop.f32.mrf.mxu1  ;;  %v1967_v58 = vsub.f32 %v7986_v55, %v1873_v19  ;;  %v1968_v9 = vsub.f32 %v7981_v42, %v1873_v19 }
 0x3b0   : > { %11693 = vst [vmem:[#allocation58_spill] sm:$0xff] %v8134_v63 }
 0x3b1   : > { %v2031_v12 = vmul.f32 1.442695, %v1967_v58  ;;  %v2033_v16 = vmul.f32 1.442695, %v1968_v9  ;;  %v1312_v26 = vpop.f32.mrf.mxu1  ;;  %v8146_v9 = vpop.f32.mrf.mxu0 }
 0x3b2   : > { %v3755_v57 = vpop.permute.xlu1 %3754  ;;  %v1876_v45 = vpop.xlane.xlu0 %1875 }
 0x3b3   : > { %6036 = vpow2.f32 %v2031_v12  ;;  %v8140_v53 = vpop.f32.mrf.mxu1  ;;  %v1969_v2 = vsub.f32 %v8000_v13, %v1876_v45  ;;  %v1970_v50 = vsub.f32 %v7993_v48, %v1876_v45  ;;  %5734 = vmatmul.mubr.msk.f32.gmra.mxu0 %vm290_vm0, %v3755_v57  ;;  %v8151_v13 = vmul.f32 0.17677669, %v8042_v31 }
 0x3b4   : > { %11694 = vst [vmem:[#allocation59_spill] sm:$0xff] %v8140_v53  ;;  %6038 = vpow2.f32 %v2033_v16  ;;  %3960 = vmatprep.mubr.f32.mxu0 %v11613_v6  ;;  %v8154_v57 = vmul.f32 0.17677669, %v8036_v32  ;;  %v8159_v45 = vmul.f32 0.17677669, %v8058_v24  ;;  %v6697_v24 = vld [vmem:[%s6840_s29 + $0x40] sm:$0xff] }
 0x3b5   : > { %v2035_v42 = vmul.f32 1.442695, %v1969_v2  ;;  %v2037_v55 = vmul.f32 1.442695, %v1970_v50  ;;  %v1317_v19 = vpop.f32.mrf.mxu1  ;;  %v8164_v31 = vmul.f32 0.17677669, %v8050_v5 }
 0x3b6   : > { %v3757_v58 = vpop.permute.xlu0 %3756  ;;  %v1889_v50 = vmax.f32 %v8154_v57, %v8151_v13  ;;  %v8174_v19 = vpop.f32.mrf.mxu0 }
 0x3b7   : > { %6040 = vpow2.f32 %v2035_v42  ;;  %5735 = vmatmul.mubr.msk.f32.gmra.mxu0 %vm290_vm0, %v3757_v58  ;;  %v1892_v26 = vmax.f32 %v8164_v31, %v8159_v45 }
 0x3b8   : > { %6042 = vpow2.f32 %v2037_v55  ;;  %3966 = vmatprep.mubr.f32.mxu0 %v11613_v6  ;;  %v6698_v55 = vld [vmem:[%s6840_s29 + $0x48] sm:$0xff]  ;;  %v8176_v58 = vpop.f32.mrf.mxu0 }
 0x3c0   : > { %v6037_v48 = vpop.eup %6036 }
 0x3c1   : > { %v6039_v2 = vpop.eup %6038 }
 0x3c2   : > { %2352 = vmatprep.mubr.f32.mxu1 %v6039_v2  ;;  %v8161_v12 = vadd.f32 %v6039_v2, %v6037_v48 }
 0x3c3   : > { %2353 = vmatmul.mubr.f32.vlgmr.msra.gmra.mxu1 %v6037_v48 }
 0x3c4   : > { %11695 = vst [vmem:[#allocation60_spill] sm:$0xff] %v8161_v12  ;;  %v6041_v16 = vpop.eup %6040  ;;  %1890 = vmax.xlane.f32.xlu1 %v1889_v50 }
 0x3c5   : > { %v6043_v32 = vpop.eup %6042 }
 0x3c6   : > { %2357 = vmatprep.mubr.f32.mxu1 %v6043_v32  ;;  %v8168_v42 = vadd.f32 %v6043_v32, %v6041_v16 }
 0x3c7   : > { %2358 = vmatmul.mubr.f32.gmra.mxu1 %v6041_v16 }
 0x3c8   : > { %11696 = vst [vmem:[#allocation61_spill] sm:$0xff] %v8168_v42  ;;  %1893 = vmax.xlane.f32.xlu0 %v1892_v26 }
 0x3d5   : > { %3766 = vrot.lane.b32.xlu1 %v6697_v24, %s6764_s9  ;;  %v8182_v24 = vpop.f32.mrf.mxu0 }
 0x3de   : > { %3768 = vrot.lane.b32.xlu0 %v6698_v55, %s6764_s9 }
 0x3e3   : > { %v1879_v5 = vpop.xlane.xlu1 %1878 }
 0x3e4   : > { %v8178_v48 = vpop.f32.mrf.mxu1  ;;  %v1971_v2 = vsub.f32 %v8066_v27, %v1879_v5  ;;  %v1972_v50 = vsub.f32 %v8063_v59, %v1879_v5 }
 0x3e5   : > { %11697 = vst [vmem:[#allocation62_spill] sm:$0xff] %v8178_v48 }
 0x3e6   : > { %v2039_v32 = vmul.f32 1.442695, %v1971_v2  ;;  %v2041_v16 = vmul.f32 1.442695, %v1972_v50  ;;  %v1322_v26 = vpop.f32.mrf.mxu1  ;;  %v8190_v50 = vpop.f32.mrf.mxu0 }
 0x3e7   : > { %v3759_v63 = vpop.permute.xlu1 %3758  ;;  %v1882_v53 = vpop.xlane.xlu0 %1881 }
 0x3e8   : > { %6044 = vpow2.f32 %v2039_v32  ;;  %v1973_v55 = vsub.f32 %v8076_v37, %v1882_v53  ;;  %v1974_v44 = vsub.f32 %v8071_v29, %v1882_v53  ;;  %5736 = vmatmul.mubr.msk.f32.gmra.mxu0 %vm290_vm0, %v3759_v63  ;;  %v8187_v48 = vpop.f32.mrf.mxu1  ;;  %v8195_v29 = vmul.f32 0.17677669, %v8088_v10 }
 0x3e9   : > { %6046 = vpow2.f32 %v2041_v16  ;;  %11698 = vst [vmem:[#allocation63_spill] sm:$0xff] %v8187_v48  ;;  %3972 = vmatprep.mubr.f32.mxu0 %v11613_v6  ;;  %v8198_v63 = vmul.f32 0.17677669, %v8086_v14  ;;  %v8203_v32 = vmul.f32 0.17677669, %v8102_v36  ;;  %v6699_v36 = vld [vmem:[%s6840_s29 + $0x50] sm:$0xff] }
 0x3ea   : > { %v2043_v59 = vmul.f32 1.442695, %v1973_v55  ;;  %v2045_v27 = vmul.f32 1.442695, %v1974_v44  ;;  %v1327_v5 = vpop.f32.mrf.mxu1  ;;  %v8208_v10 = vmul.f32 0.17677669, %v8094_v39 }
 0x3eb   : > { %v3761_v2 = vpop.permute.xlu0 %3760  ;;  %v1895_v44 = vmax.f32 %v8198_v63, %v8195_v29  ;;  %v8218_v5 = vpop.f32.mrf.mxu0 }
 0x3ec   : > { %6048 = vpow2.f32 %v2043_v59  ;;  %5737 = vmatmul.mubr.msk.f32.gmra.mxu0 %vm290_vm0, %v3761_v2  ;;  %v1898_v55 = vmax.f32 %v8208_v10, %v8203_v32 }
 0x3ed   : > { %6050 = vpow2.f32 %v2045_v27  ;;  %3978 = vmatprep.mubr.f32.mxu0 %v11613_v6  ;;  %v6700_v27 = vld [vmem:[%s6840_s29 + $0x58] sm:$0xff]  ;;  %v8220_v2 = vpop.f32.mrf.mxu0 }
 0x3f5   : > { %v6045_v37 = vpop.eup %6044 }
 0x3f6   : > { %v6047_v53 = vpop.eup %6046 }
 0x3f7   : > { %2362 = vmatprep.mubr.f32.mxu1 %v6047_v53  ;;  %v8205_v16 = vadd.f32 %v6047_v53, %v6045_v37 }
 0x3f8   : > { %2363 = vmatmul.mubr.f32.gmra.mxu1 %v6045_v37 }
 0x3f9   : > { %11699 = vst [vmem:[#allocation64_spill] sm:$0xff] %v8205_v16  ;;  %v6049_v26 = vpop.eup %6048  ;;  %1896 = vmax.xlane.f32.xlu1 %v1895_v44 }
 0x3fa   : > { %v6051_v14 = vpop.eup %6050 }
 0x3fb   : > { %2367 = vmatprep.mubr.f32.mxu1 %v6051_v14  ;;  %v8212_v59 = vadd.f32 %v6051_v14, %v6049_v26 }
 0x3fc   : > { %2368 = vmatmul.mubr.f32.gmra.mxu1 %v6049_v26 }
 0x3fd   : > { %11700 = vst [vmem:[#allocation65_spill] sm:$0xff] %v8212_v59  ;;  %1899 = vmax.xlane.f32.xlu0 %v1898_v55 }
 0x40a   : > { %3770 = vrot.lane.b32.xlu1 %v6699_v36, %s6764_s9  ;;  %v8226_v36 = vpop.f32.mrf.mxu0 }
 0x413   : > { %3772 = vrot.lane.b32.xlu0 %v6700_v27, %s6764_s9 }
 0x418   : > { %v1885_v39 = vpop.xlane.xlu1 %1884 }
 0x419   : > { %v8222_v37 = vpop.f32.mrf.mxu1  ;;  %v1975_v53 = vsub.f32 %v8110_v18, %v1885_v39  ;;  %v1976_v44 = vsub.f32 %v8107_v23, %v1885_v39 }
 0x41a   : > { %11701 = vst [vmem:[#allocation66_spill] sm:$0xff] %v8222_v37 }
 0x41b   : > { %v2047_v14 = vmul.f32 1.442695, %v1975_v53  ;;  %v2049_v26 = vmul.f32 1.442695, %v1976_v44  ;;  %v1332_v55 = vpop.f32.mrf.mxu1  ;;  %v8234_v44 = vpop.f32.mrf.mxu0 }
 0x41c   : > { %v3763_v48 = vpop.permute.xlu1 %3762  ;;  %v1888_v11 = vpop.xlane.xlu0 %1887 }
 0x41d   : > { %6052 = vpow2.f32 %v2047_v14  ;;  %v8228_v27 = vpop.f32.mrf.mxu1  ;;  %v1977_v38 = vsub.f32 %v8120_v25, %v1888_v11  ;;  %v1978_v56 = vsub.f32 %v8115_v17, %v1888_v11  ;;  %5738 = vmatmul.mubr.msk.f32.gmra.mxu0 %vm290_vm0, %v3763_v48  ;;  %v8239_v25 = vmul.f32 0.17677669, %v8132_v43 }
 0x41e   : > { %11702 = vst [vmem:[#allocation67_spill] sm:$0xff] %v8228_v27  ;;  %6054 = vpow2.f32 %v2049_v26  ;;  %3984 = vmatprep.mubr.f32.mxu0 %v11613_v6  ;;  %v8242_v17 = vmul.f32 0.17677669, %v8130_v49  ;;  %v8247_v48 = vmul.f32 0.17677669, %v8146_v9  ;;  %v6701_v9 = vld [vmem:[%s6840_s29 + $0x60] sm:$0xff] }
 0x41f   : > { %v2051_v23 = vmul.f32 1.442695, %v1977_v38  ;;  %v2053_v18 = vmul.f32 1.442695, %v1978_v56  ;;  %v1337_v39 = vpop.f32.mrf.mxu1  ;;  %v8252_v43 = vmul.f32 0.17677669, %v8138_v0 }
 0x420   : > { %v3765_v53 = vpop.permute.xlu0 %3764  ;;  %v1901_v56 = vmax.f32 %v8242_v17, %v8239_v25  ;;  %v8262_v39 = vpop.f32.mrf.mxu0 }
 0x421   : > { %6056 = vpow2.f32 %v2051_v23  ;;  %5739 = vmatmul.mubr.msk.f32.gmra.mxu0 %vm290_vm0, %v3765_v53  ;;  %v1904_v55 = vmax.f32 %v8252_v43, %v8247_v48 }
 0x422   : > { %6058 = vpow2.f32 %v2053_v18  ;;  %3990 = vmatprep.mubr.f32.mxu0 %v11613_v6  ;;  %v6702_v18 = vld [vmem:[%s6840_s29 + $0x68] sm:$0xff]  ;;  %v8264_v53 = vpop.f32.mrf.mxu0 }
 0x42a   : > { %v6053_v11 = vpop.eup %6052 }
 0x42b   : > { %v6055_v38 = vpop.eup %6054 }
 0x42c   : > { %2372 = vmatprep.mubr.f32.mxu1 %v6055_v38  ;;  %v8249_v14 = vadd.f32 %v6055_v38, %v6053_v11 }
 0x42d   : > { %2373 = vmatmul.mubr.f32.gmra.mxu1 %v6053_v11 }
 0x42e   : > { %11703 = vst [vmem:[#allocation68_spill] sm:$0xff] %v8249_v14  ;;  %v6057_v26 = vpop.eup %6056  ;;  %1902 = vmax.xlane.f32.xlu1 %v1901_v56 }
 0x42f   : > { %v6059_v49 = vpop.eup %6058 }
 0x430   : > { %2377 = vmatprep.mubr.f32.mxu1 %v6059_v49  ;;  %v8256_v23 = vadd.f32 %v6059_v49, %v6057_v26 }
 0x431   : > { %2378 = vmatmul.mubr.f32.gmra.mxu1 %v6057_v26 }
 0x432   : > { %11704 = vst [vmem:[#allocation69_spill] sm:$0xff] %v8256_v23  ;;  %1905 = vmax.xlane.f32.xlu0 %v1904_v55 }
 0x43f   : > { %3774 = vrot.lane.b32.xlu1 %v6701_v9, %s6764_s9  ;;  %v8270_v9 = vpop.f32.mrf.mxu0 }
 0x448   : > { %3776 = vrot.lane.b32.xlu0 %v6702_v18, %s6764_s9 }
 0x44d   : > { %v1891_v0 = vpop.xlane.xlu1 %1890 }
 0x44e   : > { %v8266_v11 = vpop.f32.mrf.mxu1  ;;  %v1979_v38 = vsub.f32 %v8154_v57, %v1891_v0  ;;  %v1980_v56 = vsub.f32 %v8151_v13, %v1891_v0 }
 0x44f   : > { %11705 = vst [vmem:[#allocation70_spill] sm:$0xff] %v8266_v11 }
 0x450   : > { %v2055_v49 = vmul.f32 1.442695, %v1979_v38  ;;  %v2057_v26 = vmul.f32 1.442695, %v1980_v56  ;;  %v1342_v55 = vpop.f32.mrf.mxu1  ;;  %v8278_v56 = vpop.f32.mrf.mxu0 }
 0x451   : > { %v3767_v37 = vpop.permute.xlu1 %3766  ;;  %v1894_v27 = vpop.xlane.xlu0 %1893 }
 0x452   : > { %6060 = vpow2.f32 %v2055_v49  ;;  %v8272_v18 = vpop.f32.mrf.mxu1  ;;  %v1981_v62 = vsub.f32 %v8164_v31, %v1894_v27  ;;  %v1982_v8 = vsub.f32 %v8159_v45, %v1894_v27  ;;  %5740 = vmatmul.mubr.msk.f32.gmra.mxu0 %vm290_vm0, %v3767_v37  ;;  %v8283_v31 = vmul.f32 0.17677669, %v8176_v58 }
 0x453   : > { %11706 = vst [vmem:[#allocation71_spill] sm:$0xff] %v8272_v18  ;;  %6062 = vpow2.f32 %v2057_v26  ;;  %3996 = vmatprep.mubr.f32.mxu0 %v11613_v6  ;;  %v8286_v37 = vmul.f32 0.17677669, %v8174_v19  ;;  %v8291_v27 = vmul.f32 0.17677669, %v8190_v50  ;;  %v6703_v50 = vld [vmem:[%s6840_s29 + $0x70] sm:$0xff] }
 0x454   : > { %v2059_v13 = vmul.f32 1.442695, %v1981_v62  ;;  %v2061_v57 = vmul.f32 1.442695, %v1982_v8  ;;  %v1347_v0 = vpop.f32.mrf.mxu1  ;;  %v8296_v58 = vmul.f32 0.17677669, %v8182_v24 }
 0x455   : > { %v3769_v38 = vpop.permute.xlu0 %3768  ;;  %v1907_v8 = vmax.f32 %v8286_v37, %v8283_v31  ;;  %v8306_v0 = vpop.f32.mrf.mxu0 }
 0x456   : > { %6064 = vpow2.f32 %v2059_v13  ;;  %5741 = vmatmul.mubr.msk.f32.gmra.mxu0 %vm290_vm0, %v3769_v38  ;;  %v1910_v55 = vmax.f32 %v8296_v58, %v8291_v27 }
 0x457   : > { %6066 = vpow2.f32 %v2061_v57  ;;  %4002 = vmatprep.mubr.f32.mxu0 %v11613_v6  ;;  %v6704_v57 = vld [vmem:[%s6840_s29 + $0x78] sm:$0xff]  ;;  %v8308_v38 = vpop.f32.mrf.mxu0 }
 0x45f   : > { %v6061_v45 = vpop.eup %6060 }
 0x460   : > { %v6063_v62 = vpop.eup %6062 }
 0x461   : > { %2382 = vmatprep.mubr.f32.mxu1 %v6063_v62  ;;  %v8293_v49 = vadd.f32 %v6063_v62, %v6061_v45 }
 0x462   : > { %2383 = vmatmul.mubr.f32.gmra.mxu1 %v6061_v45 }
 0x463   : > { %11707 = vst [vmem:[#allocation72_spill] sm:$0xff] %v8293_v49  ;;  %v6065_v26 = vpop.eup %6064  ;;  %1908 = vmax.xlane.f32.xlu1 %v1907_v8  ;;  %v6712_v49 = vld [vmem:[%s6840_s29 + $0xb8] sm:$0xff] }
 0x464   : > { %v6067_v19 = vpop.eup %6066 }
 0x465   : > { %2387 = vmatprep.mubr.f32.mxu1 %v6067_v19  ;;  %v8300_v13 = vadd.f32 %v6067_v19, %v6065_v26 }
 0x466   : > { %2388 = vmatmul.mubr.f32.gmra.mxu1 %v6065_v26 }
 0x467   : > { %11708 = vst [vmem:[#allocation73_spill] sm:$0xff] %v8300_v13  ;;  %1911 = vmax.xlane.f32.xlu0 %v1910_v55 }
 0x474   : > { %3778 = vrot.lane.b32.xlu1 %v6703_v50, %s6764_s9  ;;  %v8314_v50 = vpop.f32.mrf.mxu0 }
 0x47d   : > { %3780 = vrot.lane.b32.xlu0 %v6704_v57, %s6764_s9 }
 0x482   : > { %v1897_v24 = vpop.xlane.xlu1 %1896 }
 0x483   : > { %v1983_v45 = vsub.f32 %v8198_v63, %v1897_v24  ;;  %v1984_v62 = vsub.f32 %v8195_v29, %v1897_v24  ;;  %v8312_v8 = vpop.f32.mrf.mxu1 }
 0x484   : > { %11709 = vst [vmem:[#allocation74_spill] sm:$0xff] %v8312_v8 }
 0x485   : > { %v2063_v19 = vmul.f32 1.442695, %v1983_v45  ;;  %v2065_v26 = vmul.f32 1.442695, %v1984_v62  ;;  %v2356_v55 = vpop.f32.mrf.mxu1  ;;  %v8322_v62 = vpop.f32.mrf.mxu0 }
 0x486   : > { %v3771_v11 = vpop.permute.xlu1 %3770  ;;  %v1900_v18 = vpop.xlane.xlu0 %1899 }
 0x487   : > { %6068 = vpow2.f32 %v2063_v19  ;;  %v8316_v57 = vpop.f32.mrf.mxu1  ;;  %v1985_v35 = vsub.f32 %v8208_v10, %v1900_v18  ;;  %v1986_v21 = vsub.f32 %v8203_v32, %v1900_v18  ;;  %5742 = vmatmul.mubr.msk.f32.gmra.mxu0 %vm290_vm0, %v3771_v11  ;;  %v8327_v10 = vmul.f32 0.17677669, %v8220_v2 }
 0x488   : > { %11710 = vst [vmem:[#allocation75_spill] sm:$0xff] %v8316_v57  ;;  %6070 = vpow2.f32 %v2065_v26  ;;  %4008 = vmatprep.mubr.f32.mxu0 %v11613_v6  ;;  %v8330_v11 = vmul.f32 0.17677669, %v8218_v5  ;;  %v8340_v2 = vmul.f32 0.17677669, %v8226_v36 }
 0x489   : > { %v2067_v29 = vmul.f32 1.442695, %v1985_v35  ;;  %v2069_v63 = vmul.f32 1.442695, %v1986_v21  ;;  %v2361_v24 = vpop.f32.mrf.mxu1  ;;  %v8335_v35 = vmul.f32 0.17677669, %v8234_v44  ;;  %v8346_v44 = vpop.f32.mrf.mxu0 }
 0x48a   : > { %v3773_v45 = vpop.permute.xlu0 %3772  ;;  %v1913_v21 = vmax.f32 %v8330_v11, %v8327_v10  ;;  %v6705_v24 = vld [vmem:[%s6840_s29 + $0x80] sm:$0xff] }
 0x48b   : > { %6072 = vpow2.f32 %v2067_v29  ;;  %5743 = vmatmul.mubr.msk.f32.gmra.mxu0 %vm290_vm0, %v3773_v45  ;;  %v1916_v55 = vmax.f32 %v8340_v2, %v8335_v35 }
 0x48c   : > { %6074 = vpow2.f32 %v2069_v63  ;;  %4014 = vmatprep.mubr.f32.mxu0 %v11613_v6  ;;  %v8348_v63 = vpop.f32.mrf.mxu0 }
 0x48e   : > { %v8352_v45 = vpop.f32.mrf.mxu0 }
 0x490   : > { %v8354_v36 = vpop.f32.mrf.mxu0 }
 0x494   : > { %v6069_v32 = vpop.eup %6068 }
 0x495   : > { %v6071_v18 = vpop.eup %6070 }
 0x496   : > { %2392 = vmatprep.mubr.f32.mxu1 %v6071_v18  ;;  %v8337_v19 = vadd.f32 %v6071_v18, %v6069_v32  ;;  %v6706_v18 = vld [vmem:[%s6840_s29 + $0x88] sm:$0xff] }
 0x497   : > { %2393 = vmatmul.mubr.f32.gmra.mxu1 %v6069_v32  ;;  %v8356_v32 = vpop.f32.mrf.mxu0 }
 0x498   : > { %11711 = vst [vmem:[#allocation76_spill] sm:$0xff] %v8337_v19  ;;  %v6073_v26 = vpop.eup %6072  ;;  %1914 = vmax.xlane.f32.xlu1 %v1913_v21 }
 0x499   : > { %v6075_v5 = vpop.eup %6074  ;;  %v8360_v21 = vpop.f32.mrf.mxu0 }
 0x49a   : > { %2397 = vmatprep.mubr.f32.mxu1 %v6075_v5  ;;  %v8344_v29 = vadd.f32 %v6075_v5, %v6073_v26 }
 0x49b   : > { %2398 = vmatmul.mubr.f32.gmra.mxu1 %v6073_v26  ;;  %v8366_v57 = vpop.f32.mrf.mxu0 }
 0x49c   : > { %11712 = vst [vmem:[#allocation77_spill] sm:$0xff] %v8344_v29  ;;  %1917 = vmax.xlane.f32.xlu0 %v1916_v55 }
 0x4a9   : > { %3782 = vrot.lane.b32.xlu1 %v6705_v24, %s6764_s9 }
 0x4b2   : > { %3784 = vrot.lane.b32.xlu0 %v6706_v18, %s6764_s9 }
 0x4b7   : > { %v1903_v26 = vpop.xlane.xlu1 %1902 }
 0x4b8   : > { %v1987_v5 = vsub.f32 %v8242_v17, %v1903_v26  ;;  %v1988_v55 = vsub.f32 %v8239_v25, %v1903_v26  ;;  %v8364_v8 = vpop.f32.mrf.mxu1 }
 0x4b9   : > { %11713 = vst [vmem:[#allocation78_spill] sm:$0xff] %v8364_v8 }
 0x4ba   : > { %v2071_v24 = vmul.f32 1.442695, %v1987_v5  ;;  %v2073_v54 = vmul.f32 1.442695, %v1988_v55  ;;  %v2366_v3 = vpop.f32.mrf.mxu1  ;;  %v8374_v5 = vpop.f32.mrf.mxu0 }
 0x4bb   : > { %v3775_v1 = vpop.permute.xlu1 %3774  ;;  %v1906_v46 = vpop.xlane.xlu0 %1905 }
 0x4bc   : > { %6076 = vpow2.f32 %v2071_v24  ;;  %v8368_v22 = vpop.f32.mrf.mxu1  ;;  %v1989_v18 = vsub.f32 %v8252_v43, %v1906_v46  ;;  %v1990_v20 = vsub.f32 %v8247_v48, %v1906_v46  ;;  %5744 = vmatmul.mubr.msk.f32.gmra.mxu0 %vm290_vm0, %v3775_v1  ;;  %v8378_v43 = vpop.f32.mrf.mxu0  ;;  %v8381_v46 = vmul.f32 0.17677669, %v8264_v53 }
 0x4bd   : > { %11714 = vst [vmem:[#allocation79_spill] sm:$0xff] %v8368_v22  ;;  %6078 = vpow2.f32 %v2073_v54  ;;  %4020 = vmatprep.mubr.f32.mxu0 %v11613_v6  ;;  %v8391_v24 = vmul.f32 0.17677669, %v8278_v56 }
 0x4be   : > { %v2075_v25 = vmul.f32 1.442695, %v1989_v18  ;;  %v2077_v17 = vmul.f32 1.442695, %v1990_v20  ;;  %v2371_v26 = vpop.f32.mrf.mxu1  ;;  %v8383_v1 = vpop.f32.mrf.mxu0  ;;  %v8386_v20 = vmul.f32 0.17677669, %v8262_v39 }
 0x4bf   : > { %v3777_v3 = vpop.permute.xlu0 %3776 }
 0x4c0   : > { %6080 = vpow2.f32 %v2075_v25  ;;  %5745 = vmatmul.mubr.msk.f32.gmra.mxu0 %vm290_vm0, %v3777_v3  ;;  %v1919_v55 = vmax.f32 %v8386_v20, %v8381_v46  ;;  %v8393_v18 = vpop.f32.mrf.mxu0 }
 0x4c1   : > { %6082 = vpow2.f32 %v2077_v17  ;;  %4026 = vmatprep.mubr.f32.mxu0 %v11613_v6  ;;  %v8398_v17 = vmul.f32 0.17677669, %v8270_v9  ;;  %v6707_v9 = vld [vmem:[%s6840_s29 + $0x90] sm:$0xff] }
 0x4c2   : > { %v8402_v3 = vpop.f32.mrf.mxu0 }
 0x4c3   : > { %v1922_v26 = vmax.f32 %v8398_v17, %v8391_v24 }
 0x4c9   : > { %v6077_v54 = vpop.eup %6076 }
 0x4ca   : > { %v6079_v48 = vpop.eup %6078 }
 0x4cb   : > { %2402 = vmatprep.mubr.f32.mxu1 %v6079_v48  ;;  %v8395_v25 = vadd.f32 %v6079_v48, %v6077_v54  ;;  %v8406_v48 = vpop.f32.mrf.mxu0 }
 0x4cc   : > { %2403 = vmatmul.mubr.f32.gmra.mxu1 %v6077_v54 }
 0x4cd   : > { %11715 = vst [vmem:[#allocation80_spill] sm:$0xff] %v8395_v25  ;;  %v6081_v53 = vpop.eup %6080  ;;  %1920 = vmax.xlane.f32.xlu1 %v1919_v55  ;;  %v8408_v54 = vpop.f32.mrf.mxu0 }
 0x4ce   : > { %v6083_v39 = vpop.eup %6082 }
 0x4cf   : > { %2407 = vmatprep.mubr.f32.mxu1 %v6083_v39  ;;  %v8404_v56 = vadd.f32 %v6083_v39, %v6081_v53  ;;  %v8410_v22 = vpop.f32.mrf.mxu0 }
 0x4d0   : > { %2408 = vmatmul.mubr.f32.gmra.mxu1 %v6081_v53 }
 0x4d1   : > { %11716 = vst [vmem:[#allocation81_spill] sm:$0xff] %v8404_v56  ;;  %1923 = vmax.xlane.f32.xlu0 %v1922_v26  ;;  %v8414_v55 = vpop.f32.mrf.mxu0 }
 0x4d3   : > { %v8416_v8 = vpop.f32.mrf.mxu0 }
 0x4d5   : > { %v8418_v47 = vpop.f32.mrf.mxu0 }
 0x4d7   : > { %v8422_v53 = vpop.f32.mrf.mxu0 }
 0x4d9   : > { %v8428_v34 = vpop.f32.mrf.mxu0 }
 0x4de   : > { %3786 = vrot.lane.b32.xlu1 %v6707_v9, %s6764_s9 }
 0x4e7   : > { %3788 = vrot.lane.b32.xlu0 %v6708_v15, %s6764_s9 }
 0x4ec   : > { %v1909_v39 = vpop.xlane.xlu1 %1908 }
 0x4ed   : > { %v1991_v26 = vsub.f32 %v8286_v37, %v1909_v39  ;;  %v1992_v41 = vsub.f32 %v8283_v31, %v1909_v39  ;;  %v8426_v30 = vpop.f32.mrf.mxu1 }
 0x4ee   : > { %11717 = vst [vmem:[#allocation82_spill] sm:$0xff] %v8426_v30 }
 0x4ef   : > { %v2079_v9 = vmul.f32 1.442695, %v1991_v26  ;;  %v2081_v52 = vmul.f32 1.442695, %v1992_v41  ;;  %v2376_v28 = vpop.f32.mrf.mxu1  ;;  %v8436_v26 = vpop.f32.mrf.mxu0 }
 0x4f0   : > { %v3779_v4 = vpop.permute.xlu1 %3778  ;;  %v1912_v33 = vpop.xlane.xlu0 %1911 }
 0x4f1   : > { %6084 = vpow2.f32 %v2079_v9  ;;  %v8430_v7 = vpop.f32.mrf.mxu1  ;;  %v1993_v15 = vsub.f32 %v8296_v58, %v1912_v33  ;;  %v1994_v60 = vsub.f32 %v8291_v27, %v1912_v33  ;;  %5746 = vmatmul.mubr.msk.f32.gmra.mxu0 %vm290_vm0, %v3779_v4  ;;  %v8440_v41 = vpop.f32.mrf.mxu0  ;;  %v8443_v33 = vmul.f32 0.17677669, %v8308_v38 }
 0x4f2   : > { %11718 = vst [vmem:[#allocation83_spill] sm:$0xff] %v8430_v7  ;;  %6086 = vpow2.f32 %v2081_v52  ;;  %4032 = vmatprep.mubr.f32.mxu0 %v11613_v6  ;;  %v8453_v9 = vmul.f32 0.17677669, %v8322_v62 }
 0x4f3   : > { %v2083_v31 = vmul.f32 1.442695, %v1993_v15  ;;  %v2085_v37 = vmul.f32 1.442695, %v1994_v60  ;;  %v2381_v39 = vpop.f32.mrf.mxu1  ;;  %v8445_v4 = vpop.f32.mrf.mxu0  ;;  %v8448_v60 = vmul.f32 0.17677669, %v8306_v0 }
 0x4f4   : > { %v3781_v28 = vpop.permute.xlu0 %3780 }
 0x4f5   : > { %6088 = vpow2.f32 %v2083_v31  ;;  %5747 = vmatmul.mubr.msk.f32.gmra.mxu0 %vm290_vm0, %v3781_v28  ;;  %v1925_v58 = vmax.f32 %v8448_v60, %v8443_v33  ;;  %v8455_v15 = vpop.f32.mrf.mxu0 }
 0x4f6   : > { %6090 = vpow2.f32 %v2085_v37  ;;  %4038 = vmatprep.mubr.f32.mxu0 %v11613_v6  ;;  %v8460_v37 = vmul.f32 0.17677669, %v8314_v50  ;;  %v6709_v50 = vld [vmem:[%s6840_s29 + $0xa0] sm:$0xff] }
 0x4f7   : > { %v8464_v28 = vpop.f32.mrf.mxu0 }
 0x4f8   : > { %v1928_v39 = vmax.f32 %v8460_v37, %v8453_v9 }
 0x4fe   : > { %v6085_v52 = vpop.eup %6084 }
 0x4ff   : > { %v6087_v27 = vpop.eup %6086 }
 0x500   : > { %2412 = vmatprep.mubr.f32.mxu1 %v6087_v27  ;;  %v8457_v31 = vadd.f32 %v6087_v27, %v6085_v52  ;;  %v8468_v27 = vpop.f32.mrf.mxu0 }
 0x501   : > { %2413 = vmatmul.mubr.f32.gmra.mxu1 %v6085_v52 }
 0x502   : > { %11719 = vst [vmem:[#allocation84_spill] sm:$0xff] %v8457_v31  ;;  %v6089_v38 = vpop.eup %6088  ;;  %1926 = vmax.xlane.f32.xlu1 %v1925_v58  ;;  %v8470_v52 = vpop.f32.mrf.mxu0 }
 0x503   : > { %v6091_v0 = vpop.eup %6090 }
 0x504   : > { %2417 = vmatprep.mubr.f32.mxu1 %v6091_v0  ;;  %v8466_v62 = vadd.f32 %v6091_v0, %v6089_v38  ;;  %v8472_v7 = vpop.f32.mrf.mxu0 }
 0x505   : > { %2418 = vmatmul.mubr.f32.gmra.mxu1 %v6089_v38 }
 0x506   : > { %11720 = vst [vmem:[#allocation85_spill] sm:$0xff] %v8466_v62  ;;  %1929 = vmax.xlane.f32.xlu0 %v1928_v39  ;;  %v8476_v58 = vpop.f32.mrf.mxu0 }
 0x508   : > { %v8478_v30 = vpop.f32.mrf.mxu0 }
 0x50a   : > { %v8480_v40 = vpop.f32.mrf.mxu0 }
 0x50c   : > { %v8484_v38 = vpop.f32.mrf.mxu0 }
 0x50e   : > { %v8490_v56 = vpop.f32.mrf.mxu0 }
 0x513   : > { %3790 = vrot.lane.b32.xlu1 %v6709_v50, %s6764_s9 }
 0x51c   : > { %3792 = vrot.lane.b32.xlu0 %v6710_v61, %s6764_s9 }
 0x521   : > { %v1915_v0 = vpop.xlane.xlu1 %1914 }
 0x522   : > { %v1995_v39 = vsub.f32 %v8330_v11, %v1915_v0  ;;  %v1996_v51 = vsub.f32 %v8327_v10, %v1915_v0  ;;  %v8488_v62 = vpop.f32.mrf.mxu1  ;;  %v8498_v10 = vpop.f32.mrf.mxu0 }
 0x523   : > { %11721 = vst [vmem:[#allocation86_spill] sm:$0xff] %v8488_v62 }
 0x524   : > { %v2087_v50 = vmul.f32 1.442695, %v1995_v39  ;;  %v2089_v31 = vmul.f32 1.442695, %v1996_v51  ;;  %v2386_v29 = vpop.f32.mrf.mxu1 }
 0x525   : > { %v3783_v25 = vpop.permute.xlu1 %3782  ;;  %v1918_v13 = vpop.xlane.xlu0 %1917 }
 0x526   : > { %6092 = vpow2.f32 %v2087_v50  ;;  %v8492_v19 = vpop.f32.mrf.mxu1  ;;  %v1997_v61 = vsub.f32 %v8340_v2, %v1918_v13  ;;  %v1998_v23 = vsub.f32 %v8335_v35, %v1918_v13  ;;  %5748 = vmatmul.mubr.msk.f32.gmra.mxu0 %vm290_vm0, %v3783_v25  ;;  %v8502_v2 = vpop.f32.mrf.mxu0  ;;  %v8507_v35 = vmul.f32 0.17677669, %v8348_v63 }
 0x527   : > { %11722 = vst [vmem:[#allocation87_spill] sm:$0xff] %v8492_v19  ;;  %6094 = vpow2.f32 %v2089_v31  ;;  %4044 = vmatprep.mubr.f32.mxu0 %v11613_v6  ;;  %v8510_v31 = vmul.f32 0.17677669, %v8346_v44 }
 0x528   : > { %v2091_v11 = vmul.f32 1.442695, %v1997_v61  ;;  %v2093_v0 = vmul.f32 1.442695, %v1998_v23  ;;  %v2391_v51 = vpop.f32.mrf.mxu1  ;;  %v8504_v13 = vpop.f32.mrf.mxu0  ;;  %v8517_v61 = vmul.f32 0.17677669, %v8354_v36 }
 0x529   : > { %v3785_v29 = vpop.permute.xlu0 %3784  ;;  %v1931_v50 = vmax.f32 %v8510_v31, %v8507_v35 }
 0x52a   : > { %6096 = vpow2.f32 %v2091_v11  ;;  %5749 = vmatmul.mubr.msk.f32.gmra.mxu0 %vm290_vm0, %v3785_v29  ;;  %v8512_v39 = vpop.f32.mrf.mxu0 }
 0x52b   : > { %6098 = vpow2.f32 %v2093_v0  ;;  %4050 = vmatprep.mubr.f32.mxu0 %v11613_v6  ;;  %11723 = vst [vmem:[#allocation88_spill] sm:$0xff] %v8512_v39  ;;  %v8522_v0 = vmul.f32 0.17677669, %v8352_v45 }
 0x52c   : > { %v8524_v51 = vpop.f32.mrf.mxu0 }
 0x52d   : > { %11725 = vst [vmem:[#allocation90_spill] sm:$0xff] %v8524_v51  ;;  %v1934_v29 = vmax.f32 %v8522_v0, %v8517_v61 }
 0x533   : > { %v6093_v25 = vpop.eup %6092 }
 0x534   : > { %v6095_v23 = vpop.eup %6094 }
 0x535   : > { %2422 = vmatprep.mubr.f32.mxu1 %v6095_v23  ;;  %v8519_v11 = vadd.f32 %v6095_v23, %v6093_v25  ;;  %v8530_v23 = vpop.f32.mrf.mxu0 }
 0x536   : > { %2423 = vmatmul.mubr.f32.gmra.mxu1 %v6093_v25  ;;  %11727 = vst [vmem:[#allocation92_spill] sm:$0xff] %v8530_v23 }
 0x537   : > { %11724 = vst [vmem:[#allocation89_spill] sm:$0xff] %v8519_v11  ;;  %v6097_v63 = vpop.eup %6096  ;;  %1932 = vmax.xlane.f32.xlu1 %v1931_v50  ;;  %v8532_v25 = vpop.f32.mrf.mxu0  ;;  %v6711_v50 = vld [vmem:[%s6840_s29 + $0xb0] sm:$0xff] }
 0x538   : > { %v6099_v44 = vpop.eup %6098  ;;  %11728 = vst [vmem:[#allocation93_spill] sm:$0xff] %v8532_v25 }
 0x539   : > { %2427 = vmatprep.mubr.f32.mxu1 %v6099_v44  ;;  %v8528_v36 = vadd.f32 %v6099_v44, %v6097_v63  ;;  %v8534_v19 = vpop.f32.mrf.mxu0 }
 0x53a   : > { %2428 = vmatmul.mubr.f32.gmra.mxu1 %v6097_v63 }
 0x53b   : > { %11726 = vst [vmem:[#allocation91_spill] sm:$0xff] %v8528_v36  ;;  %1935 = vmax.xlane.f32.xlu0 %v1934_v29  ;;  %v8536_v45 = vpop.f32.mrf.mxu0 }
 0x53d   : > { %v8540_v62 = vpop.f32.mrf.mxu0 }
 0x53e   : > { %11729 = vst [vmem:[#allocation94_spill] sm:$0xff] %v8540_v62 }
 0x53f   : > { %v8542_v11 = vpop.f32.mrf.mxu0 }
 0x540   : > { %11730 = vst [vmem:[#allocation95_spill] sm:$0xff] %v8542_v11 }
 0x541   : > { %v8546_v63 = vpop.f32.mrf.mxu0 }
 0x543   : > { %v8552_v14 = vpop.f32.mrf.mxu0 }
 0x548   : > { %3794 = vrot.lane.b32.xlu1 %v6711_v50, %s6764_s9 }
 0x551   : > { %3796 = vrot.lane.b32.xlu0 %v6712_v49, %s6764_s9 }
 0x556   : > { %v1921_v44 = vpop.xlane.xlu1 %1920 }
 0x557   : > { %v1999_v29 = vsub.f32 %v8386_v20, %v1921_v44  ;;  %v2000_v36 = vsub.f32 %v8381_v46, %v1921_v44  ;;  %v8550_v59 = vpop.f32.mrf.mxu1  ;;  %v8559_v20 = vpop.f32.mrf.mxu0 }
 0x558   : > { %11731 = vst [vmem:[#allocation96_spill] sm:$0xff] %v8550_v59  ;;  %11733 = vst [vmem:[#allocation98_spill] sm:$0xff] %v8559_v20  ;;  %v6713_v59 = vld [vmem:[%s6840_s29 + $0xc0] sm:$0xff] }
 0x559   : > { %v2095_v42 = vmul.f32 1.442695, %v1999_v29  ;;  %v2097_v50 = vmul.f32 1.442695, %v2000_v36  ;;  %v2396_v16 = vpop.f32.mrf.mxu1 }
 0x55a   : > { %v3787_v12 = vpop.permute.xlu1 %3786  ;;  %v1924_v62 = vpop.xlane.xlu0 %1923 }
 0x55b   : > { %6100 = vpow2.f32 %v2095_v42  ;;  %v8554_v11 = vpop.f32.mrf.mxu1  ;;  %v2001_v49 = vsub.f32 %v8398_v17, %v1924_v62  ;;  %v2002_v23 = vsub.f32 %v8391_v24, %v1924_v62  ;;  %5750 = vmatmul.mubr.msk.f32.gmra.mxu0 %vm290_vm0, %v3787_v12  ;;  %v8563_v42 = vpop.f32.mrf.mxu0  ;;  %v8569_v12 = vmul.f32 0.17677669, %v8360_v21 }
 0x55c   : > { %11732 = vst [vmem:[#allocation97_spill] sm:$0xff] %v8554_v11  ;;  %6102 = vpow2.f32 %v2097_v50  ;;  %4056 = vmatprep.mubr.f32.mxu0 %v11613_v6  ;;  %11734 = vst [vmem:[#allocation99_spill] sm:$0xff] %v8563_v42  ;;  %v8572_v62 = vmul.f32 0.17677669, %v8356_v32 }
 0x55d   : > { %v2099_v46 = vmul.f32 1.442695, %v2001_v49  ;;  %v2101_v44 = vmul.f32 1.442695, %v2002_v23  ;;  %v2401_v36 = vpop.f32.mrf.mxu1  ;;  %v8566_v24 = vpop.f32.mrf.mxu0  ;;  %v8579_v49 = vmul.f32 0.17677669, %v8374_v5 }
 0x55e   : > { %v3789_v16 = vpop.permute.xlu0 %3788  ;;  %v1937_v50 = vmax.f32 %v8572_v62, %v8569_v12 }
 0x55f   : > { %6104 = vpow2.f32 %v2099_v46  ;;  %5751 = vmatmul.mubr.msk.f32.gmra.mxu0 %vm290_vm0, %v3789_v16  ;;  %v8574_v23 = vpop.f32.mrf.mxu0 }
 0x560   : > { %6106 = vpow2.f32 %v2101_v44  ;;  %4062 = vmatprep.mubr.f32.mxu0 %v11613_v6  ;;  %v8584_v44 = vmul.f32 0.17677669, %v8366_v57 }
 0x561   : > { %v8586_v32 = vpop.f32.mrf.mxu0 }
 0x562   : > { %11736 = vst [vmem:[#allocation101_spill] sm:$0xff] %v8586_v32  ;;  %v1940_v16 = vmax.f32 %v8584_v44, %v8579_v49  ;;  %v6714_v32 = vld [vmem:[%s6840_s29 + $0xc8] sm:$0xff] }
 0x568   : > { %v6101_v17 = vpop.eup %6100 }
 0x569   : > { %v6103_v29 = vpop.eup %6102 }
 0x56a   : > { %2432 = vmatprep.mubr.f32.mxu1 %v6103_v29  ;;  %v8581_v46 = vadd.f32 %v6103_v29, %v6101_v17  ;;  %v8592_v29 = vpop.f32.mrf.mxu0 }
 0x56b   : > { %2433 = vmatmul.mubr.f32.gmra.mxu1 %v6101_v17  ;;  %11738 = vst [vmem:[#allocation103_spill] sm:$0xff] %v8592_v29 }
 0x56c   : > { %11735 = vst [vmem:[#allocation100_spill] sm:$0xff] %v8581_v46  ;;  %v6105_v21 = vpop.eup %6104  ;;  %1938 = vmax.xlane.f32.xlu1 %v1937_v50  ;;  %v8594_v17 = vpop.f32.mrf.mxu0 }
 0x56d   : > { %v6107_v36 = vpop.eup %6106 }
 0x56e   : > { %2437 = vmatprep.mubr.f32.mxu1 %v6107_v36  ;;  %v8590_v5 = vadd.f32 %v6107_v36, %v6105_v21  ;;  %v8596_v11 = vpop.f32.mrf.mxu0 }
 0x56f   : > { %2438 = vmatmul.mubr.f32.gmra.mxu1 %v6105_v21 }
 0x570   : > { %11737 = vst [vmem:[#allocation102_spill] sm:$0xff] %v8590_v5  ;;  %1941 = vmax.xlane.f32.xlu0 %v1940_v16  ;;  %v8598_v57 = vpop.f32.mrf.mxu0 }
 0x571   : > { %11739 = vst [vmem:[#allocation104_spill] sm:$0xff] %v8598_v57 }
 0x572   : > { %v8602_v50 = vpop.f32.mrf.mxu0 }
 0x573   : > { %11740 = vst [vmem:[#allocation105_spill] sm:$0xff] %v8602_v50 }
 0x574   : > { %v8604_v46 = vpop.f32.mrf.mxu0 }
 0x576   : > { %v8608_v21 = vpop.f32.mrf.mxu0 }
 0x578   : > { %v8610_v16 = vpop.f32.mrf.mxu0 }
 0x579   : > { %11741 = vst [vmem:[#allocation106_spill] sm:$0xff] %v8610_v16 }
 0x57a   : > { %v8616_v39 = vpop.f32.mrf.mxu0 }
 0x57b   : > { %11743 = vst [vmem:[#allocation108_spill] sm:$0xff] %v8616_v39 }
 0x57d   : > { %3798 = vrot.lane.b32.xlu1 %v6713_v59, %s6764_s9 }
 0x586   : > { %3800 = vrot.lane.b32.xlu0 %v6714_v32, %s6764_s9 }
 0x58b   : > { %v1927_v36 = vpop.xlane.xlu1 %1926 }
 0x58c   : > { %v2003_v5 = vsub.f32 %v8448_v60, %v1927_v36  ;;  %v2004_v29 = vsub.f32 %v8443_v33, %v1927_v36  ;;  %v8614_v57 = vpop.f32.mrf.mxu1 }
 0x58d   : > { %11742 = vst [vmem:[#allocation107_spill] sm:$0xff] %v8614_v57 }
 0x58e   : > { %v2103_v20 = vmul.f32 1.442695, %v2003_v5  ;;  %v2105_v59 = vmul.f32 1.442695, %v2004_v29  ;;  %v2406_v42 = vpop.f32.mrf.mxu1  ;;  %v8624_v29 = vpop.f32.mrf.mxu0 }
 0x58f   : > { %v3791_v50 = vpop.permute.xlu1 %3790  ;;  %v1930_v25 = vpop.xlane.xlu0 %1929 }
 0x590   : > { %6108 = vpow2.f32 %v2103_v20  ;;  %v8618_v32 = vpop.f32.mrf.mxu1  ;;  %v2005_v51 = vsub.f32 %v8460_v37, %v1930_v25  ;;  %v2006_v16 = vsub.f32 %v8453_v9, %v1930_v25  ;;  %5752 = vmatmul.mubr.msk.f32.gmra.mxu0 %vm290_vm0, %v3791_v50  ;;  %v8628_v37 = vpop.f32.mrf.mxu0  ;;  %v8631_v9 = vmul.f32 0.17677669, %v8383_v1 }
 0x591   : > { %11744 = vst [vmem:[#allocation109_spill] sm:$0xff] %v8618_v32  ;;  %6110 = vpow2.f32 %v2105_v59  ;;  %4068 = vmatprep.mubr.f32.mxu0 %v11613_v6 }
 0x592   : > { %v2107_v33 = vmul.f32 1.442695, %v2005_v51  ;;  %v2109_v60 = vmul.f32 1.442695, %v2006_v16  ;;  %v2411_v5 = vpop.f32.mrf.mxu1  ;;  %v8633_v25 = vpop.f32.mrf.mxu0  ;;  %v8636_v51 = vmul.f32 0.17677669, %v8378_v43 }
 0x593   : > { %v3793_v42 = vpop.permute.xlu0 %3792  ;;  %11745 = vst [vmem:[#allocation110_spill] sm:$0xff] %v8633_v25  ;;  %v8641_v16 = vmul.f32 0.17677669, %v8402_v3 }
 0x594   : > { %6112 = vpow2.f32 %v2107_v33  ;;  %5753 = vmatmul.mubr.msk.f32.gmra.mxu0 %vm290_vm0, %v3793_v42  ;;  %v1943_v36 = vmax.f32 %v8636_v51, %v8631_v9  ;;  %v8645_v33 = vpop.f32.mrf.mxu0 }
 0x595   : > { %6114 = vpow2.f32 %v2109_v60  ;;  %4074 = vmatprep.mubr.f32.mxu0 %v11613_v6  ;;  %11747 = vst [vmem:[#allocation112_spill] sm:$0xff] %v8645_v33  ;;  %v8648_v60 = vmul.f32 0.17677669, %v8393_v18  ;;  %v6715_v18 = vld [vmem:[%s6840_s29 + $0xd0] sm:$0xff] }
 0x596   : > { %v8654_v42 = vpop.f32.mrf.mxu0 }
 0x597   : > { %v1946_v5 = vmax.f32 %v8648_v60, %v8641_v16 }
 0x59d   : > { %v6109_v20 = vpop.eup %6108 }
 0x59e   : > { %v6111_v50 = vpop.eup %6110 }
 0x59f   : > { %2442 = vmatprep.mubr.f32.mxu1 %v6111_v50  ;;  %v8643_v59 = vadd.f32 %v6111_v50, %v6109_v20  ;;  %v8656_v50 = vpop.f32.mrf.mxu0 }
 0x5a0   : > { %2443 = vmatmul.mubr.f32.gmra.mxu1 %v6109_v20 }
 0x5a1   : > { %11746 = vst [vmem:[#allocation111_spill] sm:$0xff] %v8643_v59  ;;  %v6113_v1 = vpop.eup %6112  ;;  %1944 = vmax.xlane.f32.xlu1 %v1943_v36  ;;  %v8658_v20 = vpop.f32.mrf.mxu0  ;;  %v6716_v59 = vld [vmem:[%s6840_s29 + $0xd8] sm:$0xff] }
 0x5a2   : > { %v6115_v43 = vpop.eup %6114  ;;  %11749 = vst [vmem:[#allocation114_spill] sm:$0xff] %v8658_v20 }
 0x5a3   : > { %2447 = vmatprep.mubr.f32.mxu1 %v6115_v43  ;;  %v8652_v3 = vadd.f32 %v6115_v43, %v6113_v1  ;;  %v8660_v32 = vpop.f32.mrf.mxu0 }
 0x5a4   : > { %2448 = vmatmul.mubr.f32.gmra.mxu1 %v6113_v1  ;;  %11750 = vst [vmem:[#allocation115_spill] sm:$0xff] %v8660_v32 }
 0x5a5   : > { %11748 = vst [vmem:[#allocation113_spill] sm:$0xff] %v8652_v3  ;;  %1947 = vmax.xlane.f32.xlu0 %v1946_v5  ;;  %v8664_v36 = vpop.f32.mrf.mxu0 }
 0x5a6   : > { %11751 = vst [vmem:[#allocation116_spill] sm:$0xff] %v8664_v36 }
 0x5a7   : > { %v8666_v57 = vpop.f32.mrf.mxu0 }
 0x5a8   : > { %11752 = vst [vmem:[#allocation117_spill] sm:$0xff] %v8666_v57 }
 0x5a9   : > { %v8670_v43 = vpop.f32.mrf.mxu0 }
 0x5aa   : > { %11753 = vst [vmem:[#allocation118_spill] sm:$0xff] %v8670_v43 }
 0x5ab   : > { %v8672_v1 = vpop.f32.mrf.mxu0 }
 0x5ac   : > { %11754 = vst [vmem:[#allocation119_spill] sm:$0xff] %v8672_v1 }
 0x5ad   : > { %v8678_v25 = vpop.f32.mrf.mxu0 }
 0x5b2   : > { %3802 = vrot.lane.b32.xlu1 %v6715_v18, %s6764_s9 }
 0x5bb   : > { %3804 = vrot.lane.b32.xlu0 %v6716_v59, %s6764_s9 }
 0x5c0   : > { %v1933_v5 = vpop.xlane.xlu1 %1932 }
 0x5c1   : > { %v2007_v3 = vsub.f32 %v8510_v31, %v1933_v5  ;;  %v2008_v20 = vsub.f32 %v8507_v35, %v1933_v5  ;;  %v8676_v32 = vpop.f32.mrf.mxu1  ;;  %v8685_v31 = vpop.f32.mrf.mxu0 }
 0x5c2   : > { %11755 = vst [vmem:[#allocation120_spill] sm:$0xff] %v8676_v32 }
 0x5c3   : > { %v2111_v18 = vmul.f32 1.442695, %v2007_v3  ;;  %v2113_v33 = vmul.f32 1.442695, %v2008_v20  ;;  %v2416_v39 = vpop.f32.mrf.mxu1  ;;  %v8689_v5 = vpop.f32.mrf.mxu0 }
 0x5c4   : > { %v3795_v36 = vpop.permute.xlu1 %3794  ;;  %v1936_v57 = vpop.xlane.xlu0 %1935  ;;  %11757 = vst [vmem:[#allocation122_spill] sm:$0xff] %v8689_v5 }
 0x5c5   : > { %6116 = vpow2.f32 %v2111_v18  ;;  %v8680_v59 = vpop.f32.mrf.mxu1  ;;  %v2009_v43 = vsub.f32 %v8522_v0, %v1936_v57  ;;  %v2010_v1 = vsub.f32 %v8517_v61, %v1936_v57  ;;  %5754 = vmatmul.mubr.msk.f32.gmra.mxu0 %vm290_vm0, %v3795_v36  ;;  %v8692_v61 = vpop.f32.mrf.mxu0  ;;  %v8695_v0 = vmul.f32 0.17677669, %v8408_v54 }
 0x5c6   : > { %11756 = vst [vmem:[#allocation121_spill] sm:$0xff] %v8680_v59  ;;  %6118 = vpow2.f32 %v2113_v33  ;;  %4080 = vmatprep.mubr.f32.mxu0 %v11613_v6  ;;  %11758 = vst [vmem:[#allocation123_spill] sm:$0xff] %v8692_v61  ;;  %v8700_v36 = vmul.f32 0.17677669, %v8406_v48  ;;  %v8705_v18 = vmul.f32 0.17677669, %v8414_v55 }
 0x5c7   : > { %v2115_v35 = vmul.f32 1.442695, %v2009_v43  ;;  %v2117_v3 = vmul.f32 1.442695, %v2010_v1  ;;  %v2421_v20 = vpop.f32.mrf.mxu1  ;;  %v8697_v57 = vpop.f32.mrf.mxu0 }
 0x5c8   : > { %v3797_v39 = vpop.permute.xlu0 %3796  ;;  %v1949_v1 = vmax.f32 %v8700_v36, %v8695_v0  ;;  %v8712_v20 = vmul.f32 0.17677669, %v8410_v22 }
 0x5c9   : > { %6120 = vpow2.f32 %v2115_v35  ;;  %5755 = vmatmul.mubr.msk.f32.gmra.mxu0 %vm290_vm0, %v3797_v39  ;;  %v8707_v35 = vpop.f32.mrf.mxu0 }
 0x5ca   : > { %6122 = vpow2.f32 %v2117_v3  ;;  %4086 = vmatprep.mubr.f32.mxu0 %v11613_v6  ;;  %v1952_v39 = vmax.f32 %v8712_v20, %v8705_v18 }
 0x5cb   : > { %v8716_v59 = vpop.f32.mrf.mxu0 }
 0x5cc   : > { %11760 = vst [vmem:[#allocation125_spill] sm:$0xff] %v8716_v59 }
 0x5d2   : > { %v6117_v33 = vpop.eup %6116 }
 0x5d3   : > { %v6119_v43 = vpop.eup %6118 }
 0x5d4   : > { %2452 = vmatprep.mubr.f32.mxu1 %v6119_v43  ;;  %v8709_v3 = vadd.f32 %v6119_v43, %v6117_v33  ;;  %v8720_v43 = vpop.f32.mrf.mxu0 }
 0x5d5   : > { %2453 = vmatmul.mubr.f32.gmra.mxu1 %v6117_v33  ;;  %11762 = vst [vmem:[#allocation127_spill] sm:$0xff] %v8720_v43 }
 0x5d6   : > { %11759 = vst [vmem:[#allocation124_spill] sm:$0xff] %v8709_v3  ;;  %v6121_v54 = vpop.eup %6120  ;;  %1950 = vmax.xlane.f32.xlu1 %v1949_v1  ;;  %v8722_v33 = vpop.f32.mrf.mxu0  ;;  %v6717_v1 = vld [vmem:[%s6840_s29 + $0xe0] sm:$0xff] }
 0x5d7   : > { %v6123_v48 = vpop.eup %6122  ;;  %11763 = vst [vmem:[#allocation128_spill] sm:$0xff] %v8722_v33 }
 0x5d8   : > { %2457 = vmatprep.mubr.f32.mxu1 %v6123_v48  ;;  %v8718_v55 = vadd.f32 %v6123_v48, %v6121_v54  ;;  %v8724_v32 = vpop.f32.mrf.mxu0  ;;  %v6718_v48 = vld [vmem:[%s6840_s29 + $0xe8] sm:$0xff] }
 0x5d9   : > { %2458 = vmatmul.mubr.f32.gmra.mxu1 %v6121_v54  ;;  %11764 = vst [vmem:[#allocation129_spill] sm:$0xff] %v8724_v32 }
 0x5da   : > { %11761 = vst [vmem:[#allocation126_spill] sm:$0xff] %v8718_v55  ;;  %1953 = vmax.xlane.f32.xlu0 %v1952_v39  ;;  %v8726_v22 = vpop.f32.mrf.mxu0 }
 0x5db   : > { %11765 = vst [vmem:[#allocation130_spill] sm:$0xff] %v8726_v22 }
 0x5dc   : > { %v8730_v3 = vpop.f32.mrf.mxu0 }
 0x5dd   : > { %11766 = vst [vmem:[#allocation131_spill] sm:$0xff] %v8730_v3 }
 0x5de   : > { %v8732_v5 = vpop.f32.mrf.mxu0 }
 0x5df   : > { %11767 = vst [vmem:[#allocation132_spill] sm:$0xff] %v8732_v5 }
 0x5e0   : > { %v8734_v59 = vpop.f32.mrf.mxu0 }
 0x5e1   : > { %11768 = vst [vmem:[#allocation133_spill] sm:$0xff] %v8734_v59 }
 0x5e2   : > { %v8738_v54 = vpop.f32.mrf.mxu0 }
 0x5e3   : > { %11769 = vst [vmem:[#allocation134_spill] sm:$0xff] %v8738_v54 }
 0x5e4   : > { %v8744_v61 = vpop.f32.mrf.mxu0 }
 0x5e5   : > { %11771 = vst [vmem:[#allocation136_spill] sm:$0xff] %v8744_v61 }
 0x5e7   : > { %3806 = vrot.lane.b32.xlu1 %v6717_v1, %s6764_s9 }
 0x5f0   : > { %3808 = vrot.lane.b32.xlu0 %v6718_v48, %s6764_s9 }
 0x5f5   : > { %v1939_v39 = vpop.xlane.xlu1 %1938 }
 0x5f6   : > { %v2011_v55 = vsub.f32 %v8572_v62, %v1939_v39  ;;  %v2012_v43 = vsub.f32 %v8569_v12, %v1939_v39  ;;  %v8742_v22 = vpop.f32.mrf.mxu1  ;;  %v8751_v62 = vpop.f32.mrf.mxu0 }
 0x5f7   : > { %11770 = vst [vmem:[#allocation135_spill] sm:$0xff] %v8742_v22  ;;  %v6719_v22 = vld [vmem:[%s6840_s29 + $0xf0] sm:$0xff] }
 0x5f8   : > { %v2119_v1 = vmul.f32 1.442695, %v2011_v55  ;;  %v2121_v3 = vmul.f32 1.442695, %v2012_v43  ;;  %v2426_v33 = vpop.f32.mrf.mxu1  ;;  %v8755_v39 = vpop.f32.mrf.mxu0 }
 0x5f9   : > { %v3799_v5 = vpop.permute.xlu1 %3798  ;;  %v1942_v32 = vpop.xlane.xlu0 %1941 }
 0x5fa   : > { %6124 = vpow2.f32 %v2119_v1  ;;  %v8746_v59 = vpop.f32.mrf.mxu1  ;;  %v2013_v48 = vsub.f32 %v8584_v44, %v1942_v32  ;;  %v2014_v54 = vsub.f32 %v8579_v49, %v1942_v32  ;;  %5756 = vmatmul.mubr.msk.f32.gmra.mxu0 %vm290_vm0, %v3799_v5  ;;  %v8758_v49 = vpop.f32.mrf.mxu0  ;;  %v8761_v44 = vmul.f32 0.17677669, %v8418_v47 }
 0x5fb   : > { %11772 = vst [vmem:[#allocation137_spill] sm:$0xff] %v8746_v59  ;;  %6126 = vpow2.f32 %v2121_v3  ;;  %4092 = vmatprep.mubr.f32.mxu0 %v11613_v6  ;;  %11773 = vst [vmem:[#allocation138_spill] sm:$0xff] %v8758_v49  ;;  %v8764_v5 = vmul.f32 0.17677669, %v8416_v8  ;;  %v8778_v8 = vmul.f32 0.17677669, %v8422_v53 }
 0x5fc   : > { %v2123_v12 = vmul.f32 1.442695, %v2013_v48  ;;  %v2125_v55 = vmul.f32 1.442695, %v2014_v54  ;;  %v2431_v43 = vpop.f32.mrf.mxu1  ;;  %11774 = vst [vmem:[#allocation139_spill] sm:$0xff] %v8761_v44  ;;  %v8766_v3 = vpop.f32.mrf.mxu0  ;;  %v5703_v49 = vld [vmem:[%s7100_s8 + $0x258] sm:$0xff] }
 0x5fd   : > { %v3801_v33 = vpop.permute.xlu0 %3800  ;;  %11775 = vst [vmem:[#allocation140_spill] sm:$0xff] %v8764_v5  ;;  %11776 = vst [vmem:[#allocation141_spill] sm:$0xff] %v8766_v3  ;;  %v1955_v1 = vmax.f32 %v8764_v5, %v8761_v44  ;;  %v8771_v48 = vmul.f32 0.17677669, %v8428_v34 }
 0x5fe   : > { %6128 = vpow2.f32 %v2123_v12  ;;  %5757 = vmatmul.mubr.msk.f32.gmra.mxu0 %vm290_vm0, %v3801_v33  ;;  %v8773_v12 = vpop.f32.mrf.mxu0  ;;  %11779 = vst [vmem:[#allocation144_spill] sm:$0xff] %v8778_v8 }
 0x5ff   : > { %6130 = vpow2.f32 %v2125_v55  ;;  %4098 = vmatprep.mubr.f32.mxu0 %v11613_v6  ;;  %11777 = vst [vmem:[#allocation142_spill] sm:$0xff] %v8771_v48  ;;  %v1958_v33 = vmax.f32 %v8778_v8, %v8771_v48 }
 0x600   : > { %v8782_v59 = vpop.f32.mrf.mxu0 }
 0x607   : > { %v6125_v32 = vpop.eup %6124 }
 0x608   : > { %v6127_v54 = vpop.eup %6126 }
 0x609   : > { %2462 = vmatprep.mubr.f32.mxu1 %v6127_v54  ;;  %v8775_v55 = vadd.f32 %v6127_v54, %v6125_v32 }
 0x60a   : > { %2463 = vmatmul.mubr.f32.gmra.mxu1 %v6125_v32  ;;  %v8786_v32 = vpop.f32.mrf.mxu0 }
 0x60b   : > { %11778 = vst [vmem:[#allocation143_spill] sm:$0xff] %v8775_v55  ;;  %v6129_v47 = vpop.eup %6128  ;;  %1956 = vmax.xlane.f32.xlu1 %v1955_v1  ;;  %11781 = vst [vmem:[#allocation146_spill] sm:$0xff] %v8786_v32 }
 0x60c   : > { %v6131_v43 = vpop.eup %6130  ;;  %v8788_v54 = vpop.f32.mrf.mxu0 }
 0x60d   : > { %2467 = vmatprep.mubr.f32.mxu1 %v6131_v43  ;;  %v8784_v34 = vadd.f32 %v6131_v43, %v6129_v47  ;;  %11782 = vst [vmem:[#allocation147_spill] sm:$0xff] %v8788_v54 }
 0x60e   : > { %2468 = vmatmul.mubr.f32.gmra.mxu1 %v6129_v47  ;;  %v8790_v53 = vpop.f32.mrf.mxu0  ;;  %v6720_v47 = vld [vmem:[%s6840_s29 + $0xf8] sm:$0xff] }
 0x60f   : > { %11780 = vst [vmem:[#allocation145_spill] sm:$0xff] %v8784_v34  ;;  %1959 = vmax.xlane.f32.xlu0 %v1958_v33  ;;  %v5707_v33 = vld [vmem:[%s7100_s8 + $0x278] sm:$0xff]  ;;  %v5706_v34 = vld [vmem:[%s7100_s8 + $0x270] sm:$0xff] }
 0x610   : > { %v8792_v1 = vpop.f32.mrf.mxu0  ;;  %3453 = vmatpush1.msra.mxu1 %v5707_v33 }
 0x611   : > { %3454 = vmatprep.subr.mxu1 %v11613_v6 }
 0x612   : > { %v8796_v55 = vpop.f32.mrf.mxu0  ;;  %3455 = vmatpush1.msra.mxu1 %v5706_v34 }
 0x613   : > { %11783 = vst [vmem:[#allocation148_spill] sm:$0xff] %v8796_v55  ;;  %3456 = vmatprep.subr.mxu1 %v11613_v6 }
 0x614   : > { %v8798_v48 = vpop.f32.mrf.mxu0 }
 0x615   : > { %11784 = vst [vmem:[#allocation149_spill] sm:$0xff] %v8798_v48 }
 0x616   : > { %v8800_v43 = vpop.f32.mrf.mxu0 }
 0x618   : > { %v8807_v8 = vpop.f32.mrf.mxu0 }
 0x61a   : > { %v8817_v33 = vpop.f32.mrf.mxu0 }
 0x61c   : > { %3810 = vrot.lane.b32.xlu1 %v6719_v22, %s6764_s9  ;;  %v5705_v22 = vld [vmem:[%s7100_s8 + $0x268] sm:$0xff] }
 0x61d   : > { %3457 = vmatpush1.msra.mxu1 %v5705_v22 }
 0x61e   : > { %3458 = vmatprep.subr.mxu1 %v11613_v6 }
 0x625   : > { %3812 = vrot.lane.b32.xlu0 %v6720_v47, %s6764_s9  ;;  %v5704_v47 = vld [vmem:[%s7100_s8 + $0x260] sm:$0xff] }
 0x626   : > { %3459 = vmatpush1.msra.mxu1 %v5704_v47 }
 0x627   : > { %3460 = vmatprep.subr.mxu1 %v11613_v6 }
 0x628   : > { %3461 = vmatpush1.msra.mxu1 %v5703_v49  ;;  %v5699_v49 = vld [vmem:[%s7100_s8 + $0x238] sm:$0xff] }
 0x629   : > { %3462 = vmatprep.subr.mxu1 %v11613_v6 }
 0x62a   : > { %v1945_v44 = vpop.xlane.xlu1 %1944 }
 0x62b   : > { %v2015_v55 = vsub.f32 %v8636_v51, %v1945_v44  ;;  %v2016_v48 = vsub.f32 %v8631_v9, %v1945_v44  ;;  %v8813_v5 = vpop.f32.mrf.mxu1  ;;  %v5702_v51 = vld [vmem:[%s7100_s8 + $0x250] sm:$0xff] }
 0x62c   : > { %11785 = vst [vmem:[#allocation150_spill] sm:$0xff] %v8813_v5  ;;  %3463 = vmatpush1.msra.mxu1 %v5702_v51  ;;  %v5697_v51 = vld [vmem:[%s7100_s8 + $0x228] sm:$0xff] }
 0x62d   : > { %v2127_v32 = vmul.f32 1.442695, %v2015_v55  ;;  %v2129_v54 = vmul.f32 1.442695, %v2016_v48  ;;  %v2436_v34 = vpop.f32.mrf.mxu1  ;;  %v5701_v48 = vld [vmem:[%s7100_s8 + $0x248] sm:$0xff]  ;;  %3464 = vmatprep.subr.mxu1 %v11613_v6 }
 0x62e   : > { %v3803_v3 = vpop.permute.xlu1 %3802  ;;  %v1948_v61 = vpop.xlane.xlu0 %1947  ;;  %3465 = vmatpush1.msra.mxu1 %v5701_v48 }
 0x62f   : > { %6132 = vpow2.f32 %v2127_v32  ;;  %v8822_v9 = vpop.f32.mrf.mxu1  ;;  %v2017_v44 = vsub.f32 %v8648_v60, %v1948_v61  ;;  %v2018_v22 = vsub.f32 %v8641_v16, %v1948_v61  ;;  %5758 = vmatmul.mubr.msk.f32.gmra.mxu0 %vm290_vm0, %v3803_v3  ;;  %v8830_v34 = vpop.f32.mrf.mxu0  ;;  %v5700_v16 = vld [vmem:[%s7100_s8 + $0x240] sm:$0xff]  ;;  %3466 = vmatprep.subr.mxu1 %v11613_v6  ;;  %v5698_v3 = vld [vmem:[%s7100_s8 + $0x230] sm:$0xff] }
 0x630   : > { %11786 = vst [vmem:[#allocation151_spill] sm:$0xff] %v8822_v9  ;;  %6134 = vpow2.f32 %v2129_v54  ;;  %4104 = vmatprep.mubr.f32.mxu0 %v11613_v6  ;;  %3467 = vmatpush1.msra.mxu1 %v5700_v16  ;;  %v8863_v16 = vmul.f32 0.17677669, %v8468_v27 }
 0x631   : > { %v2131_v55 = vmul.f32 1.442695, %v2017_v44  ;;  %v2133_v47 = vmul.f32 1.442695, %v2018_v22  ;;  %v2441_v32 = vpop.f32.mrf.mxu1  ;;  %v8835_v61 = vpop.f32.mrf.mxu0  ;;  %3468 = vmatprep.subr.mxu1 %v11613_v6  ;;  %v8847_v44 = vmul.f32 0.17677669, %v8440_v41 }
 0x632   : > { %v3805_v60 = vpop.permute.xlu0 %3804  ;;  %3469 = vmatpush1.msra.mxu1 %v5699_v49  ;;  %v5696_v22 = vld [vmem:[%s7100_s8 + $0x220] sm:$0xff]  ;;  %v8869_v49 = vmul.f32 0.17677669, %v8445_v4 }
 0x633   : > { %6136 = vpow2.f32 %v2131_v55  ;;  %5759 = vmatmul.mubr.msk.f32.gmra.mxu0 %vm290_vm0, %v3805_v60  ;;  %v8842_v54 = vpop.f32.mrf.mxu0  ;;  %3470 = vmatprep.subr.mxu1 %v11613_v6  ;;  %v8852_v55 = vmul.f32 0.17677669, %v8436_v26  ;;  %v8858_v60 = vmul.f32 0.17677669, %v8455_v15 }
 0x634   : > { %6138 = vpow2.f32 %v2133_v47  ;;  %4110 = vmatprep.mubr.f32.mxu0 %v11613_v6  ;;  %3471 = vmatpush1.msra.mxu1 %v5698_v3  ;;  %v5695_v3 = vld [vmem:[%s7100_s8 + $0x218] sm:$0xff] }
 0x635   : > { %3472 = vmatprep.subr.mxu1 %v11613_v6  ;;  %v8854_v47 = vpop.f32.mrf.mxu0  ;;  %v1961_v41 = vmax.f32 %v8852_v55, %v8847_v44 }
 0x636   : > { %3473 = vmatpush1.msra.mxu1 %v5697_v51  ;;  %v5694_v51 = vld [vmem:[%s7100_s8 + $0x210] sm:$0xff] }
 0x637   : > { %3474 = vmatprep.subr.mxu1 %v11613_v6  ;;  %v8876_v9 = vpop.f32.mrf.mxu0 }
 0x638   : > { %3475 = vmatpush1.msra.mxu1 %v5696_v22  ;;  %v8874_v22 = vmul.f32 0.17677669, %v8464_v28  ;;  %v8887_v28 = vmul.f32 0.17677669, %v8536_v45  ;;  %v5692_v45 = vld [vmem:[%s7100_s8 + $0x200] sm:$0xff] }
 0x639   : > { %3476 = vmatprep.subr.mxu1 %v11613_v6  ;;  %v8889_v5 = vpop.f32.mrf.mxu0 }
 0x63a   : > { %3477 = vmatpush1.msra.mxu1 %v5695_v3  ;;  %v3035_v4 = vmax.f32 %v8874_v22, %v8863_v16  ;;  %v5693_v3 = vld [vmem:[%s7100_s8 + $0x208] sm:$0xff] }
 0x63b   : > { %3478 = vmatprep.subr.mxu1 %v11613_v6 }
 0x63c   : > { %v6133_v48 = vpop.eup %6132  ;;  %3479 = vmatpush1.msra.mxu1 %v5694_v51 }
 0x63d   : > { %v6135_v32 = vpop.eup %6134  ;;  %3480 = vmatprep.subr.mxu1 %v11613_v6 }
 0x63e   : > { %2472 = vmatprep.mubr.f32.mxu1 %v6135_v32  ;;  %v8866_v26 = vadd.f32 %v6135_v32, %v6133_v48  ;;  %v1964_v32 = vmax.f32 %v8869_v49, %v8858_v60  ;;  %3481 = vmatpush1.msra.mxu1 %v5693_v3 }
 0x63f   : > { %2473 = vmatmul.mubr.f32.gmra.mxu1 %v6133_v48  ;;  %v8884_v48 = vmul.f32 0.17677669, %v8472_v7  ;;  %v8899_v7 = vmul.f32 0.17677669, %v8534_v19  ;;  %3482 = vmatprep.subr.mxu1 %v11613_v6  ;;  %v5723_v19 = vld [vmem:[%s7100_s8 + $0x2f8] sm:$0xff] }
 0x640   : > { %11787 = vst [vmem:[#allocation152_spill] sm:$0xff] %v8866_v26  ;;  %v6137_v15 = vpop.eup %6136  ;;  %1962 = vmax.xlane.f32.xlu1 %v1961_v41  ;;  %v8896_v26 = vmul.f32 0.17677669, %v8470_v52  ;;  %v8912_v52 = vpop.f32.mrf.mxu0  ;;  %3483 = vmatpush1.msra.mxu1 %v5692_v45 }
 0x641   : > { %v6139_v27 = vpop.eup %6138  ;;  %3484 = vmatprep.subr.mxu1 %v11613_v6 }
 0x642   : > { %2477 = vmatprep.mubr.f32.mxu1 %v6139_v27  ;;  %v8891_v41 = vadd.f32 %v6139_v27, %v6137_v15  ;;  %v3038_v51 = vmax.f32 %v8896_v26, %v8884_v48  ;;  %v8905_v27 = vmul.f32 0.17677669, %v8478_v30  ;;  %v8933_v45 = vpop.f32.mrf.mxu0  ;;  %3485 = vmatpush2.msra.mxu1 %v5723_v19 }
 0x643   : > { %2478 = vmatmul.mubr.f32.gmra.mxu1 %v6137_v15  ;;  %v3059_v15 = vmax.f32 %v8899_v7, %v8887_v28  ;;  %3486 = vmatprep.subr.mxu1 %v11613_v6 }
 0x644   : > { %11788 = vst [vmem:[#allocation153_spill] sm:$0xff] %v8891_v41  ;;  %3036 = vmax.xlane.f32.xlu1 %v3035_v4  ;;  %1965 = vmax.xlane.f32.xlu0 %v1964_v32  ;;  %v8910_v41 = vmul.f32 0.17677669, %v8552_v14  ;;  %v8917_v32 = vmul.f32 0.17677669, %v8476_v58 }
 0x645   : > { %v8920_v4 = vmul.f32 0.17677669, %v8546_v63  ;;  %v8926_v14 = vmul.f32 0.17677669, %v8484_v38  ;;  %v8931_v58 = vmul.f32 0.17677669, %v8574_v23 }
 0x646   : > { %11789 = vst [vmem:[#allocation154_spill] sm:$0xff] %v8910_v41  ;;  %v3041_v30 = vmax.f32 %v8917_v32, %v8905_v27  ;;  %v5722_v63 = vld [vmem:[%s7100_s8 + $0x2f0] sm:$0xff]  ;;  %v5721_v38 = vld [vmem:[%s7100_s8 + $0x2e8] sm:$0xff] }
 0x647   : > { %11790 = vst [vmem:[#allocation155_spill] sm:$0xff] %v8920_v4  ;;  %v3065_v3 = vmax.f32 %v8920_v4, %v8910_v41  ;;  %11791 = vst [vmem:[#allocation156_spill] sm:$0xff] %v8931_v58  ;;  %3487 = vmatpush2.msra.mxu1 %v5722_v63  ;;  %v8947_v41 = vmul.f32 0.17677669, %v8498_v10  ;;  %v8952_v4 = vmul.f32 0.17677669, %v8596_v11 }
 0x648   : > { %3039 = vmax.xlane.f32.xlu1 %v3038_v51  ;;  %3060 = vmax.xlane.f32.xlu0 %v3059_v15  ;;  %v8938_v51 = vmul.f32 0.17677669, %v8480_v40  ;;  %v8941_v15 = vmul.f32 0.17677669, %v8566_v24  ;;  %v8954_v40 = vpop.f32.mrf.mxu0  ;;  %v5720_v24 = vld [vmem:[%s7100_s8 + $0x2e0] sm:$0xff] }
 0x649   : > { %11792 = vst [vmem:[#allocation157_spill] sm:$0xff] %v8947_v41  ;;  %11793 = vst [vmem:[#allocation158_spill] sm:$0xff] %v8952_v4  ;;  %3488 = vmatprep.subr.mxu1 %v11613_v6  ;;  %v8970_v63 = vmul.f32 0.17677669, %v8504_v13  ;;  %v5718_v13 = vld [vmem:[%s7100_s8 + $0x2d0] sm:$0xff] }
 0x64a   : > { %v3044_v23 = vmax.f32 %v8938_v51, %v8926_v14  ;;  %v3071_v19 = vmax.f32 %v8941_v15, %v8931_v58  ;;  %3489 = vmatpush2.msra.mxu1 %v5721_v38  ;;  %v8964_v10 = vpop.f32.mrf.mxu0  ;;  %v8975_v38 = vmul.f32 0.17677669, %v8608_v21 }
 0x64b   : > { %3490 = vmatprep.subr.mxu1 %v11613_v6  ;;  %11796 = vst [vmem:[#allocation161_spill] sm:$0xff] %v8970_v63 }
 0x64c   : > { %3042 = vmax.xlane.f32.xlu1 %v3041_v30  ;;  %3066 = vmax.xlane.f32.xlu0 %v3065_v3  ;;  %v8959_v30 = vmul.f32 0.17677669, %v8490_v56  ;;  %v8962_v3 = vmul.f32 0.17677669, %v8594_v17  ;;  %11797 = vst [vmem:[#allocation162_spill] sm:$0xff] %v8975_v38  ;;  %v5719_v17 = vld [vmem:[%s7100_s8 + $0x2d8] sm:$0xff] }
 0x64d   : > { %3491 = vmatpush2.msra.mxu1 %v5720_v24  ;;  %v11800_v24 = vld [vmem:[#allocation90_spill] sm:$0xff] }
 0x64e   : > { %11794 = vst [vmem:[#allocation159_spill] sm:$0xff] %v8959_v30  ;;  %11795 = vst [vmem:[#allocation160_spill] sm:$0xff] %v8962_v3  ;;  %v3047_v11 = vmax.f32 %v8959_v30, %v8947_v41  ;;  %v3077_v56 = vmax.f32 %v8962_v3, %v8952_v4  ;;  %3492 = vmatprep.subr.mxu1 %v11613_v6  ;;  %v8985_v41 = vpop.f32.mrf.mxu0  ;;  %v8991_v4 = vmul.f32 0.17677669, %v11800_v24  ;;  %v11806_v24 = vld [vmem:[#allocation93_spill] sm:$0xff] }
 0x64f   : > { %3493 = vmatpush2.msra.mxu1 %v5719_v17  ;;  %v9004_v17 = vmul.f32 0.17677669, %v8624_v29  ;;  %v5716_v29 = vld [vmem:[%s7100_s8 + $0x2c0] sm:$0xff] }
 0x650   : > { %3045 = vmax.xlane.f32.xlu1 %v3044_v23  ;;  %3072 = vmax.xlane.f32.xlu0 %v3071_v19  ;;  %v8980_v23 = vmul.f32 0.17677669, %v8502_v2  ;;  %v8983_v19 = vmul.f32 0.17677669, %v8604_v46  ;;  %11801 = vst [vmem:[#allocation90_spill] sm:$0xff] %v8991_v4  ;;  %v5717_v46 = vld [vmem:[%s7100_s8 + $0x2c8] sm:$0xff] }
 0x651   : > { %v8996_v2 = vmul.f32 0.17677669, %v8628_v37  ;;  %3494 = vmatprep.subr.mxu1 %v11613_v6  ;;  %11805 = vst [vmem:[#allocation166_spill] sm:$0xff] %v9004_v17 }
 0x652   : > { %11798 = vst [vmem:[#allocation163_spill] sm:$0xff] %v8980_v23  ;;  %11799 = vst [vmem:[#allocation164_spill] sm:$0xff] %v8983_v19  ;;  %v3050_v21 = vmax.f32 %v8980_v23, %v8970_v63  ;;  %v3083_v3 = vmax.f32 %v8983_v19, %v8975_v38  ;;  %3495 = vmatpush2.msra.mxu1 %v5718_v13  ;;  %v9006_v63 = vpop.f32.mrf.mxu0  ;;  %v9012_v38 = vmul.f32 0.17677669, %v11806_v24  ;;  %v9025_v19 = vmul.f32 0.17677669, %v8654_v42 }
 0x653   : > { %11802 = vst [vmem:[#allocation165_spill] sm:$0xff] %v8996_v2  ;;  %3496 = vmatprep.subr.mxu1 %v11613_v6  ;;  %v3089_v13 = vmax.f32 %v9004_v17, %v8996_v2  ;;  %v5715_v24 = vld [vmem:[%s7100_s8 + $0x2b8] sm:$0xff] }
 0x654   : > { %3048 = vmax.xlane.f32.xlu1 %v3047_v11  ;;  %3078 = vmax.xlane.f32.xlu0 %v3077_v56  ;;  %v11803_v11 = vld [vmem:[#allocation88_spill] sm:$0xff]  ;;  %11807 = vst [vmem:[#allocation93_spill] sm:$0xff] %v9012_v38  ;;  %11811 = vst [vmem:[#allocation168_spill] sm:$0xff] %v9025_v19 }
 0x655   : > { %v9001_v56 = vmul.f32 0.17677669, %v11803_v11  ;;  %v9017_v11 = vmul.f32 0.17677669, %v8656_v50  ;;  %3497 = vmatpush2.msra.mxu1 %v5717_v46  ;;  %v11812_v46 = vld [vmem:[#allocation95_spill] sm:$0xff] }
 0x656   : > { %3498 = vmatprep.subr.mxu1 %v11613_v6  ;;  %v9033_v2 = vmul.f32 0.17677669, %v11812_v46 }
 0x657   : > { %11804 = vst [vmem:[#allocation88_spill] sm:$0xff] %v9001_v56  ;;  %v3053_v37 = vmax.f32 %v9001_v56, %v8991_v4  ;;  %11808 = vst [vmem:[#allocation167_spill] sm:$0xff] %v9017_v11  ;;  %v9027_v4 = vpop.f32.mrf.mxu0  ;;  %3499 = vmatpush2.msra.mxu1 %v5716_v29  ;;  %v3095_v17 = vmax.f32 %v9025_v19, %v9017_v11  ;;  %v11816_v29 = vld [vmem:[#allocation94_spill] sm:$0xff]  ;;  %v11820_v19 = vld [vmem:[#allocation99_spill] sm:$0xff] }
 0x658   : > { %3051 = vmax.xlane.f32.xlu1 %v3050_v21  ;;  %3084 = vmax.xlane.f32.xlu0 %v3083_v3  ;;  %v11809_v21 = vld [vmem:[#allocation92_spill] sm:$0xff]  ;;  %11813 = vst [vmem:[#allocation95_spill] sm:$0xff] %v9033_v2  ;;  %v9045_v23 = vmul.f32 0.17677669, %v11816_v29  ;;  %v9055_v30 = vmul.f32 0.17677669, %v11820_v19 }
 0x659   : > { %v9022_v3 = vmul.f32 0.17677669, %v11809_v21  ;;  %v11814_v21 = vld [vmem:[#allocation117_spill] sm:$0xff]  ;;  %v9040_v42 = vpop.f32.mrf.mxu0  ;;  %3500 = vmatprep.subr.mxu1 %v11613_v6  ;;  %v5713_v19 = vld [vmem:[%s7100_s8 + $0x2a8] sm:$0xff] }
 0x65a   : > { %v9038_v56 = vmul.f32 0.17677669, %v11814_v21  ;;  %3501 = vmatpush2.msra.mxu1 %v5715_v24  ;;  %v9058_v24 = vmul.f32 0.17677669, %v8685_v31 }
 0x65b   : > { %11810 = vst [vmem:[#allocation92_spill] sm:$0xff] %v9022_v3  ;;  %v3056_v50 = vmax.f32 %v9022_v3, %v9012_v38  ;;  %v11817_v38 = vld [vmem:[#allocation116_spill] sm:$0xff]  ;;  %3502 = vmatprep.subr.mxu1 %v11613_v6  ;;  %v9065_v29 = vpop.f32.mrf.mxu0 }
 0x65c   : > { %3054 = vmax.xlane.f32.xlu1 %v3053_v37  ;;  %3090 = vmax.xlane.f32.xlu0 %v3089_v13  ;;  %11815 = vst [vmem:[#allocation117_spill] sm:$0xff] %v9038_v56  ;;  %v5714_v13 = vld [vmem:[%s7100_s8 + $0x2b0] sm:$0xff]  ;;  %v9048_v3 = vmul.f32 0.17677669, %v11817_v38  ;;  %11821 = vst [vmem:[#allocation99_spill] sm:$0xff] %v9058_v24  ;;  %v3062_v38 = vmax.f32 %v9045_v23, %v9033_v2 }
 0x65d   : > { %3503 = vmatpush2.msra.mxu1 %v5714_v13  ;;  %v9073_v2 = vmul.f32 0.17677669, %v8678_v25  ;;  %v5712_v13 = vld [vmem:[%s7100_s8 + $0x2a0] sm:$0xff] }
 0x65e   : > { %11818 = vst [vmem:[#allocation94_spill] sm:$0xff] %v9048_v3  ;;  %3504 = vmatprep.subr.mxu1 %v11613_v6 }
 0x65f   : > { %v1951_v37 = vpop.xlane.xlu1 %1950  ;;  %3505 = vmatpush2.msra.mxu1 %v5713_v19  ;;  %v3107_v25 = vmax.f32 %v9073_v2, %v9058_v24  ;;  %v11827_v19 = vld [vmem:[#allocation101_spill] sm:$0xff]  ;;  %v11843_v24 = vld [vmem:[#allocation132_spill] sm:$0xff] }
 0x660   : > { %v2019_v46 = vsub.f32 %v8700_v36, %v1951_v37  ;;  %v2020_v11 = vsub.f32 %v8695_v0, %v1951_v37  ;;  %v9052_v21 = vpop.f32.mrf.mxu1  ;;  %3057 = vmax.xlane.f32.xlu1 %v3056_v50  ;;  %3096 = vmax.xlane.f32.xlu0 %v3095_v17  ;;  %v3101_v36 = vmax.f32 %v9048_v3, %v9038_v56  ;;  %v11822_v37 = vld [vmem:[#allocation98_spill] sm:$0xff] }
 0x661   : > { %11819 = vst [vmem:[#allocation116_spill] sm:$0xff] %v9052_v21  ;;  %v9069_v21 = vmul.f32 0.17677669, %v11822_v37  ;;  %11823 = vst [vmem:[#allocation98_spill] sm:$0xff] %v9073_v2  ;;  %v11825_v37 = vld [vmem:[#allocation103_spill] sm:$0xff]  ;;  %3506 = vmatprep.subr.mxu1 %v11613_v6 }
 0x662   : > { %v2135_v0 = vmul.f32 1.442695, %v2019_v46  ;;  %v2137_v50 = vmul.f32 1.442695, %v2020_v11  ;;  %v2446_v17 = vpop.f32.mrf.mxu1  ;;  %v9083_v3 = vmul.f32 0.17677669, %v11825_v37  ;;  %3507 = vmatpush2.msra.mxu1 %v5712_v13 }
 0x663   : > { %v3807_v31 = vpop.permute.xlu1 %3806  ;;  %v1954_v58 = vpop.xlane.xlu0 %1953  ;;  %v3068_v17 = vmax.f32 %v9069_v21, %v9055_v30  ;;  %v9100_v37 = vmul.f32 0.17677669, %v8697_v57  ;;  %3508 = vmatprep.subr.mxu1 %v11613_v6  ;;  %v11831_v57 = vld [vmem:[#allocation129_spill] sm:$0xff] }
 0x664   : > { %6140 = vpow2.f32 %v2135_v0  ;;  %v9075_v56 = vpop.f32.mrf.mxu1  ;;  %v2021_v46 = vsub.f32 %v8712_v20, %v1954_v58  ;;  %v2022_v11 = vsub.f32 %v8705_v18, %v1954_v58  ;;  %3063 = vmax.xlane.f32.xlu1 %v3062_v38  ;;  %3102 = vmax.xlane.f32.xlu0 %v3101_v36  ;;  %v9089_v20 = vmul.f32 0.17677669, %v8707_v35  ;;  %v9093_v36 = vpop.f32.mrf.mxu0 }
 0x665   : > { %11824 = vst [vmem:[#allocation169_spill] sm:$0xff] %v9075_v56  ;;  %6142 = vpow2.f32 %v2137_v50  ;;  %5760 = vmatmul.mubr.msk.f32.gmra.mxu0 %vm290_vm0, %v3807_v31  ;;  %v5711_v50 = vld [vmem:[%s7100_s8 + $0x298] sm:$0xff]  ;;  %v9097_v31 = vmul.f32 0.17677669, %v11827_v19  ;;  %11828 = vst [vmem:[#allocation101_spill] sm:$0xff] %v9100_v37  ;;  %v11837_v56 = vld [vmem:[#allocation108_spill] sm:$0xff] }
 0x666   : > { %11826 = vst [vmem:[#allocation103_spill] sm:$0xff] %v9089_v20  ;;  %v2139_v18 = vmul.f32 1.442695, %v2021_v46  ;;  %v2141_v58 = vmul.f32 1.442695, %v2022_v11  ;;  %v2451_v38 = vpop.f32.mrf.mxu1  ;;  %4116 = vmatprep.mubr.f32.mxu0 %v11613_v6  ;;  %v11829_v46 = vld [vmem:[#allocation105_spill] sm:$0xff]  ;;  %v3113_v13 = vmax.f32 %v9100_v37, %v9089_v20  ;;  %3509 = vmatpush2.msra.mxu1 %v5711_v50 }
 0x667   : > { %v3809_v0 = vpop.permute.xlu0 %3808  ;;  %v3074_v35 = vmax.f32 %v9097_v31, %v9083_v3  ;;  %v9107_v11 = vmul.f32 0.17677669, %v11829_v46  ;;  %v9112_v38 = vmul.f32 0.17677669, %v11831_v57  ;;  %3510 = vmatprep.subr.mxu1 %v11613_v6  ;;  %v5709_v46 = vld [vmem:[%s7100_s8 + $0x288] sm:$0xff] }
 0x668   : > { %6144 = vpow2.f32 %v2139_v18  ;;  %3069 = vmax.xlane.f32.xlu1 %v3068_v17  ;;  %3108 = vmax.xlane.f32.xlu0 %v3107_v25  ;;  %v5710_v17 = vld [vmem:[%s7100_s8 + $0x290] sm:$0xff]  ;;  %v9116_v25 = vpop.f32.mrf.mxu0  ;;  %v9131_v37 = vmul.f32 0.17677669, %v11837_v56 }
 0x669   : > { %6146 = vpow2.f32 %v2141_v58  ;;  %5761 = vmatmul.mubr.msk.f32.gmra.mxu0 %vm290_vm0, %v3809_v0  ;;  %11830 = vst [vmem:[#allocation105_spill] sm:$0xff] %v9107_v11  ;;  %11832 = vst [vmem:[#allocation129_spill] sm:$0xff] %v9112_v38  ;;  %v11833_v18 = vld [vmem:[#allocation104_spill] sm:$0xff]  ;;  %3511 = vmatpush2.msra.mxu1 %v5710_v17 }
 0x66a   : > { %4122 = vmatprep.mubr.f32.mxu0 %v11613_v6  ;;  %v9120_v58 = vmul.f32 0.17677669, %v11833_v18  ;;  %v11835_v0 = vld [vmem:[#allocation128_spill] sm:$0xff]  ;;  %v9126_v57 = vpop.f32.mrf.mxu0  ;;  %11838 = vst [vmem:[#allocation108_spill] sm:$0xff] %v9131_v37  ;;  %3512 = vmatprep.subr.mxu1 %v11613_v6  ;;  %v11839_v18 = vld [vmem:[#allocation133_spill] sm:$0xff] }
 0x66b   : > { %v9123_v19 = vmul.f32 0.17677669, %v11835_v0  ;;  %v9137_v0 = vmul.f32 0.17677669, %v11839_v18  ;;  %3513 = vmatpush2.msra.mxu1 %v5709_v46 }
 0x66c   : > { %11834 = vst [vmem:[#allocation104_spill] sm:$0xff] %v9120_v58  ;;  %3075 = vmax.xlane.f32.xlu1 %v3074_v35  ;;  %3114 = vmax.xlane.f32.xlu0 %v3113_v13  ;;  %v3080_v50 = vmax.f32 %v9120_v58, %v9107_v11  ;;  %v5708_v35 = vld [vmem:[%s7100_s8 + $0x280] sm:$0xff]  ;;  %v9144_v11 = vmul.f32 0.17677669, %v11843_v24  ;;  %v9146_v56 = vpop.f32.mrf.mxu0 }
 0x66d   : > { %11836 = vst [vmem:[#allocation128_spill] sm:$0xff] %v9123_v19  ;;  %v3119_v20 = vmax.f32 %v9123_v19, %v9112_v38  ;;  %11840 = vst [vmem:[#allocation133_spill] sm:$0xff] %v9137_v0  ;;  %v11841_v13 = vld [vmem:[#allocation106_spill] sm:$0xff]  ;;  %3514 = vmatprep.subr.mxu1 %v11613_v6  ;;  %v11845_v38 = vld [vmem:[#allocation112_spill] sm:$0xff] }
 0x66e   : > { %v9141_v2 = vmul.f32 0.17677669, %v11841_v13  ;;  %11844 = vst [vmem:[#allocation132_spill] sm:$0xff] %v9144_v11  ;;  %v9152_v46 = vmul.f32 0.17677669, %v11845_v38  ;;  %3515 = vmatpush2.msra.mxu1 %v5708_v35  ;;  %v11848_v13 = vld [vmem:[#allocation110_spill] sm:$0xff]  ;;  %v9168_v35 = vpop.f32.mrf.mxu0 }
 0x66f   : > { %4616 = vmatprep.subr.mxu1 %v11613_v6  ;;  %v9163_v58 = vmul.f32 0.17677669, %v11848_v13  ;;  %v9166_v38 = vmul.f32 0.17677669, %v8751_v62  ;;  %v11854_v62 = vld [vmem:[#allocation114_spill] sm:$0xff] }
 0x670   : > { %11842 = vst [vmem:[#allocation106_spill] sm:$0xff] %v9141_v2  ;;  %3081 = vmax.xlane.f32.xlu1 %v3080_v50  ;;  %3120 = vmax.xlane.f32.xlu0 %v3119_v20  ;;  %v3086_v18 = vmax.f32 %v9141_v2, %v9131_v37  ;;  %v3125_v50 = vmax.f32 %v9144_v11, %v9137_v0  ;;  %v9157_v20 = vmul.f32 0.17677669, %v8755_v39  ;;  %v11850_v0 = vld [vmem:[#allocation115_spill] sm:$0xff]  ;;  %v9183_v13 = vmul.f32 0.17677669, %v11854_v62 }
 0x671   : > { %v6141_v17 = vpop.eup %6140  ;;  %11849 = vst [vmem:[#allocation110_spill] sm:$0xff] %v9166_v38  ;;  %v3092_v39 = vmax.f32 %v9163_v58, %v9152_v46  ;;  %v9173_v2 = vmul.f32 0.17677669, %v11850_v0  ;;  %v9198_v62 = vmul.f32 0.17677669, %v8792_v1 }
 0x672   : > { %v6143_v19 = vpop.eup %6142  ;;  %11846 = vst [vmem:[#allocation112_spill] sm:$0xff] %v9157_v20 }
 0x673   : > { %2482 = vmatprep.mubr.f32.mxu1 %v6143_v19  ;;  %v9160_v24 = vadd.f32 %v6143_v19, %v6141_v17  ;;  %11851 = vst [vmem:[#allocation115_spill] sm:$0xff] %v9173_v2  ;;  %v4199_v19 = vmax.f32 %v9166_v38, %v9157_v20  ;;  %v3098_v0 = vmax.f32 %v9183_v13, %v9173_v2  ;;  %v11856_v38 = vld [vmem:[#allocation119_spill] sm:$0xff]  ;;  %11858 = vst [vmem:[#allocation173_spill] sm:$0xff] %v9198_v62 }
 0x674   : > { %2483 = vmatmul.mubr.f32.gmra.mxu1 %v6141_v17  ;;  %3087 = vmax.xlane.f32.xlu1 %v3086_v18  ;;  %v9178_v17 = vmul.f32 0.17677669, %v8782_v59  ;;  %v9193_v59 = vmul.f32 0.17677669, %v11856_v38 }
 0x675   : > { %11847 = vst [vmem:[#allocation170_spill] sm:$0xff] %v9160_v24  ;;  %v6145_v37 = vpop.eup %6144  ;;  %3126 = vmax.xlane.f32.xlu0 %v3125_v50  ;;  %v9186_v50 = vmul.f32 0.17677669, %v8773_v12  ;;  %v9188_v24 = vpop.f32.mrf.mxu0 }
 0x676   : > { %v6147_v11 = vpop.eup %6146  ;;  %11852 = vst [vmem:[#allocation171_spill] sm:$0xff] %v9178_v17  ;;  %11857 = vst [vmem:[#allocation119_spill] sm:$0xff] %v9193_v59 }
 0x677   : > { %2487 = vmatprep.mubr.f32.mxu1 %v6147_v11  ;;  %v9180_v18 = vadd.f32 %v6147_v11, %v6145_v37  ;;  %11855 = vst [vmem:[#allocation114_spill] sm:$0xff] %v9186_v50  ;;  %v4205_v11 = vmax.f32 %v9186_v50, %v9178_v17  ;;  %v9216_v50 = vmul.f32 0.17677669, %v8807_v8  ;;  %v9232_v8 = vmul.f32 0.17677669, %v8842_v54 }
 0x678   : > { %2488 = vmatmul.mubr.f32.gmra.mxu1 %v6145_v37  ;;  %3093 = vmax.xlane.f32.xlu1 %v3092_v39  ;;  %v9200_v37 = vpop.f32.mrf.mxu0  ;;  %v11859_v39 = vld [vmem:[#allocation118_spill] sm:$0xff] }
 0x679   : > { %11853 = vst [vmem:[#allocation172_spill] sm:$0xff] %v9180_v18  ;;  %4200 = vmax.xlane.f32.xlu0 %v4199_v19  ;;  %v9203_v12 = vmul.f32 0.17677669, %v11859_v39  ;;  %v9206_v19 = vmul.f32 0.17677669, %v8790_v53  ;;  %v11862_v18 = vld [vmem:[#allocation123_spill] sm:$0xff] }
 0x67a   : > { %v9211_v20 = vmul.f32 0.17677669, %v11862_v18  ;;  %11864 = vst [vmem:[#allocation175_spill] sm:$0xff] %v9216_v50  ;;  %v4054_v17 = vpop.f32.mrf.mxu0  ;;  %v11865_v39 = vld [vmem:[#allocation122_spill] sm:$0xff]  ;;  %v9222_v53 = vmul.f32 0.17677669, %v8800_v43 }
 0x67b   : > { %11860 = vst [vmem:[#allocation118_spill] sm:$0xff] %v9203_v12  ;;  %11861 = vst [vmem:[#allocation174_spill] sm:$0xff] %v9206_v19  ;;  %v3104_v38 = vmax.f32 %v9203_v12, %v9193_v59  ;;  %v4211_v1 = vmax.f32 %v9206_v19, %v9198_v62  ;;  %v9219_v2 = vmul.f32 0.17677669, %v11865_v39  ;;  %v11868_v18 = vld [vmem:[#allocation127_spill] sm:$0xff]  ;;  %v11871_v39 = vld [vmem:[#allocation125_spill] sm:$0xff] }
 0x67c   : > { %3099 = vmax.xlane.f32.xlu1 %v3098_v0  ;;  %11863 = vst [vmem:[#allocation123_spill] sm:$0xff] %v9211_v20  ;;  %11867 = vst [vmem:[#allocation176_spill] sm:$0xff] %v9222_v53  ;;  %v4217_v19 = vmax.f32 %v9222_v53, %v9216_v50  ;;  %v9234_v62 = vpop.f32.mrf.mxu0  ;;  %v9240_v43 = vmul.f32 0.17677669, %v8835_v61  ;;  %v9250_v53 = vmul.f32 0.17677669, %v8912_v52 }
 0x67d   : > { %4206 = vmax.xlane.f32.xlu0 %v4205_v11  ;;  %11866 = vst [vmem:[#allocation122_spill] sm:$0xff] %v9219_v2  ;;  %v3110_v0 = vmax.f32 %v9219_v2, %v9211_v20  ;;  %v9227_v11 = vmul.f32 0.17677669, %v11868_v18  ;;  %11870 = vst [vmem:[#allocation177_spill] sm:$0xff] %v9232_v8  ;;  %v11874_v18 = vld [vmem:[#allocation131_spill] sm:$0xff]  ;;  %v11901_v12 = vld [vmem:[#allocation148_spill] sm:$0xff] }
 0x67e   : > { %11873 = vst [vmem:[#allocation178_spill] sm:$0xff] %v9240_v43  ;;  %v9245_v20 = vmul.f32 0.17677669, %v11874_v18  ;;  %v4223_v54 = vmax.f32 %v9240_v43, %v9232_v8  ;;  %11876 = vst [vmem:[#allocation179_spill] sm:$0xff] %v9250_v53  ;;  %v9252_v50 = vpop.f32.mrf.mxu0  ;;  %v9258_v61 = vmul.f32 0.17677669, %v8889_v5 }
 0x67f   : > { %11869 = vst [vmem:[#allocation127_spill] sm:$0xff] %v9227_v11  ;;  %v9270_v8 = vmul.f32 0.17677669, %v8985_v41  ;;  %v9276_v5 = vmul.f32 0.17677669, %v8964_v10 }
 0x680   : > { %3105 = vmax.xlane.f32.xlu1 %v3104_v38  ;;  %v9237_v38 = vmul.f32 0.17677669, %v11871_v39  ;;  %11875 = vst [vmem:[#allocation131_spill] sm:$0xff] %v9245_v20  ;;  %v11877_v39 = vld [vmem:[#allocation130_spill] sm:$0xff]  ;;  %11879 = vst [vmem:[#allocation180_spill] sm:$0xff] %v9258_v61  ;;  %v4229_v52 = vmax.f32 %v9258_v61, %v9250_v53 }
 0x681   : > { %4212 = vmax.xlane.f32.xlu0 %v4211_v1  ;;  %11882 = vst [vmem:[#allocation181_spill] sm:$0xff] %v9270_v8  ;;  %11885 = vst [vmem:[#allocation182_spill] sm:$0xff] %v9276_v5  ;;  %v4235_v61 = vmax.f32 %v9276_v5, %v9270_v8  ;;  %v9286_v41 = vmul.f32 0.17677669, %v9065_v29  ;;  %v9292_v10 = vmul.f32 0.17677669, %v9040_v42 }
 0x682   : > { %11872 = vst [vmem:[#allocation125_spill] sm:$0xff] %v9237_v38  ;;  %v3116_v1 = vmax.f32 %v9237_v38, %v9227_v11  ;;  %v11880_v11 = vld [vmem:[#allocation136_spill] sm:$0xff]  ;;  %v9304_v5 = vmul.f32 0.17677669, %v9146_v56  ;;  %v9310_v8 = vmul.f32 0.17677669, %v9126_v57 }
 0x683   : > { %v9265_v43 = vmul.f32 0.17677669, %v11880_v11  ;;  %v11886_v11 = vld [vmem:[#allocation141_spill] sm:$0xff]  ;;  %11888 = vst [vmem:[#allocation183_spill] sm:$0xff] %v9286_v41  ;;  %11891 = vst [vmem:[#allocation184_spill] sm:$0xff] %v9292_v10  ;;  %v4241_v29 = vmax.f32 %v9292_v10, %v9286_v41 }
 0x684   : > { %3111 = vmax.xlane.f32.xlu1 %v3110_v0  ;;  %v9255_v0 = vmul.f32 0.17677669, %v11877_v39  ;;  %v11883_v39 = vld [vmem:[#allocation134_spill] sm:$0xff]  ;;  %11894 = vst [vmem:[#allocation185_spill] sm:$0xff] %v9304_v5  ;;  %v11900_v10 = vld [vmem:[#allocation149_spill] sm:$0xff] }
 0x685   : > { %4218 = vmax.xlane.f32.xlu0 %v4217_v19  ;;  %v9260_v19 = vpop.f32.mrf.mxu0  ;;  %11881 = vst [vmem:[#allocation136_spill] sm:$0xff] %v9265_v43  ;;  %v9325_v57 = vmul.f32 0.17677669, %v4054_v17 }
 0x686   : > { %11878 = vst [vmem:[#allocation130_spill] sm:$0xff] %v9255_v0  ;;  %v3122_v18 = vmax.f32 %v9255_v0, %v9245_v20  ;;  %v9281_v0 = vmul.f32 0.17677669, %v11886_v11  ;;  %v11892_v11 = vld [vmem:[#allocation147_spill] sm:$0xff] }
 0x688   : > { %3117 = vmax.xlane.f32.xlu1 %v3116_v1  ;;  %v9273_v1 = vmul.f32 0.17677669, %v11883_v39  ;;  %11887 = vst [vmem:[#allocation141_spill] sm:$0xff] %v9281_v0  ;;  %v11889_v39 = vld [vmem:[#allocation138_spill] sm:$0xff] }
 0x689   : > { %4224 = vmax.xlane.f32.xlu0 %v4223_v54  ;;  %v4066_v54 = vpop.f32.mrf.mxu0  ;;  %v9289_v53 = vmul.f32 0.17677669, %v11889_v39  ;;  %v11895_v39 = vld [vmem:[#allocation146_spill] sm:$0xff] }
 0x68a   : > { %11884 = vst [vmem:[#allocation134_spill] sm:$0xff] %v9273_v1  ;;  %v3128_v20 = vmax.f32 %v9273_v1, %v9265_v43  ;;  %v9299_v43 = vmul.f32 0.17677669, %v11892_v11  ;;  %11896 = vst [vmem:[#allocation146_spill] sm:$0xff] %v9310_v8  ;;  %v11898_v11 = vld [vmem:[#allocation139_spill] sm:$0xff] }
 0x68b   : > { %11890 = vst [vmem:[#allocation138_spill] sm:$0xff] %v9289_v53 }
 0x68c   : > { %3123 = vmax.xlane.f32.xlu1 %v3122_v18  ;;  %v9294_v18 = vpop.f32.mrf.mxu0  ;;  %11893 = vst [vmem:[#allocation147_spill] sm:$0xff] %v9299_v43 }
 0x68d   : > { %4230 = vmax.xlane.f32.xlu0 %v4229_v52  ;;  %v4202_v52 = vmax.f32 %v9289_v53, %v9281_v0  ;;  %v11897_v0 = vld [vmem:[#allocation140_spill] sm:$0xff] }
 0x690   : > { %3129 = vmax.xlane.f32.xlu1 %v3128_v20  ;;  %v9307_v20 = vmul.f32 0.17677669, %v11895_v39  ;;  %v9321_v39 = vmul.f32 0.17677669, %v11900_v10 }
 0x691   : > { %4236 = vmax.xlane.f32.xlu0 %v4235_v61  ;;  %v9312_v61 = vpop.f32.mrf.mxu0 }
 0x692   : > { %v4208_v56 = vmax.f32 %v9307_v20, %v9299_v43 }
 0x693   : > { %v4076_v41 = vpop.f32.mrf.mxu0 }
 0x694   : > { %v1957_v42 = vpop.xlane.xlu1 %1956  ;;  %4203 = vmax.xlane.f32.xlu1 %v4202_v52  ;;  %v4247_v52 = vmax.f32 %v9310_v8, %v9304_v5  ;;  %v11903_v8 = vld [vmem:[#allocation144_spill] sm:$0xff]  ;;  %v11904_v5 = vld [vmem:[#allocation142_spill] sm:$0xff] }
 0x695   : > { %v2023_v53 = vsub.f32 %v11897_v0, %v1957_v42  ;;  %v2024_v1 = vsub.f32 %v11898_v11, %v1957_v42  ;;  %4242 = vmax.xlane.f32.xlu0 %v4241_v29  ;;  %v9316_v38 = vpop.f32.mrf.mxu1  ;;  %v9328_v42 = vmul.f32 0.17677669, %v11901_v12 }
 0x696   : > { %11899 = vst [vmem:[#allocation140_spill] sm:$0xff] %v9316_v38  ;;  %v9331_v38 = vmul.f32 0.17677669, %v9200_v37  ;;  %v9346_v37 = vmul.f32 0.17677669, %v4066_v54 }
 0x697   : > { %v2143_v2 = vmul.f32 1.442695, %v2023_v53  ;;  %v2145_v59 = vmul.f32 1.442695, %v2024_v1  ;;  %v2456_v0 = vpop.f32.mrf.mxu1  ;;  %v4214_v12 = vmax.f32 %v9328_v42, %v9321_v39  ;;  %v9341_v53 = vmul.f32 0.17677669, %v8830_v34 }
 0x698   : > { %v3811_v29 = vpop.permute.xlu1 %3810  ;;  %4209 = vmax.xlane.f32.xlu1 %v4208_v56  ;;  %v1960_v11 = vpop.xlane.xlu0 %1959  ;;  %v9352_v34 = vmul.f32 0.17677669, %v9260_v19  ;;  %v9358_v54 = vmul.f32 0.17677669, %v8876_v9  ;;  %v9367_v19 = vmul.f32 0.17677669, %v4076_v41 }
 0x699   : > { %6148 = vpow2.f32 %v2143_v2  ;;  %4248 = vmax.xlane.f32.xlu0 %v4247_v52  ;;  %v9333_v10 = vpop.f32.mrf.mxu1  ;;  %v2025_v17 = vsub.f32 %v11903_v8, %v1960_v11  ;;  %v2026_v43 = vsub.f32 %v11904_v5, %v1960_v11  ;;  %5762 = vmatmul.mubr.msk.f32.gmra.mxu0 %vm290_vm0, %v3811_v29  ;;  %v4253_v2 = vmax.f32 %v9331_v38, %v9325_v57  ;;  %v4078_v52 = vpop.f32.mrf.mxu0 }
 0x69a   : > { %11902 = vst [vmem:[#allocation139_spill] sm:$0xff] %v9333_v10  ;;  %6150 = vpow2.f32 %v2145_v59  ;;  %4128 = vmatprep.mubr.f32.mxu0 %v11613_v6  ;;  %v9349_v5 = vmul.f32 0.17677669, %v8817_v33  ;;  %v4259_v33 = vmax.f32 %v9352_v34, %v9346_v37  ;;  %v9365_v29 = vmul.f32 0.17677669, %v8854_v47  ;;  %11906 = vst [vmem:[#allocation148_spill] sm:$0xff] %v9367_v19 }
 0x69b   : > { %v2147_v1 = vmul.f32 1.442695, %v2025_v17  ;;  %v2149_v8 = vmul.f32 1.442695, %v2026_v43  ;;  %v2461_v56 = vpop.f32.mrf.mxu1  ;;  %v9362_v43 = vmul.f32 0.17677669, %v4078_v52 }
 0x69c   : > { %4215 = vmax.xlane.f32.xlu1 %v4214_v12  ;;  %v3813_v0 = vpop.permute.xlu0 %3812  ;;  %v4220_v59 = vmax.f32 %v9349_v5, %v9341_v53  ;;  %v4226_v11 = vmax.f32 %v9365_v29, %v9358_v54  ;;  %v9372_v17 = vmul.f32 0.17677669, %v8954_v40  ;;  %v9377_v12 = vmul.f32 0.17677669, %v8933_v45 }
 0x69d   : > { %6152 = vpow2.f32 %v2147_v1  ;;  %4254 = vmax.xlane.f32.xlu0 %v4253_v2  ;;  %5763 = vmatmul.mubr.msk.f32.gmra.mxu0 %vm290_vm0, %v3813_v0  ;;  %11905 = vst [vmem:[#allocation149_spill] sm:$0xff] %v9362_v43  ;;  %v4265_v9 = vmax.f32 %v9367_v19, %v9362_v43  ;;  %v9382_v2 = vmul.f32 0.17677669, %v9027_v4  ;;  %v9392_v52 = vmul.f32 0.17677669, %v9116_v25 }
 0x69e   : > { %6154 = vpow2.f32 %v2149_v8  ;;  %v4232_v41 = vmax.f32 %v9377_v12, %v9372_v17  ;;  %v9385_v8 = vmul.f32 0.17677669, %v9006_v63  ;;  %v9395_v4 = vmul.f32 0.17677669, %v9093_v36 }
 0x69f   : > { %v9410_v36 = vmul.f32 0.17677669, %v9252_v50 }
 0x6a0   : > { %4221 = vmax.xlane.f32.xlu1 %v4220_v59  ;;  %v4238_v56 = vmax.f32 %v9385_v8, %v9382_v2  ;;  %v4244_v59 = vmax.f32 %v9395_v4, %v9392_v52 }
 0x6a1   : > { %4260 = vmax.xlane.f32.xlu0 %v4259_v33  ;;  %v9402_v33 = vmul.f32 0.17677669, %v9188_v24  ;;  %v9418_v24 = vmul.f32 0.17677669, %v9312_v61 }
 0x6a4   : > { %4227 = vmax.xlane.f32.xlu1 %v4226_v11  ;;  %v9405_v11 = vmul.f32 0.17677669, %v9168_v35 }
 0x6a5   : > { %4266 = vmax.xlane.f32.xlu0 %v4265_v9  ;;  %v4082_v9 = vpop.f32.mrf.mxu0 }
 0x6a6   : > { %v6149_v47 = vpop.eup %6148  ;;  %v4250_v25 = vmax.f32 %v9405_v11, %v9402_v33 }
 0x6a7   : > { %v6151_v1 = vpop.eup %6150  ;;  %v4084_v35 = vpop.f32.mrf.mxu0 }
 0x6a8   : > { %2492 = vmatprep.mubr.f32.mxu1 %v6151_v1  ;;  %4233 = vmax.xlane.f32.xlu1 %v4232_v41  ;;  %v9387_v40 = vadd.f32 %v6151_v1, %v6149_v47  ;;  %v9421_v1 = vmul.f32 0.17677669, %v9294_v18 }
 0x6a9   : > { %2493 = vmatmul.mubr.f32.gmra.mxu1 %v6149_v47  ;;  %v9413_v47 = vmul.f32 0.17677669, %v9234_v62  ;;  %v9427_v62 = vmul.f32 0.17677669, %v4082_v9 }
 0x6aa   : > { %v6153_v45 = vpop.eup %6152  ;;  %11907 = vst [vmem:[#allocation144_spill] sm:$0xff] %v9421_v1  ;;  %v4262_v50 = vmax.f32 %v9421_v1, %v9418_v24 }
 0x6ab   : > { %v6155_v0 = vpop.eup %6154  ;;  %v4256_v41 = vmax.f32 %v9413_v47, %v9410_v36  ;;  %11909 = vst [vmem:[#allocation186_spill] sm:$0xff] %v9427_v62 }
 0x6ac   : > { %2497 = vmatprep.mubr.f32.mxu1 %v6155_v0  ;;  %4239 = vmax.xlane.f32.xlu1 %v4238_v56  ;;  %v9397_v63 = vadd.f32 %v6155_v0, %v6153_v45 }
 0x6ad   : > { %2498 = vmatmul.mubr.f32.gmra.mxu1 %v6153_v45  ;;  %v9425_v45 = vmul.f32 0.17677669, %v4084_v35 }
 0x6af   : > { %11908 = vst [vmem:[#allocation142_spill] sm:$0xff] %v9425_v45  ;;  %v4268_v61 = vmax.f32 %v9427_v62, %v9425_v45 }
 0x6b0   : > { %4245 = vmax.xlane.f32.xlu1 %v4244_v59 }
 0x6b4   : > { %4251 = vmax.xlane.f32.xlu1 %v4250_v25 }
 0x6b8   : > { %4257 = vmax.xlane.f32.xlu1 %v4256_v41 }
 0x6ba   : > { %v4088_v56 = vpop.f32.mrf.mxu0 }
 0x6bb   : > { %v9429_v59 = vmul.f32 0.17677669, %v4088_v56 }
 0x6bc   : > { %4263 = vmax.xlane.f32.xlu1 %v4262_v50  ;;  %v4090_v0 = vpop.f32.mrf.mxu0 }
 0x6bd   : > { %11910 = vst [vmem:[#allocation187_spill] sm:$0xff] %v9429_v59  ;;  %v9431_v25 = vmul.f32 0.17677669, %v4090_v0 }
 0x6be   : > { %v4094_v18 = vpop.f32.mrf.mxu0 }
 0x6bf   : > { %11911 = vst [vmem:[#allocation188_spill] sm:$0xff] %v9431_v25  ;;  %v4271_v41 = vmax.f32 %v9429_v59, %v9431_v25  ;;  %v9437_v35 = vmul.f32 0.17677669, %v4094_v18 }
 0x6c0   : > { %4269 = vmax.xlane.f32.xlu1 %v4268_v61  ;;  %v4096_v10 = vpop.f32.mrf.mxu0 }
 0x6c1   : > { %11912 = vst [vmem:[#allocation189_spill] sm:$0xff] %v9437_v35  ;;  %v9439_v19 = vmul.f32 0.17677669, %v4096_v10  ;;  %4272 = vmax.xlane.f32.xlu0 %v4271_v41 }
 0x6c3   : > { %11913 = vst [vmem:[#allocation190_spill] sm:$0xff] %v9439_v19  ;;  %v4274_v9 = vmax.f32 %v9437_v35, %v9439_v19  ;;  %v5776_v19 = vld [vmem:[%s7100_s8 + $0x360] sm:$0xff] }
 0x6c5   : > { %4275 = vmax.xlane.f32.xlu1 %v4274_v9 }
 0x6c9   : > { %v1963_v50 = vpop.xlane.xlu1 %1962 }
 0x6ca   : > { %v2027_v56 = vsub.f32 %v8852_v55, %v1963_v50  ;;  %v2028_v0 = vsub.f32 %v8847_v44, %v1963_v50  ;;  %v9445_v62 = vpop.f32.mrf.mxu1 }
 0x6cb   : > { %11914 = vst [vmem:[#allocation191_spill] sm:$0xff] %v9445_v62 }
 0x6cc   : > { %v2151_v45 = vmul.f32 1.442695, %v2027_v56  ;;  %v2153_v59 = vmul.f32 1.442695, %v2028_v0  ;;  %v2466_v61 = vpop.f32.mrf.mxu1 }
 0x6cd   : > { %v3037_v25 = vpop.xlane.xlu1 %3036  ;;  %v1966_v18 = vpop.xlane.xlu0 %1965 }
 0x6ce   : > { %6156 = vpow2.f32 %v2151_v45  ;;  %v3131_v10 = vsub.f32 %v8874_v22, %v3037_v25  ;;  %v3132_v41 = vsub.f32 %v8863_v16, %v3037_v25  ;;  %v9449_v43 = vpop.f32.mrf.mxu1  ;;  %v2029_v9 = vsub.f32 %v8869_v49, %v1966_v18 }
 0x6cf   : > { %11915 = vst [vmem:[#allocation192_spill] sm:$0xff] %v9449_v43  ;;  %6158 = vpow2.f32 %v2153_v59  ;;  %v2030_v55 = vsub.f32 %v8858_v60, %v1966_v18 }
 0x6d0   : > { %v3195_v44 = vmul.f32 1.442695, %v3131_v10  ;;  %v3197_v50 = vmul.f32 1.442695, %v3132_v41  ;;  %v2155_v62 = vmul.f32 1.442695, %v2029_v9  ;;  %v2471_v56 = vpop.f32.mrf.mxu1 }
 0x6d1   : > { %v2157_v0 = vmul.f32 1.442695, %v2030_v55  ;;  %v3040_v61 = vpop.xlane.xlu1 %3039  ;;  %v3061_v35 = vpop.xlane.xlu0 %3060  ;;  %v11916_v55 = vld [vmem:[#allocation155_spill] sm:$0xff] }
 0x6d2   : > { %6160 = vpow2.f32 %v3195_v44  ;;  %v3133_v45 = vsub.f32 %v8896_v26, %v3040_v61  ;;  %v3134_v22 = vsub.f32 %v8884_v48, %v3040_v61  ;;  %v3147_v16 = vsub.f32 %v8899_v7, %v3061_v35  ;;  %v11917_v7 = vld [vmem:[#allocation154_spill] sm:$0xff] }
 0x6d3   : > { %6162 = vpow2.f32 %v3197_v50  ;;  %v3148_v49 = vsub.f32 %v8887_v28, %v3061_v35 }
 0x6d4   : > { %6164 = vpow2.f32 %v2155_v62  ;;  %v3199_v59 = vmul.f32 1.442695, %v3133_v45  ;;  %v3201_v60 = vmul.f32 1.442695, %v3134_v22  ;;  %v3227_v25 = vmul.f32 1.442695, %v3147_v16 }
 0x6d5   : > { %6166 = vpow2.f32 %v2157_v0  ;;  %v3229_v18 = vmul.f32 1.442695, %v3148_v49  ;;  %v3043_v10 = vpop.xlane.xlu1 %3042  ;;  %v3067_v41 = vpop.xlane.xlu0 %3066  ;;  %v11918_v22 = vld [vmem:[#allocation156_spill] sm:$0xff] }
 0x6d6   : > { %6168 = vpow2.f32 %v3199_v59  ;;  %v3135_v9 = vsub.f32 %v8917_v32, %v3043_v10  ;;  %v3136_v26 = vsub.f32 %v8905_v27, %v3043_v10  ;;  %v3151_v48 = vsub.f32 %v11916_v55, %v3067_v41  ;;  %v11921_v55 = vld [vmem:[#allocation160_spill] sm:$0xff] }
 0x6d7   : > { %6170 = vpow2.f32 %v3201_v60  ;;  %v3152_v44 = vsub.f32 %v11917_v7, %v3067_v41 }
 0x6d8   : > { %6172 = vpow2.f32 %v3227_v25  ;;  %v3203_v28 = vmul.f32 1.442695, %v3135_v9  ;;  %v3205_v62 = vmul.f32 1.442695, %v3136_v26  ;;  %v3235_v35 = vmul.f32 1.442695, %v3151_v48 }
 0x6d9   : > { %6174 = vpow2.f32 %v3229_v18  ;;  %v3237_v50 = vmul.f32 1.442695, %v3152_v44  ;;  %v3046_v56 = vpop.xlane.xlu1 %3045  ;;  %v3073_v0 = vpop.xlane.xlu0 %3072  ;;  %v11922_v44 = vld [vmem:[#allocation158_spill] sm:$0xff] }
 0x6da   : > { %6176 = vpow2.f32 %v3203_v28  ;;  %v3137_v61 = vsub.f32 %v8938_v51, %v3046_v56  ;;  %v3138_v32 = vsub.f32 %v8926_v14, %v3046_v56  ;;  %v3155_v27 = vsub.f32 %v8941_v15, %v3073_v0  ;;  %v11919_v14 = vld [vmem:[#allocation159_spill] sm:$0xff]  ;;  %v11920_v15 = vld [vmem:[#allocation157_spill] sm:$0xff] }
 0x6db   : > { %v6157_v45 = vpop.eup %6156  ;;  %6178 = vpow2.f32 %v3205_v62  ;;  %v3156_v16 = vsub.f32 %v11918_v22, %v3073_v0 }
 0x6dc   : > { %v6159_v49 = vpop.eup %6158  ;;  %6180 = vpow2.f32 %v3235_v35  ;;  %v3207_v59 = vmul.f32 1.442695, %v3137_v61  ;;  %v3209_v60 = vmul.f32 1.442695, %v3138_v32  ;;  %v3243_v25 = vmul.f32 1.442695, %v3155_v27 }
 0x6dd   : > { %6182 = vpow2.f32 %v3237_v50  ;;  %v3245_v18 = vmul.f32 1.442695, %v3156_v16  ;;  %2502 = vmatprep.mubr.f32.mxu1 %v6159_v49  ;;  %v3049_v10 = vpop.xlane.xlu1 %3048  ;;  %v3079_v41 = vpop.xlane.xlu0 %3078  ;;  %v9465_v9 = vadd.f32 %v6159_v49, %v6157_v45 }
 0x6de   : > { %6184 = vpow2.f32 %v3207_v59  ;;  %v3139_v51 = vsub.f32 %v11919_v14, %v3049_v10  ;;  %v3140_v26 = vsub.f32 %v11920_v15, %v3049_v10  ;;  %2503 = vmatmul.mubr.f32.gmra.mxu1 %v6157_v45  ;;  %v3159_v48 = vsub.f32 %v11921_v55, %v3079_v41  ;;  %v11924_v45 = vld [vmem:[#allocation163_spill] sm:$0xff]  ;;  %v11925_v59 = vld [vmem:[#allocation161_spill] sm:$0xff]  ;;  %v11926_v10 = vld [vmem:[#allocation164_spill] sm:$0xff] }
 0x6df   : > { %v6161_v7 = vpop.eup %6160  ;;  %6186 = vpow2.f32 %v3209_v60  ;;  %v3160_v28 = vsub.f32 %v11922_v44, %v3079_v41 }
 0x6e0   : > { %v6163_v62 = vpop.eup %6162  ;;  %6188 = vpow2.f32 %v3243_v25  ;;  %v3211_v35 = vmul.f32 1.442695, %v3139_v51  ;;  %v3213_v50 = vmul.f32 1.442695, %v3140_v26  ;;  %v3251_v56 = vmul.f32 1.442695, %v3159_v48 }
 0x6e1   : > { %v6165_v0 = vpop.eup %6164  ;;  %6190 = vpow2.f32 %v3245_v18  ;;  %v3253_v61 = vmul.f32 1.442695, %v3160_v28  ;;  %v3052_v32 = vpop.xlane.xlu1 %3051  ;;  %v9471_v22 = vadd.f32 %v6163_v62, %v6161_v7  ;;  %v11927_v25 = vld [vmem:[#allocation162_spill] sm:$0xff] }
 0x6e2   : > { %v3085_v27 = vpop.xlane.xlu0 %3084  ;;  %v6167_v16 = vpop.eup %6166  ;;  %6192 = vpow2.f32 %v3211_v35  ;;  %v3141_v49 = vsub.f32 %v11924_v45, %v3052_v32  ;;  %v3142_v60 = vsub.f32 %v11925_v59, %v3052_v32  ;;  %v11931_v45 = vld [vmem:[#allocation90_spill] sm:$0xff] }
 0x6e3   : > { %11923 = vst [vmem:[#allocation155_spill] sm:$0xff] %v9471_v22  ;;  %v3163_v41 = vsub.f32 %v11926_v10, %v3085_v27  ;;  %v6169_v14 = vpop.eup %6168  ;;  %6194 = vpow2.f32 %v3213_v50  ;;  %2507 = vmatprep.mubr.f32.mxu1 %v6167_v16  ;;  %v3164_v51 = vsub.f32 %v11927_v25, %v3085_v27  ;;  %v9477_v15 = vadd.f32 %v6167_v16, %v6165_v0  ;;  %v11930_v16 = vld [vmem:[#allocation88_spill] sm:$0xff]  ;;  %v11932_v59 = vld [vmem:[#allocation166_spill] sm:$0xff] }
 0x6e4   : > { %v6171_v18 = vpop.eup %6170  ;;  %6196 = vpow2.f32 %v3251_v56  ;;  %v3215_v26 = vmul.f32 1.442695, %v3141_v49  ;;  %v3217_v55 = vmul.f32 1.442695, %v3142_v60  ;;  %2508 = vmatmul.mubr.f32.gmra.mxu1 %v6165_v0  ;;  %v5779_v60 = vld [vmem:[%s7100_s8 + $0x378] sm:$0xff] }
 0x6e5   : > { %11928 = vst [vmem:[#allocation154_spill] sm:$0xff] %v9477_v15  ;;  %v3259_v48 = vmul.f32 1.442695, %v3163_v41  ;;  %v9479_v44 = vpop.eup %6172  ;;  %6198 = vpow2.f32 %v3253_v61  ;;  %v3261_v28 = vmul.f32 1.442695, %v3164_v51  ;;  %3516 = vmatprep.mubr.f32.mxu1 %v6163_v62  ;;  %v3055_v35 = vpop.xlane.xlu1 %3054  ;;  %v9481_v32 = vadd.f32 %v6171_v18, %v6169_v14  ;;  %v11933_v61 = vld [vmem:[#allocation165_spill] sm:$0xff] }
 0x6e6   : > { %v3091_v50 = vpop.xlane.xlu0 %3090  ;;  %v9483_v27 = vpop.eup %6174  ;;  %6200 = vpow2.f32 %v3215_v26  ;;  %v3143_v56 = vsub.f32 %v11930_v16, %v3055_v35  ;;  %v3144_v49 = vsub.f32 %v11931_v45, %v3055_v35  ;;  %v5778_v62 = vld [vmem:[%s7100_s8 + $0x370] sm:$0xff] }
 0x6e7   : > { %11929 = vst [vmem:[#allocation156_spill] sm:$0xff] %v9481_v32  ;;  %v3167_v0 = vsub.f32 %v11932_v59, %v3091_v50  ;;  %v9489_v10 = vpop.eup %6176  ;;  %6202 = vpow2.f32 %v3217_v55  ;;  %v3168_v41 = vsub.f32 %v11933_v61, %v3091_v50  ;;  %v9495_v25 = vadd.f32 %v9483_v27, %v9479_v44  ;;  %v11956_v15 = vld [vmem:[#allocation108_spill] sm:$0xff] }
 0x6e8   : > { %v6179_v51 = vpop.eup %6178  ;;  %6204 = vpow2.f32 %v3259_v48  ;;  %v3219_v26 = vmul.f32 1.442695, %v3143_v56  ;;  %v3221_v43 = vmul.f32 1.442695, %v3144_v49  ;;  %3517 = vmatmul.mubr.f32.vlgmr.msra.gmra.mxu1 %v6161_v7  ;;  %v11936_v48 = vld [vmem:[#allocation92_spill] sm:$0xff]  ;;  %v11937_v7 = vld [vmem:[#allocation93_spill] sm:$0xff] }
 0x6e9   : > { %11934 = vst [vmem:[#allocation159_spill] sm:$0xff] %v9495_v25  ;;  %v3267_v35 = vmul.f32 1.442695, %v3167_v0  ;;  %v9497_v16 = vpop.eup %6180  ;;  %6206 = vpow2.f32 %v3261_v28  ;;  %v3269_v45 = vmul.f32 1.442695, %v3168_v41  ;;  %3521 = vmatprep.mubr.f32.mxu1 %v6171_v18  ;;  %v3058_v55 = vpop.xlane.xlu1 %3057  ;;  %4617 = vmatpush1.msra.mxu1 %v5779_v60  ;;  %v9500_v59 = vadd.f32 %v6179_v51, %v9489_v10  ;;  %v11938_v0 = vld [vmem:[#allocation168_spill] sm:$0xff] }
 0x6ea   : > { %v3097_v50 = vpop.xlane.xlu0 %3096  ;;  %v9502_v61 = vpop.eup %6182  ;;  %6208 = vpow2.f32 %v3219_v26  ;;  %v3145_v56 = vsub.f32 %v11936_v48, %v3058_v55  ;;  %v3146_v49 = vsub.f32 %v11937_v7, %v3058_v55  ;;  %4618 = vmatprep.subr.mxu1 %v11613_v6  ;;  %v5777_v28 = vld [vmem:[%s7100_s8 + $0x368] sm:$0xff] }
 0x6eb   : > { %11935 = vst [vmem:[#allocation157_spill] sm:$0xff] %v9500_v59  ;;  %v3171_v25 = vsub.f32 %v11938_v0, %v3097_v50  ;;  %v9509_v18 = vpop.eup %6184  ;;  %6210 = vpow2.f32 %v3221_v43  ;;  %v11939_v41 = vld [vmem:[#allocation167_spill] sm:$0xff]  ;;  %4619 = vmatpush1.msra.mxu1 %v5778_v62  ;;  %v9515_v32 = vadd.f32 %v9502_v61, %v9497_v16 }
 0x6ec   : > { %v3172_v60 = vsub.f32 %v11939_v41, %v3097_v50  ;;  %v6187_v26 = vpop.eup %6186  ;;  %6212 = vpow2.f32 %v3267_v35  ;;  %v3223_v48 = vmul.f32 1.442695, %v3145_v56  ;;  %v3225_v55 = vmul.f32 1.442695, %v3146_v49  ;;  %3522 = vmatmul.mubr.f32.gmra.mxu1 %v6169_v14  ;;  %4620 = vmatprep.subr.mxu1 %v11613_v6  ;;  %v11943_v49 = vld [vmem:[#allocation94_spill] sm:$0xff] }
 0x6ed   : > { %11940 = vst [vmem:[#allocation160_spill] sm:$0xff] %v9515_v32  ;;  %v3275_v7 = vmul.f32 1.442695, %v3171_v25  ;;  %v9518_v0 = vpop.eup %6188  ;;  %6214 = vpow2.f32 %v3269_v45  ;;  %3526 = vmatprep.mubr.f32.mxu1 %v6179_v51  ;;  %v3064_v62 = vpop.xlane.xlu1 %3063  ;;  %4621 = vmatpush1.msra.mxu1 %v5777_v28  ;;  %v9521_v41 = vadd.f32 %v6187_v26, %v9509_v18  ;;  %v11942_v25 = vld [vmem:[#allocation95_spill] sm:$0xff]  ;;  %v5775_v45 = vld [vmem:[%s7100_s8 + $0x358] sm:$0xff] }
 0x6ee   : > { %v3277_v43 = vmul.f32 1.442695, %v3172_v60  ;;  %v3103_v50 = vpop.xlane.xlu0 %3102  ;;  %v9523_v35 = vpop.eup %6190  ;;  %6216 = vpow2.f32 %v3223_v48  ;;  %v3149_v14 = vsub.f32 %v9045_v23, %v3064_v62  ;;  %v3150_v56 = vsub.f32 %v11942_v25, %v3064_v62  ;;  %4622 = vmatprep.subr.mxu1 %v11613_v6  ;;  %v11944_v60 = vld [vmem:[#allocation117_spill] sm:$0xff] }
 0x6ef   : > { %11941 = vst [vmem:[#allocation158_spill] sm:$0xff] %v9521_v41  ;;  %v3175_v32 = vsub.f32 %v11943_v49, %v3103_v50  ;;  %v9530_v51 = vpop.eup %6192  ;;  %6218 = vpow2.f32 %v3225_v55  ;;  %v3176_v28 = vsub.f32 %v11944_v60, %v3103_v50  ;;  %v4100_v59 = vpop.f32.mrf.mxu0  ;;  %4623 = vmatpush1.msra.mxu1 %v5776_v19  ;;  %v5774_v41 = vld [vmem:[%s7100_s8 + $0x350] sm:$0xff]  ;;  %v9536_v48 = vadd.f32 %v9523_v35, %v9518_v0 }
 0x6f0   : > { %v6195_v23 = vpop.eup %6194  ;;  %6220 = vpow2.f32 %v3275_v7  ;;  %v3231_v62 = vmul.f32 1.442695, %v3149_v14  ;;  %v3233_v25 = vmul.f32 1.442695, %v3150_v56  ;;  %3527 = vmatmul.mubr.f32.gmra.mxu1 %v9489_v10  ;;  %4624 = vmatprep.subr.mxu1 %v11613_v6  ;;  %v9542_v19 = vmul.f32 0.17677669, %v4100_v59 }
 0x6f1   : > { %11945 = vst [vmem:[#allocation163_spill] sm:$0xff] %v9536_v48  ;;  %v3283_v49 = vmul.f32 1.442695, %v3175_v32  ;;  %v9540_v55 = vpop.eup %6196  ;;  %6222 = vpow2.f32 %v3277_v43  ;;  %v3285_v50 = vmul.f32 1.442695, %v3176_v28  ;;  %3531 = vmatprep.mubr.f32.mxu1 %v6187_v26  ;;  %v3070_v60 = vpop.xlane.xlu1 %3069  ;;  %4625 = vmatpush1.msra.mxu1 %v5775_v45  ;;  %v9545_v7 = vadd.f32 %v6195_v23, %v9530_v51  ;;  %v5773_v59 = vld [vmem:[%s7100_s8 + $0x348] sm:$0xff] }
 0x6f2   : > { %v4102_v1 = vpop.f32.mrf.mxu0  ;;  %v9547_v14 = vpop.eup %6198  ;;  %6224 = vpow2.f32 %v3231_v62  ;;  %v3153_v32 = vsub.f32 %v9069_v21, %v3070_v60  ;;  %v3154_v10 = vsub.f32 %v9055_v30, %v3070_v60  ;;  %4626 = vmatprep.subr.mxu1 %v11613_v6 }
 0x6f3   : > { %11946 = vst [vmem:[#allocation161_spill] sm:$0xff] %v9545_v7  ;;  %v9551_v56 = vmul.f32 0.17677669, %v4102_v1  ;;  %v6201_v26 = vpop.eup %6200  ;;  %6226 = vpow2.f32 %v3233_v25  ;;  %4627 = vmatpush1.msra.mxu1 %v5774_v41  ;;  %v9557_v45 = vadd.f32 %v9547_v14, %v9540_v55  ;;  %v5772_v1 = vld [vmem:[%s7100_s8 + $0x340] sm:$0xff] }
 0x6f4   : > { %v4106_v43 = vpop.f32.mrf.mxu0  ;;  %v6203_v28 = vpop.eup %6202  ;;  %6228 = vpow2.f32 %v3283_v49  ;;  %v3239_v62 = vmul.f32 1.442695, %v3153_v32  ;;  %v3241_v21 = vmul.f32 1.442695, %v3154_v10  ;;  %3532 = vmatmul.mubr.f32.gmra.mxu1 %v9509_v18  ;;  %4628 = vmatprep.subr.mxu1 %v11613_v6 }
 0x6f5   : > { %11947 = vst [vmem:[#allocation164_spill] sm:$0xff] %v9557_v45  ;;  %v4277_v30 = vmax.f32 %v9542_v19, %v9551_v56  ;;  %v9564_v25 = vpop.eup %6204  ;;  %6230 = vpow2.f32 %v3285_v50  ;;  %3536 = vmatprep.mubr.f32.mxu1 %v6195_v23  ;;  %v9566_v41 = vmul.f32 0.17677669, %v4106_v43  ;;  %v3076_v60 = vpop.xlane.xlu1 %3075  ;;  %4629 = vmatpush1.msra.mxu1 %v5773_v59  ;;  %v5771_v50 = vld [vmem:[%s7100_s8 + $0x338] sm:$0xff]  ;;  %v9576_v43 = vadd.f32 %v6203_v28, %v6201_v26 }
 0x6f6   : > { %v4108_v45 = vpop.f32.mrf.mxu0  ;;  %v9568_v49 = vpop.eup %6206  ;;  %6232 = vpow2.f32 %v3239_v62  ;;  %v3157_v18 = vsub.f32 %v9097_v31, %v3076_v60  ;;  %v3158_v32 = vsub.f32 %v9083_v3, %v3076_v60  ;;  %4630 = vmatprep.subr.mxu1 %v11613_v6  ;;  %v5770_v31 = vld [vmem:[%s7100_s8 + $0x330] sm:$0xff] }
 0x6f7   : > { %v9572_v10 = vmul.f32 0.17677669, %v4108_v45  ;;  %4278 = vmax.xlane.f32.xlu0 %v4277_v30  ;;  %v6209_v23 = vpop.eup %6208  ;;  %6234 = vpow2.f32 %v3241_v21  ;;  %4631 = vmatpush1.msra.mxu1 %v5772_v1  ;;  %11948 = vst [vmem:[#allocation162_spill] sm:$0xff] %v9576_v43  ;;  %v11950_v1 = vld [vmem:[#allocation104_spill] sm:$0xff]  ;;  %v9595_v43 = vadd.f32 %v9568_v49, %v9564_v25 }
 0x6f8   : > { %v6211_v59 = vpop.eup %6210  ;;  %v3247_v48 = vmul.f32 1.442695, %v3157_v18  ;;  %v3249_v7 = vmul.f32 1.442695, %v3158_v32  ;;  %3537 = vmatmul.mubr.f32.gmra.mxu1 %v9530_v51  ;;  %4632 = vmatprep.subr.mxu1 %v11613_v6  ;;  %v11951_v51 = vld [vmem:[#allocation105_spill] sm:$0xff]  ;;  %v5769_v32 = vld [vmem:[%s7100_s8 + $0x328] sm:$0xff] }
 0x6f9   : > { %v4280_v3 = vmax.f32 %v9566_v41, %v9572_v10  ;;  %v9583_v45 = vpop.eup %6212  ;;  %3541 = vmatprep.mubr.f32.mxu1 %v6203_v28  ;;  %v3082_v62 = vpop.xlane.xlu1 %3081  ;;  %4633 = vmatpush1.msra.mxu1 %v5771_v50  ;;  %v9585_v21 = vadd.f32 %v6211_v59, %v6209_v23  ;;  %11952 = vst [vmem:[#allocation90_spill] sm:$0xff] %v9595_v43 }
 0x6fa   : > { %v9587_v30 = vpop.eup %6214  ;;  %6236 = vpow2.f32 %v3247_v48  ;;  %v3161_v60 = vsub.f32 %v11950_v1, %v3082_v62  ;;  %v3162_v18 = vsub.f32 %v11951_v51, %v3082_v62  ;;  %4634 = vmatprep.subr.mxu1 %v11613_v6 }
 0x6fb   : > { %11949 = vst [vmem:[#allocation88_spill] sm:$0xff] %v9585_v21  ;;  %4281 = vmax.xlane.f32.xlu1 %v4280_v3  ;;  %v6217_v28 = vpop.eup %6216  ;;  %6238 = vpow2.f32 %v3249_v7  ;;  %4635 = vmatpush1.msra.mxu1 %v5770_v31  ;;  %v9599_v50 = vadd.f32 %v9587_v30, %v9583_v45  ;;  %v5768_v3 = vld [vmem:[%s7100_s8 + $0x320] sm:$0xff] }
 0x6fc   : > { %v6219_v48 = vpop.eup %6218  ;;  %v3255_v1 = vmul.f32 1.442695, %v3161_v60  ;;  %v3257_v21 = vmul.f32 1.442695, %v3162_v18  ;;  %3542 = vmatmul.mubr.f32.gmra.mxu1 %v6201_v26  ;;  %4636 = vmatprep.subr.mxu1 %v11613_v6  ;;  %v11955_v31 = vld [vmem:[#allocation106_spill] sm:$0xff]  ;;  %v5767_v26 = vld [vmem:[%s7100_s8 + $0x318] sm:$0xff] }
 0x6fd   : > { %11953 = vst [vmem:[#allocation166_spill] sm:$0xff] %v9599_v50  ;;  %v9603_v62 = vpop.eup %6220  ;;  %3546 = vmatprep.mubr.f32.mxu1 %v6211_v59  ;;  %v3088_v51 = vpop.xlane.xlu1 %3087  ;;  %4637 = vmatpush1.msra.mxu1 %v5769_v32  ;;  %v9605_v43 = vadd.f32 %v6219_v48, %v6217_v28 }
 0x6fe   : > { %v9607_v7 = vpop.eup %6222  ;;  %6240 = vpow2.f32 %v3255_v1  ;;  %v3165_v50 = vsub.f32 %v11955_v31, %v3088_v51  ;;  %v3166_v60 = vsub.f32 %v11956_v15, %v3088_v51  ;;  %4638 = vmatprep.subr.mxu1 %v11613_v6  ;;  %v5766_v15 = vld [vmem:[%s7100_s8 + $0x310] sm:$0xff] }
 0x6ff   : > { %11954 = vst [vmem:[#allocation165_spill] sm:$0xff] %v9605_v43  ;;  %v9613_v18 = vpop.eup %6224  ;;  %6242 = vpow2.f32 %v3257_v21  ;;  %v9615_v22 = vpop.f32.mrf.mxu1  ;;  %4639 = vmatpush1.msra.mxu1 %v5768_v3  ;;  %v9619_v59 = vadd.f32 %v9607_v7, %v9603_v62 }
 0x700   : > { %11957 = vst [vmem:[#allocation92_spill] sm:$0xff] %v9615_v22  ;;  %v6227_v32 = vpop.eup %6226  ;;  %v3263_v43 = vmul.f32 1.442695, %v3165_v50  ;;  %v3265_v1 = vmul.f32 1.442695, %v3166_v60  ;;  %3547 = vmatmul.mubr.f32.gmra.mxu1 %v6209_v23  ;;  %4640 = vmatprep.subr.mxu1 %v11613_v6  ;;  %v5765_v60 = vld [vmem:[%s7100_s8 + $0x308] sm:$0xff] }
 0x701   : > { %11958 = vst [vmem:[#allocation93_spill] sm:$0xff] %v9619_v59  ;;  %v9623_v51 = vpop.eup %6228  ;;  %3551 = vmatprep.mubr.f32.mxu1 %v6219_v48  ;;  %v2476_v31 = vpop.f32.mrf.mxu1  ;;  %4641 = vmatpush1.msra.mxu1 %v5767_v26  ;;  %v9626_v3 = vadd.f32 %v6227_v32, %v9613_v18 }
 0x702   : > { %v3094_v21 = vpop.xlane.xlu1 %3093  ;;  %v9628_v22 = vpop.eup %6230  ;;  %6244 = vpow2.f32 %v3263_v43  ;;  %4642 = vmatprep.subr.mxu1 %v11613_v6 }
 0x703   : > { %11959 = vst [vmem:[#allocation168_spill] sm:$0xff] %v9626_v3  ;;  %v3169_v50 = vsub.f32 %v9163_v58, %v3094_v21  ;;  %v3170_v23 = vsub.f32 %v9152_v46, %v3094_v21  ;;  %v9634_v59 = vpop.eup %6232  ;;  %6246 = vpow2.f32 %v3265_v1  ;;  %v9636_v48 = vpop.f32.mrf.mxu1  ;;  %4643 = vmatpush1.msra.mxu1 %v5766_v15  ;;  %v9640_v26 = vadd.f32 %v9628_v22, %v9623_v51  ;;  %v5764_v58 = vld [vmem:[%s7100_s8 + $0x300] sm:$0xff] }
 0x704   : > { %11960 = vst [vmem:[#allocation167_spill] sm:$0xff] %v9636_v48  ;;  %v6235_v31 = vpop.eup %6234  ;;  %3552 = vmatmul.mubr.f32.gmra.mxu1 %v6217_v28  ;;  %4644 = vmatprep.subr.mxu1 %v11613_v6  ;;  %v11963_v48 = vld [vmem:[#allocation115_spill] sm:$0xff]  ;;  %v5795_v28 = vld [vmem:[%s7100_s8 + $0x3f8] sm:$0xff] }
 0x705   : > { %11961 = vst [vmem:[#allocation95_spill] sm:$0xff] %v9640_v26  ;;  %v3271_v43 = vmul.f32 1.442695, %v3169_v50  ;;  %v3273_v3 = vmul.f32 1.442695, %v3170_v23  ;;  %3556 = vmatprep.mubr.f32.mxu1 %v9483_v27  ;;  %v2481_v46 = vpop.f32.mrf.mxu1  ;;  %4645 = vmatpush1.msra.mxu1 %v5765_v60  ;;  %v9646_v1 = vadd.f32 %v6235_v31, %v9634_v59 }
 0x706   : > { %v3100_v21 = vpop.xlane.xlu1 %3099  ;;  %4646 = vmatprep.subr.mxu1 %v11613_v6  ;;  %v11966_v46 = vld [vmem:[#allocation119_spill] sm:$0xff] }
 0x707   : > { %11962 = vst [vmem:[#allocation94_spill] sm:$0xff] %v9646_v1  ;;  %6248 = vpow2.f32 %v3271_v43  ;;  %v3173_v15 = vsub.f32 %v9183_v13, %v3100_v21  ;;  %v3174_v26 = vsub.f32 %v11963_v48, %v3100_v21  ;;  %v9652_v50 = vpop.eup %6236  ;;  %4647 = vmatpush1.msra.mxu1 %v5764_v58  ;;  %v5794_v43 = vld [vmem:[%s7100_s8 + $0x3f0] sm:$0xff] }
 0x708   : > { %6250 = vpow2.f32 %v3273_v3  ;;  %v9654_v27 = vpop.eup %6238  ;;  %3557 = vmatmul.mubr.f32.gmra.mxu1 %v9479_v44  ;;  %4648 = vmatprep.subr.mxu1 %v11613_v6  ;;  %v11965_v3 = vld [vmem:[#allocation118_spill] sm:$0xff] }
 0x709   : > { %v3279_v23 = vmul.f32 1.442695, %v3173_v15  ;;  %v3281_v60 = vmul.f32 1.442695, %v3174_v26  ;;  %3561 = vmatprep.mubr.f32.mxu1 %v6227_v32  ;;  %4649 = vmatpush2.msra.mxu1 %v5795_v28  ;;  %v9661_v48 = vadd.f32 %v9654_v27, %v9652_v50  ;;  %v5793_v26 = vld [vmem:[%s7100_s8 + $0x3e8] sm:$0xff] }
 0x70a   : > { %v3106_v13 = vpop.xlane.xlu1 %3105  ;;  %4650 = vmatprep.subr.mxu1 %v11613_v6 }
 0x70b   : > { %11964 = vst [vmem:[#allocation117_spill] sm:$0xff] %v9661_v48  ;;  %6252 = vpow2.f32 %v3279_v23  ;;  %v3177_v58 = vsub.f32 %v11965_v3, %v3106_v13  ;;  %v3178_v21 = vsub.f32 %v11966_v46, %v3106_v13  ;;  %v9667_v44 = vpop.eup %6240  ;;  %4651 = vmatpush2.msra.mxu1 %v5794_v43  ;;  %v5792_v23 = vld [vmem:[%s7100_s8 + $0x3e0] sm:$0xff]  ;;  %v11969_v46 = vld [vmem:[#allocation123_spill] sm:$0xff] }
 0x70c   : > { %6254 = vpow2.f32 %v3281_v60  ;;  %v9669_v32 = vpop.eup %6242  ;;  %3562 = vmatmul.mubr.f32.gmra.mxu1 %v9613_v18  ;;  %4652 = vmatprep.subr.mxu1 %v11613_v6  ;;  %v11968_v60 = vld [vmem:[#allocation122_spill] sm:$0xff]  ;;  %v5791_v18 = vld [vmem:[%s7100_s8 + $0x3d8] sm:$0xff] }
 0x70d   : > { %v3287_v15 = vmul.f32 1.442695, %v3177_v58  ;;  %v3289_v28 = vmul.f32 1.442695, %v3178_v21  ;;  %3566 = vmatprep.mubr.f32.mxu1 %v9502_v61  ;;  %4653 = vmatpush2.msra.mxu1 %v5793_v26  ;;  %v9677_v3 = vadd.f32 %v9669_v32, %v9667_v44 }
 0x70e   : > { %v3112_v13 = vpop.xlane.xlu1 %3111  ;;  %4654 = vmatprep.subr.mxu1 %v11613_v6 }
 0x70f   : > { %11967 = vst [vmem:[#allocation104_spill] sm:$0xff] %v9677_v3  ;;  %6256 = vpow2.f32 %v3287_v15  ;;  %v3181_v43 = vsub.f32 %v11968_v60, %v3112_v13  ;;  %v3182_v58 = vsub.f32 %v11969_v46, %v3112_v13  ;;  %v9683_v21 = vpop.eup %6244  ;;  %4655 = vmatpush2.msra.mxu1 %v5792_v23  ;;  %v5790_v15 = vld [vmem:[%s7100_s8 + $0x3d0] sm:$0xff]  ;;  %v11972_v46 = vld [vmem:[#allocation127_spill] sm:$0xff] }
 0x710   : > { %6258 = vpow2.f32 %v3289_v28  ;;  %v9685_v61 = vpop.eup %6246  ;;  %3567 = vmatmul.mubr.f32.gmra.mxu1 %v9497_v16  ;;  %4656 = vmatprep.subr.mxu1 %v11613_v6  ;;  %v11971_v28 = vld [vmem:[#allocation125_spill] sm:$0xff] }
 0x711   : > { %v3295_v26 = vmul.f32 1.442695, %v3181_v43  ;;  %v3297_v48 = vmul.f32 1.442695, %v3182_v58  ;;  %3571 = vmatprep.mubr.f32.mxu1 %v6235_v31  ;;  %4657 = vmatpush2.msra.mxu1 %v5791_v18  ;;  %v9692_v13 = vadd.f32 %v9685_v61, %v9683_v21  ;;  %v5789_v43 = vld [vmem:[%s7100_s8 + $0x3c8] sm:$0xff] }
 0x712   : > { %v3118_v60 = vpop.xlane.xlu1 %3117  ;;  %4658 = vmatprep.subr.mxu1 %v11613_v6 }
 0x713   : > { %11970 = vst [vmem:[#allocation105_spill] sm:$0xff] %v9692_v13  ;;  %6260 = vpow2.f32 %v3295_v26  ;;  %v3185_v23 = vsub.f32 %v11971_v28, %v3118_v60  ;;  %v3186_v3 = vsub.f32 %v11972_v46, %v3118_v60  ;;  %4659 = vmatpush2.msra.mxu1 %v5790_v15  ;;  %v5788_v26 = vld [vmem:[%s7100_s8 + $0x3c0] sm:$0xff]  ;;  %v11975_v46 = vld [vmem:[#allocation131_spill] sm:$0xff] }
 0x714   : > { %v9698_v16 = vpop.eup %6248  ;;  %6262 = vpow2.f32 %v3297_v48  ;;  %3572 = vmatmul.mubr.f32.gmra.mxu1 %v9634_v59  ;;  %4660 = vmatprep.subr.mxu1 %v11613_v6  ;;  %v11974_v48 = vld [vmem:[#allocation130_spill] sm:$0xff]  ;;  %v5787_v59 = vld [vmem:[%s7100_s8 + $0x3b8] sm:$0xff] }
 0x715   : > { %v9700_v31 = vpop.eup %6250  ;;  %v3303_v58 = vmul.f32 1.442695, %v3185_v23  ;;  %v3305_v18 = vmul.f32 1.442695, %v3186_v3  ;;  %3576 = vmatprep.mubr.f32.mxu1 %v9523_v35  ;;  %4661 = vmatpush2.msra.mxu1 %v5789_v43 }
 0x716   : > { %v3124_v60 = vpop.xlane.xlu1 %3123  ;;  %v9708_v28 = vadd.f32 %v9700_v31, %v9698_v16  ;;  %4662 = vmatprep.subr.mxu1 %v11613_v6 }
 0x717   : > { %6264 = vpow2.f32 %v3303_v58  ;;  %v3189_v15 = vsub.f32 %v11974_v48, %v3124_v60  ;;  %v3190_v23 = vsub.f32 %v11975_v46, %v3124_v60  ;;  %4663 = vmatpush2.msra.mxu1 %v5788_v26  ;;  %v5786_v58 = vld [vmem:[%s7100_s8 + $0x3b0] sm:$0xff] }
 0x718   : > { %11973 = vst [vmem:[#allocation106_spill] sm:$0xff] %v9708_v28  ;;  %v9714_v3 = vpop.eup %6252  ;;  %6266 = vpow2.f32 %v3305_v18  ;;  %3577 = vmatmul.mubr.f32.gmra.mxu1 %v9518_v0  ;;  %4664 = vmatprep.subr.mxu1 %v11613_v6  ;;  %v11977_v18 = vld [vmem:[#allocation134_spill] sm:$0xff]  ;;  %v11978_v46 = vld [vmem:[#allocation136_spill] sm:$0xff]  ;;  %v5785_v0 = vld [vmem:[%s7100_s8 + $0x3a8] sm:$0xff] }
 0x719   : > { %v9716_v35 = vpop.eup %6254  ;;  %v3311_v43 = vmul.f32 1.442695, %v3189_v15  ;;  %v3313_v13 = vmul.f32 1.442695, %v3190_v23  ;;  %3581 = vmatprep.mubr.f32.mxu1 %v9654_v27  ;;  %4665 = vmatpush2.msra.mxu1 %v5787_v59 }
 0x71a   : > { %v3130_v60 = vpop.xlane.xlu1 %3129  ;;  %v9724_v48 = vadd.f32 %v9716_v35, %v9714_v3  ;;  %4666 = vmatprep.subr.mxu1 %v11613_v6 }
 0x71b   : > { %6268 = vpow2.f32 %v3311_v43  ;;  %v3193_v26 = vsub.f32 %v11977_v18, %v3130_v60  ;;  %v3194_v15 = vsub.f32 %v11978_v46, %v3130_v60  ;;  %4667 = vmatpush2.msra.mxu1 %v5786_v58  ;;  %v5784_v43 = vld [vmem:[%s7100_s8 + $0x3a0] sm:$0xff]  ;;  %v9737_v18 = vpop.xlane.xlu0 %3108  ;;  %v11981_v46 = vld [vmem:[#allocation141_spill] sm:$0xff] }
 0x71c   : > { %11976 = vst [vmem:[#allocation108_spill] sm:$0xff] %v9724_v48  ;;  %v9730_v23 = vpop.eup %6256  ;;  %6270 = vpow2.f32 %v3313_v13  ;;  %3582 = vmatmul.mubr.f32.gmra.mxu1 %v9652_v50  ;;  %4668 = vmatprep.subr.mxu1 %v11613_v6  ;;  %v11980_v58 = vld [vmem:[#allocation138_spill] sm:$0xff]  ;;  %v5783_v50 = vld [vmem:[%s7100_s8 + $0x398] sm:$0xff] }
 0x71d   : > { %v9732_v27 = vpop.eup %6258  ;;  %v3319_v59 = vmul.f32 1.442695, %v3193_v26  ;;  %v3321_v28 = vmul.f32 1.442695, %v3194_v15  ;;  %3586 = vmatprep.mubr.f32.mxu1 %v9547_v14  ;;  %4669 = vmatpush2.msra.mxu1 %v5785_v0 }
 0x71e   : > { %v4204_v60 = vpop.xlane.xlu1 %4203  ;;  %v9742_v13 = vadd.f32 %v9732_v27, %v9730_v23  ;;  %4670 = vmatprep.subr.mxu1 %v11613_v6 }
 0x71f   : > { %6272 = vpow2.f32 %v3319_v59  ;;  %v4297_v26 = vsub.f32 %v11980_v58, %v4204_v60  ;;  %v4298_v15 = vsub.f32 %v11981_v46, %v4204_v60  ;;  %4671 = vmatpush2.msra.mxu1 %v5784_v43  ;;  %v5782_v59 = vld [vmem:[%s7100_s8 + $0x390] sm:$0xff]  ;;  %v11983_v43 = vld [vmem:[#allocation147_spill] sm:$0xff] }
 0x720   : > { %11979 = vst [vmem:[#allocation115_spill] sm:$0xff] %v9742_v13  ;;  %v9748_v48 = vpop.eup %6260  ;;  %6274 = vpow2.f32 %v3321_v28  ;;  %3587 = vmatmul.mubr.f32.gmra.mxu1 %v9540_v55  ;;  %4672 = vmatprep.subr.mxu1 %v11613_v6  ;;  %v5781_v55 = vld [vmem:[%s7100_s8 + $0x388] sm:$0xff] }
 0x721   : > { %v9750_v14 = vpop.eup %6262  ;;  %v4363_v0 = vmul.f32 1.442695, %v4297_v26  ;;  %v4365_v1 = vmul.f32 1.442695, %v4298_v15  ;;  %3591 = vmatprep.mubr.f32.mxu1 %v9669_v32  ;;  %4673 = vmatpush2.msra.mxu1 %v5783_v50  ;;  %v9766_v15 = vpop.xlane.xlu0 %3114 }
 0x722   : > { %v4210_v60 = vpop.xlane.xlu1 %4209  ;;  %v9758_v58 = vadd.f32 %v9750_v14, %v9748_v48  ;;  %4674 = vmatprep.subr.mxu1 %v11613_v6 }
 0x723   : > { %6276 = vpow2.f32 %v4363_v0  ;;  %v4301_v28 = vsub.f32 %v9307_v20, %v4210_v60  ;;  %v4302_v26 = vsub.f32 %v11983_v43, %v4210_v60  ;;  %4675 = vmatpush2.msra.mxu1 %v5782_v59  ;;  %v5780_v20 = vld [vmem:[%s7100_s8 + $0x380] sm:$0xff] }
 0x724   : > { %11982 = vst [vmem:[#allocation118_spill] sm:$0xff] %v9758_v58  ;;  %v9764_v46 = vpop.eup %6264  ;;  %6278 = vpow2.f32 %v4365_v1  ;;  %3592 = vmatmul.mubr.f32.gmra.mxu1 %v9667_v44  ;;  %4676 = vmatprep.subr.mxu1 %v11613_v6 }
 0x725   : > { %v9768_v32 = vpop.eup %6266  ;;  %v4371_v50 = vmul.f32 1.442695, %v4301_v28  ;;  %v4373_v13 = vmul.f32 1.442695, %v4302_v26  ;;  %3596 = vmatprep.mubr.f32.mxu1 %v9568_v49  ;;  %v4112_v0 = vpop.f32.mrf.mxu0  ;;  %4677 = vmatpush2.msra.mxu1 %v5781_v55 }
 0x726   : > { %v9776_v60 = vadd.f32 %v9768_v32, %v9764_v46  ;;  %4678 = vmatprep.subr.mxu1 %v11613_v6  ;;  %v9783_v28 = vmul.f32 0.17677669, %v4112_v0  ;;  %v3121_v43 = vpop.xlane.xlu0 %3120 }
 0x727   : > { %6280 = vpow2.f32 %v4371_v50  ;;  %v4114_v59 = vpop.f32.mrf.mxu0  ;;  %4679 = vmatpush2.msra.mxu1 %v5780_v20 }
 0x728   : > { %11984 = vst [vmem:[#allocation119_spill] sm:$0xff] %v9776_v60  ;;  %v9779_v1 = vpop.eup %6268  ;;  %6282 = vpow2.f32 %v4373_v13  ;;  %11985 = vst [vmem:[#allocation122_spill] sm:$0xff] %v9783_v28  ;;  %3597 = vmatmul.mubr.f32.gmra.mxu1 %v9564_v25  ;;  %v9786_v49 = vmul.f32 0.17677669, %v4114_v59 }
 0x729   : > { %v9781_v44 = vpop.eup %6270  ;;  %3601 = vmatprep.mubr.f32.mxu1 %v9685_v61  ;;  %v4118_v26 = vpop.f32.mrf.mxu0 }
 0x72a   : > { %11986 = vst [vmem:[#allocation123_spill] sm:$0xff] %v9786_v49  ;;  %v9791_v6 = vadd.f32 %v9781_v44, %v9779_v1  ;;  %v4283_v13 = vmax.f32 %v9783_v28, %v9786_v49  ;;  %v9799_v0 = vmul.f32 0.17677669, %v4118_v26  ;;  %v3127_v58 = vpop.xlane.xlu0 %3126 }
 0x72b   : > { %v4120_v50 = vpop.f32.mrf.mxu0 }
 0x72c   : > { %11987 = vst [vmem:[#allocation125_spill] sm:$0xff] %v9791_v6  ;;  %v9795_v55 = vpop.eup %6272  ;;  %11988 = vst [vmem:[#allocation127_spill] sm:$0xff] %v9799_v0  ;;  %3602 = vmatmul.mubr.f32.gmra.mxu1 %v9683_v21  ;;  %v9802_v25 = vmul.f32 0.17677669, %v4120_v50  ;;  %4284 = vmax.xlane.f32.xlu0 %v4283_v13  ;;  %v11990_v6 = vld [vmem:[#allocation99_spill] sm:$0xff]  ;;  %v11993_v21 = vld [vmem:[#allocation98_spill] sm:$0xff] }
 0x72d   : > { %v9797_v20 = vpop.eup %6274  ;;  %3606 = vmatprep.mubr.f32.mxu1 %v9587_v30  ;;  %v3180_v60 = vsub.f32 %v11990_v6, %v9737_v18  ;;  %v3179_v13 = vsub.f32 %v11993_v21, %v9737_v18  ;;  %v11996_v18 = vld [vmem:[#allocation103_spill] sm:$0xff] }
 0x72e   : > { %11989 = vst [vmem:[#allocation130_spill] sm:$0xff] %v9802_v25  ;;  %v4286_v61 = vmax.f32 %v9799_v0, %v9802_v25  ;;  %v9813_v26 = vadd.f32 %v9797_v20, %v9795_v55  ;;  %v3184_v21 = vsub.f32 %v11996_v18, %v9766_v15 }
 0x72f   : > { %v3293_v50 = vmul.f32 1.442695, %v3180_v60 }
 0x730   : > { %v9807_v59 = vpop.eup %6276  ;;  %11991 = vst [vmem:[#allocation131_spill] sm:$0xff] %v9813_v26  ;;  %3607 = vmatmul.mubr.f32.gmra.mxu1 %v9583_v45  ;;  %4287 = vmax.xlane.f32.xlu1 %v4286_v61  ;;  %v4201_v45 = vpop.xlane.xlu0 %4200  ;;  %v3291_v61 = vmul.f32 1.442695, %v3179_v13  ;;  %v3301_v0 = vmul.f32 1.442695, %v3184_v21  ;;  %v11999_v13 = vld [vmem:[#allocation129_spill] sm:$0xff] }
 0x731   : > { %v9815_v49 = vpop.eup %6278  ;;  %3611 = vmatprep.mubr.f32.mxu1 %v9700_v31  ;;  %6284 = vpow2.f32 %v3293_v50 }
 0x732   : > { %v9821_v30 = vadd.f32 %v9815_v49, %v9807_v59  ;;  %6286 = vpow2.f32 %v3291_v61  ;;  %v9855_v61 = vpop.xlane.xlu1 %4215 }
 0x733   : > { %6288 = vpow2.f32 %v3301_v0 }
 0x734   : > { %11992 = vst [vmem:[#allocation134_spill] sm:$0xff] %v9821_v30  ;;  %v9825_v6 = vpop.eup %6280  ;;  %3612 = vmatmul.mubr.f32.gmra.mxu1 %v9698_v16  ;;  %v9830_v26 = vpop.f32.mrf.mxu1  ;;  %v11998_v16 = vld [vmem:[#allocation101_spill] sm:$0xff] }
 0x735   : > { %v9827_v25 = vpop.eup %6282  ;;  %11994 = vst [vmem:[#allocation136_spill] sm:$0xff] %v9830_v26  ;;  %3616 = vmatprep.mubr.f32.mxu1 %v9607_v7  ;;  %v3183_v7 = vsub.f32 %v11998_v16, %v9766_v15  ;;  %v9845_v28 = vpop.xlane.xlu0 %4206 }
 0x736   : > { %v9835_v31 = vadd.f32 %v9827_v25, %v9825_v6  ;;  %v2486_v30 = vpop.f32.mrf.mxu1 }
 0x737   : > { %v3299_v30 = vmul.f32 1.442695, %v3183_v7 }
 0x738   : > { %11995 = vst [vmem:[#allocation138_spill] sm:$0xff] %v9835_v31  ;;  %3617 = vmatmul.mubr.f32.gmra.mxu1 %v9603_v62  ;;  %v9840_v60 = vpop.f32.mrf.mxu1  ;;  %v3188_v62 = vsub.f32 %v11999_v13, %v3121_v43 }
 0x739   : > { %11997 = vst [vmem:[#allocation141_spill] sm:$0xff] %v9840_v60  ;;  %3621 = vmatprep.mubr.f32.mxu1 %v9716_v35  ;;  %v9851_v50 = vpop.xlane.xlu0 %4212  ;;  %6290 = vpow2.f32 %v3299_v30  ;;  %v12000_v35 = vld [vmem:[#allocation128_spill] sm:$0xff] }
 0x73a   : > { %v2491_v26 = vpop.f32.mrf.mxu1  ;;  %v3187_v15 = vsub.f32 %v12000_v35, %v3121_v43  ;;  %v12002_v43 = vld [vmem:[#allocation132_spill] sm:$0xff] }
 0x73b   : > { %v3309_v26 = vmul.f32 1.442695, %v3188_v62  ;;  %v3191_v16 = vsub.f32 %v12002_v43, %v3127_v58  ;;  %v12003_v35 = vld [vmem:[#allocation112_spill] sm:$0xff] }
 0x73c   : > { %3622 = vmatmul.mubr.f32.gmra.mxu1 %v9714_v3 }
 0x73d   : > { %3626 = vmatprep.mubr.f32.mxu1 %v9628_v22  ;;  %v3307_v22 = vmul.f32 1.442695, %v3187_v15  ;;  %6292 = vpow2.f32 %v3309_v26  ;;  %v9864_v21 = vpop.xlane.xlu0 %4218  ;;  %v3315_v13 = vmul.f32 1.442695, %v3191_v16  ;;  %v4296_v15 = vsub.f32 %v12003_v35, %v4201_v45 }
 0x73e   : > { %v9857_v18 = vpop.eup %6284 }
 0x73f   : > { %v9861_v3 = vpop.eup %6286  ;;  %6294 = vpow2.f32 %v3307_v22 }
 0x740   : > { %3627 = vmatmul.mubr.f32.gmra.mxu1 %v9623_v51  ;;  %v12001_v51 = vld [vmem:[#allocation133_spill] sm:$0xff]  ;;  %v9871_v7 = vpop.eup %6288 }
 0x741   : > { %3631 = vmatprep.mubr.f32.mxu1 %v9732_v27  ;;  %v3192_v0 = vsub.f32 %v12001_v51, %v3127_v58  ;;  %v9867_v27 = vpop.xlane.xlu1 %4221  ;;  %v9874_v30 = vpop.xlane.xlu0 %4224 }
 0x744   : > { %3632 = vmatmul.mubr.f32.gmra.mxu1 %v9730_v23  ;;  %v3317_v23 = vmul.f32 1.442695, %v3192_v0 }
 0x745   : > { %3636 = vmatprep.mubr.f32.mxu1 %v9857_v18  ;;  %v9880_v26 = vpop.xlane.xlu1 %4227  ;;  %v9885_v22 = vpop.xlane.xlu0 %4230 }
 0x746   : > { %v9877_v62 = vpop.eup %6290  ;;  %6296 = vpow2.f32 %v3317_v23 }
 0x747   : > { %6298 = vpow2.f32 %v3315_v13 }
 0x748   : > { %3637 = vmatmul.mubr.f32.gmra.mxu1 %v9861_v3 }
 0x749   : > { %3641 = vmatprep.mubr.f32.mxu1 %v9750_v14  ;;  %v12004_v14 = vld [vmem:[#allocation110_spill] sm:$0xff]  ;;  %v9890_v0 = vpop.xlane.xlu1 %4233 }
 0x74a   : > { %v4295_v58 = vsub.f32 %v12004_v14, %v4201_v45  ;;  %v9887_v51 = vpop.eup %6292  ;;  %v9898_v45 = vpop.xlane.xlu0 %4236 }
 0x74c   : > { %3642 = vmatmul.mubr.f32.gmra.mxu1 %v9748_v48  ;;  %v4361_v48 = vmul.f32 1.442695, %v4296_v15  ;;  %v4359_v43 = vmul.f32 1.442695, %v4295_v58  ;;  %v9893_v16 = vpop.eup %6294 }
 0x74d   : > { %3646 = vmatprep.mubr.f32.mxu1 %v9871_v7  ;;  %12005 = vst [vmem:[#allocation147_spill] sm:$0xff] %v9893_v16  ;;  %v9903_v14 = vpop.xlane.xlu1 %4239 }
 0x74e   : > { %6300 = vpow2.f32 %v4361_v48 }
 0x74f   : > { %6302 = vpow2.f32 %v4359_v43 }
 0x750   : > { %3647 = vmatmul.mubr.f32.gmra.mxu1 %v9877_v62 }
 0x751   : > { %3651 = vmatprep.mubr.f32.mxu1 %v9768_v32  ;;  %v12006_v32 = vld [vmem:[#allocation171_spill] sm:$0xff] }
 0x752   : > { %v4300_v23 = vsub.f32 %v12006_v32, %v9845_v28 }
 0x753   : > { %v9905_v60 = vpop.eup %6296 }
 0x754   : > { %3652 = vmatmul.mubr.f32.gmra.mxu1 %v9764_v46  ;;  %v12007_v46 = vld [vmem:[#allocation114_spill] sm:$0xff]  ;;  %v4369_v15 = vmul.f32 1.442695, %v4300_v23  ;;  %v12011_v23 = vld [vmem:[#allocation173_spill] sm:$0xff] }
 0x755   : > { %3656 = vmatprep.mubr.f32.mxu1 %v9887_v51  ;;  %v4299_v35 = vsub.f32 %v12007_v46, %v9845_v28  ;;  %v9915_v28 = vpop.eup %6298  ;;  %v4304_v46 = vsub.f32 %v12011_v23, %v9851_v50 }
 0x756   : > { %12010 = vst [vmem:[#allocation103_spill] sm:$0xff] %v9915_v28  ;;  %6304 = vpow2.f32 %v4369_v15  ;;  %v12014_v15 = vld [vmem:[#allocation174_spill] sm:$0xff] }
 0x757   : > { %v4367_v31 = vmul.f32 1.442695, %v4299_v35  ;;  %v9926_v35 = vpop.xlane.xlu1 %4245 }
 0x758   : > { %3657 = vmatmul.mubr.f32.gmra.mxu1 %v9893_v16  ;;  %v9919_v16 = vpop.xlane.xlu0 %4242 }
 0x759   : > { %3661 = vmatprep.mubr.f32.mxu1 %v9781_v44  ;;  %v4124_v13 = vpop.f32.mrf.mxu0  ;;  %6306 = vpow2.f32 %v4367_v31  ;;  %v4305_v31 = vsub.f32 %v9328_v42, %v9855_v61  ;;  %v12020_v42 = vld [vmem:[#allocation176_spill] sm:$0xff] }
 0x75a   : > { %v9908_v48 = vmul.f32 0.17677669, %v4124_v13 }
 0x75b   : > { %v4126_v58 = vpop.f32.mrf.mxu0 }
 0x75c   : > { %3662 = vmatmul.mubr.f32.gmra.mxu1 %v9779_v1  ;;  %12008 = vst [vmem:[#allocation99_spill] sm:$0xff] %v9908_v48  ;;  %v9910_v32 = vmul.f32 0.17677669, %v4126_v58 }
 0x75d   : > { %3666 = vmatprep.mubr.f32.mxu1 %v9905_v60  ;;  %v4130_v44 = vpop.f32.mrf.mxu0 }
 0x75e   : > { %12009 = vst [vmem:[#allocation98_spill] sm:$0xff] %v9910_v32  ;;  %v4289_v43 = vmax.f32 %v9908_v48, %v9910_v32  ;;  %v9922_v13 = vmul.f32 0.17677669, %v4130_v44  ;;  %v4303_v32 = vsub.f32 %v12014_v15, %v9851_v50  ;;  %v4377_v48 = vmul.f32 1.442695, %v4304_v46  ;;  %v9935_v44 = vpop.eup %6300 }
 0x75f   : > { %v4132_v1 = vpop.f32.mrf.mxu0  ;;  %v9944_v50 = vpop.eup %6302 }
 0x760   : > { %3667 = vmatmul.mubr.f32.gmra.mxu1 %v9915_v28  ;;  %12012 = vst [vmem:[#allocation101_spill] sm:$0xff] %v9922_v13  ;;  %v9924_v58 = vmul.f32 0.17677669, %v4132_v1  ;;  %4290 = vmax.xlane.f32.xlu0 %v4289_v43  ;;  %v4306_v28 = vsub.f32 %v9321_v39, %v9855_v61  ;;  %v12015_v43 = vld [vmem:[#allocation60_spill] sm:$0xff]  ;;  %v9939_v1 = vpop.xlane.xlu0 %4248  ;;  %6308 = vpow2.f32 %v4377_v48  ;;  %v12016_v39 = vld [vmem:[#allocation175_spill] sm:$0xff]  ;;  %v4307_v61 = vsub.f32 %v12020_v42, %v9864_v21 }
 0x761   : > { %3671 = vmatprep.mubr.f32.mxu1 %v9797_v20  ;;  %v4375_v20 = vmul.f32 1.442695, %v4303_v32  ;;  %v4308_v46 = vsub.f32 %v12016_v39, %v9864_v21  ;;  %v12019_v32 = vld [vmem:[#allocation61_spill] sm:$0xff]  ;;  %v4379_v48 = vmul.f32 1.442695, %v4305_v31  ;;  %v4310_v39 = vsub.f32 %v9341_v53, %v9867_v27 }
 0x762   : > { %12013 = vst [vmem:[#allocation129_spill] sm:$0xff] %v9924_v58  ;;  %v4292_v23 = vmax.f32 %v9922_v13, %v9924_v58  ;;  %v4381_v15 = vmul.f32 1.442695, %v4306_v28  ;;  %v9948_v58 = vpop.xlane.xlu1 %4251  ;;  %v4383_v31 = vmul.f32 1.442695, %v4307_v61  ;;  %v4309_v53 = vsub.f32 %v9349_v5, %v9867_v27  ;;  %v12026_v61 = vld [vmem:[#allocation69_spill] sm:$0xff] }
 0x763   : > { %6310 = vpow2.f32 %v4375_v20  ;;  %v12023_v20 = vld [vmem:[#allocation65_spill] sm:$0xff]  ;;  %v12027_v5 = vld [vmem:[#allocation178_spill] sm:$0xff] }
 0x764   : > { %3672 = vmatmul.mubr.f32.gmra.mxu1 %v9795_v55  ;;  %2160 = vadd.xlane.f32.xlu0 %v12015_v43  ;;  %v12017_v55 = vld [vmem:[#allocation64_spill] sm:$0xff]  ;;  %v4385_v43 = vmul.f32 1.442695, %v4308_v46  ;;  %6312 = vpow2.f32 %v4381_v15  ;;  %v9958_v28 = vpop.xlane.xlu0 %4254  ;;  %v4389_v15 = vmul.f32 1.442695, %v4310_v39  ;;  %v4311_v27 = vsub.f32 %v12027_v5, %v9874_v30 }
 0x765   : > { %4680 = vmatprep.mubr.f32.mxu1 %v9935_v44  ;;  %4293 = vmax.xlane.f32.xlu1 %v4292_v23  ;;  %6314 = vpow2.f32 %v4379_v48  ;;  %v4387_v48 = vmul.f32 1.442695, %v4309_v53  ;;  %v4314_v39 = vsub.f32 %v9358_v54, %v9880_v26  ;;  %v12030_v54 = vld [vmem:[#allocation179_spill] sm:$0xff] }
 0x766   : > { %6316 = vpow2.f32 %v4385_v43 }
 0x767   : > { %6318 = vpow2.f32 %v4383_v31  ;;  %v4391_v31 = vmul.f32 1.442695, %v4311_v27 }
 0x768   : > { %4681 = vmatmul.mubr.f32.vlgmr.msra.gmra.mxu1 %v9944_v50  ;;  %2166 = vadd.xlane.f32.xlu0 %v12017_v55  ;;  %v9962_v55 = vpop.eup %6304  ;;  %6320 = vpow2.f32 %v4389_v15  ;;  %v4397_v15 = vmul.f32 1.442695, %v4314_v39 }
 0x769   : > { %4685 = vmatprep.mubr.f32.mxu1 %v9815_v49  ;;  %v9953_v23 = vpop.f32.mrf.mxu1  ;;  %2163 = vadd.xlane.f32.xlu1 %v12019_v32  ;;  %v12021_v49 = vld [vmem:[#allocation68_spill] sm:$0xff]  ;;  %v9966_v32 = vpop.xlane.xlu1 %4257  ;;  %6322 = vpow2.f32 %v4387_v48 }
 0x76a   : > { %12018 = vst [vmem:[#allocation128_spill] sm:$0xff] %v9953_v23 }
 0x76b   : > { %v2496_v13 = vpop.f32.mrf.mxu1 }
 0x76c   : > { %4686 = vmatmul.mubr.f32.gmra.mxu1 %v9807_v59  ;;  %2172 = vadd.xlane.f32.xlu0 %v12021_v49  ;;  %v9974_v13 = vpop.eup %6306  ;;  %v12024_v59 = vld [vmem:[#allocation177_spill] sm:$0xff]  ;;  %v12025_v49 = vld [vmem:[#allocation72_spill] sm:$0xff] }
 0x76d   : > { %4690 = vmatprep.mubr.f32.mxu1 %v9962_v55  ;;  %v9969_v21 = vpop.f32.mrf.mxu1  ;;  %2169 = vadd.xlane.f32.xlu1 %v12023_v20  ;;  %v4312_v46 = vsub.f32 %v12024_v59, %v9874_v30  ;;  %v9988_v20 = vpop.xlane.xlu1 %4263  ;;  %v4313_v30 = vsub.f32 %v9365_v29, %v9880_v26  ;;  %v12033_v29 = vld [vmem:[#allocation77_spill] sm:$0xff]  ;;  %v12034_v26 = vld [vmem:[#allocation180_spill] sm:$0xff] }
 0x76e   : > { %12022 = vst [vmem:[#allocation133_spill] sm:$0xff] %v9969_v21  ;;  %v9980_v21 = vpop.xlane.xlu0 %4260  ;;  %v9990_v59 = vpop.eup %6308  ;;  %v4315_v27 = vsub.f32 %v12034_v26, %v9885_v22 }
 0x76f   : > { %v2501_v42 = vpop.f32.mrf.mxu1  ;;  %v4393_v43 = vmul.f32 1.442695, %v4312_v46  ;;  %v4316_v46 = vsub.f32 %v12030_v54, %v9885_v22  ;;  %v4395_v48 = vmul.f32 1.442695, %v4313_v30  ;;  %v4317_v30 = vsub.f32 %v9377_v12, %v9890_v0  ;;  %v12041_v12 = vld [vmem:[#allocation182_spill] sm:$0xff] }
 0x770   : > { %4691 = vmatmul.mubr.f32.gmra.mxu1 %v9974_v13  ;;  %2178 = vadd.xlane.f32.xlu0 %v12025_v49  ;;  %v12028_v42 = vld [vmem:[#allocation76_spill] sm:$0xff]  ;;  %v9998_v53 = vpop.eup %6310  ;;  %v4399_v22 = vmul.f32 1.442695, %v4315_v27 }
 0x771   : > { %4695 = vmatprep.mubr.f32.mxu1 %v9827_v25  ;;  %2175 = vadd.xlane.f32.xlu1 %v12026_v61  ;;  %v12029_v25 = vld [vmem:[#allocation73_spill] sm:$0xff]  ;;  %6324 = vpow2.f32 %v4393_v43  ;;  %v12032_v61 = vld [vmem:[#allocation80_spill] sm:$0xff]  ;;  %v10008_v5 = vpop.xlane.xlu1 %4269  ;;  %v4401_v39 = vmul.f32 1.442695, %v4316_v46 }
 0x772   : > { %v10002_v49 = vpop.xlane.xlu0 %4266  ;;  %6326 = vpow2.f32 %v4391_v31  ;;  %v12037_v31 = vld [vmem:[#allocation81_spill] sm:$0xff] }
 0x773   : > { %6328 = vpow2.f32 %v4397_v15 }
 0x774   : > { %4696 = vmatmul.mubr.f32.gmra.mxu1 %v9825_v6  ;;  %2184 = vadd.xlane.f32.xlu0 %v12028_v42  ;;  %v10004_v6 = vpop.eup %6312  ;;  %v4318_v42 = vsub.f32 %v9372_v17, %v9890_v0  ;;  %6330 = vpow2.f32 %v4395_v48  ;;  %v12039_v17 = vld [vmem:[#allocation181_spill] sm:$0xff]  ;;  %v4319_v0 = vsub.f32 %v12041_v12, %v9898_v45 }
 0x775   : > { %4700 = vmatprep.mubr.f32.mxu1 %v9990_v59  ;;  %2181 = vadd.xlane.f32.xlu1 %v12029_v25  ;;  %12031 = vst [vmem:[#allocation132_spill] sm:$0xff] %v10004_v6  ;;  %v10014_v43 = vpop.eup %6314  ;;  %6332 = vpow2.f32 %v4401_v39  ;;  %v4320_v15 = vsub.f32 %v12039_v17, %v9898_v45  ;;  %v10032_v26 = vpop.xlane.xlu1 %4275  ;;  %v12042_v39 = vld [vmem:[#allocation85_spill] sm:$0xff] }
 0x776   : > { %12035 = vst [vmem:[#allocation112_spill] sm:$0xff] %v10014_v43  ;;  %v10018_v25 = vpop.xlane.xlu0 %4272  ;;  %v10020_v54 = vpop.eup %6316  ;;  %6334 = vpow2.f32 %v4399_v22 }
 0x777   : > { %v10028_v46 = vpop.eup %6318 }
 0x778   : > { %4701 = vmatmul.mubr.f32.gmra.mxu1 %v9998_v53  ;;  %2190 = vadd.xlane.f32.xlu0 %v12032_v61  ;;  %v12036_v61 = vld [vmem:[#allocation84_spill] sm:$0xff]  ;;  %12038 = vst [vmem:[#allocation110_spill] sm:$0xff] %v10028_v46 }
 0x779   : > { %4705 = vmatprep.mubr.f32.mxu1 %v10004_v6  ;;  %2187 = vadd.xlane.f32.xlu1 %v12033_v29  ;;  %v4405_v29 = vmul.f32 1.442695, %v4318_v42  ;;  %v4403_v42 = vmul.f32 1.442695, %v4317_v30  ;;  %v12043_v30 = vld [vmem:[#allocation100_spill] sm:$0xff] }
 0x77b   : > { %6336 = vpow2.f32 %v4405_v29 }
 0x77c   : > { %4706 = vmatmul.mubr.f32.gmra.mxu1 %v10014_v43  ;;  %2196 = vadd.xlane.f32.xlu0 %v12036_v61  ;;  %v10034_v61 = vpop.eup %6320 }
 0x77d   : > { %4710 = vmatprep.mubr.f32.mxu1 %v10020_v54  ;;  %2193 = vadd.xlane.f32.xlu1 %v12037_v31  ;;  %v12040_v31 = vld [vmem:[#allocation89_spill] sm:$0xff]  ;;  %v10044_v6 = vpop.eup %6322 }
 0x780   : > { %v4279_v23 = vpop.xlane.xlu0 %4278  ;;  %4711 = vmatmul.mubr.f32.gmra.mxu1 %v10028_v46  ;;  %2202 = vadd.xlane.f32.xlu0 %v12040_v31  ;;  %v4409_v46 = vmul.f32 1.442695, %v4320_v15  ;;  %v12044_v15 = vld [vmem:[#allocation91_spill] sm:$0xff] }
 0x781   : > { %v4347_v27 = vsub.f32 %v9542_v19, %v4279_v23  ;;  %v4348_v48 = vsub.f32 %v9551_v56, %v4279_v23  ;;  %4715 = vmatprep.mubr.f32.mxu1 %v10034_v61  ;;  %2199 = vadd.xlane.f32.xlu1 %v12042_v39  ;;  %v4322_v19 = vsub.f32 %v9382_v2, %v9903_v14  ;;  %v10048_v23 = vpop.eup %6324 }
 0x782   : > { %v4321_v2 = vsub.f32 %v9385_v8, %v9903_v14  ;;  %v10058_v31 = vpop.eup %6326  ;;  %v12047_v8 = vld [vmem:[#allocation102_spill] sm:$0xff]  ;;  %v12048_v14 = vld [vmem:[#allocation184_spill] sm:$0xff] }
 0x783   : > { %v4463_v17 = vmul.f32 1.442695, %v4347_v27  ;;  %v4465_v43 = vmul.f32 1.442695, %v4348_v48  ;;  %v4407_v27 = vmul.f32 1.442695, %v4319_v0  ;;  %v10062_v39 = vpop.eup %6328 }
 0x784   : > { %v4282_v56 = vpop.xlane.xlu1 %4281  ;;  %4716 = vmatmul.mubr.f32.gmra.mxu1 %v10044_v6  ;;  %2208 = vadd.xlane.f32.xlu0 %v12043_v30  ;;  %v4413_v12 = vmul.f32 1.442695, %v4322_v19  ;;  %v4411_v0 = vmul.f32 1.442695, %v4321_v2  ;;  %v4326_v19 = vsub.f32 %v9392_v52, %v9926_v35  ;;  %v12051_v52 = vld [vmem:[#allocation185_spill] sm:$0xff] }
 0x785   : > { %6338 = vpow2.f32 %v4463_v17  ;;  %v4349_v45 = vsub.f32 %v9566_v41, %v4282_v56  ;;  %v4350_v22 = vsub.f32 %v9572_v10, %v4282_v56  ;;  %4720 = vmatprep.mubr.f32.mxu1 %v10048_v23  ;;  %2205 = vadd.xlane.f32.xlu1 %v12044_v15  ;;  %v12045_v41 = vld [vmem:[#allocation183_spill] sm:$0xff]  ;;  %v4328_v15 = vsub.f32 %v12051_v52, %v9939_v1 }
 0x786   : > { %6340 = vpow2.f32 %v4465_v43  ;;  %v4324_v10 = vsub.f32 %v12045_v41, %v9919_v16  ;;  %v12046_v43 = vld [vmem:[#allocation111_spill] sm:$0xff]  ;;  %v4421_v2 = vmul.f32 1.442695, %v4326_v19  ;;  %v12056_v19 = vld [vmem:[#allocation152_spill] sm:$0xff]  ;;  %v4332_v52 = vsub.f32 %v9325_v57, %v9958_v28 }
 0x787   : > { %6342 = vpow2.f32 %v4403_v42  ;;  %v4467_v29 = vmul.f32 1.442695, %v4349_v45  ;;  %v4469_v48 = vmul.f32 1.442695, %v4350_v22  ;;  %v10070_v42 = vpop.eup %6330  ;;  %v12049_v45 = vld [vmem:[#allocation124_spill] sm:$0xff]  ;;  %v12050_v22 = vld [vmem:[#allocation113_spill] sm:$0xff] }
 0x788   : > { %6344 = vpow2.f32 %v4409_v46  ;;  %4721 = vmatmul.mubr.f32.gmra.mxu1 %v10058_v31  ;;  %2214 = vadd.xlane.f32.xlu0 %v12046_v43  ;;  %v4323_v46 = vsub.f32 %v12048_v14, %v9919_v16  ;;  %v4417_v17 = vmul.f32 1.442695, %v4324_v10  ;;  %v10074_v56 = vpop.eup %6332  ;;  %v4325_v16 = vsub.f32 %v9395_v4, %v9926_v35  ;;  %v12053_v10 = vld [vmem:[#allocation126_spill] sm:$0xff] }
 0x789   : > { %6346 = vpow2.f32 %v4467_v29  ;;  %4725 = vmatprep.mubr.f32.mxu1 %v10062_v39  ;;  %2211 = vadd.xlane.f32.xlu1 %v12047_v8  ;;  %v12054_v35 = vld [vmem:[#allocation146_spill] sm:$0xff]  ;;  %v4425_v14 = vmul.f32 1.442695, %v4328_v15 }
 0x78a   : > { %6348 = vpow2.f32 %v4469_v48  ;;  %v4415_v30 = vmul.f32 1.442695, %v4323_v46  ;;  %v12052_v48 = vld [vmem:[#allocation143_spill] sm:$0xff]  ;;  %v4419_v43 = vmul.f32 1.442695, %v4325_v16  ;;  %v4330_v46 = vsub.f32 %v9402_v33, %v9948_v58 }
 0x78b   : > { %6350 = vpow2.f32 %v4407_v27  ;;  %v10082_v27 = vpop.eup %6334  ;;  %v4329_v33 = vsub.f32 %v9405_v11, %v9948_v58  ;;  %v12060_v11 = vld [vmem:[#allocation153_spill] sm:$0xff]  ;;  %v4331_v58 = vsub.f32 %v9331_v38, %v9958_v28  ;;  %v4333_v38 = vsub.f32 %v9413_v47, %v9966_v32 }
 0x78c   : > { %6352 = vpow2.f32 %v4413_v12  ;;  %4726 = vmatmul.mubr.f32.gmra.mxu1 %v10070_v42  ;;  %2220 = vadd.xlane.f32.xlu0 %v12049_v45  ;;  %v10086_v29 = vpop.eup %6336  ;;  %v4327_v12 = vsub.f32 %v12054_v35, %v9939_v1  ;;  %v12057_v1 = vld [vmem:[#allocation145_spill] sm:$0xff]  ;;  %v4429_v15 = vmul.f32 1.442695, %v4330_v46  ;;  %v12061_v46 = vld [vmem:[#allocation172_spill] sm:$0xff]  ;;  %v4335_v47 = vsub.f32 %v9352_v34, %v9980_v21 }
 0x78d   : > { %4730 = vmatprep.mubr.f32.mxu1 %v10074_v56  ;;  %2217 = vadd.xlane.f32.xlu1 %v12050_v22  ;;  %6354 = vpow2.f32 %v4411_v0  ;;  %v4427_v57 = vmul.f32 1.442695, %v4329_v33 }
 0x78e   : > { %6356 = vpow2.f32 %v4417_v17  ;;  %v4439_v34 = vmul.f32 1.442695, %v4335_v47 }
 0x78f   : > { %6358 = vpow2.f32 %v4415_v30  ;;  %v4423_v30 = vmul.f32 1.442695, %v4327_v12  ;;  %v4433_v12 = vmul.f32 1.442695, %v4332_v52 }
 0x790   : > { %4731 = vmatmul.mubr.f32.gmra.mxu1 %v10082_v27  ;;  %2226 = vadd.xlane.f32.xlu0 %v12052_v48  ;;  %6360 = vpow2.f32 %v4421_v2 }
 0x791   : > { %4735 = vmatprep.mubr.f32.mxu1 %v10086_v29  ;;  %2223 = vadd.xlane.f32.xlu1 %v12053_v10  ;;  %6362 = vpow2.f32 %v4419_v43  ;;  %v12059_v10 = vld [vmem:[#allocation170_spill] sm:$0xff]  ;;  %v4334_v43 = vsub.f32 %v9410_v36, %v9966_v32  ;;  %v4336_v36 = vsub.f32 %v9346_v37, %v9980_v21  ;;  %v4435_v32 = vmul.f32 1.442695, %v4333_v38  ;;  %v12066_v21 = vld [vmem:[#allocation144_spill] sm:$0xff] }
 0x792   : > { %v10090_v41 = vpop.eup %6338  ;;  %6364 = vpow2.f32 %v4425_v14 }
 0x793   : > { %v10094_v4 = vpop.eup %6340  ;;  %6366 = vpow2.f32 %v4423_v30  ;;  %v4437_v30 = vmul.f32 1.442695, %v4334_v43  ;;  %v4441_v37 = vmul.f32 1.442695, %v4336_v36  ;;  %v12069_v36 = vld [vmem:[#allocation157_spill] sm:$0xff] }
 0x794   : > { %v10098_v8 = vpop.eup %6342  ;;  %v10104_v0 = vadd.f32 %v10094_v4, %v10090_v41  ;;  %2232 = vadd.xlane.f32.xlu0 %v12056_v19  ;;  %6368 = vpow2.f32 %v4429_v15  ;;  %v4431_v19 = vmul.f32 1.442695, %v4331_v58  ;;  %v4338_v15 = vsub.f32 %v9418_v24, %v9988_v20  ;;  %v12067_v24 = vld [vmem:[#allocation149_spill] sm:$0xff] }
 0x795   : > { %v10106_v17 = vpop.eup %6344  ;;  %4736 = vmatmul.mubr.f32.gmra.mxu1 %v10098_v8  ;;  %2229 = vadd.xlane.f32.xlu1 %v12057_v1  ;;  %6370 = vpow2.f32 %v4427_v57  ;;  %v4337_v58 = vsub.f32 %v12066_v21, %v9988_v20  ;;  %v4340_v43 = vsub.f32 %v12067_v24, %v10002_v49  ;;  %v12071_v20 = vld [vmem:[#allocation148_spill] sm:$0xff]  ;;  %v12074_v24 = vld [vmem:[#allocation161_spill] sm:$0xff] }
 0x796   : > { %12055 = vst [vmem:[#allocation171_spill] sm:$0xff] %v10104_v0  ;;  %v10110_v45 = vpop.eup %6346  ;;  %4740 = vmatprep.mubr.f32.mxu1 %v10106_v17  ;;  %6372 = vpow2.f32 %v4433_v12 }
 0x797   : > { %v10114_v22 = vpop.eup %6348  ;;  %6374 = vpow2.f32 %v4431_v19  ;;  %v4443_v47 = vmul.f32 1.442695, %v4337_v58  ;;  %v12076_v58 = vld [vmem:[#allocation186_spill] sm:$0xff] }
 0x798   : > { %v10118_v16 = vpop.eup %6350  ;;  %v10124_v2 = vadd.f32 %v10114_v22, %v10110_v45  ;;  %2238 = vadd.xlane.f32.xlu0 %v12059_v10  ;;  %6376 = vpow2.f32 %v4437_v30  ;;  %v12070_v30 = vld [vmem:[#allocation156_spill] sm:$0xff] }
 0x799   : > { %v10126_v48 = vpop.eup %6352  ;;  %4741 = vmatmul.mubr.f32.gmra.mxu1 %v10118_v16  ;;  %2235 = vadd.xlane.f32.xlu1 %v12060_v11  ;;  %6378 = vpow2.f32 %v4435_v32 }
 0x79a   : > { %12058 = vst [vmem:[#allocation114_spill] sm:$0xff] %v10124_v2  ;;  %4745 = vmatprep.mubr.f32.mxu1 %v10126_v48  ;;  %v10134_v35 = vpop.eup %6354  ;;  %6380 = vpow2.f32 %v4441_v37 }
 0x79b   : > { %v10138_v14 = vpop.eup %6356  ;;  %6382 = vpow2.f32 %v4439_v34 }
 0x79c   : > { %2244 = vadd.xlane.f32.xlu0 %v9387_v40  ;;  %v10148_v1 = vpop.eup %6358 }
 0x79d   : > { %4746 = vmatmul.mubr.f32.gmra.mxu1 %v10134_v35  ;;  %2241 = vadd.xlane.f32.xlu1 %v12061_v46  ;;  %v10152_v33 = vpop.eup %6360  ;;  %v4445_v46 = vmul.f32 1.442695, %v4338_v15  ;;  %v4449_v15 = vmul.f32 1.442695, %v4340_v43  ;;  %v4341_v43 = vsub.f32 %v12076_v58, %v10008_v5 }
 0x79e   : > { %4750 = vmatprep.mubr.f32.mxu1 %v10138_v14  ;;  %v10146_v28 = vpop.f32.mrf.mxu1  ;;  %v10160_v52 = vpop.eup %6362 }
 0x79f   : > { %12062 = vst [vmem:[#allocation173_spill] sm:$0xff] %v10146_v28  ;;  %v10164_v10 = vpop.eup %6364  ;;  %6384 = vpow2.f32 %v4445_v46 }
 0x7a0   : > { %v2506_v40 = vpop.f32.mrf.mxu1  ;;  %2250 = vadd.xlane.f32.xlu0 %v9465_v9  ;;  %v12064_v9 = vld [vmem:[#allocation155_spill] sm:$0xff]  ;;  %v10174_v12 = vpop.eup %6366  ;;  %6386 = vpow2.f32 %v4443_v47 }
 0x7a1   : > { %4751 = vmatmul.mubr.f32.gmra.mxu1 %v10148_v1  ;;  %2247 = vadd.xlane.f32.xlu1 %v9397_v63  ;;  %v12065_v63 = vld [vmem:[#allocation154_spill] sm:$0xff]  ;;  %v10178_v19 = vpop.eup %6368  ;;  %v4339_v40 = vsub.f32 %v12071_v20, %v10002_v49  ;;  %6388 = vpow2.f32 %v4449_v15  ;;  %v12077_v20 = vld [vmem:[#allocation188_spill] sm:$0xff] }
 0x7a2   : > { %4755 = vmatprep.mubr.f32.mxu1 %v10152_v33  ;;  %v10188_v37 = vpop.eup %6370  ;;  %v12075_v49 = vld [vmem:[#allocation158_spill] sm:$0xff] }
 0x7a3   : > { %v10192_v21 = vpop.eup %6372  ;;  %v4447_v34 = vmul.f32 1.442695, %v4339_v40  ;;  %v12080_v40 = vld [vmem:[#allocation88_spill] sm:$0xff]  ;;  %v12082_v15 = vld [vmem:[#allocation162_spill] sm:$0xff] }
 0x7a4   : > { %v10166_v11 = vpop.f32.mrf.mxu1  ;;  %3324 = vadd.xlane.f32.xlu0 %v12064_v9  ;;  %v12072_v9 = vld [vmem:[#allocation142_spill] sm:$0xff] }
 0x7a5   : > { %12063 = vst [vmem:[#allocation174_spill] sm:$0xff] %v10166_v11  ;;  %4756 = vmatmul.mubr.f32.gmra.mxu1 %v10160_v52  ;;  %2253 = vadd.xlane.f32.xlu1 %v12065_v63  ;;  %v4342_v63 = vsub.f32 %v12072_v9, %v10008_v5  ;;  %v12081_v5 = vld [vmem:[#allocation190_spill] sm:$0xff]  ;;  %6390 = vpow2.f32 %v4447_v34  ;;  %v12086_v34 = vld [vmem:[#allocation165_spill] sm:$0xff] }
 0x7a6   : > { %4760 = vmatprep.mubr.f32.mxu1 %v10164_v10  ;;  %v2511_v57 = vpop.f32.mrf.mxu1  ;;  %v4346_v47 = vsub.f32 %v12081_v5, %v10032_v26  ;;  %v12085_v5 = vld [vmem:[#allocation189_spill] sm:$0xff] }
 0x7a8   : > { %v10180_v38 = vpop.f32.mrf.mxu1  ;;  %3330 = vadd.xlane.f32.xlu0 %v12069_v36  ;;  %v10202_v36 = vpop.eup %6374 }
 0x7a9   : > { %12068 = vst [vmem:[#allocation60_spill] sm:$0xff] %v10180_v38  ;;  %4761 = vmatmul.mubr.f32.gmra.mxu1 %v10174_v12  ;;  %3327 = vadd.xlane.f32.xlu1 %v12070_v30  ;;  %v4453_v30 = vmul.f32 1.442695, %v4342_v63  ;;  %v10206_v9 = vpop.eup %6376  ;;  %v4451_v63 = vmul.f32 1.442695, %v4341_v43 }
 0x7aa   : > { %4765 = vmatprep.mubr.f32.mxu1 %v10178_v19  ;;  %v3520_v32 = vpop.f32.mrf.mxu1  ;;  %v10218_v58 = vpop.eup %6378 }
 0x7ab   : > { %v4344_v32 = vsub.f32 %v12077_v20, %v10018_v25  ;;  %6392 = vpow2.f32 %v4453_v30 }
 0x7ac   : > { %v10194_v57 = vpop.f32.mrf.mxu1  ;;  %3336 = vadd.xlane.f32.xlu0 %v12074_v24  ;;  %v12078_v24 = vld [vmem:[#allocation187_spill] sm:$0xff]  ;;  %6394 = vpow2.f32 %v4451_v63 }
 0x7ad   : > { %12073 = vst [vmem:[#allocation175_spill] sm:$0xff] %v10194_v57  ;;  %4766 = vmatmul.mubr.f32.gmra.mxu1 %v10188_v37  ;;  %3333 = vadd.xlane.f32.xlu1 %v12075_v49  ;;  %v4343_v57 = vsub.f32 %v12078_v24, %v10018_v25  ;;  %v4457_v25 = vmul.f32 1.442695, %v4344_v32  ;;  %v12087_v32 = vld [vmem:[#allocation122_spill] sm:$0xff] }
 0x7ae   : > { %4770 = vmatprep.mubr.f32.mxu1 %v10192_v21  ;;  %v3525_v46 = vpop.f32.mrf.mxu1 }
 0x7af   : > { %v10220_v46 = vpop.eup %6380  ;;  %v4455_v20 = vmul.f32 1.442695, %v4343_v57  ;;  %v12088_v57 = vld [vmem:[#allocation123_spill] sm:$0xff]  ;;  %6396 = vpow2.f32 %v4457_v25 }
 0x7b0   : > { %v10210_v38 = vpop.f32.mrf.mxu1  ;;  %3342 = vadd.xlane.f32.xlu0 %v12080_v40  ;;  %v12084_v40 = vld [vmem:[#allocation159_spill] sm:$0xff] }
 0x7b1   : > { %12079 = vst [vmem:[#allocation64_spill] sm:$0xff] %v10210_v38  ;;  %4771 = vmatmul.mubr.f32.gmra.mxu1 %v10202_v36  ;;  %3339 = vadd.xlane.f32.xlu1 %v12082_v15  ;;  %v4345_v38 = vsub.f32 %v12085_v5, %v10032_v26  ;;  %v4461_v15 = vmul.f32 1.442695, %v4346_v47  ;;  %6398 = vpow2.f32 %v4455_v20  ;;  %v12090_v5 = vld [vmem:[#allocation160_spill] sm:$0xff]  ;;  %v12093_v20 = vld [vmem:[#allocation130_spill] sm:$0xff] }
 0x7b2   : > { %4775 = vmatprep.mubr.f32.mxu1 %v10206_v9  ;;  %v3530_v49 = vpop.f32.mrf.mxu1 }
 0x7b3   : > { %v4459_v63 = vmul.f32 1.442695, %v4345_v38  ;;  %6400 = vpow2.f32 %v4461_v15  ;;  %v12095_v15 = vld [vmem:[#allocation163_spill] sm:$0xff] }
 0x7b4   : > { %v10222_v24 = vpop.f32.mrf.mxu1  ;;  %3348 = vadd.xlane.f32.xlu0 %v12084_v40 }
 0x7b5   : > { %12083 = vst [vmem:[#allocation61_spill] sm:$0xff] %v10222_v24  ;;  %4776 = vmatmul.mubr.f32.gmra.mxu1 %v10218_v58  ;;  %3345 = vadd.xlane.f32.xlu1 %v12086_v34  ;;  %v4285_v43 = vpop.xlane.xlu0 %4284  ;;  %v10232_v24 = vpop.eup %6382 }
 0x7b6   : > { %4780 = vmatprep.mubr.f32.mxu1 %v10220_v46  ;;  %v3535_v30 = vpop.f32.mrf.mxu1  ;;  %v4351_v49 = vsub.f32 %v12087_v32, %v4285_v43  ;;  %v4352_v11 = vsub.f32 %v12088_v57, %v4285_v43  ;;  %v10234_v28 = vpop.eup %6384  ;;  %v12091_v43 = vld [vmem:[#allocation168_spill] sm:$0xff] }
 0x7b7   : > { %v12092_v30 = vld [vmem:[#allocation127_spill] sm:$0xff] }
 0x7b8   : > { %v4471_v40 = vmul.f32 1.442695, %v4351_v49  ;;  %v4473_v26 = vmul.f32 1.442695, %v4352_v11  ;;  %v10236_v47 = vpop.f32.mrf.mxu1  ;;  %3354 = vadd.xlane.f32.xlu0 %v12090_v5  ;;  %v10244_v11 = vpop.eup %6386 }
 0x7b9   : > { %12089 = vst [vmem:[#allocation176_spill] sm:$0xff] %v10236_v47  ;;  %4781 = vmatmul.mubr.f32.gmra.mxu1 %v10232_v24  ;;  %v4288_v34 = vpop.xlane.xlu1 %4287  ;;  %3351 = vadd.xlane.f32.xlu1 %v12091_v43  ;;  %v10246_v57 = vpop.eup %6388 }
 0x7ba   : > { %4785 = vmatprep.mubr.f32.mxu1 %v10234_v28  ;;  %6402 = vpow2.f32 %v4471_v40  ;;  %v3540_v25 = vpop.f32.mrf.mxu1  ;;  %v4353_v32 = vsub.f32 %v12092_v30, %v4288_v34  ;;  %v4354_v49 = vsub.f32 %v12093_v20, %v4288_v34  ;;  %v12096_v40 = vld [vmem:[#allocation94_spill] sm:$0xff]  ;;  %v10254_v43 = vpop.eup %6390  ;;  %v12099_v30 = vld [vmem:[#allocation164_spill] sm:$0xff] }
 0x7bb   : > { %6404 = vpow2.f32 %v4473_v26  ;;  %v10256_v26 = vpop.eup %6392 }
 0x7bc   : > { %v4475_v47 = vmul.f32 1.442695, %v4353_v32  ;;  %v4477_v5 = vmul.f32 1.442695, %v4354_v49  ;;  %v10248_v38 = vpop.f32.mrf.mxu1  ;;  %3360 = vadd.xlane.f32.xlu0 %v12095_v15  ;;  %6406 = vpow2.f32 %v4459_v63  ;;  %12097 = vst [vmem:[#allocation65_spill] sm:$0xff] %v10256_v26  ;;  %v12100_v63 = vld [vmem:[#allocation117_spill] sm:$0xff]  ;;  %v10264_v20 = vpop.eup %6394 }
 0x7bd   : > { %12094 = vst [vmem:[#allocation68_spill] sm:$0xff] %v10248_v38  ;;  %4786 = vmatmul.mubr.f32.gmra.mxu1 %v10244_v11  ;;  %3357 = vadd.xlane.f32.xlu1 %v12096_v40  ;;  %12101 = vst [vmem:[#allocation72_spill] sm:$0xff] %v10264_v20  ;;  %v12104_v40 = vld [vmem:[#allocation104_spill] sm:$0xff] }
 0x7be   : > { %4790 = vmatprep.mubr.f32.mxu1 %v10246_v57  ;;  %6408 = vpow2.f32 %v4475_v47  ;;  %v3545_v34 = vpop.f32.mrf.mxu1  ;;  %v10266_v47 = vpop.eup %6396 }
 0x7bf   : > { %6410 = vpow2.f32 %v4477_v5  ;;  %v12103_v5 = vld [vmem:[#allocation90_spill] sm:$0xff]  ;;  %v10272_v15 = vpop.eup %6398 }
 0x7c0   : > { %v10258_v25 = vpop.f32.mrf.mxu1  ;;  %3366 = vadd.xlane.f32.xlu0 %v12099_v30  ;;  %v10276_v34 = vpop.eup %6400 }
 0x7c1   : > { %12098 = vst [vmem:[#allocation177_spill] sm:$0xff] %v10258_v25  ;;  %4791 = vmatmul.mubr.f32.gmra.mxu1 %v10254_v43  ;;  %3363 = vadd.xlane.f32.xlu1 %v12100_v63  ;;  %12105 = vst [vmem:[#allocation178_spill] sm:$0xff] %v10276_v34 }
 0x7c2   : > { %4795 = vmatprep.mubr.f32.mxu1 %v10256_v26  ;;  %v3550_v32 = vpop.f32.mrf.mxu1 }
 0x7c4   : > { %v10268_v49 = vpop.f32.mrf.mxu1  ;;  %3372 = vadd.xlane.f32.xlu0 %v12103_v5  ;;  %v12108_v5 = vld [vmem:[#allocation105_spill] sm:$0xff] }
 0x7c5   : > { %12102 = vst [vmem:[#allocation69_spill] sm:$0xff] %v10268_v49  ;;  %4796 = vmatmul.mubr.f32.gmra.mxu1 %v10264_v20  ;;  %3369 = vadd.xlane.f32.xlu1 %v12104_v40  ;;  %v12107_v49 = vld [vmem:[#allocation166_spill] sm:$0xff] }
 0x7c6   : > { %4800 = vmatprep.mubr.f32.mxu1 %v10266_v47  ;;  %v3555_v30 = vpop.f32.mrf.mxu1 }
 0x7c7   : > { %v6403_v63 = vpop.eup %6402 }
 0x7c8   : > { %v6405_v32 = vpop.eup %6404  ;;  %v10278_v25 = vpop.f32.mrf.mxu1  ;;  %3378 = vadd.xlane.f32.xlu0 %v12107_v49  ;;  %v12112_v49 = vld [vmem:[#allocation106_spill] sm:$0xff] }
 0x7c9   : > { %12106 = vst [vmem:[#allocation76_spill] sm:$0xff] %v10278_v25  ;;  %4801 = vmatmul.mubr.f32.gmra.mxu1 %v10272_v15  ;;  %3375 = vadd.xlane.f32.xlu1 %v12108_v5  ;;  %v10284_v38 = vadd.f32 %v6405_v32, %v6403_v63  ;;  %v10286_v2 = vpop.eup %6406  ;;  %v12111_v25 = vld [vmem:[#allocation93_spill] sm:$0xff] }
 0x7ca   : > { %4805 = vmatprep.mubr.f32.mxu1 %v10276_v34  ;;  %v3560_v40 = vpop.f32.mrf.mxu1 }
 0x7cb   : > { %12109 = vst [vmem:[#allocation73_spill] sm:$0xff] %v10284_v38  ;;  %v6409_v0 = vpop.eup %6408  ;;  %v12114_v40 = vld [vmem:[#allocation95_spill] sm:$0xff] }
 0x7cc   : > { %v6411_v20 = vpop.eup %6410  ;;  %v10288_v30 = vpop.f32.mrf.mxu1  ;;  %3384 = vadd.xlane.f32.xlu0 %v12111_v25  ;;  %v3395_v25 = vadd.f32 %v9861_v3, %v9857_v18  ;;  %v12120_v3 = vld [vmem:[#allocation147_spill] sm:$0xff] }
 0x7cd   : > { %12110 = vst [vmem:[#allocation179_spill] sm:$0xff] %v10288_v30  ;;  %4806 = vmatmul.mubr.f32.gmra.mxu1 %v10286_v2  ;;  %3381 = vadd.xlane.f32.xlu1 %v12112_v49  ;;  %v10294_v34 = vadd.f32 %v6411_v20, %v6409_v0  ;;  %v12115_v30 = vld [vmem:[#allocation108_spill] sm:$0xff]  ;;  %v12117_v49 = vld [vmem:[#allocation115_spill] sm:$0xff] }
 0x7ce   : > { %4810 = vmatprep.mubr.f32.mxu1 %v10094_v4  ;;  %v3565_v5 = vpop.f32.mrf.mxu1 }
 0x7d0   : > { %v10296_v26 = vpop.f32.mrf.mxu1  ;;  %3390 = vadd.xlane.f32.xlu0 %v12114_v40 }
 0x7d1   : > { %12113 = vst [vmem:[#allocation80_spill] sm:$0xff] %v10296_v26  ;;  %4811 = vmatmul.mubr.f32.gmra.mxu1 %v10090_v41  ;;  %3387 = vadd.xlane.f32.xlu1 %v12115_v30  ;;  %v3401_v41 = vadd.f32 %v9877_v62, %v9871_v7  ;;  %v12123_v7 = vld [vmem:[#allocation103_spill] sm:$0xff] }
 0x7d2   : > { %4815 = vmatprep.mubr.f32.mxu1 %v10114_v22  ;;  %v3570_v38 = vpop.f32.mrf.mxu1  ;;  %v12119_v22 = vld [vmem:[#allocation118_spill] sm:$0xff]  ;;  %v3413_v62 = vadd.f32 %v12123_v7, %v9905_v60 }
 0x7d3   : > { %v3407_v38 = vadd.f32 %v12120_v3, %v9887_v51  ;;  %v12129_v60 = vld [vmem:[#allocation134_spill] sm:$0xff] }
 0x7d4   : > { %v10304_v4 = vpop.f32.mrf.mxu1  ;;  %3396 = vadd.xlane.f32.xlu0 %v3395_v25 }
 0x7d5   : > { %12116 = vst [vmem:[#allocation77_spill] sm:$0xff] %v10304_v4  ;;  %4816 = vmatmul.mubr.f32.gmra.mxu1 %v10110_v45  ;;  %3393 = vadd.xlane.f32.xlu1 %v12117_v49  ;;  %v4487_v49 = vadd.f32 %v9944_v50, %v9935_v44  ;;  %v4499_v50 = vadd.f32 %v9998_v53, %v9990_v59  ;;  %v12137_v53 = vld [vmem:[#allocation132_spill] sm:$0xff] }
 0x7d6   : > { %4820 = vmatprep.mubr.f32.mxu1 %v6405_v32  ;;  %v3575_v5 = vpop.f32.mrf.mxu1  ;;  %v12122_v32 = vld [vmem:[#allocation119_spill] sm:$0xff] }
 0x7d8   : > { %v10310_v40 = vpop.f32.mrf.mxu1  ;;  %3402 = vadd.xlane.f32.xlu0 %v3401_v41  ;;  %v4493_v41 = vadd.f32 %v9974_v13, %v9962_v55  ;;  %v12133_v55 = vld [vmem:[#allocation138_spill] sm:$0xff] }
 0x7d9   : > { %12118 = vst [vmem:[#allocation180_spill] sm:$0xff] %v10310_v40  ;;  %4821 = vmatmul.mubr.f32.gmra.mxu1 %v6403_v63  ;;  %3399 = vadd.xlane.f32.xlu1 %v12119_v22 }
 0x7da   : > { %4825 = vmatprep.mubr.f32.mxu1 %v6411_v20  ;;  %v3580_v18 = vpop.f32.mrf.mxu1  ;;  %v12125_v20 = vld [vmem:[#allocation125_spill] sm:$0xff] }
 0x7dc   : > { %v10315_v45 = vpop.f32.mrf.mxu1  ;;  %3408 = vadd.xlane.f32.xlu0 %v3407_v38  ;;  %v12130_v38 = vld [vmem:[#allocation99_spill] sm:$0xff] }
 0x7dd   : > { %12121 = vst [vmem:[#allocation84_spill] sm:$0xff] %v10315_v45  ;;  %4826 = vmatmul.mubr.f32.gmra.mxu1 %v6409_v0  ;;  %3405 = vadd.xlane.f32.xlu1 %v12122_v32  ;;  %v12127_v0 = vld [vmem:[#allocation131_spill] sm:$0xff] }
 0x7de   : > { %v3585_v30 = vpop.f32.mrf.mxu1 }
 0x7df   : > { %v12131_v30 = vld [vmem:[#allocation98_spill] sm:$0xff] }
 0x7e0   : > { %v10320_v25 = vpop.f32.mrf.mxu1  ;;  %3414 = vadd.xlane.f32.xlu0 %v3413_v62 }
 0x7e1   : > { %12124 = vst [vmem:[#allocation81_spill] sm:$0xff] %v10320_v25  ;;  %3411 = vadd.xlane.f32.xlu1 %v12125_v20 }
 0x7e2   : > { %v3590_v63 = vpop.f32.mrf.mxu1 }
 0x7e4   : > { %v10325_v51 = vpop.f32.mrf.mxu1  ;;  %4488 = vadd.xlane.f32.xlu0 %v4487_v49 }
 0x7e5   : > { %12126 = vst [vmem:[#allocation181_spill] sm:$0xff] %v10325_v51  ;;  %3417 = vadd.xlane.f32.xlu1 %v12127_v0  ;;  %v12134_v0 = vld [vmem:[#allocation110_spill] sm:$0xff] }
 0x7e6   : > { %v3595_v5 = vpop.f32.mrf.mxu1 }
 0x7e7   : > { %v4505_v5 = vadd.f32 %v12134_v0, %v10020_v54  ;;  %v4511_v54 = vadd.f32 %v10058_v31, %v10048_v23  ;;  %v4514_v23 = vadd.f32 %v10070_v42, %v10062_v39 }
 0x7e8   : > { %v10330_v22 = vpop.f32.mrf.mxu1  ;;  %4494 = vadd.xlane.f32.xlu0 %v4493_v41  ;;  %v12135_v41 = vld [vmem:[#allocation101_spill] sm:$0xff] }
 0x7e9   : > { %12128 = vst [vmem:[#allocation89_spill] sm:$0xff] %v10330_v22  ;;  %4491 = vadd.xlane.f32.xlu1 %v12129_v60  ;;  %v4291_v18 = vpop.xlane.xlu0 %4290 }
 0x7ea   : > { %v3600_v3 = vpop.f32.mrf.mxu1  ;;  %v4355_v32 = vsub.f32 %v12130_v38, %v4291_v18  ;;  %v4356_v44 = vsub.f32 %v12131_v30, %v4291_v18  ;;  %v12136_v18 = vld [vmem:[#allocation129_spill] sm:$0xff] }
 0x7eb   : > { %v12138_v3 = vld [vmem:[#allocation112_spill] sm:$0xff] }
 0x7ec   : > { %v10337_v7 = vpop.f32.mrf.mxu1  ;;  %v4479_v62 = vmul.f32 1.442695, %v4355_v32  ;;  %v4481_v20 = vmul.f32 1.442695, %v4356_v44  ;;  %4500 = vadd.xlane.f32.xlu0 %v4499_v50  ;;  %v4502_v38 = vadd.f32 %v12138_v3, %v12137_v53 }
 0x7ed   : > { %12132 = vst [vmem:[#allocation182_spill] sm:$0xff] %v10337_v7  ;;  %4497 = vadd.xlane.f32.xlu1 %v12133_v55  ;;  %v10340_v13 = vpop.xlane.xlu0 %2160 }
 0x7ee   : > { %6412 = vpow2.f32 %v4479_v62  ;;  %v3605_v63 = vpop.f32.mrf.mxu1  ;;  %v4294_v49 = vpop.xlane.xlu1 %4293 }
 0x7ef   : > { %6414 = vpow2.f32 %v4481_v20  ;;  %v4357_v60 = vsub.f32 %v12135_v41, %v4294_v49  ;;  %v4358_v59 = vsub.f32 %v12136_v18, %v4294_v49  ;;  %v4508_v20 = vadd.f32 %v10044_v6, %v10034_v61 }
 0x7f0   : > { %v10348_v32 = vpop.f32.mrf.mxu1  ;;  %4506 = vadd.xlane.f32.xlu0 %v4505_v5  ;;  %v4517_v41 = vadd.f32 %v10082_v27, %v10074_v56  ;;  %v4523_v18 = vadd.f32 %v10118_v16, %v10106_v17  ;;  %v4520_v56 = vadd.f32 %v10098_v8, %v10086_v29  ;;  %v4529_v17 = vadd.f32 %v10148_v1, %v10138_v14 }
 0x7f1   : > { %12139 = vst [vmem:[#allocation85_spill] sm:$0xff] %v10348_v32  ;;  %v4483_v30 = vmul.f32 1.442695, %v4357_v60  ;;  %v4485_v44 = vmul.f32 1.442695, %v4358_v59  ;;  %4503 = vadd.xlane.f32.xlu1 %v4502_v38  ;;  %v10350_v50 = vpop.xlane.xlu0 %2166  ;;  %v4526_v29 = vadd.f32 %v10134_v35, %v10126_v48  ;;  %v4535_v14 = vadd.f32 %v10174_v12, %v10164_v10 }
 0x7f2   : > { %v3610_v62 = vpop.f32.mrf.mxu1  ;;  %v10352_v55 = vpop.xlane.xlu1 %2163  ;;  %v4532_v48 = vadd.f32 %v10160_v52, %v10152_v33  ;;  %v4538_v10 = vadd.f32 %v10188_v37, %v10178_v19 }
 0x7f3   : > { %6416 = vpow2.f32 %v4483_v30 }
 0x7f4   : > { %6418 = vpow2.f32 %v4485_v44  ;;  %v10358_v63 = vpop.f32.mrf.mxu1  ;;  %4512 = vadd.xlane.f32.xlu0 %v4511_v54 }
 0x7f5   : > { %12140 = vst [vmem:[#allocation100_spill] sm:$0xff] %v10358_v63  ;;  %4509 = vadd.xlane.f32.xlu1 %v4508_v20  ;;  %v10360_v49 = vpop.xlane.xlu0 %2172  ;;  %6420 = vrcp.f32 %v10340_v13 }
 0x7f6   : > { %v3615_v0 = vpop.f32.mrf.mxu1  ;;  %v10362_v5 = vpop.xlane.xlu1 %2169  ;;  %6422 = vrcp.f32 %v10352_v55 }
 0x7f7   : > { %v4541_v0 = vadd.f32 %v10202_v36, %v10192_v21  ;;  %v4553_v36 = vadd.f32 %v10254_v43, %v10246_v57  ;;  %v12151_v43 = vld [vmem:[#allocation178_spill] sm:$0xff]  ;;  %6424 = vrcp.f32 %v10350_v50 }
 0x7f8   : > { %v10368_v31 = vpop.f32.mrf.mxu1  ;;  %4518 = vadd.xlane.f32.xlu0 %v4517_v41  ;;  %6426 = vrcp.f32 %v10362_v5 }
 0x7f9   : > { %12141 = vst [vmem:[#allocation91_spill] sm:$0xff] %v10368_v31  ;;  %4515 = vadd.xlane.f32.xlu1 %v4514_v23  ;;  %v10370_v6 = vpop.xlane.xlu0 %2178  ;;  %v4547_v23 = vadd.f32 %v10232_v24, %v10220_v46  ;;  %v4559_v24 = vadd.f32 %v10272_v15, %v10266_v47  ;;  %6428 = vrcp.f32 %v10360_v49 }
 0x7fa   : > { %v3620_v61 = vpop.f32.mrf.mxu1  ;;  %v10372_v60 = vpop.xlane.xlu1 %2175 }
 0x7fb   : > { %v10376_v59 = vpop.eup %6412  ;;  %v4544_v61 = vadd.f32 %v10218_v58, %v10206_v9  ;;  %6430 = vrcp.f32 %v10372_v60 }
 0x7fc   : > { %v10380_v27 = vpop.eup %6414  ;;  %v10382_v39 = vpop.f32.mrf.mxu1  ;;  %4524 = vadd.xlane.f32.xlu0 %v4523_v18  ;;  %6432 = vrcp.f32 %v10370_v6 }
 0x7fd   : > { %12142 = vst [vmem:[#allocation183_spill] sm:$0xff] %v10382_v39  ;;  %4521 = vadd.xlane.f32.xlu1 %v4520_v56  ;;  %4830 = vmatprep.mubr.f32.mxu1 %v10380_v27  ;;  %v10385_v42 = vpop.xlane.xlu0 %2184  ;;  %v4550_v56 = vadd.f32 %v10244_v11, %v10234_v28 }
 0x7fe   : > { %v3625_v53 = vpop.f32.mrf.mxu1  ;;  %v10387_v3 = vpop.xlane.xlu1 %2181  ;;  %4831 = vmatmul.mubr.f32.gmra.mxu1 %v10376_v59 }
 0x7ff   : > { %6434 = vrcp.f32 %v10387_v3 }
 0x800   : > { %v10394_v8 = vpop.eup %6416  ;;  %v10396_v16 = vpop.f32.mrf.mxu1  ;;  %4530 = vadd.xlane.f32.xlu0 %v4529_v17  ;;  %v12148_v17 = vld [vmem:[#allocation65_spill] sm:$0xff]  ;;  %6436 = vrcp.f32 %v10385_v42 }
 0x801   : > { %12143 = vst [vmem:[#allocation111_spill] sm:$0xff] %v10396_v16  ;;  %v10398_v38 = vpop.eup %6418  ;;  %4527 = vadd.xlane.f32.xlu1 %v4526_v29  ;;  %v10400_v30 = vpop.xlane.xlu0 %2190  ;;  %v12149_v29 = vld [vmem:[#allocation72_spill] sm:$0xff] }
 0x802   : > { %v3630_v44 = vpop.f32.mrf.mxu1  ;;  %4835 = vmatprep.mubr.f32.mxu1 %v10398_v38  ;;  %v10403_v62 = vpop.xlane.xlu1 %2187 }
 0x803   : > { %4836 = vmatmul.mubr.f32.gmra.mxu1 %v10394_v8  ;;  %v4556_v44 = vadd.f32 %v12149_v29, %v12148_v17  ;;  %v6421_v50 = vpop.eup %6420  ;;  %6438 = vrcp.f32 %v10403_v62 }
 0x804   : > { %v10410_v35 = vpop.f32.mrf.mxu1  ;;  %4536 = vadd.xlane.f32.xlu0 %v4535_v14  ;;  %6440 = vrcp.f32 %v10400_v30 }
 0x805   : > { %12144 = vst [vmem:[#allocation102_spill] sm:$0xff] %v10410_v35  ;;  %4533 = vadd.xlane.f32.xlu1 %v4532_v48  ;;  %v10412_v1 = vpop.xlane.xlu0 %2196  ;;  %v4562_v48 = vadd.f32 %v10286_v2, %v12151_v43  ;;  %v12159_v43 = vld [vmem:[#allocation32_spill] sm:$0xff] }
 0x806   : > { %v3635_v54 = vpop.f32.mrf.mxu1  ;;  %v10414_v20 = vpop.xlane.xlu1 %2193 }
 0x807   : > { %6442 = vrcp.f32 %v10414_v20 }
 0x808   : > { %v10420_v12 = vpop.f32.mrf.mxu1  ;;  %4542 = vadd.xlane.f32.xlu0 %v4541_v0  ;;  %v12153_v0 = vld [vmem:[#allocation171_spill] sm:$0xff]  ;;  %6444 = vrcp.f32 %v10412_v1 }
 0x809   : > { %12145 = vst [vmem:[#allocation184_spill] sm:$0xff] %v10420_v12  ;;  %4539 = vadd.xlane.f32.xlu1 %v4538_v10  ;;  %v10422_v33 = vpop.xlane.xlu0 %2202 }
 0x80a   : > { %v3640_v52 = vpop.f32.mrf.mxu1  ;;  %v10424_v41 = vpop.xlane.xlu1 %2199 }
 0x80b   : > { %6446 = vrcp.f32 %v10424_v41 }
 0x80c   : > { %v10430_v18 = vpop.f32.mrf.mxu1  ;;  %4548 = vadd.xlane.f32.xlu0 %v4547_v23  ;;  %v12155_v23 = vld [vmem:[#allocation73_spill] sm:$0xff]  ;;  %6448 = vrcp.f32 %v10422_v33 }
 0x80d   : > { %12146 = vst [vmem:[#allocation124_spill] sm:$0xff] %v10430_v18  ;;  %4545 = vadd.xlane.f32.xlu1 %v4544_v61  ;;  %v10432_v19 = vpop.xlane.xlu0 %2208  ;;  %v12156_v61 = vld [vmem:[#allocation114_spill] sm:$0xff] }
 0x80e   : > { %v3645_v37 = vpop.f32.mrf.mxu1  ;;  %v10434_v21 = vpop.xlane.xlu1 %2205 }
 0x80f   : > { %6450 = vrcp.f32 %v10434_v21 }
 0x810   : > { %v10440_v53 = vpop.f32.mrf.mxu1  ;;  %4554 = vadd.xlane.f32.xlu0 %v4553_v36  ;;  %6452 = vrcp.f32 %v10432_v19 }
 0x811   : > { %12147 = vst [vmem:[#allocation113_spill] sm:$0xff] %v10440_v53  ;;  %4551 = vadd.xlane.f32.xlu1 %v4550_v56  ;;  %v10442_v9 = vpop.xlane.xlu0 %2214  ;;  %v4577_v56 = vadd.f32 %v10380_v27, %v10376_v59 }
 0x812   : > { %v3650_v58 = vpop.f32.mrf.mxu1  ;;  %v10444_v46 = vpop.xlane.xlu1 %2211 }
 0x814   : > { %v10450_v14 = vpop.f32.mrf.mxu1  ;;  %4560 = vadd.xlane.f32.xlu0 %v4559_v24 }
 0x815   : > { %12150 = vst [vmem:[#allocation185_spill] sm:$0xff] %v10450_v14  ;;  %4557 = vadd.xlane.f32.xlu1 %v4556_v44  ;;  %v10452_v28 = vpop.xlane.xlu0 %2220  ;;  %v4580_v44 = vadd.f32 %v10398_v38, %v10394_v8 }
 0x816   : > { %v3655_v11 = vpop.f32.mrf.mxu1  ;;  %v10454_v57 = vpop.xlane.xlu1 %2217 }
 0x818   : > { %v10458_v54 = vpop.f32.mrf.mxu1  ;;  %4566 = vadd.xlane.f32.xlu0 %v12153_v0 }
 0x819   : > { %12152 = vst [vmem:[#allocation143_spill] sm:$0xff] %v10458_v54  ;;  %4563 = vadd.xlane.f32.xlu1 %v4562_v48  ;;  %v10461_v47 = vpop.xlane.xlu0 %2226 }
 0x81a   : > { %v3660_v15 = vpop.f32.mrf.mxu1  ;;  %v10463_v10 = vpop.xlane.xlu1 %2223 }
 0x81b   : > { %v12162_v15 = vld [vmem:[#allocation33_spill] sm:$0xff] }
 0x81c   : > { %v10465_v52 = vpop.f32.mrf.mxu1  ;;  %4572 = vadd.xlane.f32.xlu0 %v12155_v23 }
 0x81d   : > { %12154 = vst [vmem:[#allocation126_spill] sm:$0xff] %v10465_v52  ;;  %4569 = vadd.xlane.f32.xlu1 %v12156_v61  ;;  %v10469_v37 = vpop.xlane.xlu0 %2232 }
 0x81e   : > { %v3665_v36 = vpop.f32.mrf.mxu1  ;;  %v10471_v2 = vpop.xlane.xlu1 %2229 }
 0x81f   : > { %v12164_v36 = vld [vmem:[#allocation36_spill] sm:$0xff] }
 0x820   : > { %v10475_v58 = vpop.f32.mrf.mxu1  ;;  %4578 = vadd.xlane.f32.xlu0 %v4577_v56  ;;  %v12165_v56 = vld [vmem:[#allocation35_spill] sm:$0xff] }
 0x821   : > { %12157 = vst [vmem:[#allocation146_spill] sm:$0xff] %v10475_v58  ;;  %4575 = vadd.xlane.f32.xlu1 %v10294_v34  ;;  %v10478_v24 = vpop.xlane.xlu0 %2238  ;;  %v12161_v34 = vld [vmem:[#allocation34_spill] sm:$0xff] }
 0x822   : > { %v3670_v17 = vpop.f32.mrf.mxu1  ;;  %v10480_v29 = vpop.xlane.xlu1 %2235 }
 0x824   : > { %v10484_v11 = vpop.f32.mrf.mxu1  ;;  %997 = vadd.xlane.f32.xlu0 %v12159_v43 }
 0x825   : > { %12158 = vst [vmem:[#allocation152_spill] sm:$0xff] %v10484_v11  ;;  %4581 = vadd.xlane.f32.xlu1 %v4580_v44  ;;  %v10487_v48 = vpop.xlane.xlu0 %2244 }
 0x826   : > { %v3675_v59 = vpop.f32.mrf.mxu1  ;;  %v10489_v27 = vpop.xlane.xlu1 %2241 }
 0x828   : > { %v10491_v0 = vpop.f32.mrf.mxu1  ;;  %1003 = vadd.xlane.f32.xlu0 %v12161_v34  ;;  %v12167_v34 = vld [vmem:[#allocation38_spill] sm:$0xff] }
 0x829   : > { %12160 = vst [vmem:[#allocation145_spill] sm:$0xff] %v10491_v0  ;;  %1000 = vadd.xlane.f32.xlu1 %v12162_v15  ;;  %v10495_v23 = vpop.xlane.xlu0 %2250  ;;  %v12168_v15 = vld [vmem:[#allocation37_spill] sm:$0xff] }
 0x82a   : > { %v4684_v61 = vpop.f32.mrf.mxu1  ;;  %v10497_v8 = vpop.xlane.xlu1 %2247 }
 0x82c   : > { %v10499_v38 = vpop.f32.mrf.mxu1  ;;  %1009 = vadd.xlane.f32.xlu0 %v12164_v36  ;;  %v12170_v36 = vld [vmem:[#allocation40_spill] sm:$0xff] }
 0x82d   : > { %12163 = vst [vmem:[#allocation170_spill] sm:$0xff] %v10499_v38  ;;  %1006 = vadd.xlane.f32.xlu1 %v12165_v56  ;;  %v10503_v17 = vpop.xlane.xlu0 %3324  ;;  %v12171_v56 = vld [vmem:[#allocation39_spill] sm:$0xff] }
 0x82e   : > { %v4689_v44 = vpop.f32.mrf.mxu1  ;;  %v10505_v43 = vpop.xlane.xlu1 %2253 }
 0x830   : > { %v10507_v59 = vpop.f32.mrf.mxu1  ;;  %1015 = vadd.xlane.f32.xlu0 %v12167_v34  ;;  %v12173_v34 = vld [vmem:[#allocation42_spill] sm:$0xff] }
 0x831   : > { %12166 = vst [vmem:[#allocation153_spill] sm:$0xff] %v10507_v59  ;;  %1012 = vadd.xlane.f32.xlu1 %v12168_v15  ;;  %v10511_v61 = vpop.xlane.xlu0 %3330  ;;  %v12174_v15 = vld [vmem:[#allocation41_spill] sm:$0xff] }
 0x832   : > { %v4694_v0 = vpop.f32.mrf.mxu1  ;;  %v10513_v11 = vpop.xlane.xlu1 %3327 }
 0x834   : > { %v10515_v38 = vpop.f32.mrf.mxu1  ;;  %1021 = vadd.xlane.f32.xlu0 %v12170_v36  ;;  %v12176_v36 = vld [vmem:[#allocation44_spill] sm:$0xff] }
 0x835   : > { %12169 = vst [vmem:[#allocation172_spill] sm:$0xff] %v10515_v38  ;;  %1018 = vadd.xlane.f32.xlu1 %v12171_v56  ;;  %v10519_v44 = vpop.xlane.xlu0 %3336  ;;  %v12177_v56 = vld [vmem:[#allocation43_spill] sm:$0xff] }
 0x836   : > { %v4699_v58 = vpop.f32.mrf.mxu1  ;;  %v10521_v52 = vpop.xlane.xlu1 %3333 }
 0x838   : > { %v10523_v59 = vpop.f32.mrf.mxu1  ;;  %1027 = vadd.xlane.f32.xlu0 %v12173_v34  ;;  %v12179_v34 = vld [vmem:[#allocation2_spill] sm:$0xff] }
 0x839   : > { %12172 = vst [vmem:[#allocation155_spill] sm:$0xff] %v10523_v59  ;;  %1024 = vadd.xlane.f32.xlu1 %v12174_v15  ;;  %v10527_v0 = vpop.xlane.xlu0 %3342  ;;  %v12180_v15 = vld [vmem:[#allocation45_spill] sm:$0xff] }
 0x83a   : > { %v4704_v54 = vpop.f32.mrf.mxu1  ;;  %v10529_v14 = vpop.xlane.xlu1 %3339 }
 0x83c   : > { %v10531_v38 = vpop.f32.mrf.mxu1  ;;  %1033 = vadd.xlane.f32.xlu0 %v12176_v36  ;;  %v12182_v36 = vld [vmem:[#allocation6_spill] sm:$0xff] }
 0x83d   : > { %12175 = vst [vmem:[#allocation154_spill] sm:$0xff] %v10531_v38  ;;  %1030 = vadd.xlane.f32.xlu1 %v12177_v56  ;;  %v10535_v58 = vpop.xlane.xlu0 %3348  ;;  %v12183_v56 = vld [vmem:[#allocation4_spill] sm:$0xff] }
 0x83e   : > { %v4709_v53 = vpop.f32.mrf.mxu1  ;;  %v10537_v18 = vpop.xlane.xlu1 %3345 }
 0x840   : > { %v10539_v59 = vpop.f32.mrf.mxu1  ;;  %1039 = vadd.xlane.f32.xlu0 %v12179_v34  ;;  %v12185_v34 = vld [vmem:[#allocation16_spill] sm:$0xff] }
 0x841   : > { %12178 = vst [vmem:[#allocation144_spill] sm:$0xff] %v10539_v59  ;;  %1036 = vadd.xlane.f32.xlu1 %v12180_v15  ;;  %v10543_v54 = vpop.xlane.xlu0 %3354  ;;  %v12186_v15 = vld [vmem:[#allocation8_spill] sm:$0xff] }
 0x842   : > { %v4714_v12 = vpop.f32.mrf.mxu1  ;;  %v10545_v35 = vpop.xlane.xlu1 %3351 }
 0x844   : > { %v10547_v38 = vpop.f32.mrf.mxu1  ;;  %1045 = vadd.xlane.f32.xlu0 %v12182_v36  ;;  %v12188_v36 = vld [vmem:[#allocation21_spill] sm:$0xff] }
 0x845   : > { %12181 = vst [vmem:[#allocation149_spill] sm:$0xff] %v10547_v38  ;;  %1042 = vadd.xlane.f32.xlu1 %v12183_v56  ;;  %v10551_v53 = vpop.xlane.xlu0 %3360  ;;  %v12189_v56 = vld [vmem:[#allocation20_spill] sm:$0xff] }
 0x846   : > { %v4719_v16 = vpop.f32.mrf.mxu1  ;;  %v10553_v39 = vpop.xlane.xlu1 %3357 }
 0x848   : > { %v10555_v59 = vpop.f32.mrf.mxu1  ;;  %1051 = vadd.xlane.f32.xlu0 %v12185_v34  ;;  %v12191_v34 = vld [vmem:[#allocation26_spill] sm:$0xff] }
 0x849   : > { %12184 = vst [vmem:[#allocation157_spill] sm:$0xff] %v10555_v59  ;;  %1048 = vadd.xlane.f32.xlu1 %v12186_v15  ;;  %v10559_v12 = vpop.xlane.xlu0 %3366  ;;  %v12192_v15 = vld [vmem:[#allocation24_spill] sm:$0xff] }
 0x84a   : > { %v4724_v31 = vpop.f32.mrf.mxu1  ;;  %v10561_v63 = vpop.xlane.xlu1 %3363 }
 0x84c   : > { %v10563_v38 = vpop.f32.mrf.mxu1  ;;  %1057 = vadd.xlane.f32.xlu0 %v12188_v36  ;;  %v12194_v36 = vld [vmem:[#allocation31_spill] sm:$0xff] }
 0x84d   : > { %12187 = vst [vmem:[#allocation156_spill] sm:$0xff] %v10563_v38  ;;  %1054 = vadd.xlane.f32.xlu1 %v12189_v56  ;;  %v10567_v16 = vpop.xlane.xlu0 %3372  ;;  %v12195_v56 = vld [vmem:[#allocation28_spill] sm:$0xff] }
 0x84e   : > { %v4729_v32 = vpop.f32.mrf.mxu1  ;;  %v10569_v7 = vpop.xlane.xlu1 %3369 }
 0x850   : > { %v10571_v59 = vpop.f32.mrf.mxu1  ;;  %1063 = vadd.xlane.f32.xlu0 %v12191_v34  ;;  %v12198_v34 = vld [vmem:[#allocation48_spill] sm:$0xff] }
 0x851   : > { %12190 = vst [vmem:[#allocation148_spill] sm:$0xff] %v10571_v59  ;;  %1060 = vadd.xlane.f32.xlu1 %v12192_v15  ;;  %v10575_v31 = vpop.xlane.xlu0 %3378  ;;  %v12199_v15 = vld [vmem:[#allocation29_spill] sm:$0xff] }
 0x852   : > { %v4734_v22 = vpop.f32.mrf.mxu1  ;;  %v10577_v51 = vpop.xlane.xlu1 %3375 }
 0x854   : > { %1069 = vadd.xlane.f32.xlu0 %v12194_v36  ;;  %v12203_v36 = vld [vmem:[#allocation52_spill] sm:$0xff] }
 0x855   : > { %v10579_v38 = vpop.f32.mrf.mxu1  ;;  %1066 = vadd.xlane.f32.xlu1 %v12195_v56  ;;  %v10583_v32 = vpop.xlane.xlu0 %3384  ;;  %v12204_v56 = vld [vmem:[#allocation49_spill] sm:$0xff] }
 0x856   : > { %12193 = vst [vmem:[#allocation142_spill] sm:$0xff] %v10579_v38  ;;  %12196 = vst [vmem:[#allocation161_spill] sm:$0xff] %v10583_v32  ;;  %v10585_v45 = vpop.xlane.xlu1 %3381 }
 0x857   : > { %v4739_v25 = vpop.f32.mrf.mxu1 }
 0x858   : > { %1075 = vadd.xlane.f32.xlu0 %v12198_v34  ;;  %v12206_v34 = vld [vmem:[#allocation56_spill] sm:$0xff] }
 0x859   : > { %v10587_v59 = vpop.f32.mrf.mxu1  ;;  %1072 = vadd.xlane.f32.xlu1 %v12199_v15  ;;  %v10591_v22 = vpop.xlane.xlu0 %3390  ;;  %v12207_v15 = vld [vmem:[#allocation53_spill] sm:$0xff] }
 0x85a   : > { %12197 = vst [vmem:[#allocation158_spill] sm:$0xff] %v10587_v59  ;;  %12200 = vst [vmem:[#allocation186_spill] sm:$0xff] %v10591_v22  ;;  %v10593_v4 = vpop.xlane.xlu1 %3387 }
 0x85b   : > { %v4744_v40 = vpop.f32.mrf.mxu1  ;;  %12201 = vst [vmem:[#allocation188_spill] sm:$0xff] %v10593_v4 }
 0x85c   : > { %1081 = vadd.xlane.f32.xlu0 %v12203_v36 }
 0x85d   : > { %v10595_v38 = vpop.f32.mrf.mxu1  ;;  %1078 = vadd.xlane.f32.xlu1 %v12204_v56  ;;  %v10599_v25 = vpop.xlane.xlu0 %3396 }
 0x85e   : > { %12202 = vst [vmem:[#allocation187_spill] sm:$0xff] %v10595_v38  ;;  %v10601_v26 = vpop.xlane.xlu1 %3393 }
 0x85f   : > { %v4749_v32 = vpop.f32.mrf.mxu1 }
 0x860   : > { %1087 = vadd.xlane.f32.xlu0 %v12206_v34  ;;  %v12209_v32 = vld [vmem:[#allocation57_spill] sm:$0xff] }
 0x861   : > { %v10603_v59 = vpop.f32.mrf.mxu1  ;;  %1084 = vadd.xlane.f32.xlu1 %v12207_v15  ;;  %v10607_v40 = vpop.xlane.xlu0 %3402 }
 0x862   : > { %12205 = vst [vmem:[#allocation88_spill] sm:$0xff] %v10603_v59  ;;  %v10609_v4 = vpop.xlane.xlu1 %3399 }
 0x863   : > { %v4754_v22 = vpop.f32.mrf.mxu1 }
 0x865   : > { %v10613_v36 = vpop.f32.mrf.mxu1  ;;  %1090 = vadd.xlane.f32.xlu1 %v12209_v32  ;;  %v10616_v56 = vpop.xlane.xlu0 %3408 }
 0x866   : > { %12208 = vst [vmem:[#allocation190_spill] sm:$0xff] %v10613_v36  ;;  %v10618_v38 = vpop.xlane.xlu1 %3405 }
 0x867   : > { %v4759_v59 = vpop.f32.mrf.mxu1 }
 0x869   : > { %v10622_v22 = vpop.f32.mrf.mxu1  ;;  %v10624_v34 = vpop.xlane.xlu0 %3414 }
 0x86a   : > { %12210 = vst [vmem:[#allocation162_spill] sm:$0xff] %v10622_v22  ;;  %12211 = vst [vmem:[#allocation159_spill] sm:$0xff] %v10624_v34  ;;  %v10626_v15 = vpop.xlane.xlu1 %3411 }
 0x86b   : > { %v4764_v13 = vpop.f32.mrf.mxu1  ;;  %12212 = vst [vmem:[#allocation189_spill] sm:$0xff] %v10626_v15 }
 0x86c   : > { %v6423_v13 = vpop.eup %6422  ;;  %6454 = vrcp.f32 %v10444_v46 }
 0x86d   : > { %v10630_v55 = vpop.f32.mrf.mxu1  ;;  %v10632_v59 = vpop.xlane.xlu0 %4488 }
 0x86e   : > { %12213 = vst [vmem:[#allocation165_spill] sm:$0xff] %v10630_v55  ;;  %12214 = vst [vmem:[#allocation122_spill] sm:$0xff] %v10632_v59  ;;  %v10634_v36 = vpop.xlane.xlu1 %3417  ;;  %v6425_v60 = vpop.eup %6424  ;;  %v12218_v55 = vld [vmem:[#allocation75_spill] sm:$0xff]  ;;  %v12219_v59 = vld [vmem:[#allocation74_spill] sm:$0xff]  ;;  %6456 = vrcp.f32 %v10442_v9 }
 0x86f   : > { %v4769_v32 = vpop.f32.mrf.mxu1  ;;  %12215 = vst [vmem:[#allocation123_spill] sm:$0xff] %v10634_v36  ;;  %v2546_v6 = vmul.f32 %v6423_v13, %v12218_v55  ;;  %v2545_v36 = vmul.f32 %v6421_v50, %v12219_v59  ;;  %v6427_v3 = vpop.eup %6426  ;;  %v12222_v55 = vld [vmem:[#allocation78_spill] sm:$0xff]  ;;  %v12223_v59 = vld [vmem:[#allocation79_spill] sm:$0xff]  ;;  %6458 = vrcp.f32 %v10454_v57 }
 0x870   : > { %v6429_v42 = vpop.eup %6428  ;;  %v2547_v13 = vmul.f32 %v6425_v60, %v12222_v55  ;;  %v2548_v50 = vmul.f32 %v6427_v3, %v12223_v59  ;;  %v12227_v3 = vld [vmem:[#allocation83_spill] sm:$0xff]  ;;  %6460 = vrcp.f32 %v10452_v28 }
 0x871   : > { %v10638_v5 = vpop.f32.mrf.mxu1  ;;  %v10640_v22 = vpop.xlane.xlu0 %4494 }
 0x872   : > { %12216 = vst [vmem:[#allocation160_spill] sm:$0xff] %v10638_v5  ;;  %v10642_v34 = vpop.xlane.xlu1 %4491 }
 0x873   : > { %v4774_v49 = vpop.f32.mrf.mxu1 }
 0x875   : > { %v10646_v32 = vpop.f32.mrf.mxu1  ;;  %v10650_v15 = vpop.xlane.xlu0 %4500 }
 0x876   : > { %12217 = vst [vmem:[#allocation168_spill] sm:$0xff] %v10646_v32  ;;  %12220 = vst [vmem:[#allocation127_spill] sm:$0xff] %v10650_v15  ;;  %4939 = vrot.lane.b32.xlu1 %v2546_v6, %s6764_s9  ;;  %v10653_v49 = vpop.xlane.xlu1 %4497  ;;  %4937 = vrot.lane.b32.xlu0 %v2545_v36, %s6764_s9  ;;  %v6431_v32 = vpop.eup %6430  ;;  %v12226_v36 = vld [vmem:[#allocation82_spill] sm:$0xff]  ;;  %6462 = vrcp.f32 %v10463_v10 }
 0x877   : > { %v4779_v5 = vpop.f32.mrf.mxu1  ;;  %v6433_v30 = vpop.eup %6432  ;;  %v2549_v60 = vmul.f32 %v6429_v42, %v12226_v36  ;;  %v2550_v55 = vmul.f32 %v6431_v32, %v12227_v3  ;;  %v12229_v42 = vld [vmem:[#allocation86_spill] sm:$0xff]  ;;  %v12230_v32 = vld [vmem:[#allocation87_spill] sm:$0xff]  ;;  %6464 = vrcp.f32 %v10461_v47 }
 0x878   : > { %v6435_v59 = vpop.eup %6434  ;;  %6466 = vrcp.f32 %v10471_v2 }
 0x879   : > { %v10658_v62 = vpop.f32.mrf.mxu1  ;;  %v10662_v15 = vpop.xlane.xlu0 %4506 }
 0x87a   : > { %12221 = vst [vmem:[#allocation130_spill] sm:$0xff] %v10658_v62  ;;  %12224 = vst [vmem:[#allocation163_spill] sm:$0xff] %v10662_v15  ;;  %v10664_v6 = vpop.xlane.xlu1 %4503  ;;  %4941 = vrot.lane.b32.xlu1 %v2547_v13, %s6764_s9  ;;  %4943 = vrot.lane.b32.xlu0 %v2548_v50, %s6764_s9  ;;  %v6437_v1 = vpop.eup %6436  ;;  %v2551_v13 = vmul.f32 %v6433_v30, %v12229_v42  ;;  %v2552_v50 = vmul.f32 %v6435_v59, %v12230_v32  ;;  %v12232_v30 = vld [vmem:[#allocation96_spill] sm:$0xff]  ;;  %6468 = vrcp.f32 %v10469_v37 }
 0x87b   : > { %v4784_v5 = vpop.f32.mrf.mxu1  ;;  %v6439_v36 = vpop.eup %6438  ;;  %6470 = vrcp.f32 %v10480_v29 }
 0x87c   : > { %v6441_v33 = vpop.eup %6440  ;;  %6472 = vrcp.f32 %v10478_v24 }
 0x87d   : > { %v10670_v20 = vpop.f32.mrf.mxu1  ;;  %v10674_v62 = vpop.xlane.xlu0 %4512 }
 0x87e   : > { %12225 = vst [vmem:[#allocation94_spill] sm:$0xff] %v10670_v20  ;;  %v10676_v15 = vpop.xlane.xlu1 %4509  ;;  %4945 = vrot.lane.b32.xlu1 %v2549_v60, %s6764_s9  ;;  %4947 = vrot.lane.b32.xlu0 %v2550_v55, %s6764_s9  ;;  %v2553_v60 = vmul.f32 %v6437_v1, %v12232_v30  ;;  %v12233_v55 = vld [vmem:[#allocation97_spill] sm:$0xff]  ;;  %v6443_v42 = vpop.eup %6442  ;;  %v12235_v1 = vld [vmem:[#allocation107_spill] sm:$0xff]  ;;  %6474 = vrcp.f32 %v10489_v27 }
 0x87f   : > { %v4789_v5 = vpop.f32.mrf.mxu1  ;;  %v2554_v59 = vmul.f32 %v6439_v36, %v12233_v55  ;;  %v6445_v19 = vpop.eup %6444  ;;  %6476 = vrcp.f32 %v10487_v48 }
 0x880   : > { %v6447_v30 = vpop.eup %6446  ;;  %6478 = vrcp.f32 %v10497_v8  ;;  %v12251_v8 = vld [vmem:[#allocation191_spill] sm:$0xff] }
 0x881   : > { %v10682_v41 = vpop.f32.mrf.mxu1  ;;  %v10686_v3 = vpop.xlane.xlu0 %4518 }
 0x882   : > { %12228 = vst [vmem:[#allocation164_spill] sm:$0xff] %v10682_v41  ;;  %v10688_v20 = vpop.xlane.xlu1 %4515  ;;  %4949 = vrot.lane.b32.xlu1 %v2551_v13, %s6764_s9  ;;  %4951 = vrot.lane.b32.xlu0 %v2552_v50, %s6764_s9  ;;  %v2555_v13 = vmul.f32 %v6441_v33, %v12235_v1  ;;  %v12236_v50 = vld [vmem:[#allocation109_spill] sm:$0xff]  ;;  %v6449_v9 = vpop.eup %6448  ;;  %v12238_v33 = vld [vmem:[#allocation120_spill] sm:$0xff]  ;;  %6480 = vrcp.f32 %v10495_v23 }
 0x883   : > { %v4794_v5 = vpop.f32.mrf.mxu1  ;;  %v2556_v36 = vmul.f32 %v6443_v42, %v12236_v50  ;;  %v6451_v1 = vpop.eup %6450  ;;  %6482 = vrcp.f32 %v10505_v43  ;;  %v12253_v23 = vld [vmem:[#allocation92_spill] sm:$0xff] }
 0x884   : > { %v6453_v28 = vpop.eup %6452  ;;  %6484 = vrcp.f32 %v10503_v17  ;;  %v12255_v17 = vld [vmem:[#allocation136_spill] sm:$0xff] }
 0x885   : > { %v10694_v21 = vpop.f32.mrf.mxu1  ;;  %v10698_v32 = vpop.xlane.xlu0 %4524 }
 0x886   : > { %12231 = vst [vmem:[#allocation117_spill] sm:$0xff] %v10694_v21  ;;  %v10700_v41 = vpop.xlane.xlu1 %4521  ;;  %4953 = vrot.lane.b32.xlu1 %v2553_v60, %s6764_s9  ;;  %4955 = vrot.lane.b32.xlu0 %v2554_v59, %s6764_s9  ;;  %v2557_v60 = vmul.f32 %v6445_v19, %v12238_v33  ;;  %v12239_v59 = vld [vmem:[#allocation121_spill] sm:$0xff]  ;;  %v12241_v19 = vld [vmem:[#allocation135_spill] sm:$0xff]  ;;  %v6455_v33 = vpop.eup %6454  ;;  %6486 = vrcp.f32 %v10513_v11 }
 0x887   : > { %v4799_v5 = vpop.f32.mrf.mxu1  ;;  %v2558_v42 = vmul.f32 %v6447_v30, %v12239_v59  ;;  %v6457_v47 = vpop.eup %6456  ;;  %6488 = vrcp.f32 %v10511_v61  ;;  %v12257_v61 = vld [vmem:[#allocation128_spill] sm:$0xff] }
 0x889   : > { %v10706_v46 = vpop.f32.mrf.mxu1  ;;  %v10710_v55 = vpop.xlane.xlu0 %4530 }
 0x88a   : > { %12234 = vst [vmem:[#allocation90_spill] sm:$0xff] %v10706_v46  ;;  %v10712_v21 = vpop.xlane.xlu1 %4527  ;;  %4957 = vrot.lane.b32.xlu1 %v2555_v13, %s6764_s9  ;;  %4959 = vrot.lane.b32.xlu0 %v2556_v36, %s6764_s9  ;;  %v2559_v13 = vmul.f32 %v6449_v9, %v12241_v19  ;;  %v12242_v36 = vld [vmem:[#allocation137_spill] sm:$0xff]  ;;  %v12244_v9 = vld [vmem:[#allocation150_spill] sm:$0xff]  ;;  %v6459_v19 = vpop.eup %6458  ;;  %6490 = vrcp.f32 %v10521_v52 }
 0x88b   : > { %v4804_v5 = vpop.f32.mrf.mxu1  ;;  %v2560_v30 = vmul.f32 %v6451_v1, %v12242_v36  ;;  %v6461_v37 = vpop.eup %6460  ;;  %6492 = vrcp.f32 %v10519_v44  ;;  %v12259_v44 = vld [vmem:[#allocation173_spill] sm:$0xff] }
 0x88d   : > { %v10718_v57 = vpop.f32.mrf.mxu1  ;;  %v10722_v50 = vpop.xlane.xlu0 %4536 }
 0x88e   : > { %12237 = vst [vmem:[#allocation104_spill] sm:$0xff] %v10718_v57  ;;  %v10724_v46 = vpop.xlane.xlu1 %4533  ;;  %4961 = vrot.lane.b32.xlu1 %v2557_v60, %s6764_s9  ;;  %4963 = vrot.lane.b32.xlu0 %v2558_v42, %s6764_s9  ;;  %v2561_v60 = vmul.f32 %v6453_v28, %v12244_v9  ;;  %v12245_v42 = vld [vmem:[#allocation151_spill] sm:$0xff]  ;;  %v12247_v28 = vld [vmem:[#allocation116_spill] sm:$0xff]  ;;  %v6463_v9 = vpop.eup %6462  ;;  %6494 = vrcp.f32 %v10529_v14 }
 0x88f   : > { %v4809_v5 = vpop.f32.mrf.mxu1  ;;  %v2562_v1 = vmul.f32 %v6455_v33, %v12245_v42  ;;  %v6465_v24 = vpop.eup %6464  ;;  %6496 = vrcp.f32 %v10527_v0  ;;  %v12261_v0 = vld [vmem:[#allocation60_spill] sm:$0xff] }
 0x891   : > { %v10730_v10 = vpop.f32.mrf.mxu1  ;;  %v10734_v59 = vpop.xlane.xlu0 %4542 }
 0x892   : > { %12240 = vst [vmem:[#allocation166_spill] sm:$0xff] %v10730_v10  ;;  %v10736_v57 = vpop.xlane.xlu1 %4539  ;;  %4965 = vrot.lane.b32.xlu1 %v2559_v13, %s6764_s9  ;;  %4967 = vrot.lane.b32.xlu0 %v2560_v30, %s6764_s9  ;;  %v2563_v13 = vmul.f32 %v6457_v47, %v12247_v28  ;;  %v12248_v30 = vld [vmem:[#allocation169_spill] sm:$0xff]  ;;  %v12249_v47 = vld [vmem:[#allocation140_spill] sm:$0xff]  ;;  %v6467_v28 = vpop.eup %6466  ;;  %6498 = vrcp.f32 %v10537_v18 }
 0x893   : > { %v4814_v5 = vpop.f32.mrf.mxu1  ;;  %v2564_v33 = vmul.f32 %v6459_v19, %v12248_v30  ;;  %v6469_v48 = vpop.eup %6468  ;;  %6500 = vrcp.f32 %v10535_v58  ;;  %v12263_v58 = vld [vmem:[#allocation64_spill] sm:$0xff] }
 0x894   : > { %v2569_v43 = vmul.f32 %v6469_v48, %v12253_v23 }
 0x895   : > { %v10742_v2 = vpop.f32.mrf.mxu1  ;;  %v10746_v36 = vpop.xlane.xlu0 %4548 }
 0x896   : > { %12243 = vst [vmem:[#allocation105_spill] sm:$0xff] %v10742_v2  ;;  %v10748_v10 = vpop.xlane.xlu1 %4545  ;;  %4969 = vrot.lane.b32.xlu1 %v2561_v60, %s6764_s9  ;;  %4971 = vrot.lane.b32.xlu0 %v2562_v1, %s6764_s9  ;;  %v2565_v60 = vmul.f32 %v6461_v37, %v12249_v47  ;;  %v12250_v1 = vld [vmem:[#allocation139_spill] sm:$0xff]  ;;  %v12252_v37 = vld [vmem:[#allocation192_spill] sm:$0xff] }
 0x897   : > { %v4819_v5 = vpop.f32.mrf.mxu1  ;;  %v2566_v19 = vmul.f32 %v6463_v9, %v12250_v1  ;;  %v6471_v9 = vpop.eup %6470  ;;  %6502 = vrcp.f32 %v10545_v35 }
 0x899   : > { %v10754_v29 = vpop.f32.mrf.mxu1  ;;  %v10758_v42 = vpop.xlane.xlu0 %4554 }
 0x89a   : > { %12246 = vst [vmem:[#allocation93_spill] sm:$0xff] %v10754_v29  ;;  %v10760_v2 = vpop.xlane.xlu1 %4551  ;;  %4973 = vrot.lane.b32.xlu1 %v2563_v13, %s6764_s9  ;;  %4975 = vrot.lane.b32.xlu0 %v2564_v33, %s6764_s9  ;;  %v2567_v13 = vmul.f32 %v6465_v24, %v12251_v8  ;;  %v2568_v33 = vmul.f32 %v6467_v28, %v12252_v37  ;;  %v12256_v37 = vld [vmem:[#allocation141_spill] sm:$0xff] }
 0x89b   : > { %v4824_v5 = vpop.f32.mrf.mxu1 }
 0x89d   : > { %v10766_v27 = vpop.f32.mrf.mxu1  ;;  %v10770_v30 = vpop.xlane.xlu0 %4560 }
 0x89e   : > { %v10772_v29 = vpop.xlane.xlu1 %4557  ;;  %4977 = vrot.lane.b32.xlu1 %v2565_v60, %s6764_s9  ;;  %4979 = vrot.lane.b32.xlu0 %v2566_v19, %s6764_s9  ;;  %v6473_v60 = vpop.eup %6472  ;;  %v12254_v19 = vld [vmem:[#allocation167_spill] sm:$0xff]  ;;  %6504 = vrcp.f32 %v10543_v54  ;;  %v12265_v54 = vld [vmem:[#allocation176_spill] sm:$0xff] }
 0x89f   : > { %v4829_v5 = vpop.f32.mrf.mxu1  ;;  %v2570_v24 = vmul.f32 %v6471_v9, %v12254_v19  ;;  %v2571_v11 = vmul.f32 %v6473_v60, %v12255_v17  ;;  %v12258_v19 = vld [vmem:[#allocation133_spill] sm:$0xff] }
 0x8a0   : > { %v6475_v5 = vpop.eup %6474  ;;  %6506 = vrcp.f32 %v10553_v39 }
 0x8a1   : > { %v10780_v47 = vpop.xlane.xlu0 %4566  ;;  %v2572_v48 = vmul.f32 %v6475_v5, %v12256_v37  ;;  %v12260_v37 = vld [vmem:[#allocation174_spill] sm:$0xff] }
 0x8a2   : > { %v10782_v1 = vpop.xlane.xlu1 %4563  ;;  %4981 = vrot.lane.b32.xlu1 %v2567_v13, %s6764_s9  ;;  %4983 = vrot.lane.b32.xlu0 %v2568_v33, %s6764_s9  ;;  %v6477_v13 = vpop.eup %6476  ;;  %6508 = vrcp.f32 %v10551_v53 }
 0x8a3   : > { %v6479_v33 = vpop.eup %6478  ;;  %v2573_v52 = vmul.f32 %v6477_v13, %v12257_v61  ;;  %6510 = vrcp.f32 %v10561_v63 }
 0x8a4   : > { %v2574_v60 = vmul.f32 %v6479_v33, %v12258_v19  ;;  %v12262_v19 = vld [vmem:[#allocation175_spill] sm:$0xff] }
 0x8a5   : > { %v10790_v28 = vpop.xlane.xlu0 %4572 }
 0x8a6   : > { %v10792_v8 = vpop.xlane.xlu1 %4569  ;;  %4985 = vrot.lane.b32.xlu1 %v2569_v43, %s6764_s9  ;;  %4987 = vrot.lane.b32.xlu0 %v2570_v24, %s6764_s9  ;;  %v6481_v43 = vpop.eup %6480  ;;  %6512 = vrcp.f32 %v10559_v12 }
 0x8a7   : > { %v6483_v24 = vpop.eup %6482  ;;  %v2575_v14 = vmul.f32 %v6481_v43, %v12259_v44  ;;  %6514 = vrcp.f32 %v10569_v7  ;;  %v12271_v7 = vld [vmem:[#allocation76_spill] sm:$0xff] }
 0x8a8   : > { %v2576_v13 = vmul.f32 %v6483_v24, %v12260_v37  ;;  %v12264_v37 = vld [vmem:[#allocation61_spill] sm:$0xff] }
 0x8a9   : > { %v10800_v9 = vpop.xlane.xlu0 %4578 }
 0x8aa   : > { %v10802_v23 = vpop.xlane.xlu1 %4575  ;;  %4989 = vrot.lane.b32.xlu1 %v2571_v11, %s6764_s9  ;;  %4991 = vrot.lane.b32.xlu0 %v2572_v48, %s6764_s9  ;;  %v6485_v11 = vpop.eup %6484  ;;  %6516 = vrcp.f32 %v10567_v16 }
 0x8ab   : > { %v6487_v48 = vpop.eup %6486  ;;  %v3709_v18 = vmul.f32 %v6485_v11, %v12261_v0  ;;  %6518 = vrcp.f32 %v10577_v51  ;;  %v12274_v51 = vld [vmem:[#allocation80_spill] sm:$0xff] }
 0x8ac   : > { %v3710_v43 = vmul.f32 %v6487_v48, %v12262_v19  ;;  %v12266_v19 = vld [vmem:[#allocation68_spill] sm:$0xff] }
 0x8ad   : > { %v10810_v5 = vpop.xlane.xlu0 %997 }
 0x8ae   : > { %v10812_v17 = vpop.xlane.xlu1 %4581  ;;  %4993 = vrot.lane.b32.xlu1 %v2573_v52, %s6764_s9  ;;  %4995 = vrot.lane.b32.xlu0 %v2574_v60, %s6764_s9  ;;  %v6489_v52 = vpop.eup %6488  ;;  %6520 = vrcp.f32 %v10575_v31  ;;  %v12278_v31 = vld [vmem:[#allocation188_spill] sm:$0xff] }
 0x8af   : > { %v6491_v60 = vpop.eup %6490  ;;  %v3711_v35 = vmul.f32 %v6489_v52, %v12263_v58  ;;  %6522 = vrcp.f32 %v10585_v45 }
 0x8b0   : > { %v3712_v11 = vmul.f32 %v6491_v60, %v12264_v37 }
 0x8b1   : > { %v10820_v33 = vpop.xlane.xlu0 %1003 }
 0x8b2   : > { %v10822_v61 = vpop.xlane.xlu1 %1000  ;;  %4997 = vrot.lane.b32.xlu1 %v2575_v14, %s6764_s9  ;;  %4999 = vrot.lane.b32.xlu0 %v2576_v13, %s6764_s9  ;;  %v6493_v14 = vpop.eup %6492 }
 0x8b3   : > { %v6495_v13 = vpop.eup %6494  ;;  %v3713_v39 = vmul.f32 %v6493_v14, %v12265_v54  ;;  %v12268_v14 = vld [vmem:[#allocation177_spill] sm:$0xff] }
 0x8b4   : > { %v3714_v52 = vmul.f32 %v6495_v13, %v12266_v19 }
 0x8b5   : > { %v10830_v24 = vpop.xlane.xlu0 %1009 }
 0x8b6   : > { %v10832_v44 = vpop.xlane.xlu1 %1006  ;;  %5065 = vrot.lane.b32.xlu1 %v3709_v18, %s6763_s4  ;;  %5067 = vrot.lane.b32.xlu0 %v3710_v43, %s6763_s4  ;;  %v6497_v18 = vpop.eup %6496 }
 0x8b7   : > { %v6499_v43 = vpop.eup %6498 }
 0x8b8   : > { %v6501_v53 = vpop.eup %6500 }
 0x8b9   : > { %v10840_v48 = vpop.xlane.xlu0 %1015  ;;  %v6503_v54 = vpop.eup %6502 }
 0x8ba   : > { %v10842_v0 = vpop.xlane.xlu1 %1012  ;;  %5069 = vrot.lane.b32.xlu1 %v3711_v35, %s6763_s4  ;;  %5071 = vrot.lane.b32.xlu0 %v3712_v11, %s6763_s4  ;;  %v3715_v35 = vmul.f32 %v6497_v18, %v12268_v14  ;;  %v12269_v11 = vld [vmem:[#allocation69_spill] sm:$0xff]  ;;  %v3717_v18 = vmul.f32 %v6501_v53, %v12271_v7 }
 0x8bb   : > { %v3716_v13 = vmul.f32 %v6499_v43, %v12269_v11  ;;  %v12275_v53 = vld [vmem:[#allocation77_spill] sm:$0xff] }
 0x8bd   : > { %v10850_v60 = vpop.xlane.xlu0 %1021 }
 0x8be   : > { %12267 = vst [vmem:[#allocation106_spill] sm:$0xff] %v10850_v60  ;;  %v10852_v58 = vpop.xlane.xlu1 %1018  ;;  %v10854_v37 = vpop.f32.mrf.mxu1  ;;  %5073 = vrot.lane.b32.xlu1 %v3713_v39, %s6763_s4  ;;  %5075 = vrot.lane.b32.xlu0 %v3714_v52, %s6763_s4  ;;  %v12272_v52 = vld [vmem:[#allocation179_spill] sm:$0xff] }
 0x8bf   : > { %v6505_v39 = vpop.eup %6504  ;;  %v3718_v43 = vmul.f32 %v6503_v54, %v12272_v52 }
 0x8c0   : > { %v4834_v63 = vpop.f32.mrf.mxu1 }
 0x8c1   : > { %v10862_v19 = vpop.xlane.xlu0 %1027  ;;  %v6507_v63 = vpop.eup %6506 }
 0x8c2   : > { %12270 = vst [vmem:[#allocation95_spill] sm:$0xff] %v10862_v19  ;;  %v10864_v60 = vpop.xlane.xlu1 %1024  ;;  %5077 = vrot.lane.b32.xlu1 %v3715_v35, %s6763_s4  ;;  %5079 = vrot.lane.b32.xlu0 %v3716_v13, %s6763_s4  ;;  %v6509_v16 = vpop.eup %6508  ;;  %v3719_v35 = vmul.f32 %v6505_v39, %v12274_v51  ;;  %v3720_v13 = vmul.f32 %v6507_v63, %v12275_v53 }
 0x8c3   : > { %v10869_v12 = vpop.f32.mrf.mxu1  ;;  %v6511_v54 = vpop.eup %6510 }
 0x8c5   : > { %v4839_v14 = vpop.f32.mrf.mxu1  ;;  %v10874_v11 = vpop.xlane.xlu0 %1033 }
 0x8c6   : > { %12273 = vst [vmem:[#allocation108_spill] sm:$0xff] %v10874_v11  ;;  %v10876_v19 = vpop.xlane.xlu1 %1030  ;;  %5081 = vrot.lane.b32.xlu1 %v3717_v18, %s6763_s4  ;;  %5083 = vrot.lane.b32.xlu0 %v3718_v43, %s6763_s4  ;;  %v12277_v18 = vld [vmem:[#allocation161_spill] sm:$0xff]  ;;  %v6513_v43 = vpop.eup %6512  ;;  %v12279_v14 = vld [vmem:[#allocation180_spill] sm:$0xff] }
 0x8c7   : > { %6524 = vrcp.f32 %v12277_v18  ;;  %v3721_v45 = vmul.f32 %v6509_v16, %v12279_v14  ;;  %v12280_v11 = vld [vmem:[#allocation84_spill] sm:$0xff]  ;;  %v6515_v51 = vpop.eup %6514  ;;  %v12282_v18 = vld [vmem:[#allocation81_spill] sm:$0xff] }
 0x8c8   : > { %6526 = vrcp.f32 %v12278_v31  ;;  %v3722_v39 = vmul.f32 %v6511_v54, %v12280_v11  ;;  %v3723_v31 = vmul.f32 %v6513_v43, %v12282_v18 }
 0x8c9   : > { %v10884_v7 = vpop.xlane.xlu0 %1039 }
 0x8ca   : > { %12276 = vst [vmem:[#allocation115_spill] sm:$0xff] %v10884_v7  ;;  %v10886_v52 = vpop.xlane.xlu1 %1036  ;;  %5085 = vrot.lane.b32.xlu1 %v3719_v35, %s6763_s4  ;;  %5087 = vrot.lane.b32.xlu0 %v3720_v13, %s6763_s4  ;;  %v12281_v35 = vld [vmem:[#allocation186_spill] sm:$0xff]  ;;  %v6517_v13 = vpop.eup %6516  ;;  %v12283_v7 = vld [vmem:[#allocation181_spill] sm:$0xff] }
 0x8cb   : > { %6528 = vrcp.f32 %v12281_v35  ;;  %v3724_v16 = vmul.f32 %v6515_v51, %v12283_v7  ;;  %v6519_v14 = vpop.eup %6518  ;;  %v12286_v35 = vld [vmem:[#allocation182_spill] sm:$0xff] }
 0x8cc   : > { %6530 = vrcp.f32 %v10601_v26  ;;  %v3726_v43 = vmul.f32 %v6519_v14, %v12286_v35 }
 0x8cd   : > { %v10894_v63 = vpop.xlane.xlu0 %1045  ;;  %6532 = vrcp.f32 %v10599_v25  ;;  %v12288_v25 = vld [vmem:[#allocation85_spill] sm:$0xff] }
 0x8ce   : > { %v10896_v53 = vpop.xlane.xlu1 %1042  ;;  %5089 = vrot.lane.b32.xlu1 %v3721_v45, %s6763_s4  ;;  %5091 = vrot.lane.b32.xlu0 %v3722_v39, %s6763_s4  ;;  %v6521_v45 = vpop.eup %6520  ;;  %6534 = vrcp.f32 %v10609_v4  ;;  %v12285_v39 = vld [vmem:[#allocation89_spill] sm:$0xff] }
 0x8cf   : > { %v3725_v26 = vmul.f32 %v6517_v13, %v12285_v39  ;;  %v6523_v18 = vpop.eup %6522  ;;  %6536 = vrcp.f32 %v10607_v40  ;;  %v3727_v4 = vmul.f32 %v6521_v45, %v12288_v25  ;;  %v12291_v40 = vld [vmem:[#allocation189_spill] sm:$0xff] }
 0x8d0   : > { %6538 = vrcp.f32 %v10618_v38 }
 0x8d1   : > { %v10904_v11 = vpop.xlane.xlu0 %1051  ;;  %6540 = vrcp.f32 %v10616_v56  ;;  %v12296_v56 = vld [vmem:[#allocation123_spill] sm:$0xff] }
 0x8d2   : > { %12284 = vst [vmem:[#allocation118_spill] sm:$0xff] %v10904_v11  ;;  %v10906_v54 = vpop.xlane.xlu1 %1048  ;;  %5093 = vrot.lane.b32.xlu1 %v3723_v31, %s6763_s4  ;;  %5095 = vrot.lane.b32.xlu0 %v3724_v16, %s6763_s4  ;;  %v12289_v16 = vld [vmem:[#allocation100_spill] sm:$0xff]  ;;  %6542 = vrcp.f32 %v12291_v40  ;;  %v12298_v11 = vld [vmem:[#allocation102_spill] sm:$0xff] }
 0x8d3   : > { %v3728_v13 = vmul.f32 %v6523_v18, %v12289_v16 }
 0x8d4   : > { %v6525_v31 = vpop.eup %6524 }
 0x8d5   : > { %v10914_v7 = vpop.xlane.xlu0 %1057  ;;  %v6527_v39 = vpop.eup %6526 }
 0x8d6   : > { %12287 = vst [vmem:[#allocation147_spill] sm:$0xff] %v10914_v7  ;;  %v10916_v51 = vpop.xlane.xlu1 %1054  ;;  %5097 = vrot.lane.b32.xlu1 %v3725_v26, %s6763_s4  ;;  %5099 = vrot.lane.b32.xlu0 %v3726_v43, %s6763_s4  ;;  %v12292_v43 = vld [vmem:[#allocation91_spill] sm:$0xff] }
 0x8d7   : > { %v3729_v38 = vmul.f32 %v6525_v31, %v12292_v43  ;;  %v12293_v7 = vld [vmem:[#allocation183_spill] sm:$0xff] }
 0x8d8   : > { %v6529_v26 = vpop.eup %6528  ;;  %v3730_v45 = vmul.f32 %v6527_v39, %v12293_v7 }
 0x8d9   : > { %v10924_v14 = vpop.xlane.xlu0 %1063  ;;  %v6531_v25 = vpop.eup %6530 }
 0x8da   : > { %12290 = vst [vmem:[#allocation119_spill] sm:$0xff] %v10924_v14  ;;  %v10926_v35 = vpop.xlane.xlu1 %1060  ;;  %5101 = vrot.lane.b32.xlu1 %v3727_v4, %s6763_s4  ;;  %5103 = vrot.lane.b32.xlu0 %v3728_v13, %s6763_s4  ;;  %v12295_v4 = vld [vmem:[#allocation159_spill] sm:$0xff]  ;;  %v6533_v13 = vpop.eup %6532  ;;  %v3732_v31 = vmul.f32 %v6531_v25, %v12298_v11 }
 0x8db   : > { %6544 = vrcp.f32 %v12295_v4  ;;  %v12297_v14 = vld [vmem:[#allocation111_spill] sm:$0xff]  ;;  %v6535_v43 = vpop.eup %6534  ;;  %v12301_v4 = vld [vmem:[#allocation184_spill] sm:$0xff] }
 0x8dc   : > { %6546 = vrcp.f32 %v12296_v56  ;;  %v3731_v40 = vmul.f32 %v6529_v26, %v12297_v14  ;;  %v3733_v56 = vmul.f32 %v6533_v13, %v12301_v4 }
 0x8dd   : > { %v10934_v18 = vpop.xlane.xlu0 %1069 }
 0x8de   : > { %12294 = vst [vmem:[#allocation103_spill] sm:$0xff] %v10934_v18  ;;  %v10936_v16 = vpop.xlane.xlu1 %1066  ;;  %5105 = vrot.lane.b32.xlu1 %v3729_v38, %s6763_s4  ;;  %5107 = vrot.lane.b32.xlu0 %v3730_v45, %s6763_s4  ;;  %v12300_v38 = vld [vmem:[#allocation122_spill] sm:$0xff]  ;;  %v6537_v45 = vpop.eup %6536  ;;  %v12302_v18 = vld [vmem:[#allocation124_spill] sm:$0xff] }
 0x8df   : > { %6548 = vrcp.f32 %v12300_v38  ;;  %v3734_v14 = vmul.f32 %v6535_v43, %v12302_v18  ;;  %v6539_v26 = vpop.eup %6538  ;;  %v12305_v38 = vld [vmem:[#allocation185_spill] sm:$0xff] }
 0x8e0   : > { %6550 = vrcp.f32 %v10642_v34  ;;  %v3736_v13 = vmul.f32 %v6539_v26, %v12305_v38 }
 0x8e1   : > { %v10944_v7 = vpop.xlane.xlu0 %1075  ;;  %6552 = vrcp.f32 %v10640_v22  ;;  %v12308_v22 = vld [vmem:[#allocation143_spill] sm:$0xff] }
 0x8e2   : > { %12299 = vst [vmem:[#allocation125_spill] sm:$0xff] %v10944_v7  ;;  %v10946_v39 = vpop.xlane.xlu1 %1072  ;;  %5109 = vrot.lane.b32.xlu1 %v3731_v40, %s6763_s4  ;;  %5111 = vrot.lane.b32.xlu0 %v3732_v31, %s6763_s4  ;;  %v6541_v40 = vpop.eup %6540  ;;  %6554 = vrcp.f32 %v10653_v49  ;;  %v12304_v31 = vld [vmem:[#allocation113_spill] sm:$0xff]  ;;  %v12312_v7 = vld [vmem:[#allocation152_spill] sm:$0xff] }
 0x8e3   : > { %v3735_v34 = vmul.f32 %v6537_v45, %v12304_v31  ;;  %v6543_v4 = vpop.eup %6542  ;;  %v3737_v49 = vmul.f32 %v6541_v40, %v12308_v22 }
 0x8e5   : > { %v10954_v11 = vpop.xlane.xlu0 %1081 }
 0x8e6   : > { %12303 = vst [vmem:[#allocation131_spill] sm:$0xff] %v10954_v11  ;;  %v10956_v25 = vpop.xlane.xlu1 %1078  ;;  %5113 = vrot.lane.b32.xlu1 %v3733_v56, %s6763_s4  ;;  %5115 = vrot.lane.b32.xlu0 %v3734_v14, %s6763_s4  ;;  %v12307_v56 = vld [vmem:[#allocation127_spill] sm:$0xff]  ;;  %v12309_v11 = vld [vmem:[#allocation126_spill] sm:$0xff] }
 0x8e7   : > { %6556 = vrcp.f32 %v12307_v56  ;;  %v3738_v45 = vmul.f32 %v6543_v4, %v12309_v11  ;;  %v12311_v56 = vld [vmem:[#allocation146_spill] sm:$0xff] }
 0x8e8   : > { %v6545_v14 = vpop.eup %6544  ;;  %6558 = vrcp.f32 %v10664_v6 }
 0x8e9   : > { %v10964_v18 = vpop.xlane.xlu0 %1087  ;;  %v6547_v31 = vpop.eup %6546  ;;  %v3739_v6 = vmul.f32 %v6545_v14, %v12311_v56 }
 0x8ea   : > { %v10966_v43 = vpop.xlane.xlu1 %1084  ;;  %5117 = vrot.lane.b32.xlu1 %v3735_v34, %s6763_s4  ;;  %5119 = vrot.lane.b32.xlu0 %v3736_v13, %s6763_s4  ;;  %v12310_v34 = vld [vmem:[#allocation163_spill] sm:$0xff]  ;;  %v3740_v40 = vmul.f32 %v6547_v31, %v12312_v7 }
 0x8eb   : > { %12306 = vst [vmem:[#allocation134_spill] sm:$0xff] %v10966_v43  ;;  %6560 = vrcp.f32 %v12310_v34  ;;  %v12314_v34 = vld [vmem:[#allocation170_spill] sm:$0xff] }
 0x8ec   : > { %v6549_v13 = vpop.eup %6548  ;;  %6562 = vrcp.f32 %v10676_v15 }
 0x8ed   : > { %v10974_v26 = vpop.permute.xlu0 %4937  ;;  %v6551_v22 = vpop.eup %6550  ;;  %6564 = vrcp.f32 %v10674_v62  ;;  %v12315_v62 = vld [vmem:[#allocation153_spill] sm:$0xff] }
 0x8ee   : > { %v10976_v38 = vpop.xlane.xlu1 %1090  ;;  %5121 = vrot.lane.b32.xlu1 %v3737_v49, %s6763_s4  ;;  %5123 = vrot.lane.b32.xlu0 %v3738_v45, %s6763_s4  ;;  %v6553_v49 = vpop.eup %6552  ;;  %6566 = vrcp.f32 %v10688_v20  ;;  %v12313_v45 = vld [vmem:[#allocation145_spill] sm:$0xff]  ;;  %v4874_v14 = vmul.f32 %v6551_v22, %v12314_v34 }
 0x8ef   : > { %v4873_v15 = vmul.f32 %v6549_v13, %v12313_v45  ;;  %v6555_v56 = vpop.eup %6554  ;;  %6568 = vrcp.f32 %v10686_v3  ;;  %v4875_v20 = vmul.f32 %v6553_v49, %v12315_v62  ;;  %v12317_v3 = vld [vmem:[#allocation155_spill] sm:$0xff] }
 0x8f0   : > { %6570 = vrcp.f32 %v10700_v41 }
 0x8f1   : > { %v10984_v11 = vpop.permute.xlu0 %4943  ;;  %6572 = vrcp.f32 %v10698_v32  ;;  %v12319_v32 = vld [vmem:[#allocation144_spill] sm:$0xff] }
 0x8f2   : > { %v10986_v4 = vpop.permute.xlu1 %4939  ;;  %5125 = vrot.lane.b32.xlu1 %v3739_v6, %s6763_s4  ;;  %5127 = vrot.lane.b32.xlu0 %v3740_v40, %s6763_s4  ;;  %v12316_v40 = vld [vmem:[#allocation172_spill] sm:$0xff]  ;;  %6574 = vrcp.f32 %v10712_v21 }
 0x8f3   : > { %v4876_v13 = vmul.f32 %v6555_v56, %v12316_v40  ;;  %6576 = vrcp.f32 %v10710_v55  ;;  %v12321_v55 = vld [vmem:[#allocation157_spill] sm:$0xff] }
 0x8f4   : > { %v6557_v6 = vpop.eup %6556  ;;  %6578 = vrcp.f32 %v10724_v46 }
 0x8f5   : > { %v10994_v7 = vpop.permute.xlu0 %4947  ;;  %v6559_v45 = vpop.eup %6558  ;;  %v4877_v41 = vmul.f32 %v6557_v6, %v12317_v3  ;;  %6580 = vrcp.f32 %v10722_v50  ;;  %v12323_v50 = vld [vmem:[#allocation148_spill] sm:$0xff] }
 0x8f6   : > { %v10996_v31 = vpop.permute.xlu1 %4941  ;;  %5193 = vrot.lane.b32.xlu1 %v4873_v15, %s6762_s30  ;;  %5195 = vrot.lane.b32.xlu0 %v4874_v14, %s6762_s30  ;;  %v12318_v14 = vld [vmem:[#allocation154_spill] sm:$0xff]  ;;  %6582 = vrcp.f32 %v10736_v57 }
 0x8f7   : > { %v4878_v49 = vmul.f32 %v6559_v45, %v12318_v14  ;;  %6584 = vrcp.f32 %v10734_v59  ;;  %v12325_v59 = vld [vmem:[#allocation158_spill] sm:$0xff] }
 0x8f8   : > { %v6561_v15 = vpop.eup %6560  ;;  %6586 = vrcp.f32 %v10748_v10 }
 0x8f9   : > { %v11004_v22 = vpop.permute.xlu0 %4951  ;;  %v6563_v62 = vpop.eup %6562  ;;  %v4879_v21 = vmul.f32 %v6561_v15, %v12319_v32  ;;  %6588 = vrcp.f32 %v10746_v36  ;;  %v12327_v36 = vld [vmem:[#allocation88_spill] sm:$0xff] }
 0x8fa   : > { %v11006_v34 = vpop.permute.xlu1 %4945  ;;  %5197 = vrot.lane.b32.xlu1 %v4875_v20, %s6762_s30  ;;  %5199 = vrot.lane.b32.xlu0 %v4876_v13, %s6762_s30  ;;  %v6565_v20 = vpop.eup %6564  ;;  %v12320_v13 = vld [vmem:[#allocation149_spill] sm:$0xff]  ;;  %6590 = vrcp.f32 %v10760_v2 }
 0x8fb   : > { %v4880_v6 = vmul.f32 %v6563_v62, %v12320_v13  ;;  %v6567_v3 = vpop.eup %6566  ;;  %v4881_v46 = vmul.f32 %v6565_v20, %v12321_v55  ;;  %6592 = vrcp.f32 %v10758_v42  ;;  %v12329_v42 = vld [vmem:[#allocation162_spill] sm:$0xff] }
 0x8fc   : > { %6594 = vrcp.f32 %v10772_v29 }
 0x8fd   : > { %v11014_v56 = vpop.permute.xlu0 %4955  ;;  %6596 = vrcp.f32 %v10770_v30 }
 0x8fe   : > { %v11016_v40 = vpop.permute.xlu1 %4949  ;;  %5201 = vrot.lane.b32.xlu1 %v4877_v41, %s6762_s30  ;;  %5203 = vrot.lane.b32.xlu0 %v4878_v49, %s6762_s30  ;;  %v6569_v41 = vpop.eup %6568  ;;  %v12322_v49 = vld [vmem:[#allocation156_spill] sm:$0xff]  ;;  %6598 = vrcp.f32 %v10782_v1 }
 0x8ff   : > { %v4882_v15 = vmul.f32 %v6567_v3, %v12322_v49  ;;  %v6571_v32 = vpop.eup %6570  ;;  %v4883_v57 = vmul.f32 %v6569_v41, %v12323_v50  ;;  %6600 = vrcp.f32 %v10780_v47  ;;  %v12333_v1 = vld [vmem:[#allocation160_spill] sm:$0xff] }
 0x900   : > { %6602 = vrcp.f32 %v10792_v8  ;;  %v12337_v8 = vld [vmem:[#allocation130_spill] sm:$0xff] }
 0x901   : > { %v11024_v45 = vpop.permute.xlu0 %4959 }
 0x902   : > { %v11026_v14 = vpop.permute.xlu1 %4953  ;;  %5205 = vrot.lane.b32.xlu1 %v4879_v21, %s6762_s30  ;;  %5207 = vrot.lane.b32.xlu0 %v4880_v6, %s6762_s30  ;;  %v6573_v21 = vpop.eup %6572  ;;  %v12324_v6 = vld [vmem:[#allocation142_spill] sm:$0xff]  ;;  %6604 = vrcp.f32 %v10976_v38 }
 0x903   : > { %v4884_v20 = vmul.f32 %v6571_v32, %v12324_v6  ;;  %v6575_v55 = vpop.eup %6574  ;;  %v4885_v10 = vmul.f32 %v6573_v21, %v12325_v59  ;;  %6606 = vrcp.f32 %v10790_v28  ;;  %v12341_v28 = vld [vmem:[#allocation164_spill] sm:$0xff] }
 0x905   : > { %v11034_v62 = vpop.permute.xlu0 %4963 }
 0x906   : > { %v11036_v13 = vpop.permute.xlu1 %4957  ;;  %5209 = vrot.lane.b32.xlu1 %v4881_v46, %s6762_s30  ;;  %5211 = vrot.lane.b32.xlu0 %v4882_v15, %s6762_s30  ;;  %v6577_v46 = vpop.eup %6576  ;;  %v12326_v15 = vld [vmem:[#allocation187_spill] sm:$0xff]  ;;  %6608 = vrcp.f32 %v10802_v23 }
 0x907   : > { %v4886_v41 = vmul.f32 %v6575_v55, %v12326_v15  ;;  %v6579_v50 = vpop.eup %6578  ;;  %v4887_v2 = vmul.f32 %v6577_v46, %v12327_v36  ;;  %6610 = vrcp.f32 %v10964_v18 }
 0x909   : > { %v11044_v3 = vpop.permute.xlu0 %4967 }
 0x90a   : > { %v11046_v49 = vpop.permute.xlu1 %4961  ;;  %5213 = vrot.lane.b32.xlu1 %v4883_v57, %s6762_s30  ;;  %5215 = vrot.lane.b32.xlu0 %v4884_v20, %s6762_s30  ;;  %v6581_v57 = vpop.eup %6580  ;;  %v12328_v20 = vld [vmem:[#allocation190_spill] sm:$0xff]  ;;  %6612 = vrcp.f32 %v10800_v9 }
 0x90b   : > { %v4888_v21 = vmul.f32 %v6579_v50, %v12328_v20  ;;  %v6583_v59 = vpop.eup %6582  ;;  %v4889_v29 = vmul.f32 %v6581_v57, %v12329_v42  ;;  %6614 = vrcp.f32 %v10812_v17 }
 0x90d   : > { %v11054_v32 = vpop.permute.xlu0 %4971 }
 0x90e   : > { %v11056_v6 = vpop.permute.xlu1 %4965  ;;  %5217 = vrot.lane.b32.xlu1 %v4885_v10, %s6762_s30  ;;  %5219 = vrot.lane.b32.xlu0 %v4886_v41, %s6762_s30  ;;  %v6585_v10 = vpop.eup %6584  ;;  %v12330_v41 = vld [vmem:[#allocation165_spill] sm:$0xff]  ;;  %6616 = vrcp.f32 %v10822_v61 }
 0x90f   : > { %v4890_v46 = vmul.f32 %v6583_v59, %v12330_v41  ;;  %v6587_v36 = vpop.eup %6586  ;;  %v4891_v57 = vmul.f32 %v6585_v10, %v12333_v1  ;;  %6618 = vrcp.f32 %v10832_v44 }
 0x910   : > { %v6589_v30 = vpop.eup %6588  ;;  %6620 = vrcp.f32 %v10810_v5  ;;  %v12365_v5 = vld [vmem:[#allocation12_spill] sm:$0xff] }
 0x911   : > { %v11064_v55 = vpop.permute.xlu0 %4975  ;;  %v6591_v59 = vpop.eup %6590  ;;  %v4893_v38 = vmul.f32 %v6589_v30, %v12337_v8  ;;  %6622 = vrcp.f32 %v10842_v0 }
 0x912   : > { %v11066_v15 = vpop.permute.xlu1 %4969  ;;  %5221 = vrot.lane.b32.xlu1 %v4887_v2, %s6762_s30  ;;  %5223 = vrot.lane.b32.xlu0 %v4888_v21, %s6762_s30  ;;  %v12334_v2 = vld [vmem:[#allocation168_spill] sm:$0xff]  ;;  %v6593_v47 = vpop.eup %6592  ;;  %6624 = vrcp.f32 %v10820_v33 }
 0x913   : > { %v4892_v21 = vmul.f32 %v6587_v36, %v12334_v2  ;;  %v4895_v2 = vmul.f32 %v6593_v47, %v12341_v28  ;;  %v12346_v47 = vld [vmem:[#allocation104_spill] sm:$0xff] }
 0x915   : > { %v11074_v50 = vpop.permute.xlu0 %4979 }
 0x916   : > { %12331 = vst [vmem:[#allocation99_spill] sm:$0xff] %v11074_v50  ;;  %v11077_v20 = vpop.permute.xlu1 %4973  ;;  %5225 = vrot.lane.b32.xlu1 %v4889_v29, %s6762_s30  ;;  %5227 = vrot.lane.b32.xlu0 %v4890_v46, %s6762_s30  ;;  %v12338_v29 = vld [vmem:[#allocation94_spill] sm:$0xff]  ;;  %v6595_v46 = vpop.eup %6594  ;;  %6626 = vrcp.f32 %v10852_v58 }
 0x917   : > { %12332 = vst [vmem:[#allocation98_spill] sm:$0xff] %v11077_v20  ;;  %v4894_v10 = vmul.f32 %v6591_v59, %v12338_v29 }
 0x919   : > { %v11085_v42 = vpop.permute.xlu0 %4983 }
 0x91a   : > { %12335 = vst [vmem:[#allocation138_spill] sm:$0xff] %v11085_v42  ;;  %v11087_v41 = vpop.permute.xlu1 %4977  ;;  %5229 = vrot.lane.b32.xlu1 %v4891_v57, %s6762_s30  ;;  %5231 = vrot.lane.b32.xlu0 %v4892_v21, %s6762_s30  ;;  %v6597_v57 = vpop.eup %6596  ;;  %v12342_v21 = vld [vmem:[#allocation117_spill] sm:$0xff]  ;;  %6628 = vrcp.f32 %v10830_v24 }
 0x91b   : > { %12336 = vst [vmem:[#allocation110_spill] sm:$0xff] %v11087_v41  ;;  %v4896_v23 = vmul.f32 %v6595_v46, %v12342_v21  ;;  %v6599_v41 = vpop.eup %6598  ;;  %v12349_v21 = vld [vmem:[#allocation166_spill] sm:$0xff]  ;;  %6630 = vrcp.f32 %v10864_v60 }
 0x91c   : > { %v6601_v59 = vpop.eup %6600  ;;  %6632 = vrcp.f32 %v10840_v48 }
 0x91d   : > { %v11096_v36 = vpop.permute.xlu0 %4987  ;;  %v6603_v8 = vpop.eup %6602  ;;  %6634 = vrcp.f32 %v10876_v19 }
 0x91e   : > { %12339 = vst [vmem:[#allocation101_spill] sm:$0xff] %v11096_v36  ;;  %v11098_v1 = vpop.permute.xlu1 %4981  ;;  %5233 = vrot.lane.b32.xlu1 %v4893_v38, %s6762_s30  ;;  %5235 = vrot.lane.b32.xlu0 %v4894_v10, %s6762_s30  ;;  %v12345_v38 = vld [vmem:[#allocation90_spill] sm:$0xff]  ;;  %v4898_v10 = vmul.f32 %v6599_v41, %v12346_v47  ;;  %v6605_v46 = vpop.eup %6604 }
 0x91f   : > { %12340 = vst [vmem:[#allocation129_spill] sm:$0xff] %v11098_v1  ;;  %v4897_v29 = vmul.f32 %v6597_v57, %v12345_v38  ;;  %v6607_v17 = vpop.eup %6606 }
 0x920   : > { %v6609_v36 = vpop.eup %6608 }
 0x921   : > { %v11105_v30 = vpop.permute.xlu0 %4991  ;;  %v6611_v38 = vpop.eup %6610 }
 0x922   : > { %12343 = vst [vmem:[#allocation132_spill] sm:$0xff] %v11105_v30  ;;  %v11108_v18 = vpop.permute.xlu1 %4985  ;;  %5237 = vrot.lane.b32.xlu1 %v4895_v2, %s6762_s30  ;;  %5239 = vrot.lane.b32.xlu0 %v4896_v23, %s6762_s30  ;;  %v4899_v2 = vmul.f32 %v6601_v59, %v12349_v21  ;;  %v12351_v30 = vld [vmem:[#allocation105_spill] sm:$0xff]  ;;  %v4902_v59 = vmul.f32 %v6609_v36, %v10766_v27  ;;  %v12355_v21 = vld [vmem:[#allocation70_spill] sm:$0xff] }
 0x923   : > { %12344 = vst [vmem:[#allocation112_spill] sm:$0xff] %v11108_v18  ;;  %v12350_v18 = vld [vmem:[#allocation71_spill] sm:$0xff]  ;;  %v4900_v1 = vmul.f32 %v6603_v8, %v12351_v30  ;;  %v6613_v30 = vpop.eup %6612 }
 0x924   : > { %v1412_v23 = vmul.f32 %v6605_v46, %v12350_v18  ;;  %v1411_v18 = vmul.f32 %v6611_v38, %v12355_v21 }
 0x925   : > { %v11114_v28 = vpop.permute.xlu0 %4995 }
 0x926   : > { %12347 = vst [vmem:[#allocation65_spill] sm:$0xff] %v11114_v28  ;;  %v11116_v9 = vpop.permute.xlu1 %4989  ;;  %5241 = vrot.lane.b32.xlu1 %v4897_v29, %s6762_s30  ;;  %5243 = vrot.lane.b32.xlu0 %v4898_v10, %s6762_s30  ;;  %v12354_v29 = vld [vmem:[#allocation93_spill] sm:$0xff] }
 0x927   : > { %12348 = vst [vmem:[#allocation72_spill] sm:$0xff] %v11116_v9  ;;  %v4901_v10 = vmul.f32 %v6607_v17, %v12354_v29 }
 0x929   : > { %v5000_v57 = vpop.permute.xlu0 %4999 }
 0x92a   : > { %v11123_v41 = vpop.permute.xlu1 %4993  ;;  %5245 = vrot.lane.b32.xlu1 %v4899_v2, %s6762_s30  ;;  %v11127_v47 = vsel %vm290_vm0, %v1412_v23, %v5000_v57  ;;  %5247 = vrot.lane.b32.xlu0 %v4900_v1, %s6762_s30  ;;  %v4903_v23 = vmul.f32 %v6613_v30, %v10854_v37 }
 0x92b   : > { %12352 = vst [vmem:[#allocation178_spill] sm:$0xff] %v11123_v41  ;;  %12353 = vst [vmem:[#allocation171_spill] sm:$0xff] %v11127_v47  ;;  %v6615_v41 = vpop.eup %6614 }
 0x92c   : > { %v4904_v1 = vmul.f32 %v6615_v41, %v10869_v12  ;;  %v6617_v44 = vpop.eup %6616 }
 0x92d   : > { %v5068_v46 = vpop.permute.xlu0 %5067  ;;  %v1382_v0 = vmul.f32 %v6617_v44, %v12365_v5  ;;  %v6619_v33 = vpop.eup %6618  ;;  %v12367_v44 = vld [vmem:[#allocation14_spill] sm:$0xff] }
 0x92e   : > { %v4998_v8 = vpop.permute.xlu1 %4997  ;;  %5249 = vrot.lane.b32.xlu1 %v4901_v10, %s6762_s30  ;;  %5251 = vrot.lane.b32.xlu0 %v4902_v59, %s6762_s30  ;;  %v1384_v5 = vmul.f32 %v6619_v33, %v12367_v44 }
 0x92f   : > { %v11136_v2 = vsel %vm290_vm0, %v1411_v18, %v4998_v8  ;;  %v5290_v58 = vsel %vm290_vm0, %v1382_v0, %v10986_v4  ;;  %v12368_v4 = vld [vmem:[#allocation106_spill] sm:$0xff] }
 0x930   : > { %12356 = vst [vmem:[#allocation73_spill] sm:$0xff] %v11136_v2  ;;  %v5323_v24 = vsel %vm5321_vm1, %v5290_v58, %v5068_v46  ;;  %6636 = vrcp.f32 %v12368_v4  ;;  %v12369_v0 = vld [vmem:[#allocation10_spill] sm:$0xff]  ;;  %v5292_v46 = vsel %vm290_vm0, %v1384_v5, %v10984_v11  ;;  %v12371_v11 = vld [vmem:[#allocation95_spill] sm:$0xff] }
 0x931   : > { %v11140_v17 = vpop.permute.xlu0 %5071  ;;  %6638 = vrcp.f32 %v10886_v52  ;;  %v12372_v5 = vld [vmem:[#allocation3_spill] sm:$0xff] }
 0x932   : > { %v11142_v27 = vpop.permute.xlu1 %5065  ;;  %5253 = vrot.lane.b32.xlu1 %v4903_v23, %s6762_s30  ;;  %5255 = vrot.lane.b32.xlu0 %v4904_v1, %s6762_s30  ;;  %v5325_v33 = vsel %vm5321_vm1, %v5292_v46, %v11140_v17  ;;  %6640 = vrcp.f32 %v12371_v11 }
 0x933   : > { %6642 = vrcp.f32 %v10896_v53 }
 0x935   : > { %v11146_v36 = vpop.permute.xlu0 %5075 }
 0x936   : > { %v11148_v57 = vpop.permute.xlu1 %5069 }
 0x939   : > { %v11150_v38 = vpop.permute.xlu0 %5079 }
 0x93a   : > { %v11152_v29 = vpop.permute.xlu1 %5073 }
 0x93d   : > { %v11154_v10 = vpop.permute.xlu0 %5083 }
 0x93e   : > { %v11156_v37 = vpop.permute.xlu1 %5077 }
 0x941   : > { %v11158_v12 = vpop.permute.xlu0 %5087 }
 0x942   : > { %v11160_v41 = vpop.permute.xlu1 %5081 }
 0x945   : > { %v11162_v59 = vpop.permute.xlu0 %5091 }
 0x946   : > { %v11164_v21 = vpop.permute.xlu1 %5085 }
 0x949   : > { %v11166_v18 = vpop.permute.xlu0 %5095 }
 0x94a   : > { %v11168_v30 = vpop.permute.xlu1 %5089 }
 0x94d   : > { %v11170_v8 = vpop.permute.xlu0 %5099 }
 0x94e   : > { %v11172_v23 = vpop.permute.xlu1 %5093 }
 0x951   : > { %v11174_v1 = vpop.permute.xlu0 %5103 }
 0x952   : > { %v11176_v2 = vpop.permute.xlu1 %5097 }
 0x955   : > { %v11178_v47 = vpop.permute.xlu0 %5107 }
 0x956   : > { %12357 = vst [vmem:[#allocation114_spill] sm:$0xff] %v11178_v47  ;;  %v11180_v9 = vpop.permute.xlu1 %5101 }
 0x959   : > { %v11182_v28 = vpop.permute.xlu0 %5111 }
 0x95a   : > { %v11185_v42 = vpop.permute.xlu1 %5105 }
 0x95d   : > { %v11187_v20 = vpop.permute.xlu0 %5115 }
 0x95e   : > { %12358 = vst [vmem:[#allocation32_spill] sm:$0xff] %v11187_v20  ;;  %v11190_v50 = vpop.permute.xlu1 %5109 }
 0x95f   : > { %12359 = vst [vmem:[#allocation34_spill] sm:$0xff] %v11190_v50 }
 0x961   : > { %v11193_v43 = vpop.permute.xlu0 %5119 }
 0x962   : > { %12360 = vst [vmem:[#allocation33_spill] sm:$0xff] %v11193_v43  ;;  %v11196_v47 = vpop.permute.xlu1 %5113 }
 0x963   : > { %12361 = vst [vmem:[#allocation36_spill] sm:$0xff] %v11196_v47 }
 0x965   : > { %v11199_v61 = vpop.permute.xlu0 %5123 }
 0x966   : > { %12362 = vst [vmem:[#allocation35_spill] sm:$0xff] %v11199_v61  ;;  %v11202_v20 = vpop.permute.xlu1 %5117  ;;  %v6621_v61 = vpop.eup %6620 }
 0x967   : > { %12363 = vst [vmem:[#allocation38_spill] sm:$0xff] %v11202_v20  ;;  %v1381_v20 = vmul.f32 %v6621_v61, %v12369_v0 }
 0x969   : > { %v11205_v50 = vpop.permute.xlu0 %5127  ;;  %v5289_v19 = vsel %vm290_vm0, %v1381_v20, %v10974_v26 }
 0x96a   : > { %12364 = vst [vmem:[#allocation37_spill] sm:$0xff] %v11205_v50  ;;  %v11209_v47 = vpop.permute.xlu1 %5121  ;;  %v6623_v50 = vpop.eup %6622  ;;  %v5322_v61 = vsel %vm5321_vm1, %v5289_v19, %v11142_v27 }
 0x96b   : > { %12366 = vst [vmem:[#allocation40_spill] sm:$0xff] %v11209_v47  ;;  %v6625_v43 = vpop.eup %6624 }
 0x96c   : > { %v6627_v4 = vpop.eup %6626  ;;  %v1383_v0 = vmul.f32 %v6625_v43, %v12372_v5  ;;  %v12373_v43 = vld [vmem:[#allocation7_spill] sm:$0xff] }
 0x96d   : > { %v5196_v60 = vpop.permute.xlu0 %5195  ;;  %v6629_v20 = vpop.eup %6628  ;;  %v1388_v46 = vmul.f32 %v6627_v4, %v12373_v43  ;;  %v12376_v4 = vld [vmem:[#allocation11_spill] sm:$0xff] }
 0x96e   : > { %v11224_v48 = vpop.permute.xlu1 %5125  ;;  %v5356_v47 = vsel %vm5354_vm2, %v5323_v24, %v5196_v60  ;;  %v12370_v24 = vld [vmem:[#allocation22_spill] sm:$0xff]  ;;  %v12379_v43 = vld [vmem:[#allocation15_spill] sm:$0xff] }
 0x96f   : > { %5388 = vst [vmem:[%s11219_s12 + $0x8] sm:$0xff] %v5356_v47  ;;  %v1386_v60 = vmul.f32 %v6623_v50, %v12370_v24  ;;  %v5291_v50 = vsel %vm290_vm0, %v1383_v0, %v10996_v31  ;;  %v12374_v24 = vld [vmem:[#allocation108_spill] sm:$0xff]  ;;  %v5296_v53 = vsel %vm290_vm0, %v1388_v46, %v11004_v22 }
 0x970   : > { %v5324_v19 = vsel %vm5321_vm1, %v5291_v50, %v11148_v57  ;;  %6644 = vrcp.f32 %v12374_v24 }
 0x971   : > { %v5200_v58 = vpop.permute.xlu0 %5199  ;;  %v5294_v52 = vsel %vm290_vm0, %v1386_v60, %v10994_v7  ;;  %v6631_v7 = vpop.eup %6630  ;;  %v12375_v60 = vld [vmem:[#allocation18_spill] sm:$0xff]  ;;  %6646 = vrcp.f32 %v10906_v54 }
 0x972   : > { %v5194_v47 = vpop.permute.xlu1 %5193  ;;  %v5358_v44 = vsel %vm5354_vm2, %v5325_v33, %v5200_v58  ;;  %v5327_v17 = vsel %vm5321_vm1, %v5294_v52, %v11146_v36  ;;  %v6633_v36 = vpop.eup %6632  ;;  %v1390_v11 = vmul.f32 %v6631_v7, %v12376_v4  ;;  %v12378_v52 = vld [vmem:[#allocation5_spill] sm:$0xff] }
 0x973   : > { %v5355_v26 = vsel %vm5354_vm2, %v5322_v61, %v5194_v47  ;;  %5390 = vst [vmem:[%s11219_s12 + $0x18] sm:$0xff] %v5358_v44  ;;  %v1385_v61 = vmul.f32 %v6629_v20, %v12375_v60  ;;  %v5329_v47 = vsel %vm5321_vm1, %v5296_v53, %v11150_v38  ;;  %v6635_v22 = vpop.eup %6634  ;;  %v12377_v20 = vld [vmem:[#allocation115_spill] sm:$0xff]  ;;  %v1387_v50 = vmul.f32 %v6633_v36, %v12378_v52  ;;  %v12380_v7 = vld [vmem:[#allocation9_spill] sm:$0xff] }
 0x974   : > { %5387 = vst [vmem:[%s11219_s12] sm:$0xff] %v5355_v26  ;;  %6648 = vrcp.f32 %v12377_v20  ;;  %v6637_v38 = vpop.eup %6636  ;;  %v5298_v54 = vsel %vm290_vm0, %v1390_v11, %v11014_v56  ;;  %v1392_v46 = vmul.f32 %v6635_v22, %v12379_v43 }
 0x975   : > { %v5204_v27 = vpop.permute.xlu0 %5203  ;;  %v5293_v57 = vsel %vm290_vm0, %v1385_v61, %v11006_v34  ;;  %6650 = vrcp.f32 %v10916_v51  ;;  %v6639_v56 = vpop.eup %6638  ;;  %v1389_v24 = vmul.f32 %v6637_v38, %v12380_v7 }
 0x976   : > { %v5198_v33 = vpop.permute.xlu1 %5197  ;;  %v5360_v58 = vsel %vm5354_vm2, %v5327_v17, %v5204_v27  ;;  %v5326_v5 = vsel %vm5321_vm1, %v5293_v57, %v11152_v29  ;;  %v5295_v29 = vsel %vm290_vm0, %v1387_v50, %v11016_v40  ;;  %v5331_v17 = vsel %vm5321_vm1, %v5298_v54, %v11154_v10  ;;  %v6641_v10 = vpop.eup %6640  ;;  %v12385_v50 = vld [vmem:[#allocation147_spill] sm:$0xff] }
 0x977   : > { %v5357_v31 = vsel %vm5354_vm2, %v5324_v19, %v5198_v33  ;;  %5392 = vst [vmem:[%s11219_s12 + $0x28] sm:$0xff] %v5360_v58  ;;  %v5328_v19 = vsel %vm5321_vm1, %v5295_v29, %v11156_v37  ;;  %6652 = vrcp.f32 %v10894_v63  ;;  %v5300_v51 = vsel %vm290_vm0, %v1392_v46, %v11024_v45  ;;  %v12381_v63 = vld [vmem:[#allocation19_spill] sm:$0xff]  ;;  %v6643_v45 = vpop.eup %6642 }
 0x978   : > { %5389 = vst [vmem:[%s11219_s12 + $0x10] sm:$0xff] %v5357_v31  ;;  %v5297_v37 = vsel %vm290_vm0, %v1389_v24, %v11026_v14  ;;  %v5333_v60 = vsel %vm5321_vm1, %v5300_v51, %v11158_v12  ;;  %6654 = vrcp.f32 %v10926_v35  ;;  %v1394_v31 = vmul.f32 %v6639_v56, %v12381_v63  ;;  %v12392_v63 = vld [vmem:[#allocation30_spill] sm:$0xff] }
 0x979   : > { %v5208_v44 = vpop.permute.xlu0 %5207  ;;  %v5330_v36 = vsel %vm5321_vm1, %v5297_v37, %v11160_v41 }
 0x97a   : > { %v5202_v0 = vpop.permute.xlu1 %5201  ;;  %v5362_v26 = vsel %vm5354_vm2, %v5329_v47, %v5208_v44  ;;  %v12382_v47 = vld [vmem:[#allocation118_spill] sm:$0xff]  ;;  %v12383_v44 = vld [vmem:[#allocation13_spill] sm:$0xff]  ;;  %v5302_v35 = vsel %vm290_vm0, %v1394_v31, %v11034_v62 }
 0x97b   : > { %v5359_v34 = vsel %vm5354_vm2, %v5326_v5, %v5202_v0  ;;  %5394 = vst [vmem:[%s11219_s12 + $0x38] sm:$0xff] %v5362_v26  ;;  %6656 = vrcp.f32 %v12382_v47  ;;  %v1391_v4 = vmul.f32 %v6641_v10, %v12383_v44  ;;  %v5335_v11 = vsel %vm5321_vm1, %v5302_v35, %v11162_v59  ;;  %v12384_v0 = vld [vmem:[#allocation25_spill] sm:$0xff]  ;;  %v12396_v35 = vld [vmem:[#allocation46_spill] sm:$0xff] }
 0x97c   : > { %5391 = vst [vmem:[%s11219_s12 + $0x20] sm:$0xff] %v5359_v34  ;;  %6658 = vrcp.f32 %v10936_v16  ;;  %v1396_v26 = vmul.f32 %v6643_v45, %v12384_v0  ;;  %v12386_v34 = vld [vmem:[#allocation17_spill] sm:$0xff]  ;;  %v12394_v45 = vld [vmem:[#allocation51_spill] sm:$0xff]  ;;  %v12398_v0 = vld [vmem:[#allocation98_spill] sm:$0xff] }
 0x97d   : > { %v5212_v27 = vpop.permute.xlu0 %5211  ;;  %v6645_v12 = vpop.eup %6644  ;;  %v5299_v41 = vsel %vm290_vm0, %v1391_v4, %v11036_v13  ;;  %6660 = vrcp.f32 %v12385_v50 }
 0x97e   : > { %v5206_v33 = vpop.permute.xlu1 %5205  ;;  %v5364_v58 = vsel %vm5354_vm2, %v5331_v17, %v5212_v27  ;;  %v5332_v22 = vsel %vm5321_vm1, %v5299_v41, %v11164_v21  ;;  %v6647_v62 = vpop.eup %6646  ;;  %v1393_v38 = vmul.f32 %v6645_v12, %v12386_v34  ;;  %v5304_v16 = vsel %vm290_vm0, %v1396_v26, %v11044_v3  ;;  %v12387_v17 = vld [vmem:[#allocation27_spill] sm:$0xff]  ;;  %v12395_v12 = vld [vmem:[#allocation125_spill] sm:$0xff]  ;;  %v12399_v26 = vld [vmem:[#allocation114_spill] sm:$0xff] }
 0x97f   : > { %v5361_v40 = vsel %vm5354_vm2, %v5328_v19, %v5206_v33  ;;  %5396 = vst [vmem:[%s11219_s12 + $0x48] sm:$0xff] %v5364_v58  ;;  %v5337_v54 = vsel %vm5321_vm1, %v5304_v16, %v11166_v18  ;;  %6662 = vrcp.f32 %v10946_v39  ;;  %v1398_v27 = vmul.f32 %v6647_v62, %v12387_v17  ;;  %v12388_v33 = vld [vmem:[#allocation119_spill] sm:$0xff]  ;;  %v12402_v16 = vld [vmem:[#allocation50_spill] sm:$0xff] }
 0x980   : > { %5393 = vst [vmem:[%s11219_s12 + $0x30] sm:$0xff] %v5361_v40  ;;  %v5301_v21 = vsel %vm290_vm0, %v1393_v38, %v11046_v49  ;;  %6664 = vrcp.f32 %v12388_v33  ;;  %v12389_v58 = vld [vmem:[#allocation23_spill] sm:$0xff]  ;;  %v12403_v17 = vld [vmem:[#allocation138_spill] sm:$0xff] }
 0x981   : > { %v5216_v61 = vpop.permute.xlu0 %5215  ;;  %v6649_v59 = vpop.eup %6648  ;;  %v5334_v43 = vsel %vm5321_vm1, %v5301_v21, %v11168_v30  ;;  %v5306_v39 = vsel %vm290_vm0, %v1398_v27, %v11054_v32  ;;  %6666 = vrcp.f32 %v10956_v25  ;;  %v12390_v40 = vld [vmem:[#allocation47_spill] sm:$0xff] }
 0x982   : > { %v5210_v53 = vpop.permute.xlu1 %5209  ;;  %v5366_v57 = vsel %vm5354_vm2, %v5333_v60, %v5216_v61  ;;  %v6651_v3 = vpop.eup %6650  ;;  %v1395_v56 = vmul.f32 %v6649_v59, %v12389_v58  ;;  %v5339_v7 = vsel %vm5321_vm1, %v5306_v39, %v11170_v8  ;;  %v12391_v61 = vld [vmem:[#allocation103_spill] sm:$0xff]  ;;  %v12406_v39 = vld [vmem:[#allocation54_spill] sm:$0xff] }
 0x983   : > { %v5363_v14 = vsel %vm5354_vm2, %v5330_v36, %v5210_v53  ;;  %5398 = vst [vmem:[%s11219_s12 + $0x58] sm:$0xff] %v5366_v57  ;;  %v1400_v10 = vmul.f32 %v6651_v3, %v12390_v40  ;;  %6668 = vrcp.f32 %v12391_v61  ;;  %v12393_v57 = vld [vmem:[#allocation134_spill] sm:$0xff]  ;;  %v12401_v59 = vld [vmem:[#allocation131_spill] sm:$0xff]  ;;  %v12407_v40 = vld [vmem:[#allocation101_spill] sm:$0xff] }
 0x984   : > { %5395 = vst [vmem:[%s11219_s12 + $0x40] sm:$0xff] %v5363_v14  ;;  %v6653_v18 = vpop.eup %6652  ;;  %v5303_v30 = vsel %vm290_vm0, %v1395_v56, %v11056_v6  ;;  %6670 = vrcp.f32 %v12393_v57  ;;  %v12405_v3 = vld [vmem:[#allocation59_spill] sm:$0xff] }
 0x985   : > { %v5220_v5 = vpop.permute.xlu0 %5219  ;;  %v5336_v51 = vsel %vm5321_vm1, %v5303_v30, %v11172_v23  ;;  %v6655_v32 = vpop.eup %6654  ;;  %v1397_v31 = vmul.f32 %v6653_v18, %v12392_v63  ;;  %v5308_v25 = vsel %vm290_vm0, %v1400_v10, %v11064_v55  ;;  %6672 = vrcp.f32 %v12395_v12  ;;  %v12408_v10 = vld [vmem:[#allocation129_spill] sm:$0xff]  ;;  %v12411_v63 = vld [vmem:[#allocation34_spill] sm:$0xff] }
 0x986   : > { %v5214_v20 = vpop.permute.xlu1 %5213  ;;  %v5368_v52 = vsel %vm5354_vm2, %v5335_v11, %v5220_v5  ;;  %v5341_v36 = vsel %vm5321_vm1, %v5308_v25, %v11174_v1  ;;  %v1402_v47 = vmul.f32 %v6655_v32, %v12394_v45  ;;  %v12397_v11 = vld [vmem:[#allocation99_spill] sm:$0xff]  ;;  %6674 = vrcp.f32 %v12401_v59  ;;  %v12413_v45 = vld [vmem:[#allocation132_spill] sm:$0xff]  ;;  %v12422_v59 = vld [vmem:[#allocation38_spill] sm:$0xff] }
 0x987   : > { %v5365_v13 = vsel %vm5354_vm2, %v5332_v22, %v5214_v20  ;;  %5400 = vst [vmem:[%s11219_s12 + $0x68] sm:$0xff] %v5368_v52  ;;  %v5305_v23 = vsel %vm290_vm0, %v1397_v31, %v11066_v15  ;;  %v12400_v52 = vld [vmem:[#allocation55_spill] sm:$0xff] }
 0x988   : > { %5397 = vst [vmem:[%s11219_s12 + $0x50] sm:$0xff] %v5365_v13  ;;  %v6657_v8 = vpop.eup %6656  ;;  %v5338_v44 = vsel %vm5321_vm1, %v5305_v23, %v11176_v2  ;;  %v5310_v5 = vsel %vm290_vm0, %v1402_v47, %v12397_v11  ;;  %v12410_v32 = vld [vmem:[#allocation63_spill] sm:$0xff]  ;;  %v12412_v23 = vld [vmem:[#allocation58_spill] sm:$0xff] }
 0x989   : > { %v5224_v29 = vpop.permute.xlu0 %5223  ;;  %v6659_v55 = vpop.eup %6658  ;;  %v1399_v41 = vmul.f32 %v6657_v8, %v12396_v35  ;;  %v5343_v22 = vsel %vm5321_vm1, %v5310_v5, %v12399_v26  ;;  %v12416_v35 = vld [vmem:[#allocation67_spill] sm:$0xff] }
 0x98a   : > { %v5218_v46 = vpop.permute.xlu1 %5217  ;;  %v5370_v19 = vsel %vm5354_vm2, %v5337_v54, %v5224_v29  ;;  %v6661_v1 = vpop.eup %6660  ;;  %v1404_v62 = vmul.f32 %v6659_v55, %v12400_v52 }
 0x98b   : > { %v5367_v49 = vsel %vm5354_vm2, %v5334_v43, %v5218_v46  ;;  %5402 = vst [vmem:[%s11219_s12 + $0x78] sm:$0xff] %v5370_v19  ;;  %v5307_v2 = vsel %vm290_vm0, %v1399_v41, %v12398_v0  ;;  %v1401_v21 = vmul.f32 %v6661_v1, %v12402_v16  ;;  %v12404_v43 = vld [vmem:[#allocation110_spill] sm:$0xff] }
 0x98c   : > { %5399 = vst [vmem:[%s11219_s12 + $0x60] sm:$0xff] %v5367_v49  ;;  %v5340_v50 = vsel %vm5321_vm1, %v5307_v2, %v11180_v9  ;;  %v6663_v13 = vpop.eup %6662  ;;  %v5312_v27 = vsel %vm290_vm0, %v1404_v62, %v12403_v17  ;;  %v12418_v0 = vld [vmem:[#allocation62_spill] sm:$0xff]  ;;  %v12420_v62 = vld [vmem:[#allocation72_spill] sm:$0xff] }
 0x98d   : > { %v5228_v24 = vpop.permute.xlu0 %5227  ;;  %v6665_v29 = vpop.eup %6664  ;;  %v5309_v9 = vsel %vm290_vm0, %v1401_v21, %v12404_v43  ;;  %v5345_v46 = vsel %vm5321_vm1, %v5312_v27, %v11182_v28  ;;  %v1406_v33 = vmul.f32 %v6663_v13, %v12405_v3  ;;  %v12424_v43 = vld [vmem:[#allocation178_spill] sm:$0xff] }
 0x98e   : > { %v5222_v37 = vpop.permute.xlu1 %5221  ;;  %v5372_v60 = vsel %vm5354_vm2, %v5339_v7, %v5228_v24  ;;  %v5342_v58 = vsel %vm5321_vm1, %v5309_v9, %v11185_v42  ;;  %v6667_v18 = vpop.eup %6666  ;;  %v1403_v30 = vmul.f32 %v6665_v29, %v12406_v39  ;;  %v12409_v42 = vld [vmem:[#allocation32_spill] sm:$0xff]  ;;  %v12423_v29 = vld [vmem:[#allocation66_spill] sm:$0xff] }
 0x98f   : > { %v5369_v6 = vsel %vm5354_vm2, %v5336_v51, %v5222_v37  ;;  %5404 = vst [vmem:[%s11219_s12 + $0x88] sm:$0xff] %v5372_v60  ;;  %v5314_v28 = vsel %vm290_vm0, %v1406_v33, %v12407_v40  ;;  %v1408_v61 = vmul.f32 %v6667_v18, %v12410_v32 }
 0x990   : > { %5401 = vst [vmem:[%s11219_s12 + $0x70] sm:$0xff] %v5369_v6  ;;  %v6669_v24 = vpop.eup %6668  ;;  %v5311_v51 = vsel %vm290_vm0, %v1403_v30, %v12408_v10  ;;  %v5347_v37 = vsel %vm5321_vm1, %v5314_v28, %v12409_v42  ;;  %v12428_v30 = vld [vmem:[#allocation73_spill] sm:$0xff] }
 0x991   : > { %v5232_v53 = vpop.permute.xlu0 %5231  ;;  %v5344_v31 = vsel %vm5321_vm1, %v5311_v51, %v12411_v63  ;;  %v6671_v25 = vpop.eup %6670  ;;  %v5316_v47 = vsel %vm290_vm0, %v1408_v61, %v12413_v45 }
 0x992   : > { %v5226_v4 = vpop.permute.xlu1 %5225  ;;  %v5374_v14 = vsel %vm5354_vm2, %v5341_v36, %v5232_v53  ;;  %v1405_v36 = vmul.f32 %v6669_v24, %v12412_v23  ;;  %v6673_v57 = vpop.eup %6672  ;;  %v1410_v41 = vmul.f32 %v6671_v25, %v12416_v35 }
 0x993   : > { %v5371_v15 = vsel %vm5354_vm2, %v5338_v44, %v5226_v4  ;;  %5406 = vst [vmem:[%s11219_s12 + $0x98] sm:$0xff] %v5374_v14  ;;  %v12414_v44 = vld [vmem:[#allocation112_spill] sm:$0xff]  ;;  %v12415_v14 = vld [vmem:[#allocation33_spill] sm:$0xff]  ;;  %v1407_v2 = vmul.f32 %v6673_v57, %v12418_v0 }
 0x994   : > { %5403 = vst [vmem:[%s11219_s12 + $0x80] sm:$0xff] %v5371_v15  ;;  %v5313_v4 = vsel %vm290_vm0, %v1405_v36, %v12414_v44  ;;  %v5349_v55 = vsel %vm5321_vm1, %v5316_v47, %v12415_v14  ;;  %v12417_v15 = vld [vmem:[#allocation36_spill] sm:$0xff] }
 0x995   : > { %v5236_v20 = vpop.permute.xlu0 %5235  ;;  %v5346_v1 = vsel %vm5321_vm1, %v5313_v4, %v12417_v15 }
 0x996   : > { %v5230_v34 = vpop.permute.xlu1 %5229  ;;  %v5376_v38 = vsel %vm5354_vm2, %v5343_v22, %v5236_v20  ;;  %v6675_v22 = vpop.eup %6674  ;;  %v12419_v20 = vld [vmem:[#allocation65_spill] sm:$0xff] }
 0x997   : > { %v5373_v54 = vsel %vm5354_vm2, %v5340_v50, %v5230_v34  ;;  %5408 = vst [vmem:[%s11219_s12 + $0xa8] sm:$0xff] %v5376_v38  ;;  %v5318_v52 = vsel %vm290_vm0, %v1410_v41, %v12419_v20  ;;  %v5315_v50 = vsel %vm290_vm0, %v1407_v2, %v12420_v62  ;;  %v12421_v34 = vld [vmem:[#allocation35_spill] sm:$0xff]  ;;  %v1409_v17 = vmul.f32 %v6675_v22, %v12423_v29 }
 0x998   : > { %5405 = vst [vmem:[%s11219_s12 + $0x90] sm:$0xff] %v5373_v54  ;;  %v5351_v38 = vsel %vm5321_vm1, %v5318_v52, %v12421_v34  ;;  %v5348_v16 = vsel %vm5321_vm1, %v5315_v50, %v12422_v59 }
 0x999   : > { %v5240_v19 = vpop.permute.xlu0 %5239  ;;  %v5317_v9 = vsel %vm290_vm0, %v1409_v17, %v12424_v43 }
 0x99a   : > { %v5234_v56 = vpop.permute.xlu1 %5233  ;;  %v5378_v49 = vsel %vm5354_vm2, %v5345_v46, %v5240_v19  ;;  %v12425_v46 = vld [vmem:[#allocation37_spill] sm:$0xff]  ;;  %v12426_v19 = vld [vmem:[#allocation171_spill] sm:$0xff] }
 0x99b   : > { %v5375_v7 = vsel %vm5354_vm2, %v5342_v58, %v5234_v56  ;;  %5410 = vst [vmem:[%s11219_s12 + $0xb8] sm:$0xff] %v5378_v49  ;;  %v5353_v3 = vsel %vm5321_vm1, %v12426_v19, %v12425_v46  ;;  %v12427_v58 = vld [vmem:[#allocation40_spill] sm:$0xff] }
 0x99c   : > { %5407 = vst [vmem:[%s11219_s12 + $0xa0] sm:$0xff] %v5375_v7  ;;  %v5350_v56 = vsel %vm5321_vm1, %v5317_v9, %v12427_v58  ;;  %v5352_v7 = vsel %vm5321_vm1, %v12428_v30, %v11224_v48 }
 0x99d   : > { %v5244_v60 = vpop.permute.xlu0 %5243 }
 0x99e   : > { %v5238_v6 = vpop.permute.xlu1 %5237  ;;  %v5380_v8 = vsel %vm5354_vm2, %v5347_v37, %v5244_v60 }
 0x99f   : > { %v5377_v53 = vsel %vm5354_vm2, %v5344_v31, %v5238_v6  ;;  %5412 = vst [vmem:[%s11219_s12 + $0xc8] sm:$0xff] %v5380_v8 }
 0x9a0   : > { %5409 = vst [vmem:[%s11219_s12 + $0xb0] sm:$0xff] %v5377_v53 }
 0x9a1   : > { %v5248_v12 = vpop.permute.xlu0 %5247 }
 0x9a2   : > { %v5242_v11 = vpop.permute.xlu1 %5241  ;;  %v5382_v5 = vsel %vm5354_vm2, %v5349_v55, %v5248_v12 }
 0x9a3   : > { %v5379_v26 = vsel %vm5354_vm2, %v5346_v1, %v5242_v11  ;;  %5414 = vst [vmem:[%s11219_s12 + $0xd8] sm:$0xff] %v5382_v5 }
 0x9a4   : > { %5411 = vst [vmem:[%s11219_s12 + $0xc0] sm:$0xff] %v5379_v26 }
 0x9a5   : > { %v5252_v13 = vpop.permute.xlu0 %5251 }
 0x9a6   : > { %v5246_v21 = vpop.permute.xlu1 %5245  ;;  %v5384_v54 = vsel %vm5354_vm2, %v5351_v38, %v5252_v13 }
 0x9a7   : > { %v5381_v27 = vsel %vm5354_vm2, %v5348_v16, %v5246_v21  ;;  %5416 = vst [vmem:[%s11219_s12 + $0xe8] sm:$0xff] %v5384_v54 }
 0x9a8   : > { %5413 = vst [vmem:[%s11219_s12 + $0xd0] sm:$0xff] %v5381_v27 }
 0x9a9   : > { %v5256_v33 = vpop.permute.xlu0 %5255 }
 0x9aa   : > { %v5250_v49 = vpop.permute.xlu1 %5249  ;;  %v5386_v18 = vsel %vm5354_vm2, %v5353_v3, %v5256_v33 }
 0x9ab   : > { %v5383_v39 = vsel %vm5354_vm2, %v5350_v56, %v5250_v49  ;;  %5418 = vst [vmem:[%s11219_s12 + $0xf8] sm:$0xff] %v5386_v18 }
 0x9ac   : > { %5415 = vst [vmem:[%s11219_s12 + $0xe0] sm:$0xff] %v5383_v39 }
 0x9ae   : > { %v5254_v24 = vpop.permute.xlu1 %5253 }
 0x9af   : > { %v5385_v40 = vsel %vm5354_vm2, %v5352_v7, %v5254_v24 }
 0x9b0   : > { %5417 = vst [vmem:[%s11219_s12 + $0xf0] sm:$0xff] %v5385_v40 }
 0x9b1 PF: > { %s13_s16 = sadd.s32 1, %s6759_s16   ;;  %s12429_s12 = smov %s6751_s14 }
 0x9b2   : > { %p10_p7 = scmp.ge.s32.totalorder %s13_s16, 10   ;;  %s12430_s13 = smov %s6755_s15 }
 0x9b3   : > { %s12431_s14 = smov %s12434_s17  ;;  %s12432_s15 = smov %s12438_s18 }
 0x9b4   :  { %12 = sbr.rel (!%p10_p7) target bundleno = 3 (0x3), region = 74 }

// kernel: e_mhsa_forward.5
= control target key start
LH: loop header
LB: loop body
LE: loop exit
PB: predicated region body
PF: predicated region fallthrough
CT: control target
= control target key end

     0   :  { %s1800_s21 = smov 0   ;;  %s1802_s22 = smov 0   ;;  %s2579_s0 = inlined_call_operand.vmem [shape: f32[2,1024,128], index: 0, kind: input, shape index: {}]   ;;  %s2580_s1 = inlined_call_operand.vmem [shape: f32[128,64], index: 1, kind: input, shape index: {}]   ;;  %s2581_s2 = inlined_call_operand.vmem [shape: f32[1,64], index: 2, kind: input, shape index: {}]   ;;  %s2582_s3 = inlined_call_operand.vmem [shape: f32[2,1024,64], index: 3, kind: input, shape index: {}]   ;;  %s2583_s4 = inlined_call_operand.vmem [shape: f32[1024,64], index: 4, kind: input, shape index: {}]   ;;  %s2584_s5 = inlined_call_operand.vmem [shape: f32[1024,64], index: 5, kind: input, shape index: {}]   ;;  %s2585_s6 = inlined_call_operand.vmem [shape: f32[2,1024,64], index: 6, kind: output, shape index: {}]  }
   0x1   :  { %s1804_s23 = smov 0   ;;  %s1806_s24 = smov 0  }
   0x2   :  { %s1808_s25 = smov 0  }
   0x3 LB: > { %s25_s26 = sadd.s32 1, %s1755_s23  ;;  %s28_s27 = sadd.s32 1, %s1759_s24  ;;  %s1763_s25 = sphi %s1808_s25, %s16_s25   ;;  %s1759_s24 = sphi %s1806_s24, %s2623_s24   ;;  %s1755_s23 = sphi %s1804_s23, %s2622_s23   ;;  %s1751_s22 = sphi %s1802_s22, %s2621_s22   ;;  %s1747_s21 = sphi %s1800_s21, %s2620_s21  }
   0x4   : > { %p26_p0 = scmp.ge.s32.totalorder %s25_s26, 2  ;;  %p1428_p1 = scmp.ge.s32.totalorder %s1763_s25, 1 }
   0x5   : > { %p272_p2 = scmp.lt.s32.totalorder %s1763_s25, 5 }
   0x6   : > { %s2625_s26 = smov (%p26_p0, %s25_s26), 0  ;;  %s2627_s27 = smov (!%p26_p0, %s28_s27), %s1759_s24 }
   0x7   : > { %p273_p3 = pnand %p1428_p1, %p272_p2  ;;  %p30_p4 = scmp.ge.s32.totalorder %s2627_s27, 2 }
   0x9   : > { %s2629_s27 = smov (%p30_p4, %s2627_s27), 0  ;;  %276 = sbr.rel (%p273_p3) target bundleno = 308 (0x134), region = 44 }
   0xe   : > { %v770_v0 = vld [vmem:[%s2580_s1 + $0x78] sm:$0xff]  ;;  %v769_v1 = vld [vmem:[%s2580_s1 + $0x70] sm:$0xff]  ;;  %v768_v2 = vld [vmem:[%s2580_s1 + $0x68] sm:$0xff]  ;;  %s1429_s18 = sshll.u32 %s1747_s21, 6  ;;  %p330_p5 = scmp.lt.s32.totalorder %s1751_s22, 1  ;;  %vm1227_vm0 = vcmask 523264  }
   0xf   : > { %1525 = vmatprep.subr.mxu0 %v770_v0  ;;  %1653 = vmatprep.subr.mxu1 %v770_v0  ;;  %v767_v3 = vld [vmem:[%s2580_s1 + $0x60] sm:$0xff]  ;;  %v766_v4 = vld [vmem:[%s2580_s1 + $0x58] sm:$0xff]  ;;  %v765_v5 = vld [vmem:[%s2580_s1 + $0x50] sm:$0xff]  ;;  %p332_p6 = scmp.lt.s32.totalorder %s1429_s18, 127 }
  0x10   : > { %1526 = vmatpush3.msra.mxu0 %v770_v0  ;;  %1669 = vmatpush3.msra.mxu1 %v770_v0  ;;  %v764_v6 = vld [vmem:[%s2580_s1 + $0x48] sm:$0xff]  ;;  %v763_v7 = vld [vmem:[%s2580_s1 + $0x40] sm:$0xff]  ;;  %v762_v8 = vld [vmem:[%s2580_s1 + $0x38] sm:$0xff]  ;;  %s2631_s22 = smov (!%p330_p5, %s1751_s22), 1 }
  0x11   : > { %1527 = vmatprep.subr.mxu0 %v769_v1  ;;  %1654 = vmatprep.subr.mxu1 %v769_v1  ;;  %v761_v9 = vld [vmem:[%s2580_s1 + $0x30] sm:$0xff]  ;;  %s2633_s18 = smov (!%p332_p6, %s1429_s18), 127  ;;  %v760_v10 = vld [vmem:[%s2580_s1 + $0x28] sm:$0xff]  ;;  %s1430_s9 = sshll.u32 %s2631_s22, 7  ;;  %v759_v11 = vld [vmem:[%s2580_s1 + $0x20] sm:$0xff] }
  0x12   : > { %1528 = vmatpush3.msra.mxu0 %v769_v1  ;;  %1670 = vmatpush3.msra.mxu1 %v769_v1  ;;  %s335_s12 = sadd.s32 %s1430_s9, %s2633_s18  ;;  %s1436_s13 = sshll.u32 %s2633_s18, 3  ;;  %v758_v12 = vld [vmem:[%s2580_s1 + $0x18] sm:$0xff]  ;;  %v757_v13 = vld [vmem:[%s2580_s1 + $0x10] sm:$0xff]  ;;  %v756_v14 = vld [vmem:[%s2580_s1 + $0x8] sm:$0xff] }
  0x13   : > { %1529 = vmatprep.subr.mxu0 %v768_v2  ;;  %1655 = vmatprep.subr.mxu1 %v768_v2  ;;  %s1883_s17 = sshll.u32 %s335_s12, 3  ;;  %s1888_s18 = scalar_lea.vmem %s2583_s4, %s1436_s13  ;;  %v755_v16 = vld [vmem:[%s2580_s1] sm:$0xff] }
  0x14   : > { %1530 = vmatpush3.msra.mxu0 %v768_v2  ;;  %1671 = vmatpush3.msra.mxu1 %v768_v2  ;;  %s1897_s7 = scalar_lea.vmem %s2582_s3, %s1883_s17  ;;  %s1902_s10 = scalar_lea.vmem %s2584_s5, %s1436_s13  ;;  %v436_v15 = vld [vmem:[%s1888_s18 + $0x8] sm:$0xff] }
  0x15   : > { %1531 = vmatprep.subr.mxu0 %v767_v3  ;;  %1656 = vmatprep.subr.mxu1 %v767_v3  ;;  %s1908_s14 = scalar_lea.vmem %s2579_s0, %s1883_s17  ;;  %v372_v17 = vld [vmem:[%s1897_s7 + $0x8] sm:$0xff] }
  0x16   : > { %1532 = vmatpush3.msra.mxu0 %v767_v3  ;;  %1672 = vmatpush3.msra.mxu1 %v767_v3  ;;  %v564_v18 = vld [vmem:[%s1902_s10 + $0x8] sm:$0xff]  ;;  %v691_v19 = vld [vmem:[%s1908_s14] sm:$0xff]  ;;  %v500_v21 = vmul.f32 %v436_v15, %v372_v17  ;;  %v693_v24 = vld [vmem:[%s1908_s14 + $0x10] sm:$0xff] }
  0x17   : > { %1533 = vmatprep.subr.mxu0 %v766_v4  ;;  %1657 = vmatprep.subr.mxu1 %v766_v4  ;;  %v723_v20 = vld [vmem:[%s1908_s14 + $0x100] sm:$0xff]  ;;  %v692_v22 = vld [vmem:[%s1908_s14 + $0x8] sm:$0xff]  ;;  %v725_v25 = vld [vmem:[%s1908_s14 + $0x110] sm:$0xff] }
  0x18   : > { %1534 = vmatpush3.msra.mxu0 %v766_v4  ;;  %1673 = vmatpush3.msra.mxu1 %v766_v4  ;;  %v724_v23 = vld [vmem:[%s1908_s14 + $0x108] sm:$0xff]  ;;  %v1922_v26 = vadd.f32 %v564_v18, %v500_v21  ;;  %v694_v27 = vld [vmem:[%s1908_s14 + $0x18] sm:$0xff]  ;;  %v695_v29 = vld [vmem:[%s1908_s14 + $0x20] sm:$0xff] }
  0x19   : > { %1535 = vmatprep.subr.mxu0 %v765_v5  ;;  %1658 = vmatprep.subr.mxu1 %v765_v5  ;;  %v726_v28 = vld [vmem:[%s1908_s14 + $0x118] sm:$0xff]  ;;  %v727_v30 = vld [vmem:[%s1908_s14 + $0x120] sm:$0xff]  ;;  %v696_v31 = vld [vmem:[%s1908_s14 + $0x28] sm:$0xff] }
  0x1a   : > { %1536 = vmatpush3.msra.mxu0 %v765_v5  ;;  %1674 = vmatpush3.msra.mxu1 %v765_v5  ;;  %v728_v32 = vld [vmem:[%s1908_s14 + $0x128] sm:$0xff]  ;;  %v697_v33 = vld [vmem:[%s1908_s14 + $0x30] sm:$0xff]  ;;  %v698_v35 = vld [vmem:[%s1908_s14 + $0x38] sm:$0xff] }
  0x1b   : > { %1537 = vmatprep.subr.mxu0 %v764_v6  ;;  %1659 = vmatprep.subr.mxu1 %v764_v6  ;;  %v729_v34 = vld [vmem:[%s1908_s14 + $0x130] sm:$0xff]  ;;  %v730_v36 = vld [vmem:[%s1908_s14 + $0x138] sm:$0xff]  ;;  %v699_v37 = vld [vmem:[%s1908_s14 + $0x40] sm:$0xff] }
  0x1c   : > { %1538 = vmatpush3.msra.mxu0 %v764_v6  ;;  %1675 = vmatpush3.msra.mxu1 %v764_v6  ;;  %v731_v38 = vld [vmem:[%s1908_s14 + $0x140] sm:$0xff]  ;;  %v700_v39 = vld [vmem:[%s1908_s14 + $0x48] sm:$0xff]  ;;  %v701_v41 = vld [vmem:[%s1908_s14 + $0x50] sm:$0xff] }
  0x1d   : > { %1539 = vmatprep.subr.mxu0 %v763_v7  ;;  %1660 = vmatprep.subr.mxu1 %v763_v7  ;;  %v732_v40 = vld [vmem:[%s1908_s14 + $0x148] sm:$0xff]  ;;  %v733_v42 = vld [vmem:[%s1908_s14 + $0x150] sm:$0xff]  ;;  %v702_v43 = vld [vmem:[%s1908_s14 + $0x58] sm:$0xff] }
  0x1e   : > { %1540 = vmatpush3.msra.mxu0 %v763_v7  ;;  %1676 = vmatpush3.msra.mxu1 %v763_v7  ;;  %v734_v44 = vld [vmem:[%s1908_s14 + $0x158] sm:$0xff]  ;;  %v703_v45 = vld [vmem:[%s1908_s14 + $0x60] sm:$0xff]  ;;  %v704_v47 = vld [vmem:[%s1908_s14 + $0x68] sm:$0xff] }
  0x1f   : > { %1541 = vmatprep.subr.mxu0 %v762_v8  ;;  %1661 = vmatprep.subr.mxu1 %v762_v8  ;;  %v735_v46 = vld [vmem:[%s1908_s14 + $0x160] sm:$0xff]  ;;  %v736_v48 = vld [vmem:[%s1908_s14 + $0x168] sm:$0xff]  ;;  %v705_v49 = vld [vmem:[%s1908_s14 + $0x70] sm:$0xff] }
  0x20   : > { %1542 = vmatpush3.msra.mxu0 %v762_v8  ;;  %1677 = vmatpush3.msra.mxu1 %v762_v8  ;;  %v737_v50 = vld [vmem:[%s1908_s14 + $0x170] sm:$0xff]  ;;  %v706_v51 = vld [vmem:[%s1908_s14 + $0x78] sm:$0xff]  ;;  %v707_v53 = vld [vmem:[%s1908_s14 + $0x80] sm:$0xff] }
  0x21   : > { %1543 = vmatprep.subr.mxu0 %v761_v9  ;;  %1662 = vmatprep.subr.mxu1 %v761_v9  ;;  %v738_v52 = vld [vmem:[%s1908_s14 + $0x178] sm:$0xff]  ;;  %v739_v54 = vld [vmem:[%s1908_s14 + $0x180] sm:$0xff]  ;;  %v708_v55 = vld [vmem:[%s1908_s14 + $0x88] sm:$0xff] }
  0x22   : > { %1544 = vmatpush3.msra.mxu0 %v761_v9  ;;  %1678 = vmatpush3.msra.mxu1 %v761_v9  ;;  %v740_v56 = vld [vmem:[%s1908_s14 + $0x188] sm:$0xff]  ;;  %v709_v57 = vld [vmem:[%s1908_s14 + $0x90] sm:$0xff]  ;;  %v710_v59 = vld [vmem:[%s1908_s14 + $0x98] sm:$0xff] }
  0x23   : > { %1545 = vmatprep.subr.mxu0 %v760_v10  ;;  %1663 = vmatprep.subr.mxu1 %v760_v10  ;;  %v741_v58 = vld [vmem:[%s1908_s14 + $0x190] sm:$0xff]  ;;  %v742_v60 = vld [vmem:[%s1908_s14 + $0x198] sm:$0xff]  ;;  %v711_v61 = vld [vmem:[%s1908_s14 + $0xa0] sm:$0xff] }
  0x24   : > { %1546 = vmatpush3.msra.mxu0 %v760_v10  ;;  %1679 = vmatpush3.msra.mxu1 %v760_v10  ;;  %v743_v62 = vld [vmem:[%s1908_s14 + $0x1a0] sm:$0xff]  ;;  %v712_v63 = vld [vmem:[%s1908_s14 + $0xa8] sm:$0xff]  ;;  %v713_v1 = vld [vmem:[%s1908_s14 + $0xb0] sm:$0xff] }
  0x25   : > { %1547 = vmatprep.subr.mxu0 %v759_v11  ;;  %1664 = vmatprep.subr.mxu1 %v759_v11  ;;  %v744_v0 = vld [vmem:[%s1908_s14 + $0x1a8] sm:$0xff]  ;;  %v745_v2 = vld [vmem:[%s1908_s14 + $0x1b0] sm:$0xff]  ;;  %v714_v3 = vld [vmem:[%s1908_s14 + $0xb8] sm:$0xff] }
  0x26   : > { %1548 = vmatpush3.msra.mxu0 %v759_v11  ;;  %1680 = vmatpush3.msra.mxu1 %v759_v11  ;;  %v746_v4 = vld [vmem:[%s1908_s14 + $0x1b8] sm:$0xff]  ;;  %v715_v5 = vld [vmem:[%s1908_s14 + $0xc0] sm:$0xff]  ;;  %v716_v7 = vld [vmem:[%s1908_s14 + $0xc8] sm:$0xff] }
  0x27   : > { %1549 = vmatprep.subr.mxu0 %v758_v12  ;;  %1665 = vmatprep.subr.mxu1 %v758_v12  ;;  %v747_v6 = vld [vmem:[%s1908_s14 + $0x1c0] sm:$0xff]  ;;  %v748_v8 = vld [vmem:[%s1908_s14 + $0x1c8] sm:$0xff]  ;;  %v717_v9 = vld [vmem:[%s1908_s14 + $0xd0] sm:$0xff] }
  0x28   : > { %1550 = vmatpush3.msra.mxu0 %v758_v12  ;;  %1681 = vmatpush3.msra.mxu1 %v758_v12  ;;  %v749_v10 = vld [vmem:[%s1908_s14 + $0x1d0] sm:$0xff]  ;;  %v718_v11 = vld [vmem:[%s1908_s14 + $0xd8] sm:$0xff]  ;;  %v720_v15 = vld [vmem:[%s1908_s14 + $0xe8] sm:$0xff] }
  0x29   : > { %1551 = vmatprep.subr.mxu0 %v757_v13  ;;  %1666 = vmatprep.subr.mxu1 %v757_v13  ;;  %v750_v12 = vld [vmem:[%s1908_s14 + $0x1d8] sm:$0xff]  ;;  %v721_v17 = vld [vmem:[%s1908_s14 + $0xf0] sm:$0xff]  ;;  %v404_v21 = vld [vmem:[%s1897_s7 + $0x108] sm:$0xff] }
  0x2a   : > { %1552 = vmatpush3.msra.mxu0 %v757_v13  ;;  %1682 = vmatpush3.msra.mxu1 %v757_v13  ;;  %v719_v13 = vld [vmem:[%s1908_s14 + $0xe0] sm:$0xff]  ;;  %v753_v18 = vld [vmem:[%s1908_s14 + $0x1f0] sm:$0xff] }
  0x2b   : > { %1553 = vmatprep.subr.mxu0 %v756_v14  ;;  %1667 = vmatprep.subr.mxu1 %v756_v14 }
  0x2c   : > { %1554 = vmatpush3.msra.mxu0 %v756_v14  ;;  %1683 = vmatpush3.msra.mxu1 %v756_v14  ;;  %v751_v14 = vld [vmem:[%s1908_s14 + $0x1e0] sm:$0xff] }
  0x2d   : > { %1555 = vmatprep.subr.mxu0 %v755_v16  ;;  %1668 = vmatprep.subr.mxu1 %v755_v16 }
  0x2e   : > { %1556 = vmatpush3.msra.mxu0 %v755_v16  ;;  %1684 = vmatpush3.msra.mxu1 %v755_v16  ;;  %v752_v16 = vld [vmem:[%s1908_s14 + $0x1e8] sm:$0xff] }
  0x2f   : > { %1557 = vmatprep.mubr.f32.mxu0 %v691_v19  ;;  %1605 = vmatprep.mubr.f32.mxu1 %v723_v20  ;;  %v722_v19 = vld [vmem:[%s1908_s14 + $0xf8] sm:$0xff] }
  0x30   : > { %1558 = vmatmul.mubr.f32.vlgmr.msra.gmra.mxu0 %v692_v22  ;;  %1606 = vmatmul.mubr.f32.vlgmr.msra.gmra.mxu1 %v724_v23  ;;  %v754_v20 = vld [vmem:[%s1908_s14 + $0x1f8] sm:$0xff]  ;;  %v468_v22 = vld [vmem:[%s1888_s18 + $0x108] sm:$0xff] }
  0x31   : > { %1560 = vmatprep.mubr.f32.mxu0 %v693_v24  ;;  %1608 = vmatprep.mubr.f32.mxu1 %v725_v25  ;;  %v532_v23 = vmul.f32 %v468_v22, %v404_v21  ;;  %v596_v24 = vld [vmem:[%s1902_s10 + $0x108] sm:$0xff]  ;;  %v371_v25 = vld [vmem:[%s1897_s7] sm:$0xff]  ;;  %v377_v21 = vld [vmem:[%s1897_s7 + $0x30] sm:$0xff] }
  0x32   : > { %v441_v22 = vld [vmem:[%s1888_s18 + $0x30] sm:$0xff] }
  0x34   : > { %1561 = vmatmul.mubr.f32.gmra.mxu0 %v694_v27  ;;  %1609 = vmatmul.mubr.f32.gmra.mxu1 %v726_v28  ;;  %v1986_v27 = vadd.f32 %v596_v24, %v532_v23  ;;  %v435_v28 = vld [vmem:[%s1888_s18] sm:$0xff]  ;;  %v409_v23 = vld [vmem:[%s1897_s7 + $0x130] sm:$0xff] }
  0x35   : > { %1563 = vmatprep.mubr.f32.mxu0 %v695_v29  ;;  %1611 = vmatprep.mubr.f32.mxu1 %v727_v30  ;;  %v403_v29 = vld [vmem:[%s1897_s7 + $0x100] sm:$0xff]  ;;  %v473_v24 = vld [vmem:[%s1888_s18 + $0x130] sm:$0xff] }
  0x36   : > { %v467_v30 = vld [vmem:[%s1888_s18 + $0x100] sm:$0xff] }
  0x38   : > { %1564 = vmatmul.mubr.f32.gmra.mxu0 %v696_v31  ;;  %1612 = vmatmul.mubr.f32.gmra.mxu1 %v728_v32  ;;  %v499_v31 = vmul.f32 %v435_v28, %v371_v25  ;;  %v563_v32 = vld [vmem:[%s1902_s10] sm:$0xff] }
  0x39   : > { %1566 = vmatprep.mubr.f32.mxu0 %v697_v33  ;;  %1614 = vmatprep.mubr.f32.mxu1 %v729_v34  ;;  %v531_v33 = vmul.f32 %v467_v30, %v403_v29  ;;  %v595_v34 = vld [vmem:[%s1902_s10 + $0x100] sm:$0xff]  ;;  %v505_v29 = vmul.f32 %v441_v22, %v377_v21  ;;  %v569_v30 = vld [vmem:[%s1902_s10 + $0x30] sm:$0xff]  ;;  %v416_v21 = vld [vmem:[%s1897_s7 + $0x168] sm:$0xff] }
  0x3a   : > { %v480_v22 = vld [vmem:[%s1888_s18 + $0x168] sm:$0xff] }
  0x3c   : > { %1567 = vmatmul.mubr.f32.gmra.mxu0 %v698_v35  ;;  %1615 = vmatmul.mubr.f32.gmra.mxu1 %v730_v36  ;;  %v374_v35 = vld [vmem:[%s1897_s7 + $0x18] sm:$0xff] }
  0x3d   : > { %1569 = vmatprep.mubr.f32.mxu0 %v699_v37  ;;  %1617 = vmatprep.mubr.f32.mxu1 %v731_v38  ;;  %v438_v36 = vld [vmem:[%s1888_s18 + $0x18] sm:$0xff] }
  0x3e   : > { %v406_v37 = vld [vmem:[%s1897_s7 + $0x118] sm:$0xff] }
  0x3f   : > { %v470_v38 = vld [vmem:[%s1888_s18 + $0x118] sm:$0xff] }
  0x40   : > { %1570 = vmatmul.mubr.f32.gmra.mxu0 %v700_v39  ;;  %1618 = vmatmul.mubr.f32.gmra.mxu1 %v732_v40  ;;  %v1997_v39 = vadd.f32 %v563_v32, %v499_v31  ;;  %v1999_v40 = vadd.f32 %v595_v34, %v531_v33  ;;  %v537_v31 = vmul.f32 %v473_v24, %v409_v23  ;;  %v601_v32 = vld [vmem:[%s1902_s10 + $0x130] sm:$0xff]  ;;  %v380_v33 = vld [vmem:[%s1897_s7 + $0x48] sm:$0xff] }
  0x41   : > { %1572 = vmatprep.mubr.f32.mxu0 %v701_v41  ;;  %1620 = vmatprep.mubr.f32.mxu1 %v733_v42  ;;  %v502_v41 = vmul.f32 %v438_v36, %v374_v35  ;;  %v566_v42 = vld [vmem:[%s1902_s10 + $0x18] sm:$0xff]  ;;  %v444_v34 = vld [vmem:[%s1888_s18 + $0x48] sm:$0xff] }
  0x42   : > { %v412_v35 = vld [vmem:[%s1897_s7 + $0x148] sm:$0xff] }
  0x43   : > { %v476_v36 = vld [vmem:[%s1888_s18 + $0x148] sm:$0xff] }
  0x44   : > { %1573 = vmatmul.mubr.f32.gmra.mxu0 %v702_v43  ;;  %1621 = vmatmul.mubr.f32.gmra.mxu1 %v734_v44  ;;  %v534_v43 = vmul.f32 %v470_v38, %v406_v37  ;;  %v598_v44 = vld [vmem:[%s1902_s10 + $0x118] sm:$0xff]  ;;  %v2057_v37 = vadd.f32 %v569_v30, %v505_v29  ;;  %v2059_v38 = vadd.f32 %v601_v32, %v537_v31  ;;  %v576_v30 = vld [vmem:[%s1902_s10 + $0x68] sm:$0xff] }
  0x45   : > { %1575 = vmatprep.mubr.f32.mxu0 %v703_v45  ;;  %1623 = vmatprep.mubr.f32.mxu1 %v735_v46  ;;  %v373_v45 = vld [vmem:[%s1897_s7 + $0x10] sm:$0xff]  ;;  %v544_v31 = vmul.f32 %v480_v22, %v416_v21  ;;  %v608_v32 = vld [vmem:[%s1902_s10 + $0x168] sm:$0xff] }
  0x46   : > { %v437_v46 = vld [vmem:[%s1888_s18 + $0x10] sm:$0xff] }
  0x48   : > { %1576 = vmatmul.mubr.f32.gmra.mxu0 %v704_v47  ;;  %1624 = vmatmul.mubr.f32.gmra.mxu1 %v736_v48  ;;  %v405_v47 = vld [vmem:[%s1897_s7 + $0x110] sm:$0xff] }
  0x49   : > { %1578 = vmatprep.mubr.f32.mxu0 %v705_v49  ;;  %1626 = vmatprep.mubr.f32.mxu1 %v737_v50  ;;  %v469_v48 = vld [vmem:[%s1888_s18 + $0x110] sm:$0xff]  ;;  %v2007_v49 = vadd.f32 %v566_v42, %v502_v41  ;;  %v2009_v50 = vadd.f32 %v598_v44, %v534_v43  ;;  %v508_v41 = vmul.f32 %v444_v34, %v380_v33  ;;  %v572_v42 = vld [vmem:[%s1902_s10 + $0x48] sm:$0xff]  ;;  %v383_v33 = vld [vmem:[%s1897_s7 + $0x60] sm:$0xff] }
  0x4a   : > { %v540_v43 = vmul.f32 %v476_v36, %v412_v35  ;;  %v604_v44 = vld [vmem:[%s1902_s10 + $0x148] sm:$0xff]  ;;  %v447_v34 = vld [vmem:[%s1888_s18 + $0x60] sm:$0xff] }
  0x4b   : > { %v415_v35 = vld [vmem:[%s1897_s7 + $0x160] sm:$0xff] }
  0x4c   : > { %1579 = vmatmul.mubr.f32.gmra.mxu0 %v706_v51  ;;  %1627 = vmatmul.mubr.f32.gmra.mxu1 %v738_v52  ;;  %v501_v51 = vmul.f32 %v437_v46, %v373_v45  ;;  %v565_v52 = vld [vmem:[%s1902_s10 + $0x10] sm:$0xff]  ;;  %v379_v45 = vld [vmem:[%s1897_s7 + $0x40] sm:$0xff] }
  0x4d   : > { %1581 = vmatprep.mubr.f32.mxu0 %v707_v53  ;;  %1629 = vmatprep.mubr.f32.mxu1 %v739_v54  ;;  %v533_v53 = vmul.f32 %v469_v48, %v405_v47  ;;  %v597_v54 = vld [vmem:[%s1902_s10 + $0x110] sm:$0xff]  ;;  %v443_v46 = vld [vmem:[%s1888_s18 + $0x40] sm:$0xff] }
  0x4e   : > { %v411_v47 = vld [vmem:[%s1897_s7 + $0x140] sm:$0xff] }
  0x4f   : > { %v475_v48 = vld [vmem:[%s1888_s18 + $0x140] sm:$0xff] }
  0x50   : > { %1582 = vmatmul.mubr.f32.gmra.mxu0 %v708_v55  ;;  %1630 = vmatmul.mubr.f32.gmra.mxu1 %v740_v56  ;;  %v376_v55 = vld [vmem:[%s1897_s7 + $0x28] sm:$0xff]  ;;  %v479_v36 = vld [vmem:[%s1888_s18 + $0x160] sm:$0xff] }
  0x51   : > { %1584 = vmatprep.mubr.f32.mxu0 %v709_v57  ;;  %1632 = vmatprep.mubr.f32.mxu1 %v741_v58  ;;  %v440_v56 = vld [vmem:[%s1888_s18 + $0x28] sm:$0xff] }
  0x52   : > { %v408_v57 = vld [vmem:[%s1897_s7 + $0x128] sm:$0xff] }
  0x53   : > { %v472_v58 = vld [vmem:[%s1888_s18 + $0x128] sm:$0xff] }
  0x54   : > { %1585 = vmatmul.mubr.f32.gmra.mxu0 %v710_v59  ;;  %1633 = vmatmul.mubr.f32.gmra.mxu1 %v742_v60  ;;  %v2017_v59 = vadd.f32 %v565_v52, %v501_v51  ;;  %v2019_v60 = vadd.f32 %v597_v54, %v533_v53  ;;  %v2067_v51 = vadd.f32 %v572_v42, %v508_v41  ;;  %v571_v54 = vld [vmem:[%s1902_s10 + $0x40] sm:$0xff] }
  0x55   : > { %1587 = vmatprep.mubr.f32.mxu0 %v711_v61  ;;  %1635 = vmatprep.mubr.f32.mxu1 %v743_v62  ;;  %v504_v61 = vmul.f32 %v440_v56, %v376_v55  ;;  %v568_v62 = vld [vmem:[%s1902_s10 + $0x28] sm:$0xff]  ;;  %v2069_v52 = vadd.f32 %v604_v44, %v540_v43  ;;  %v507_v53 = vmul.f32 %v443_v46, %v379_v45  ;;  %v603_v56 = vld [vmem:[%s1902_s10 + $0x140] sm:$0xff] }
  0x56   : > { %v539_v55 = vmul.f32 %v475_v48, %v411_v47  ;;  %v2109_v42 = vadd.f32 %v608_v32, %v544_v31  ;;  %v511_v43 = vmul.f32 %v447_v34, %v383_v33  ;;  %v575_v44 = vld [vmem:[%s1902_s10 + $0x60] sm:$0xff]  ;;  %v543_v45 = vmul.f32 %v479_v36, %v415_v35  ;;  %v386_v47 = vld [vmem:[%s1897_s7 + $0x78] sm:$0xff]  ;;  %v612_v32 = vld [vmem:[%s1902_s10 + $0x188] sm:$0xff] }
  0x57   : > { %v607_v46 = vld [vmem:[%s1902_s10 + $0x160] sm:$0xff]  ;;  %v450_v48 = vld [vmem:[%s1888_s18 + $0x78] sm:$0xff] }
  0x58   : > { %1588 = vmatmul.mubr.f32.gmra.mxu0 %v712_v63  ;;  %1636 = vmatmul.mubr.f32.gmra.mxu1 %v744_v0  ;;  %v536_v63 = vmul.f32 %v472_v58, %v408_v57  ;;  %v600_v0 = vld [vmem:[%s1902_s10 + $0x128] sm:$0xff]  ;;  %v382_v57 = vld [vmem:[%s1897_s7 + $0x58] sm:$0xff]  ;;  %v387_v33 = vld [vmem:[%s1897_s7 + $0x80] sm:$0xff] }
  0x59   : > { %1590 = vmatprep.mubr.f32.mxu0 %v713_v1  ;;  %1638 = vmatprep.mubr.f32.mxu1 %v745_v2  ;;  %v375_v1 = vld [vmem:[%s1897_s7 + $0x20] sm:$0xff]  ;;  %v446_v58 = vld [vmem:[%s1888_s18 + $0x58] sm:$0xff] }
  0x5a   : > { %v439_v2 = vld [vmem:[%s1888_s18 + $0x20] sm:$0xff] }
  0x5b   : > { %v451_v34 = vld [vmem:[%s1888_s18 + $0x80] sm:$0xff] }
  0x5c   : > { %1591 = vmatmul.mubr.f32.gmra.mxu0 %v714_v3  ;;  %1639 = vmatmul.mubr.f32.gmra.mxu1 %v746_v4  ;;  %v407_v3 = vld [vmem:[%s1897_s7 + $0x120] sm:$0xff] }
  0x5d   : > { %1593 = vmatprep.mubr.f32.mxu0 %v715_v5  ;;  %1641 = vmatprep.mubr.f32.mxu1 %v747_v6  ;;  %v471_v4 = vld [vmem:[%s1888_s18 + $0x120] sm:$0xff]  ;;  %v2027_v5 = vadd.f32 %v568_v62, %v504_v61  ;;  %v2029_v6 = vadd.f32 %v600_v0, %v536_v63  ;;  %v414_v61 = vld [vmem:[%s1897_s7 + $0x158] sm:$0xff]  ;;  %v2077_v63 = vadd.f32 %v571_v54, %v507_v53 }
  0x5e   : > { %v478_v62 = vld [vmem:[%s1888_s18 + $0x158] sm:$0xff]  ;;  %v2079_v0 = vadd.f32 %v603_v56, %v539_v55  ;;  %v2117_v55 = vadd.f32 %v575_v44, %v511_v43  ;;  %v2119_v56 = vadd.f32 %v607_v46, %v543_v45  ;;  %v419_v35 = vld [vmem:[%s1897_s7 + $0x180] sm:$0xff]  ;;  %v515_v45 = vmul.f32 %v451_v34, %v387_v33  ;;  %v424_v33 = vld [vmem:[%s1897_s7 + $0x1a8] sm:$0xff] }
  0x5f   : > { %v418_v53 = vld [vmem:[%s1897_s7 + $0x178] sm:$0xff]  ;;  %v483_v36 = vld [vmem:[%s1888_s18 + $0x180] sm:$0xff]  ;;  %v488_v34 = vld [vmem:[%s1888_s18 + $0x1a8] sm:$0xff] }
  0x60   : > { %1594 = vmatmul.mubr.f32.gmra.mxu0 %v716_v7  ;;  %1642 = vmatmul.mubr.f32.gmra.mxu1 %v748_v8  ;;  %v503_v7 = vmul.f32 %v439_v2, %v375_v1  ;;  %v567_v8 = vld [vmem:[%s1902_s10 + $0x20] sm:$0xff]  ;;  %v510_v1 = vmul.f32 %v446_v58, %v382_v57  ;;  %v574_v2 = vld [vmem:[%s1902_s10 + $0x58] sm:$0xff]  ;;  %v514_v57 = vmul.f32 %v450_v48, %v386_v47 }
  0x61   : > { %1596 = vmatprep.mubr.f32.mxu0 %v717_v9  ;;  %1644 = vmatprep.mubr.f32.mxu1 %v749_v10  ;;  %v535_v9 = vmul.f32 %v471_v4, %v407_v3  ;;  %v599_v10 = vld [vmem:[%s1902_s10 + $0x120] sm:$0xff]  ;;  %v542_v3 = vmul.f32 %v478_v62, %v414_v61  ;;  %v606_v4 = vld [vmem:[%s1902_s10 + $0x158] sm:$0xff]  ;;  %v547_v47 = vmul.f32 %v483_v36, %v419_v35 }
  0x62   : > { %v482_v54 = vld [vmem:[%s1888_s18 + $0x178] sm:$0xff]  ;;  %v579_v46 = vld [vmem:[%s1902_s10 + $0x80] sm:$0xff] }
  0x63   : > { %v578_v58 = vld [vmem:[%s1902_s10 + $0x78] sm:$0xff]  ;;  %v546_v61 = vmul.f32 %v482_v54, %v418_v53  ;;  %v611_v48 = vld [vmem:[%s1902_s10 + $0x180] sm:$0xff] }
  0x64   : > { %1597 = vmatmul.mubr.f32.gmra.mxu0 %v718_v11  ;;  %1645 = vmatmul.mubr.f32.gmra.mxu1 %v750_v12  ;;  %v378_v11 = vld [vmem:[%s1897_s7 + $0x38] sm:$0xff] }
  0x65   : > { %1599 = vmatprep.mubr.f32.mxu0 %v719_v13  ;;  %1647 = vmatprep.mubr.f32.mxu1 %v751_v14  ;;  %v442_v12 = vld [vmem:[%s1888_s18 + $0x38] sm:$0xff] }
  0x66   : > { %v410_v13 = vld [vmem:[%s1897_s7 + $0x138] sm:$0xff] }
  0x67   : > { %v474_v14 = vld [vmem:[%s1888_s18 + $0x138] sm:$0xff] }
  0x68   : > { %1600 = vmatmul.mubr.f32.gmra.mxu0 %v720_v15  ;;  %1648 = vmatmul.mubr.f32.gmra.mxu1 %v752_v16  ;;  %v2037_v15 = vadd.f32 %v567_v8, %v503_v7  ;;  %v2039_v16 = vadd.f32 %v599_v10, %v535_v9  ;;  %v381_v7 = vld [vmem:[%s1897_s7 + $0x50] sm:$0xff]  ;;  %v610_v62 = vld [vmem:[%s1902_s10 + $0x178] sm:$0xff] }
  0x69   : > { %1602 = vmatprep.mubr.f32.mxu0 %v721_v17  ;;  %1650 = vmatprep.mubr.f32.mxu1 %v753_v18  ;;  %v506_v17 = vmul.f32 %v442_v12, %v378_v11  ;;  %v570_v18 = vld [vmem:[%s1902_s10 + $0x38] sm:$0xff]  ;;  %v445_v8 = vld [vmem:[%s1888_s18 + $0x50] sm:$0xff]  ;;  %v2087_v11 = vadd.f32 %v574_v2, %v510_v1  ;;  %v2089_v12 = vadd.f32 %v606_v4, %v542_v3 }
  0x6a   : > { %v413_v9 = vld [vmem:[%s1897_s7 + $0x150] sm:$0xff]  ;;  %v390_v53 = vld [vmem:[%s1897_s7 + $0x98] sm:$0xff] }
  0x6b   : > { %v2047_v25 = vadd.f32 %v570_v18, %v506_v17  ;;  %v477_v10 = vld [vmem:[%s1888_s18 + $0x150] sm:$0xff]  ;;  %v454_v54 = vld [vmem:[%s1888_s18 + $0x98] sm:$0xff] }
  0x6c   : > { %1603 = vmatmul.mubr.f32.gmra.mxu0 %v722_v19  ;;  %1651 = vmatmul.mubr.f32.gmra.mxu1 %v754_v20  ;;  %v538_v19 = vmul.f32 %v474_v14, %v410_v13  ;;  %v602_v20 = vld [vmem:[%s1902_s10 + $0x138] sm:$0xff]  ;;  %v509_v13 = vmul.f32 %v445_v8, %v381_v7  ;;  %v573_v14 = vld [vmem:[%s1902_s10 + $0x50] sm:$0xff]  ;;  %v541_v17 = vmul.f32 %v477_v10, %v413_v9 }
  0x6d   : > { %v605_v18 = vld [vmem:[%s1902_s10 + $0x150] sm:$0xff]  ;;  %v2127_v7 = vadd.f32 %v578_v58, %v514_v57  ;;  %v2129_v8 = vadd.f32 %v610_v62, %v546_v61  ;;  %v422_v57 = vld [vmem:[%s1897_s7 + $0x198] sm:$0xff]  ;;  %v2157_v61 = vadd.f32 %v579_v46, %v515_v45  ;;  %v2159_v62 = vadd.f32 %v611_v48, %v547_v47  ;;  %v584_v46 = vld [vmem:[%s1902_s10 + $0xa8] sm:$0xff] }
  0x6e   : > { %v2049_v28 = vadd.f32 %v602_v20, %v538_v19  ;;  %v384_v19 = vld [vmem:[%s1897_s7 + $0x68] sm:$0xff]  ;;  %v2097_v23 = vadd.f32 %v573_v14, %v509_v13  ;;  %v2099_v24 = vadd.f32 %v605_v18, %v541_v17  ;;  %v385_v1 = vld [vmem:[%s1897_s7 + $0x70] sm:$0xff]  ;;  %v486_v58 = vld [vmem:[%s1888_s18 + $0x198] sm:$0xff]  ;;  %v552_v47 = vmul.f32 %v488_v34, %v424_v33 }
  0x6f   : > { %v448_v20 = vld [vmem:[%s1888_s18 + $0x68] sm:$0xff]  ;;  %v449_v2 = vld [vmem:[%s1888_s18 + $0x70] sm:$0xff]  ;;  %v618_v34 = vld [vmem:[%s1902_s10 + $0x1b8] sm:$0xff] }
  0x70   : > { %v512_v29 = vmul.f32 %v448_v20, %v384_v19  ;;  %v417_v3 = vld [vmem:[%s1897_s7 + $0x170] sm:$0xff]  ;;  %v513_v9 = vmul.f32 %v449_v2, %v385_v1  ;;  %v388_v17 = vld [vmem:[%s1897_s7 + $0x88] sm:$0xff]  ;;  %v518_v1 = vmul.f32 %v454_v54, %v390_v53  ;;  %v582_v2 = vld [vmem:[%s1902_s10 + $0x98] sm:$0xff] }
  0x71   : > { %v481_v4 = vld [vmem:[%s1888_s18 + $0x170] sm:$0xff]  ;;  %v452_v18 = vld [vmem:[%s1888_s18 + $0x88] sm:$0xff]  ;;  %v391_v53 = vld [vmem:[%s1897_s7 + $0xa0] sm:$0xff] }
  0x72   : > { %v2107_v41 = vadd.f32 %v576_v30, %v512_v29  ;;  %v577_v10 = vld [vmem:[%s1902_s10 + $0x70] sm:$0xff]  ;;  %v545_v13 = vmul.f32 %v481_v4, %v417_v3  ;;  %v420_v19 = vld [vmem:[%s1897_s7 + $0x188] sm:$0xff]  ;;  %v516_v29 = vmul.f32 %v452_v18, %v388_v17  ;;  %v550_v3 = vmul.f32 %v486_v58, %v422_v57  ;;  %v614_v4 = vld [vmem:[%s1902_s10 + $0x198] sm:$0xff] }
  0x73   : > { %v609_v14 = vld [vmem:[%s1902_s10 + $0x170] sm:$0xff]  ;;  %v484_v20 = vld [vmem:[%s1888_s18 + $0x188] sm:$0xff]  ;;  %v2137_v21 = vadd.f32 %v577_v10, %v513_v9  ;;  %v2167_v17 = vadd.f32 %v582_v2, %v518_v1  ;;  %v455_v54 = vld [vmem:[%s1888_s18 + $0xa0] sm:$0xff] }
  0x74   : > { %v2139_v22 = vadd.f32 %v609_v14, %v545_v13  ;;  %v580_v30 = vld [vmem:[%s1902_s10 + $0x88] sm:$0xff]  ;;  %v548_v31 = vmul.f32 %v484_v20, %v420_v19  ;;  %v389_v9 = vld [vmem:[%s1897_s7 + $0x90] sm:$0xff]  ;;  %v2169_v18 = vadd.f32 %v614_v4, %v550_v3  ;;  %v423_v57 = vld [vmem:[%s1897_s7 + $0x1a0] sm:$0xff]  ;;  %v519_v3 = vmul.f32 %v455_v54, %v391_v53 }
  0x75   : > { %v2147_v43 = vadd.f32 %v580_v30, %v516_v29  ;;  %v453_v10 = vld [vmem:[%s1888_s18 + $0x90] sm:$0xff]  ;;  %v616_v48 = vld [vmem:[%s1902_s10 + $0x1a8] sm:$0xff]  ;;  %v487_v58 = vld [vmem:[%s1888_s18 + $0x1a0] sm:$0xff] }
  0x76   : > { %v2149_v44 = vadd.f32 %v612_v32, %v548_v31  ;;  %v421_v13 = vld [vmem:[%s1897_s7 + $0x190] sm:$0xff]  ;;  %v517_v19 = vmul.f32 %v453_v10, %v389_v9  ;;  %v392_v31 = vld [vmem:[%s1897_s7 + $0xa8] sm:$0xff]  ;;  %v2189_v2 = vadd.f32 %v616_v48, %v552_v47  ;;  %v583_v4 = vld [vmem:[%s1902_s10 + $0xa0] sm:$0xff]  ;;  %v551_v9 = vmul.f32 %v487_v58, %v423_v57 }
  0x77   : > { %v485_v14 = vld [vmem:[%s1888_s18 + $0x190] sm:$0xff]  ;;  %v456_v32 = vld [vmem:[%s1888_s18 + $0xa8] sm:$0xff]  ;;  %v615_v10 = vld [vmem:[%s1902_s10 + $0x1a0] sm:$0xff] }
  0x78   : > { %v581_v20 = vld [vmem:[%s1902_s10 + $0x90] sm:$0xff]  ;;  %v549_v29 = vmul.f32 %v485_v14, %v421_v13  ;;  %v520_v45 = vmul.f32 %v456_v32, %v392_v31  ;;  %2586 = vst [vmem:[#allocation2_spill] sm:$0xff] %v2189_v2  ;;  %v394_v13 = vld [vmem:[%s1897_s7 + $0xb8] sm:$0xff] }
  0x79   : > { %v613_v30 = vld [vmem:[%s1902_s10 + $0x190] sm:$0xff]  ;;  %v2177_v35 = vadd.f32 %v581_v20, %v517_v19  ;;  %v458_v14 = vld [vmem:[%s1888_s18 + $0xb8] sm:$0xff] }
  0x7a   : > { %v2179_v36 = vadd.f32 %v613_v30, %v549_v29  ;;  %v2187_v1 = vadd.f32 %v584_v46, %v520_v45  ;;  %v426_v19 = vld [vmem:[%s1897_s7 + $0x1b8] sm:$0xff]  ;;  %v2197_v29 = vadd.f32 %v583_v4, %v519_v3  ;;  %v2199_v30 = vadd.f32 %v615_v10, %v551_v9  ;;  %v393_v45 = vld [vmem:[%s1897_s7 + $0xb0] sm:$0xff]  ;;  %v396_v9 = vld [vmem:[%s1897_s7 + $0xc8] sm:$0xff] }
  0x7b   : > { %v490_v20 = vld [vmem:[%s1888_s18 + $0x1b8] sm:$0xff]  ;;  %v522_v31 = vmul.f32 %v458_v14, %v394_v13  ;;  %v457_v46 = vld [vmem:[%s1888_s18 + $0xb0] sm:$0xff]  ;;  %v460_v10 = vld [vmem:[%s1888_s18 + $0xc8] sm:$0xff] }
  0x7c   : > { %2587 = vst [vmem:[#allocation3_spill] sm:$0xff] %v2197_v29  ;;  %2588 = vst [vmem:[#allocation4_spill] sm:$0xff] %v2199_v30  ;;  %v586_v32 = vld [vmem:[%s1902_s10 + $0xb8] sm:$0xff]  ;;  %v554_v33 = vmul.f32 %v490_v20, %v426_v19  ;;  %v425_v47 = vld [vmem:[%s1897_s7 + $0x1b0] sm:$0xff]  ;;  %v521_v57 = vmul.f32 %v457_v46, %v393_v45 }
  0x7d   : > { %v489_v48 = vld [vmem:[%s1888_s18 + $0x1b0] sm:$0xff]  ;;  %v2207_v53 = vadd.f32 %v586_v32, %v522_v31  ;;  %v428_v13 = vld [vmem:[%s1897_s7 + $0x1c8] sm:$0xff]  ;;  %v524_v31 = vmul.f32 %v460_v10, %v396_v9  ;;  %v395_v45 = vld [vmem:[%s1897_s7 + $0xc0] sm:$0xff] }
  0x7e   : > { %v2209_v54 = vadd.f32 %v618_v34, %v554_v33  ;;  %v585_v58 = vld [vmem:[%s1902_s10 + $0xb0] sm:$0xff]  ;;  %v553_v3 = vmul.f32 %v489_v48, %v425_v47  ;;  %v492_v14 = vld [vmem:[%s1888_s18 + $0x1c8] sm:$0xff]  ;;  %v459_v46 = vld [vmem:[%s1888_s18 + $0xc0] sm:$0xff] }
  0x7f   : > { %2589 = vst [vmem:[#allocation5_spill] sm:$0xff] %v2207_v53  ;;  %v617_v4 = vld [vmem:[%s1902_s10 + $0x1b0] sm:$0xff]  ;;  %v2217_v19 = vadd.f32 %v585_v58, %v521_v57  ;;  %v588_v32 = vld [vmem:[%s1902_s10 + $0xc8] sm:$0xff]  ;;  %v556_v33 = vmul.f32 %v492_v14, %v428_v13  ;;  %v427_v47 = vld [vmem:[%s1897_s7 + $0x1c0] sm:$0xff]  ;;  %v523_v58 = vmul.f32 %v459_v46, %v395_v45 }
  0x80   : > { %2590 = vst [vmem:[#allocation6_spill] sm:$0xff] %v2209_v54  ;;  %v2219_v20 = vadd.f32 %v617_v4, %v553_v3  ;;  %v620_v34 = vld [vmem:[%s1902_s10 + $0x1c8] sm:$0xff]  ;;  %v491_v48 = vld [vmem:[%s1888_s18 + $0x1c0] sm:$0xff]  ;;  %v2227_v54 = vadd.f32 %v588_v32, %v524_v31  ;;  %v398_v10 = vld [vmem:[%s1897_s7 + $0xd8] sm:$0xff] }
  0x81   : > { %2591 = vst [vmem:[#allocation7_spill] sm:$0xff] %v2217_v19  ;;  %v2229_v57 = vadd.f32 %v620_v34, %v556_v33  ;;  %v587_v3 = vld [vmem:[%s1902_s10 + $0xc0] sm:$0xff]  ;;  %v555_v4 = vmul.f32 %v491_v48, %v427_v47  ;;  %v462_v13 = vld [vmem:[%s1888_s18 + $0xd8] sm:$0xff]  ;;  %v397_v46 = vld [vmem:[%s1897_s7 + $0xd0] sm:$0xff] }
  0x82   : > { %2592 = vst [vmem:[#allocation8_spill] sm:$0xff] %v2219_v20  ;;  %2593 = vst [vmem:[#allocation9_spill] sm:$0xff] %v2227_v54  ;;  %v619_v9 = vld [vmem:[%s1902_s10 + $0x1c0] sm:$0xff]  ;;  %v430_v14 = vld [vmem:[%s1897_s7 + $0x1d8] sm:$0xff]  ;;  %v2237_v19 = vadd.f32 %v587_v3, %v523_v58  ;;  %v526_v32 = vmul.f32 %v462_v13, %v398_v10 }
  0x83   : > { %2594 = vst [vmem:[#allocation10_spill] sm:$0xff] %v2229_v57  ;;  %v494_v20 = vld [vmem:[%s1888_s18 + $0x1d8] sm:$0xff]  ;;  %v2239_v31 = vadd.f32 %v619_v9, %v555_v4  ;;  %v461_v47 = vld [vmem:[%s1888_s18 + $0xd0] sm:$0xff]  ;;  %v464_v13 = vld [vmem:[%s1888_s18 + $0xe8] sm:$0xff] }
  0x84   : > { %2595 = vst [vmem:[#allocation11_spill] sm:$0xff] %v2237_v19  ;;  %v590_v33 = vld [vmem:[%s1902_s10 + $0xd8] sm:$0xff]  ;;  %v558_v34 = vmul.f32 %v494_v20, %v430_v14  ;;  %v429_v48 = vld [vmem:[%s1897_s7 + $0x1d0] sm:$0xff]  ;;  %v525_v3 = vmul.f32 %v461_v47, %v397_v46  ;;  %v400_v20 = vld [vmem:[%s1897_s7 + $0xe8] sm:$0xff] }
  0x85   : > { %2596 = vst [vmem:[#allocation12_spill] sm:$0xff] %v2239_v31  ;;  %v622_v45 = vld [vmem:[%s1902_s10 + $0x1d8] sm:$0xff]  ;;  %v493_v57 = vld [vmem:[%s1888_s18 + $0x1d0] sm:$0xff]  ;;  %v2247_v54 = vadd.f32 %v590_v33, %v526_v32  ;;  %v432_v14 = vld [vmem:[%s1897_s7 + $0x1e8] sm:$0xff]  ;;  %v528_v33 = vmul.f32 %v464_v13, %v400_v20 }
  0x86   : > { %v2249_v58 = vadd.f32 %v622_v45, %v558_v34  ;;  %v589_v4 = vld [vmem:[%s1902_s10 + $0xd0] sm:$0xff]  ;;  %v557_v9 = vmul.f32 %v493_v57, %v429_v48  ;;  %v496_v31 = vld [vmem:[%s1888_s18 + $0x1e8] sm:$0xff]  ;;  %v399_v57 = vld [vmem:[%s1897_s7 + $0xe0] sm:$0xff] }
  0x87   : > { %2597 = vst [vmem:[#allocation13_spill] sm:$0xff] %v2247_v54  ;;  %v621_v10 = vld [vmem:[%s1902_s10 + $0x1d0] sm:$0xff]  ;;  %v2257_v19 = vadd.f32 %v589_v4, %v525_v3  ;;  %v592_v34 = vld [vmem:[%s1902_s10 + $0xe8] sm:$0xff]  ;;  %v560_v45 = vmul.f32 %v496_v31, %v432_v14  ;;  %v463_v47 = vld [vmem:[%s1888_s18 + $0xe0] sm:$0xff] }
  0x88   : > { %2598 = vst [vmem:[#allocation14_spill] sm:$0xff] %v2249_v58  ;;  %v2259_v32 = vadd.f32 %v621_v10, %v557_v9  ;;  %v624_v46 = vld [vmem:[%s1902_s10 + $0x1e8] sm:$0xff]  ;;  %v431_v48 = vld [vmem:[%s1897_s7 + $0x1e0] sm:$0xff]  ;;  %v2267_v54 = vadd.f32 %v592_v34, %v528_v33  ;;  %v527_v4 = vmul.f32 %v463_v47, %v399_v57  ;;  %v402_v31 = vld [vmem:[%s1897_s7 + $0xf8] sm:$0xff] }
  0x89   : > { %2599 = vst [vmem:[#allocation15_spill] sm:$0xff] %v2257_v19  ;;  %v495_v58 = vld [vmem:[%s1888_s18 + $0x1e0] sm:$0xff]  ;;  %v2269_v3 = vadd.f32 %v624_v46, %v560_v45  ;;  %v466_v13 = vld [vmem:[%s1888_s18 + $0xf8] sm:$0xff]  ;;  %v401_v57 = vld [vmem:[%s1897_s7 + $0xf0] sm:$0xff] }
  0x8a   : > { %2600 = vst [vmem:[#allocation16_spill] sm:$0xff] %v2259_v32  ;;  %2601 = vst [vmem:[#allocation17_spill] sm:$0xff] %v2267_v54  ;;  %v591_v9 = vld [vmem:[%s1902_s10 + $0xe0] sm:$0xff]  ;;  %v559_v10 = vmul.f32 %v495_v58, %v431_v48  ;;  %v434_v14 = vld [vmem:[%s1897_s7 + $0x1f8] sm:$0xff]  ;;  %v530_v34 = vmul.f32 %v466_v13, %v402_v31 }
  0x8b   : > { %2602 = vst [vmem:[#allocation18_spill] sm:$0xff] %v2269_v3  ;;  %v623_v20 = vld [vmem:[%s1902_s10 + $0x1e0] sm:$0xff]  ;;  %v498_v32 = vld [vmem:[%s1888_s18 + $0x1f8] sm:$0xff]  ;;  %v2277_v19 = vadd.f32 %v591_v9, %v527_v4  ;;  %v465_v47 = vld [vmem:[%s1888_s18 + $0xf0] sm:$0xff] }
  0x8c   : > { %v2279_v33 = vadd.f32 %v623_v20, %v559_v10  ;;  %v594_v45 = vld [vmem:[%s1902_s10 + $0xf8] sm:$0xff]  ;;  %v562_v46 = vmul.f32 %v498_v32, %v434_v14  ;;  %v433_v54 = vld [vmem:[%s1897_s7 + $0x1f0] sm:$0xff]  ;;  %v529_v30 = vmul.f32 %v465_v47, %v401_v57  ;;  %v2300_v32 = vld [vmem:[%s2581_s2] ss:$0 sm:$0xff] }
  0x8d   : > { %v626_v3 = vld [vmem:[%s1902_s10 + $0x1f8] sm:$0xff]  ;;  %v497_v58 = vld [vmem:[%s1888_s18 + $0x1f0] sm:$0xff]  ;;  %v2287_v48 = vadd.f32 %v594_v45, %v530_v34  ;;  %s2308_s18 = scalar_lea.vmem %s2585_s6, %s1883_s17 }
  0x8e   : > { %v2289_v53 = vadd.f32 %v626_v3, %v562_v46  ;;  %v593_v29 = vld [vmem:[%s1902_s10 + $0xf0] sm:$0xff]  ;;  %v561_v2 = vmul.f32 %v497_v58, %v433_v54 }
  0x8f   : > { %v625_v4 = vld [vmem:[%s1902_s10 + $0x1f0] sm:$0xff]  ;;  %v2293_v9 = vadd.f32 %v593_v29, %v529_v30 }
  0x90   : > { %v2295_v10 = vadd.f32 %v625_v4, %v561_v2 }
  0xf0   : > { %v1559_v20 = vpop.f32.mrf.mxu0  ;;  %v1607_v31 = vpop.f32.mrf.mxu1 }
  0xf1   : > { %v850_v13 = vadd.f32 %v1559_v20, %v2300_v32  ;;  %v1010_v3 = vadd.f32 %v1607_v31, %v2300_v32 }
  0xf2   : > { %v844_v2 = vpop.f32.mrf.mxu0  ;;  %v1004_v29 = vpop.f32.mrf.mxu1 }
  0xf3   : > { %v1164_v30 = vadd.f32 %v850_v13, %v1922_v26  ;;  %v1196_v54 = vadd.f32 %v1010_v3, %v1986_v27  ;;  %v845_v14 = vadd.f32 %v2300_v32, %v844_v2  ;;  %v1005_v34 = vadd.f32 %v2300_v32, %v1004_v29 }
  0xf4   : > { %v1562_v45 = vpop.f32.mrf.mxu0  ;;  %v1610_v46 = vpop.f32.mrf.mxu1 }
  0xf5   : > { %1229 = vst.msk [vmem:[%s2308_s18 + $0x8] sm:$0xff] %vm1227_vm0, %v1164_v30  ;;  %1261 = vst.msk [vmem:[%s2308_s18 + $0x108] sm:$0xff] %vm1227_vm0, %v1196_v54  ;;  %v1163_v57 = vadd.f32 %v845_v14, %v1997_v39  ;;  %v1195_v47 = vadd.f32 %v1005_v34, %v1999_v40  ;;  %v860_v26 = vadd.f32 %v1562_v45, %v2300_v32 }
  0xf6   : > { %v1020_v27 = vadd.f32 %v1610_v46, %v2300_v32  ;;  %v854_v58 = vpop.f32.mrf.mxu0  ;;  %v1014_v4 = vpop.f32.mrf.mxu1 }
  0xf7   : > { %1228 = vst.msk [vmem:[%s2308_s18] sm:$0xff] %vm1227_vm0, %v1163_v57  ;;  %1260 = vst.msk [vmem:[%s2308_s18 + $0x100] sm:$0xff] %vm1227_vm0, %v1195_v47  ;;  %v1166_v20 = vadd.f32 %v860_v26, %v2007_v49  ;;  %v855_v39 = vadd.f32 %v2300_v32, %v854_v58  ;;  %v1015_v40 = vadd.f32 %v2300_v32, %v1014_v4 }
  0xf8   : > { %v1198_v31 = vadd.f32 %v1020_v27, %v2009_v50  ;;  %v1565_v13 = vpop.f32.mrf.mxu0  ;;  %v1613_v3 = vpop.f32.mrf.mxu1 }
  0xf9   : > { %1231 = vst.msk [vmem:[%s2308_s18 + $0x18] sm:$0xff] %vm1227_vm0, %v1166_v20  ;;  %v1165_v2 = vadd.f32 %v855_v39, %v2017_v59  ;;  %v1197_v29 = vadd.f32 %v1015_v40, %v2019_v60  ;;  %v870_v49 = vadd.f32 %v1565_v13, %v2300_v32  ;;  %v1030_v50 = vadd.f32 %v1613_v3, %v2300_v32 }
  0xfa   : > { %1263 = vst.msk [vmem:[%s2308_s18 + $0x118] sm:$0xff] %vm1227_vm0, %v1198_v31  ;;  %v864_v30 = vpop.f32.mrf.mxu0  ;;  %v1024_v54 = vpop.f32.mrf.mxu1 }
  0xfb   : > { %1230 = vst.msk [vmem:[%s2308_s18 + $0x10] sm:$0xff] %vm1227_vm0, %v1165_v2  ;;  %1262 = vst.msk [vmem:[%s2308_s18 + $0x110] sm:$0xff] %vm1227_vm0, %v1197_v29  ;;  %v1168_v14 = vadd.f32 %v870_v49, %v2027_v5  ;;  %v1200_v34 = vadd.f32 %v1030_v50, %v2029_v6  ;;  %v865_v59 = vadd.f32 %v2300_v32, %v864_v30 }
  0xfc   : > { %v1025_v60 = vadd.f32 %v2300_v32, %v1024_v54  ;;  %v1568_v45 = vpop.f32.mrf.mxu0  ;;  %v1616_v46 = vpop.f32.mrf.mxu1 }
  0xfd   : > { %1233 = vst.msk [vmem:[%s2308_s18 + $0x28] sm:$0xff] %vm1227_vm0, %v1168_v14  ;;  %1265 = vst.msk [vmem:[%s2308_s18 + $0x128] sm:$0xff] %vm1227_vm0, %v1200_v34  ;;  %v1167_v57 = vadd.f32 %v865_v59, %v2037_v15  ;;  %v880_v5 = vadd.f32 %v1568_v45, %v2300_v32  ;;  %v1040_v6 = vadd.f32 %v1616_v46, %v2300_v32 }
  0xfe   : > { %v1199_v47 = vadd.f32 %v1025_v60, %v2039_v16  ;;  %v874_v26 = vpop.f32.mrf.mxu0  ;;  %v1034_v27 = vpop.f32.mrf.mxu1 }
  0xff   : > { %1232 = vst.msk [vmem:[%s2308_s18 + $0x20] sm:$0xff] %vm1227_vm0, %v1167_v57  ;;  %v1170_v58 = vadd.f32 %v880_v5, %v2047_v25  ;;  %v1202_v4 = vadd.f32 %v1040_v6, %v2049_v28  ;;  %v875_v15 = vadd.f32 %v2300_v32, %v874_v26  ;;  %v1035_v16 = vadd.f32 %v2300_v32, %v1034_v27 }
 0x100   : > { %1264 = vst.msk [vmem:[%s2308_s18 + $0x120] sm:$0xff] %vm1227_vm0, %v1199_v47  ;;  %v1571_v20 = vpop.f32.mrf.mxu0  ;;  %v1619_v31 = vpop.f32.mrf.mxu1 }
 0x101   : > { %1235 = vst.msk [vmem:[%s2308_s18 + $0x38] sm:$0xff] %vm1227_vm0, %v1170_v58  ;;  %1267 = vst.msk [vmem:[%s2308_s18 + $0x138] sm:$0xff] %vm1227_vm0, %v1202_v4  ;;  %v1169_v39 = vadd.f32 %v875_v15, %v2057_v37  ;;  %v1201_v40 = vadd.f32 %v1035_v16, %v2059_v38  ;;  %v890_v25 = vadd.f32 %v1571_v20, %v2300_v32 }
 0x102   : > { %v1050_v28 = vadd.f32 %v1619_v31, %v2300_v32  ;;  %v884_v13 = vpop.f32.mrf.mxu0  ;;  %v1044_v3 = vpop.f32.mrf.mxu1 }
 0x103   : > { %1234 = vst.msk [vmem:[%s2308_s18 + $0x30] sm:$0xff] %vm1227_vm0, %v1169_v39  ;;  %1266 = vst.msk [vmem:[%s2308_s18 + $0x130] sm:$0xff] %vm1227_vm0, %v1201_v40  ;;  %v1172_v2 = vadd.f32 %v890_v25, %v2067_v51  ;;  %v885_v37 = vadd.f32 %v2300_v32, %v884_v13  ;;  %v1045_v38 = vadd.f32 %v2300_v32, %v1044_v3 }
 0x104   : > { %v1204_v29 = vadd.f32 %v1050_v28, %v2069_v52  ;;  %v1574_v49 = vpop.f32.mrf.mxu0  ;;  %v1622_v50 = vpop.f32.mrf.mxu1 }
 0x105   : > { %1237 = vst.msk [vmem:[%s2308_s18 + $0x48] sm:$0xff] %vm1227_vm0, %v1172_v2  ;;  %v1171_v30 = vadd.f32 %v885_v37, %v2077_v63  ;;  %v1203_v54 = vadd.f32 %v1045_v38, %v2079_v0  ;;  %v900_v51 = vadd.f32 %v1574_v49, %v2300_v32  ;;  %v1060_v52 = vadd.f32 %v1622_v50, %v2300_v32 }
 0x106   : > { %1269 = vst.msk [vmem:[%s2308_s18 + $0x148] sm:$0xff] %vm1227_vm0, %v1204_v29  ;;  %v894_v14 = vpop.f32.mrf.mxu0  ;;  %v1054_v34 = vpop.f32.mrf.mxu1 }
 0x107   : > { %1236 = vst.msk [vmem:[%s2308_s18 + $0x40] sm:$0xff] %vm1227_vm0, %v1171_v30  ;;  %1268 = vst.msk [vmem:[%s2308_s18 + $0x140] sm:$0xff] %vm1227_vm0, %v1203_v54  ;;  %v1174_v59 = vadd.f32 %v900_v51, %v2087_v11  ;;  %v1206_v60 = vadd.f32 %v1060_v52, %v2089_v12  ;;  %v895_v63 = vadd.f32 %v2300_v32, %v894_v14 }
 0x108   : > { %v1055_v0 = vadd.f32 %v2300_v32, %v1054_v34  ;;  %v1577_v45 = vpop.f32.mrf.mxu0  ;;  %v1625_v46 = vpop.f32.mrf.mxu1 }
 0x109   : > { %1239 = vst.msk [vmem:[%s2308_s18 + $0x58] sm:$0xff] %vm1227_vm0, %v1174_v59  ;;  %1271 = vst.msk [vmem:[%s2308_s18 + $0x158] sm:$0xff] %vm1227_vm0, %v1206_v60  ;;  %v1173_v57 = vadd.f32 %v895_v63, %v2097_v23  ;;  %v910_v11 = vadd.f32 %v1577_v45, %v2300_v32  ;;  %v1070_v12 = vadd.f32 %v1625_v46, %v2300_v32 }
 0x10a   : > { %v1205_v47 = vadd.f32 %v1055_v0, %v2099_v24  ;;  %v904_v5 = vpop.f32.mrf.mxu0  ;;  %v1064_v6 = vpop.f32.mrf.mxu1 }
 0x10b   : > { %1238 = vst.msk [vmem:[%s2308_s18 + $0x50] sm:$0xff] %vm1227_vm0, %v1173_v57  ;;  %v1176_v26 = vadd.f32 %v910_v11, %v2107_v41  ;;  %v1208_v27 = vadd.f32 %v1070_v12, %v2109_v42  ;;  %v905_v23 = vadd.f32 %v2300_v32, %v904_v5  ;;  %v1065_v24 = vadd.f32 %v2300_v32, %v1064_v6  ;;  %v2604_v6 = vld [vmem:[#allocation3_spill] sm:$0xff] }
 0x10c   : > { %1270 = vst.msk [vmem:[%s2308_s18 + $0x150] sm:$0xff] %vm1227_vm0, %v1205_v47  ;;  %v1580_v58 = vpop.f32.mrf.mxu0  ;;  %v1628_v4 = vpop.f32.mrf.mxu1  ;;  %v2603_v47 = vld [vmem:[#allocation2_spill] sm:$0xff] }
 0x10d   : > { %1241 = vst.msk [vmem:[%s2308_s18 + $0x68] sm:$0xff] %vm1227_vm0, %v1176_v26  ;;  %1273 = vst.msk [vmem:[%s2308_s18 + $0x168] sm:$0xff] %vm1227_vm0, %v1208_v27  ;;  %v1175_v15 = vadd.f32 %v905_v23, %v2117_v55  ;;  %v1207_v16 = vadd.f32 %v1065_v24, %v2119_v56  ;;  %v920_v41 = vadd.f32 %v1580_v58, %v2300_v32  ;;  %v2605_v27 = vld [vmem:[#allocation4_spill] sm:$0xff] }
 0x10e   : > { %v1080_v42 = vadd.f32 %v1628_v4, %v2300_v32  ;;  %v914_v20 = vpop.f32.mrf.mxu0  ;;  %v1074_v31 = vpop.f32.mrf.mxu1 }
 0x10f   : > { %1240 = vst.msk [vmem:[%s2308_s18 + $0x60] sm:$0xff] %vm1227_vm0, %v1175_v15  ;;  %1272 = vst.msk [vmem:[%s2308_s18 + $0x160] sm:$0xff] %vm1227_vm0, %v1207_v16  ;;  %v1178_v39 = vadd.f32 %v920_v41, %v2127_v7  ;;  %v915_v55 = vadd.f32 %v2300_v32, %v914_v20  ;;  %v1075_v56 = vadd.f32 %v2300_v32, %v1074_v31  ;;  %v2606_v15 = vld [vmem:[#allocation5_spill] sm:$0xff]  ;;  %v2607_v41 = vld [vmem:[#allocation6_spill] sm:$0xff] }
 0x110   : > { %v1210_v40 = vadd.f32 %v1080_v42, %v2129_v8  ;;  %v1583_v25 = vpop.f32.mrf.mxu0  ;;  %v1631_v28 = vpop.f32.mrf.mxu1 }
 0x111   : > { %1243 = vst.msk [vmem:[%s2308_s18 + $0x78] sm:$0xff] %vm1227_vm0, %v1178_v39  ;;  %v1177_v13 = vadd.f32 %v915_v55, %v2137_v21  ;;  %v1209_v3 = vadd.f32 %v1075_v56, %v2139_v22  ;;  %v930_v7 = vadd.f32 %v1583_v25, %v2300_v32  ;;  %v1090_v8 = vadd.f32 %v1631_v28, %v2300_v32  ;;  %v2608_v55 = vld [vmem:[#allocation7_spill] sm:$0xff]  ;;  %v2609_v25 = vld [vmem:[#allocation8_spill] sm:$0xff] }
 0x112   : > { %1275 = vst.msk [vmem:[%s2308_s18 + $0x178] sm:$0xff] %vm1227_vm0, %v1210_v40  ;;  %v924_v2 = vpop.f32.mrf.mxu0  ;;  %v1084_v29 = vpop.f32.mrf.mxu1 }
 0x113   : > { %1242 = vst.msk [vmem:[%s2308_s18 + $0x70] sm:$0xff] %vm1227_vm0, %v1177_v13  ;;  %1274 = vst.msk [vmem:[%s2308_s18 + $0x170] sm:$0xff] %vm1227_vm0, %v1209_v3  ;;  %v1180_v37 = vadd.f32 %v930_v7, %v2147_v43  ;;  %v1212_v38 = vadd.f32 %v1090_v8, %v2149_v44  ;;  %v925_v21 = vadd.f32 %v2300_v32, %v924_v2  ;;  %v2610_v2 = vld [vmem:[#allocation9_spill] sm:$0xff] }
 0x114   : > { %v1085_v22 = vadd.f32 %v2300_v32, %v1084_v29  ;;  %v1586_v49 = vpop.f32.mrf.mxu0  ;;  %v1634_v50 = vpop.f32.mrf.mxu1 }
 0x115   : > { %1245 = vst.msk [vmem:[%s2308_s18 + $0x88] sm:$0xff] %vm1227_vm0, %v1180_v37  ;;  %1277 = vst.msk [vmem:[%s2308_s18 + $0x188] sm:$0xff] %vm1227_vm0, %v1212_v38  ;;  %v1179_v30 = vadd.f32 %v925_v21, %v2157_v61  ;;  %v940_v43 = vadd.f32 %v1586_v49, %v2300_v32  ;;  %v1100_v44 = vadd.f32 %v1634_v50, %v2300_v32  ;;  %v2611_v37 = vld [vmem:[#allocation10_spill] sm:$0xff] }
 0x116   : > { %v1211_v54 = vadd.f32 %v1085_v22, %v2159_v62  ;;  %v934_v51 = vpop.f32.mrf.mxu0  ;;  %v1094_v52 = vpop.f32.mrf.mxu1 }
 0x117   : > { %1244 = vst.msk [vmem:[%s2308_s18 + $0x80] sm:$0xff] %vm1227_vm0, %v1179_v30  ;;  %v1182_v14 = vadd.f32 %v940_v43, %v2167_v17  ;;  %v1214_v34 = vadd.f32 %v1100_v44, %v2169_v18  ;;  %v935_v61 = vadd.f32 %v2300_v32, %v934_v51  ;;  %v1095_v62 = vadd.f32 %v2300_v32, %v1094_v52  ;;  %v2612_v30 = vld [vmem:[#allocation11_spill] sm:$0xff]  ;;  %v2613_v43 = vld [vmem:[#allocation12_spill] sm:$0xff] }
 0x118   : > { %1276 = vst.msk [vmem:[%s2308_s18 + $0x180] sm:$0xff] %vm1227_vm0, %v1211_v54  ;;  %v1589_v59 = vpop.f32.mrf.mxu0  ;;  %v1637_v60 = vpop.f32.mrf.mxu1 }
 0x119   : > { %1247 = vst.msk [vmem:[%s2308_s18 + $0x98] sm:$0xff] %vm1227_vm0, %v1182_v14  ;;  %1279 = vst.msk [vmem:[%s2308_s18 + $0x198] sm:$0xff] %vm1227_vm0, %v1214_v34  ;;  %v1181_v63 = vadd.f32 %v935_v61, %v2177_v35  ;;  %v1213_v0 = vadd.f32 %v1095_v62, %v2179_v36  ;;  %v950_v17 = vadd.f32 %v1589_v59, %v2300_v32  ;;  %v2614_v61 = vld [vmem:[#allocation13_spill] sm:$0xff]  ;;  %v2615_v59 = vld [vmem:[#allocation14_spill] sm:$0xff] }
 0x11a   : > { %v1110_v18 = vadd.f32 %v1637_v60, %v2300_v32  ;;  %v944_v45 = vpop.f32.mrf.mxu0  ;;  %v1104_v46 = vpop.f32.mrf.mxu1 }
 0x11b   : > { %1246 = vst.msk [vmem:[%s2308_s18 + $0x90] sm:$0xff] %vm1227_vm0, %v1181_v63  ;;  %1278 = vst.msk [vmem:[%s2308_s18 + $0x190] sm:$0xff] %vm1227_vm0, %v1213_v0  ;;  %v1184_v57 = vadd.f32 %v950_v17, %v2187_v1  ;;  %v945_v35 = vadd.f32 %v2300_v32, %v944_v45  ;;  %v1105_v36 = vadd.f32 %v2300_v32, %v1104_v46  ;;  %v2616_v45 = vld [vmem:[#allocation15_spill] sm:$0xff] }
 0x11c   : > { %v1216_v11 = vadd.f32 %v1110_v18, %v2603_v47  ;;  %v1592_v12 = vpop.f32.mrf.mxu0  ;;  %v1640_v5 = vpop.f32.mrf.mxu1 }
 0x11d   : > { %1249 = vst.msk [vmem:[%s2308_s18 + $0xa8] sm:$0xff] %vm1227_vm0, %v1184_v57  ;;  %v1183_v26 = vadd.f32 %v945_v35, %v2604_v6  ;;  %v1215_v23 = vadd.f32 %v1105_v36, %v2605_v27  ;;  %v960_v1 = vadd.f32 %v1592_v12, %v2300_v32  ;;  %v1120_v24 = vadd.f32 %v1640_v5, %v2300_v32  ;;  %v2617_v57 = vld [vmem:[#allocation16_spill] sm:$0xff]  ;;  %v2618_v5 = vld [vmem:[#allocation17_spill] sm:$0xff] }
 0x11e   : > { %1281 = vst.msk [vmem:[%s2308_s18 + $0x1a8] sm:$0xff] %vm1227_vm0, %v1216_v11  ;;  %v954_v58 = vpop.f32.mrf.mxu0  ;;  %v1114_v4 = vpop.f32.mrf.mxu1 }
 0x11f   : > { %1248 = vst.msk [vmem:[%s2308_s18 + $0xa0] sm:$0xff] %vm1227_vm0, %v1183_v26  ;;  %1280 = vst.msk [vmem:[%s2308_s18 + $0x1a0] sm:$0xff] %vm1227_vm0, %v1215_v23  ;;  %v1186_v16 = vadd.f32 %v960_v1, %v2606_v15  ;;  %v1218_v42 = vadd.f32 %v1120_v24, %v2607_v41  ;;  %v955_v20 = vadd.f32 %v2300_v32, %v954_v58  ;;  %v2619_v26 = vld [vmem:[#allocation18_spill] sm:$0xff] }
 0x120   : > { %v1115_v31 = vadd.f32 %v2300_v32, %v1114_v4  ;;  %v1595_v39 = vpop.f32.mrf.mxu0  ;;  %v1643_v40 = vpop.f32.mrf.mxu1 }
 0x121   : > { %1251 = vst.msk [vmem:[%s2308_s18 + $0xb8] sm:$0xff] %vm1227_vm0, %v1186_v16  ;;  %1283 = vst.msk [vmem:[%s2308_s18 + $0x1b8] sm:$0xff] %vm1227_vm0, %v1218_v42  ;;  %v1185_v56 = vadd.f32 %v955_v20, %v2608_v55  ;;  %v970_v13 = vadd.f32 %v1595_v39, %v2300_v32  ;;  %v1130_v3 = vadd.f32 %v1643_v40, %v2300_v32 }
 0x122   : > { %v1217_v28 = vadd.f32 %v1115_v31, %v2609_v25  ;;  %v964_v7 = vpop.f32.mrf.mxu0  ;;  %v1124_v8 = vpop.f32.mrf.mxu1 }
 0x123   : > { %1250 = vst.msk [vmem:[%s2308_s18 + $0xb0] sm:$0xff] %vm1227_vm0, %v1185_v56  ;;  %v1188_v29 = vadd.f32 %v970_v13, %v2610_v2  ;;  %v1220_v38 = vadd.f32 %v1130_v3, %v2611_v37  ;;  %v965_v21 = vadd.f32 %v2300_v32, %v964_v7  ;;  %v1125_v22 = vadd.f32 %v2300_v32, %v1124_v8 }
 0x124   : > { %1282 = vst.msk [vmem:[%s2308_s18 + $0x1b0] sm:$0xff] %vm1227_vm0, %v1217_v28  ;;  %v1598_v49 = vpop.f32.mrf.mxu0  ;;  %v1646_v50 = vpop.f32.mrf.mxu1 }
 0x125   : > { %1253 = vst.msk [vmem:[%s2308_s18 + $0xc8] sm:$0xff] %vm1227_vm0, %v1188_v29  ;;  %1285 = vst.msk [vmem:[%s2308_s18 + $0x1c8] sm:$0xff] %vm1227_vm0, %v1220_v38  ;;  %v1187_v54 = vadd.f32 %v965_v21, %v2612_v30  ;;  %v1219_v44 = vadd.f32 %v1125_v22, %v2613_v43  ;;  %v980_v51 = vadd.f32 %v1598_v49, %v2300_v32 }
 0x126   : > { %v1140_v52 = vadd.f32 %v1646_v50, %v2300_v32  ;;  %v974_v14 = vpop.f32.mrf.mxu0  ;;  %v1134_v34 = vpop.f32.mrf.mxu1 }
 0x127   : > { %1252 = vst.msk [vmem:[%s2308_s18 + $0xc0] sm:$0xff] %vm1227_vm0, %v1187_v54  ;;  %1284 = vst.msk [vmem:[%s2308_s18 + $0x1c0] sm:$0xff] %vm1227_vm0, %v1219_v44  ;;  %v1190_v62 = vadd.f32 %v980_v51, %v2614_v61  ;;  %v975_v63 = vadd.f32 %v2300_v32, %v974_v14  ;;  %v1135_v0 = vadd.f32 %v2300_v32, %v1134_v34 }
 0x128   : > { %v1222_v60 = vadd.f32 %v1140_v52, %v2615_v59  ;;  %v1601_v17 = vpop.f32.mrf.mxu0  ;;  %v1649_v18 = vpop.f32.mrf.mxu1 }
 0x129   : > { %1255 = vst.msk [vmem:[%s2308_s18 + $0xd8] sm:$0xff] %vm1227_vm0, %v1190_v62  ;;  %v1189_v46 = vadd.f32 %v975_v63, %v2616_v45  ;;  %v1221_v47 = vadd.f32 %v1135_v0, %v2617_v57  ;;  %v990_v11 = vadd.f32 %v1601_v17, %v2300_v32  ;;  %v1150_v35 = vadd.f32 %v1649_v18, %v2300_v32 }
 0x12a   : > { %1287 = vst.msk [vmem:[%s2308_s18 + $0x1d8] sm:$0xff] %vm1227_vm0, %v1222_v60  ;;  %v984_v36 = vpop.f32.mrf.mxu0  ;;  %v1144_v12 = vpop.f32.mrf.mxu1 }
 0x12b   : > { %1254 = vst.msk [vmem:[%s2308_s18 + $0xd0] sm:$0xff] %vm1227_vm0, %v1189_v46  ;;  %1286 = vst.msk [vmem:[%s2308_s18 + $0x1d0] sm:$0xff] %vm1227_vm0, %v1221_v47  ;;  %v1192_v6 = vadd.f32 %v990_v11, %v2618_v5  ;;  %v1224_v27 = vadd.f32 %v1150_v35, %v2619_v26  ;;  %v985_v23 = vadd.f32 %v2300_v32, %v984_v36 }
 0x12c   : > { %v1145_v1 = vadd.f32 %v2300_v32, %v1144_v12  ;;  %v1604_v24 = vpop.f32.mrf.mxu0  ;;  %v1652_v58 = vpop.f32.mrf.mxu1 }
 0x12d   : > { %1257 = vst.msk [vmem:[%s2308_s18 + $0xe8] sm:$0xff] %vm1227_vm0, %v1192_v6  ;;  %1289 = vst.msk [vmem:[%s2308_s18 + $0x1e8] sm:$0xff] %vm1227_vm0, %v1224_v27  ;;  %v1191_v4 = vadd.f32 %v985_v23, %v2277_v19  ;;  %v1000_v16 = vadd.f32 %v1604_v24, %v2300_v32  ;;  %v1160_v41 = vadd.f32 %v1652_v58, %v2300_v32 }
 0x12e   : > { %v1223_v15 = vadd.f32 %v1145_v1, %v2279_v33  ;;  %v994_v42 = vpop.f32.mrf.mxu0  ;;  %v1154_v20 = vpop.f32.mrf.mxu1 }
 0x12f   : > { %1256 = vst.msk [vmem:[%s2308_s18 + $0xe0] sm:$0xff] %vm1227_vm0, %v1191_v4  ;;  %v1194_v31 = vadd.f32 %v1000_v16, %v2287_v48  ;;  %v1226_v39 = vadd.f32 %v1160_v41, %v2289_v53  ;;  %v995_v19 = vadd.f32 %v2300_v32, %v994_v42  ;;  %v1155_v40 = vadd.f32 %v2300_v32, %v1154_v20 }
 0x130   : > { %1288 = vst.msk [vmem:[%s2308_s18 + $0x1e0] sm:$0xff] %vm1227_vm0, %v1223_v15 }
 0x131   : > { %1259 = vst.msk [vmem:[%s2308_s18 + $0xf8] sm:$0xff] %vm1227_vm0, %v1194_v31  ;;  %1291 = vst.msk [vmem:[%s2308_s18 + $0x1f8] sm:$0xff] %vm1227_vm0, %v1226_v39  ;;  %v1193_v33 = vadd.f32 %v995_v19, %v2293_v9  ;;  %v1225_v55 = vadd.f32 %v1155_v40, %v2295_v10 }
 0x133   : > { %1258 = vst.msk [vmem:[%s2308_s18 + $0xf0] sm:$0xff] %vm1227_vm0, %v1193_v33  ;;  %1290 = vst.msk [vmem:[%s2308_s18 + $0x1f0] sm:$0xff] %vm1227_vm0, %v1225_v55 }
 0x134 PF: > { %s16_s25 = sadd.s32 1, %s1763_s25   ;;  %s2620_s21 = smov %s1755_s23 }
 0x135   : > { %p13_p7 = scmp.ge.s32.totalorder %s16_s25, 6   ;;  %s2621_s22 = smov %s1759_s24 }
 0x136   : > { %s2622_s23 = smov %s2625_s26  ;;  %s2623_s24 = smov %s2629_s27 }
 0x137   :  { %15 = sbr.rel (!%p13_p7) target bundleno = 3 (0x3), region = 83 }

</bundles_post_ra>
